<compile_context>
chip_gen: v7x
topology: tpu7x:2x2x1
jax: 0.10.0
libtpu: 0.0.40
codegen_flags: <defaults>
</compile_context>

<pallas_src>
import jax
import jax.numpy as jnp
from jax.experimental import pallas as pl
from jax.experimental.pallas import tpu as pltpu

BN_EPS = 1e-5
C5 = 1500          # PyTorch conv5 / stats channel width
C5P = 1536         # padded to 12 * 128 for lane-dense stores


def _round_up(n, m):
    return ((n + m - 1) // m) * m


# ---------------------------------------------------------------------------
# Fused TDNN stack + stats pooling, one grid step per batch item.
# ---------------------------------------------------------------------------
def _conv_relu_bn(x_bf16, w_ref, b_ref, bn_ref, ksize, dilation):
    """x_bf16: (T_in, Cin) bf16; w_ref: (K, Cin, Cout) bf16;
    b_ref: (1, Cout) f32; bn_ref: (2, Cout) f32 (row 0 = scale, row 1 = shift)."""
    t_in = x_bf16.shape[0]
    t_out = t_in - (ksize - 1) * dilation
    c_out = w_ref.shape[2]
    acc = jnp.zeros((t_out, c_out), jnp.float32)
    for k in range(ksize):                       # static unroll over taps
        off = k * dilation
        acc = acc + jnp.dot(x_bf16[off:off + t_out, :], w_ref[k],
                            preferred_element_type=jnp.float32)
    y = jnp.maximum(acc + b_ref[...], 0.0)       # bias + relu (f32)
    return y * bn_ref[0:1, :] + bn_ref[1:2, :]   # eval BatchNorm (f32)


def _tdnn_stats_kernel(x_ref,
                       w1, b1, g1, w2, b2, g2, w3, b3, g3,
                       w4, b4, g4, w5, b5, g5,
                       out_ref):
    # x_ref: (1, T0, Cin) bf16 ; out_ref: (1, 2, C5P) f32 (row 0 mean, row 1 std)
    h = x_ref[0]                                             # (T0, Cin) bf16
    h = _conv_relu_bn(h, w1, b1, g1, ksize=5, dilation=1)
    h = _conv_relu_bn(h.astype(jnp.bfloat16), w2, b2, g2, ksize=5, dilation=2)
    h = _conv_relu_bn(h.astype(jnp.bfloat16), w3, b3, g3, ksize=7, dilation=3)
    h = _conv_relu_bn(h.astype(jnp.bfloat16), w4, b4, g4, ksize=1, dilation=1)
    h = _conv_relu_bn(h.astype(jnp.bfloat16), w5, b5, g5, ksize=1, dilation=1)
    # stats pooling in f32 (padded channels 1500:1536 are exactly zero).
    t5 = h.shape[0]
    mean = jnp.mean(h, axis=0, keepdims=True)                            # (1, C5P)
    var = jnp.sum((h - mean) ** 2, axis=0, keepdims=True) / (t5 - 1)     # unbiased (torch.std)
    std = jnp.sqrt(var)
    out_ref[0] = jnp.concatenate([mean, std], axis=0).astype(out_ref.dtype)


def tdnn_stats_pallas(x_btc_bf16, params):
    B, T0, Cin = x_btc_bf16.shape
    in_specs = [pl.BlockSpec((1, T0, Cin), lambda b: (b, 0, 0))]
    args = [x_btc_bf16]
    for layer in ("1", "2", "3", "4", "5"):
        w = params["w" + layer]
        bias = params["b" + layer]
        bn = params["g" + layer]
        in_specs.append(pl.BlockSpec(w.shape, lambda b: (0, 0, 0)))    # weights stay resident
        in_specs.append(pl.BlockSpec(bias.shape, lambda b: (0, 0)))
        in_specs.append(pl.BlockSpec(bn.shape, lambda b: (0, 0)))
        args.extend([w, bias, bn])

    return pl.pallas_call(
        _tdnn_stats_kernel,
        out_shape=jax.ShapeDtypeStruct((B, 2, C5P), jnp.float32),
        grid=(B,),
        in_specs=in_specs,
        out_specs=pl.BlockSpec((1, 2, C5P), lambda b: (b, 0, 0)),
        compiler_params=pltpu.CompilerParams(
            dimension_semantics=("parallel",),          # batch items are independent (v7x: 2 TCs)
            vmem_limit_bytes=48 * 1024 * 1024,          # bf16 weight set ~8.6 MB, double-buffered
        ),
    )(*args)


# ---------------------------------------------------------------------------
# FC head: fc1(split into mean/std halves) -> relu -> bn -> fc2 -> relu -> bn -> fc3
# Whole batch in one call (M = B).
# ---------------------------------------------------------------------------
def _fc_head_kernel(mean_ref, std_ref, w6m, w6s, b6, g6, w7, b7, g7, w8, b8, o_ref):
    mean = mean_ref[...].astype(jnp.bfloat16)   # (B, C5P)
    std = std_ref[...].astype(jnp.bfloat16)     # (B, C5P)
    h = (jnp.dot(mean, w6m[...], preferred_element_type=jnp.float32)
         + jnp.dot(std, w6s[...], preferred_element_type=jnp.float32)
         + b6[...])
    h = jnp.maximum(h, 0.0) * g6[0:1, :] + g6[1:2, :]
    h = jnp.dot(h.astype(jnp.bfloat16), w7[...],
                preferred_element_type=jnp.float32) + b7[...]
    h = jnp.maximum(h, 0.0) * g7[0:1, :] + g7[1:2, :]
    out = jnp.dot(h.astype(jnp.bfloat16), w8[...],
                  preferred_element_type=jnp.float32) + b8[...]
    o_ref[...] = out.astype(o_ref.dtype)


def fc_head_pallas(mean, std, params):
    B = mean.shape[0]
    ncp = params["w8"].shape[1]
    vmem_spec = lambda: pl.BlockSpec(memory_space=pltpu.MemorySpace.VMEM)
    return pl.pallas_call(
        _fc_head_kernel,
        out_shape=jax.ShapeDtypeStruct((B, ncp), jnp.float32),
        in_specs=[vmem_spec() for _ in range(11)],
        out_specs=vmem_spec(),
    )(mean, std,
      params["w6m"], params["w6s"], params["b6"], params["g6"],
      params["w7"], params["b7"], params["g7"],
      params["w8"], params["b8"])


# ---------------------------------------------------------------------------
# Forward
# ---------------------------------------------------------------------------
def xvec_tdnn_forward(x_nct, params, eps, n_classes):
    # eval mode: dropout is identity.
    # TODO(synk): training-only Gaussian-noise branch (x += noise * eps) not implemented (eval forward).
    del eps
    x = jnp.transpose(x_nct, (0, 2, 1)).astype(jnp.bfloat16)   # NCW -> (B, T, Cin) channels-last
    stats = tdnn_stats_pallas(x, params)                       # (B, 2, C5P) f32
    mean = stats[:, 0, :]
    std = stats[:, 1, :]
    logits_padded = fc_head_pallas(mean, std, params)          # (B, NCP)
    return logits_padded[:, :n_classes]


# ---------------------------------------------------------------------------
# Parameters (weights stored bf16 channels-last; biases / BN affine in f32)
# ---------------------------------------------------------------------------
def init_params(key, input_dim, n_classes):
    ncp = _round_up(n_classes, 128)
    keys = jax.random.split(key, 16)

    def rnd(k, shape, scale=0.05):
        return jax.random.normal(k, shape, jnp.float32) * scale

    def bn_affine(c):
        # eval BatchNorm1d(affine=False): y = (x - rm) / sqrt(rv + eps).
        # Freshly-initialized running stats: rm = 0, rv = 1.
        rm = jnp.zeros((c,), jnp.float32)
        rv = jnp.ones((c,), jnp.float32)
        scale = 1.0 / jnp.sqrt(rv + BN_EPS)
        shift = -rm * scale
        return jnp.stack([scale, shift], axis=0)   # (2, c)

    p = {}
    # Conv1d weights: PyTorch (Cout, Cin, K) stored here as (K, Cin, Cout) bf16.
    p["w1"] = rnd(keys[0], (5, input_dim, 512)).astype(jnp.bfloat16)
    p["b1"] = rnd(keys[1], (1, 512)); p["g1"] = bn_affine(512)
    p["w2"] = rnd(keys[2], (5, 512, 512)).astype(jnp.bfloat16)
    p["b2"] = rnd(keys[3], (1, 512)); p["g2"] = bn_affine(512)
    p["w3"] = rnd(keys[4], (7, 512, 512)).astype(jnp.bfloat16)
    p["b3"] = rnd(keys[5], (1, 512)); p["g3"] = bn_affine(512)
    p["w4"] = rnd(keys[6], (1, 512, 512)).astype(jnp.bfloat16)
    p["b4"] = rnd(keys[7], (1, 512)); p["g4"] = bn_affine(512)
    # conv5: channels padded 1500 -> 1536 (zero weights/bias/BN for pad lanes).
    w5 = rnd(keys[8], (1, 512, C5))
    p["w5"] = jnp.pad(w5, ((0, 0), (0, 0), (0, C5P - C5))).astype(jnp.bfloat16)
    p["b5"] = jnp.pad(rnd(keys[9], (1, C5)), ((0, 0), (0, C5P - C5)))
    p["g5"] = jnp.pad(bn_affine(C5), ((0, 0), (0, C5P - C5)))
    # fc1: PyTorch (512, 3000) stored transposed, split into mean/std halves, rows padded.
    w6 = rnd(keys[10], (2 * C5, 512))
    p["w6m"] = jnp.pad(w6[:C5], ((0, C5P - C5), (0, 0))).astype(jnp.bfloat16)
    p["w6s"] = jnp.pad(w6[C5:], ((0, C5P - C5), (0, 0))).astype(jnp.bfloat16)
    p["b6"] = rnd(keys[11], (1, 512)); p["g6"] = bn_affine(512)
    p["w7"] = rnd(keys[12], (512, 512)).astype(jnp.bfloat16)
    p["b7"] = rnd(keys[13], (1, 512)); p["g7"] = bn_affine(512)
    # fc3: class dim padded to a multiple of 128 for lane-dense output.
    w8 = rnd(keys[14], (512, n_classes))
    p["w8"] = jnp.pad(w8, ((0, 0), (0, ncp - n_classes))).astype(jnp.bfloat16)
    p["b8"] = jnp.pad(rnd(keys[15], (1, n_classes)), ((0, 0), (0, ncp - n_classes)))
    return p


if __name__ == "__main__":
    # T shrinks by 30 across the TDNN stack -> 10 frames for stats pooling.
    B, input_dim, T, n_classes = 2, 24, 40, 16
    key = jax.random.PRNGKey(0)
    k_x, k_p = jax.random.split(key)
    x = jax.random.normal(k_x, (B, input_dim, T), jnp.float32)   # NCW, like PyTorch
    params = init_params(k_p, input_dim, n_classes)
    eps = jnp.float32(0.0)   # only used by the training-time noise branch

    out = xvec_tdnn_forward(x, params, eps, n_classes)
    out = jax.block_until_ready(out)
    assert out.shape == (B, n_classes)
    assert bool(jnp.all(jnp.isfinite(out)))
    print("KERNEL_OK")
</pallas_src>

<mosaic_0001>
module attributes {stable_mosaic.version = 11 : i64} {
  func.func @_tdnn_stats_kernel(%arg0: i32, %arg1: memref<1x40x24xbf16, #tpu.memory_space<vmem>>, %arg2: memref<5x24x512xbf16, #tpu.memory_space<vmem>>, %arg3: memref<1x512xf32, #tpu.memory_space<vmem>>, %arg4: memref<2x512xf32, #tpu.memory_space<vmem>>, %arg5: memref<5x512x512xbf16, #tpu.memory_space<vmem>>, %arg6: memref<1x512xf32, #tpu.memory_space<vmem>>, %arg7: memref<2x512xf32, #tpu.memory_space<vmem>>, %arg8: memref<7x512x512xbf16, #tpu.memory_space<vmem>>, %arg9: memref<1x512xf32, #tpu.memory_space<vmem>>, %arg10: memref<2x512xf32, #tpu.memory_space<vmem>>, %arg11: memref<1x512x512xbf16, #tpu.memory_space<vmem>>, %arg12: memref<1x512xf32, #tpu.memory_space<vmem>>, %arg13: memref<2x512xf32, #tpu.memory_space<vmem>>, %arg14: memref<1x512x1536xbf16, #tpu.memory_space<vmem>>, %arg15: memref<1x1536xf32, #tpu.memory_space<vmem>>, %arg16: memref<2x1536xf32, #tpu.memory_space<vmem>>, %arg17: memref<1x2x1536xf32, #tpu.memory_space<vmem>>) attributes {dimension_semantics = [#tpu.dimension_semantics<parallel>], iteration_bounds = array<i64: 2>, scalar_prefetch = 0 : i64, scratch_operands = 0 : i64, tpu.core_type = #tpu.core_type<tc>, window_params = [{transform_indices = @transform_0, window_bounds = array<i64: 1, 40, 24>}, {pipeline_mode = #tpu.pipeline_mode<synchronous>, transform_indices = @transform_1, window_bounds = array<i64: 5, 24, 512>}, {pipeline_mode = #tpu.pipeline_mode<synchronous>, transform_indices = @transform_2, window_bounds = array<i64: 1, 512>}, {pipeline_mode = #tpu.pipeline_mode<synchronous>, transform_indices = @transform_3, window_bounds = array<i64: 2, 512>}, {pipeline_mode = #tpu.pipeline_mode<synchronous>, transform_indices = @transform_4, window_bounds = array<i64: 5, 512, 512>}, {pipeline_mode = #tpu.pipeline_mode<synchronous>, transform_indices = @transform_5, window_bounds = array<i64: 1, 512>}, {pipeline_mode = #tpu.pipeline_mode<synchronous>, transform_indices = @transform_6, window_bounds = array<i64: 2, 512>}, {pipeline_mode = #tpu.pipeline_mode<synchronous>, transform_indices = @transform_7, window_bounds = array<i64: 7, 512, 512>}, {pipeline_mode = #tpu.pipeline_mode<synchronous>, transform_indices = @transform_8, window_bounds = array<i64: 1, 512>}, {pipeline_mode = #tpu.pipeline_mode<synchronous>, transform_indices = @transform_9, window_bounds = array<i64: 2, 512>}, {pipeline_mode = #tpu.pipeline_mode<synchronous>, transform_indices = @transform_10, window_bounds = array<i64: 1, 512, 512>}, {pipeline_mode = #tpu.pipeline_mode<synchronous>, transform_indices = @transform_11, window_bounds = array<i64: 1, 512>}, {pipeline_mode = #tpu.pipeline_mode<synchronous>, transform_indices = @transform_12, window_bounds = array<i64: 2, 512>}, {pipeline_mode = #tpu.pipeline_mode<synchronous>, transform_indices = @transform_13, window_bounds = array<i64: 1, 512, 1536>}, {pipeline_mode = #tpu.pipeline_mode<synchronous>, transform_indices = @transform_14, window_bounds = array<i64: 1, 1536>}, {pipeline_mode = #tpu.pipeline_mode<synchronous>, transform_indices = @transform_15, window_bounds = array<i64: 2, 1536>}, {transform_indices = @transform_16, window_bounds = array<i64: 1, 2, 1536>}]} {
    %c0 = arith.constant 0 : index
    %c0_0 = arith.constant 0 : index
    %c0_1 = arith.constant 0 : index
    %0 = vector.load %arg1[%c0, %c0_0, %c0_1] : memref<1x40x24xbf16, #tpu.memory_space<vmem>>, vector<1x40x24xbf16>
    %1 = vector.shape_cast %0 : vector<1x40x24xbf16> to vector<40x24xbf16>
    %cst = arith.constant 0.000000e+00 : f32
    %2 = vector.broadcast %cst : f32 to vector<36x512xf32>
    %3 = vector.extract_strided_slice %1 {offsets = [0, 0], sizes = [36, 24], strides = [1, 1]} : vector<40x24xbf16> to vector<36x24xbf16>
    %c0_2 = arith.constant 0 : index
    %c0_3 = arith.constant 0 : index
    %c0_4 = arith.constant 0 : index
    %4 = vector.load %arg2[%c0_2, %c0_3, %c0_4] : memref<5x24x512xbf16, #tpu.memory_space<vmem>>, vector<1x24x512xbf16>
    %5 = vector.shape_cast %4 : vector<1x24x512xbf16> to vector<24x512xbf16>
    %cst_5 = arith.constant dense<0.000000e+00> : vector<36x512xf32>
    %6 = tpu.matmul %3, %5, %cst_5 {dimension_numbers = #tpu.dot_dimension_numbers<[1], [0], [0], [1], [0, 0, 1, 1], [], []>} : vector<36x24xbf16>, vector<24x512xbf16>, vector<36x512xf32> -> vector<36x512xf32>
    %7 = arith.addf %2, %6 : vector<36x512xf32>
    %8 = vector.extract_strided_slice %1 {offsets = [1, 0], sizes = [36, 24], strides = [1, 1]} : vector<40x24xbf16> to vector<36x24xbf16>
    %c1 = arith.constant 1 : index
    %c0_6 = arith.constant 0 : index
    %c0_7 = arith.constant 0 : index
    %9 = vector.load %arg2[%c1, %c0_6, %c0_7] : memref<5x24x512xbf16, #tpu.memory_space<vmem>>, vector<1x24x512xbf16>
    %10 = vector.shape_cast %9 : vector<1x24x512xbf16> to vector<24x512xbf16>
    %cst_8 = arith.constant dense<0.000000e+00> : vector<36x512xf32>
    %11 = tpu.matmul %8, %10, %cst_8 {dimension_numbers = #tpu.dot_dimension_numbers<[1], [0], [0], [1], [0, 0, 1, 1], [], []>} : vector<36x24xbf16>, vector<24x512xbf16>, vector<36x512xf32> -> vector<36x512xf32>
    %12 = arith.addf %7, %11 : vector<36x512xf32>
    %13 = vector.extract_strided_slice %1 {offsets = [2, 0], sizes = [36, 24], strides = [1, 1]} : vector<40x24xbf16> to vector<36x24xbf16>
    %c2 = arith.constant 2 : index
    %c0_9 = arith.constant 0 : index
    %c0_10 = arith.constant 0 : index
    %14 = vector.load %arg2[%c2, %c0_9, %c0_10] : memref<5x24x512xbf16, #tpu.memory_space<vmem>>, vector<1x24x512xbf16>
    %15 = vector.shape_cast %14 : vector<1x24x512xbf16> to vector<24x512xbf16>
    %cst_11 = arith.constant dense<0.000000e+00> : vector<36x512xf32>
    %16 = tpu.matmul %13, %15, %cst_11 {dimension_numbers = #tpu.dot_dimension_numbers<[1], [0], [0], [1], [0, 0, 1, 1], [], []>} : vector<36x24xbf16>, vector<24x512xbf16>, vector<36x512xf32> -> vector<36x512xf32>
    %17 = arith.addf %12, %16 : vector<36x512xf32>
    %18 = vector.extract_strided_slice %1 {offsets = [3, 0], sizes = [36, 24], strides = [1, 1]} : vector<40x24xbf16> to vector<36x24xbf16>
    %c3 = arith.constant 3 : index
    %c0_12 = arith.constant 0 : index
    %c0_13 = arith.constant 0 : index
    %19 = vector.load %arg2[%c3, %c0_12, %c0_13] : memref<5x24x512xbf16, #tpu.memory_space<vmem>>, vector<1x24x512xbf16>
    %20 = vector.shape_cast %19 : vector<1x24x512xbf16> to vector<24x512xbf16>
    %cst_14 = arith.constant dense<0.000000e+00> : vector<36x512xf32>
    %21 = tpu.matmul %18, %20, %cst_14 {dimension_numbers = #tpu.dot_dimension_numbers<[1], [0], [0], [1], [0, 0, 1, 1], [], []>} : vector<36x24xbf16>, vector<24x512xbf16>, vector<36x512xf32> -> vector<36x512xf32>
    %22 = arith.addf %17, %21 : vector<36x512xf32>
    %23 = vector.extract_strided_slice %1 {offsets = [4, 0], sizes = [36, 24], strides = [1, 1]} : vector<40x24xbf16> to vector<36x24xbf16>
    %c4 = arith.constant 4 : index
    %c0_15 = arith.constant 0 : index
    %c0_16 = arith.constant 0 : index
    %24 = vector.load %arg2[%c4, %c0_15, %c0_16] : memref<5x24x512xbf16, #tpu.memory_space<vmem>>, vector<1x24x512xbf16>
    %25 = vector.shape_cast %24 : vector<1x24x512xbf16> to vector<24x512xbf16>
    %cst_17 = arith.constant dense<0.000000e+00> : vector<36x512xf32>
    %26 = tpu.matmul %23, %25, %cst_17 {dimension_numbers = #tpu.dot_dimension_numbers<[1], [0], [0], [1], [0, 0, 1, 1], [], []>} : vector<36x24xbf16>, vector<24x512xbf16>, vector<36x512xf32> -> vector<36x512xf32>
    %27 = arith.addf %22, %26 : vector<36x512xf32>
    %c0_18 = arith.constant 0 : index
    %c0_19 = arith.constant 0 : index
    %28 = vector.load %arg3[%c0_18, %c0_19] : memref<1x512xf32, #tpu.memory_space<vmem>>, vector<1x512xf32>
    %29 = vector.broadcast %28 : vector<1x512xf32> to vector<36x512xf32>
    %30 = arith.addf %27, %29 : vector<36x512xf32>
    %cst_20 = arith.constant 0.000000e+00 : f32
    %31 = vector.broadcast %cst_20 : f32 to vector<36x512xf32>
    %32 = arith.maximumf %30, %31 : vector<36x512xf32>
    %c0_21 = arith.constant 0 : index
    %c0_22 = arith.constant 0 : index
    %33 = vector.load %arg4[%c0_21, %c0_22] : memref<2x512xf32, #tpu.memory_space<vmem>>, vector<1x512xf32>
    %34 = vector.broadcast %33 : vector<1x512xf32> to vector<36x512xf32>
    %35 = arith.mulf %32, %34 : vector<36x512xf32>
    %c1_23 = arith.constant 1 : index
    %c0_24 = arith.constant 0 : index
    %36 = vector.load %arg4[%c1_23, %c0_24] : memref<2x512xf32, #tpu.memory_space<vmem>>, vector<1x512xf32>
    %37 = vector.broadcast %36 : vector<1x512xf32> to vector<36x512xf32>
    %38 = arith.addf %35, %37 : vector<36x512xf32>
    %39 = arith.truncf %38 : vector<36x512xf32> to vector<36x512xbf16>
    %cst_25 = arith.constant 0.000000e+00 : f32
    %40 = vector.broadcast %cst_25 : f32 to vector<28x512xf32>
    %41 = vector.extract_strided_slice %39 {offsets = [0, 0], sizes = [28, 512], strides = [1, 1]} : vector<36x512xbf16> to vector<28x512xbf16>
    %c0_26 = arith.constant 0 : index
    %c0_27 = arith.constant 0 : index
    %c0_28 = arith.constant 0 : index
    %42 = vector.load %arg5[%c0_26, %c0_27, %c0_28] : memref<5x512x512xbf16, #tpu.memory_space<vmem>>, vector<1x512x512xbf16>
    %43 = vector.shape_cast %42 : vector<1x512x512xbf16> to vector<512x512xbf16>
    %cst_29 = arith.constant dense<0.000000e+00> : vector<28x512xf32>
    %44 = tpu.matmul %41, %43, %cst_29 {dimension_numbers = #tpu.dot_dimension_numbers<[1], [0], [0], [1], [0, 0, 1, 1], [], []>} : vector<28x512xbf16>, vector<512x512xbf16>, vector<28x512xf32> -> vector<28x512xf32>
    %45 = arith.addf %40, %44 : vector<28x512xf32>
    %46 = vector.extract_strided_slice %39 {offsets = [2, 0], sizes = [28, 512], strides = [1, 1]} : vector<36x512xbf16> to vector<28x512xbf16>
    %c1_30 = arith.constant 1 : index
    %c0_31 = arith.constant 0 : index
    %c0_32 = arith.constant 0 : index
    %47 = vector.load %arg5[%c1_30, %c0_31, %c0_32] : memref<5x512x512xbf16, #tpu.memory_space<vmem>>, vector<1x512x512xbf16>
    %48 = vector.shape_cast %47 : vector<1x512x512xbf16> to vector<512x512xbf16>
    %cst_33 = arith.constant dense<0.000000e+00> : vector<28x512xf32>
    %49 = tpu.matmul %46, %48, %cst_33 {dimension_numbers = #tpu.dot_dimension_numbers<[1], [0], [0], [1], [0, 0, 1, 1], [], []>} : vector<28x512xbf16>, vector<512x512xbf16>, vector<28x512xf32> -> vector<28x512xf32>
    %50 = arith.addf %45, %49 : vector<28x512xf32>
    %51 = vector.extract_strided_slice %39 {offsets = [4, 0], sizes = [28, 512], strides = [1, 1]} : vector<36x512xbf16> to vector<28x512xbf16>
    %c2_34 = arith.constant 2 : index
    %c0_35 = arith.constant 0 : index
    %c0_36 = arith.constant 0 : index
    %52 = vector.load %arg5[%c2_34, %c0_35, %c0_36] : memref<5x512x512xbf16, #tpu.memory_space<vmem>>, vector<1x512x512xbf16>
    %53 = vector.shape_cast %52 : vector<1x512x512xbf16> to vector<512x512xbf16>
    %cst_37 = arith.constant dense<0.000000e+00> : vector<28x512xf32>
    %54 = tpu.matmul %51, %53, %cst_37 {dimension_numbers = #tpu.dot_dimension_numbers<[1], [0], [0], [1], [0, 0, 1, 1], [], []>} : vector<28x512xbf16>, vector<512x512xbf16>, vector<28x512xf32> -> vector<28x512xf32>
    %55 = arith.addf %50, %54 : vector<28x512xf32>
    %56 = vector.extract_strided_slice %39 {offsets = [6, 0], sizes = [28, 512], strides = [1, 1]} : vector<36x512xbf16> to vector<28x512xbf16>
    %c3_38 = arith.constant 3 : index
    %c0_39 = arith.constant 0 : index
    %c0_40 = arith.constant 0 : index
    %57 = vector.load %arg5[%c3_38, %c0_39, %c0_40] : memref<5x512x512xbf16, #tpu.memory_space<vmem>>, vector<1x512x512xbf16>
    %58 = vector.shape_cast %57 : vector<1x512x512xbf16> to vector<512x512xbf16>
    %cst_41 = arith.constant dense<0.000000e+00> : vector<28x512xf32>
    %59 = tpu.matmul %56, %58, %cst_41 {dimension_numbers = #tpu.dot_dimension_numbers<[1], [0], [0], [1], [0, 0, 1, 1], [], []>} : vector<28x512xbf16>, vector<512x512xbf16>, vector<28x512xf32> -> vector<28x512xf32>
    %60 = arith.addf %55, %59 : vector<28x512xf32>
    %61 = vector.extract_strided_slice %39 {offsets = [8, 0], sizes = [28, 512], strides = [1, 1]} : vector<36x512xbf16> to vector<28x512xbf16>
    %c4_42 = arith.constant 4 : index
    %c0_43 = arith.constant 0 : index
    %c0_44 = arith.constant 0 : index
    %62 = vector.load %arg5[%c4_42, %c0_43, %c0_44] : memref<5x512x512xbf16, #tpu.memory_space<vmem>>, vector<1x512x512xbf16>
    %63 = vector.shape_cast %62 : vector<1x512x512xbf16> to vector<512x512xbf16>
    %cst_45 = arith.constant dense<0.000000e+00> : vector<28x512xf32>
    %64 = tpu.matmul %61, %63, %cst_45 {dimension_numbers = #tpu.dot_dimension_numbers<[1], [0], [0], [1], [0, 0, 1, 1], [], []>} : vector<28x512xbf16>, vector<512x512xbf16>, vector<28x512xf32> -> vector<28x512xf32>
    %65 = arith.addf %60, %64 : vector<28x512xf32>
    %c0_46 = arith.constant 0 : index
    %c0_47 = arith.constant 0 : index
    %66 = vector.load %arg6[%c0_46, %c0_47] : memref<1x512xf32, #tpu.memory_space<vmem>>, vector<1x512xf32>
    %67 = vector.broadcast %66 : vector<1x512xf32> to vector<28x512xf32>
    %68 = arith.addf %65, %67 : vector<28x512xf32>
    %cst_48 = arith.constant 0.000000e+00 : f32
    %69 = vector.broadcast %cst_48 : f32 to vector<28x512xf32>
    %70 = arith.maximumf %68, %69 : vector<28x512xf32>
    %c0_49 = arith.constant 0 : index
    %c0_50 = arith.constant 0 : index
    %71 = vector.load %arg7[%c0_49, %c0_50] : memref<2x512xf32, #tpu.memory_space<vmem>>, vector<1x512xf32>
    %72 = vector.broadcast %71 : vector<1x512xf32> to vector<28x512xf32>
    %73 = arith.mulf %70, %72 : vector<28x512xf32>
    %c1_51 = arith.constant 1 : index
    %c0_52 = arith.constant 0 : index
    %74 = vector.load %arg7[%c1_51, %c0_52] : memref<2x512xf32, #tpu.memory_space<vmem>>, vector<1x512xf32>
    %75 = vector.broadcast %74 : vector<1x512xf32> to vector<28x512xf32>
    %76 = arith.addf %73, %75 : vector<28x512xf32>
    %77 = arith.truncf %76 : vector<28x512xf32> to vector<28x512xbf16>
    %cst_53 = arith.constant 0.000000e+00 : f32
    %78 = vector.broadcast %cst_53 : f32 to vector<10x512xf32>
    %79 = vector.extract_strided_slice %77 {offsets = [0, 0], sizes = [10, 512], strides = [1, 1]} : vector<28x512xbf16> to vector<10x512xbf16>
    %c0_54 = arith.constant 0 : index
    %c0_55 = arith.constant 0 : index
    %c0_56 = arith.constant 0 : index
    %80 = vector.load %arg8[%c0_54, %c0_55, %c0_56] : memref<7x512x512xbf16, #tpu.memory_space<vmem>>, vector<1x512x512xbf16>
    %81 = vector.shape_cast %80 : vector<1x512x512xbf16> to vector<512x512xbf16>
    %cst_57 = arith.constant dense<0.000000e+00> : vector<10x512xf32>
    %82 = tpu.matmul %79, %81, %cst_57 {dimension_numbers = #tpu.dot_dimension_numbers<[1], [0], [0], [1], [0, 0, 1, 1], [], []>} : vector<10x512xbf16>, vector<512x512xbf16>, vector<10x512xf32> -> vector<10x512xf32>
    %83 = arith.addf %78, %82 : vector<10x512xf32>
    %84 = vector.extract_strided_slice %77 {offsets = [3, 0], sizes = [10, 512], strides = [1, 1]} : vector<28x512xbf16> to vector<10x512xbf16>
    %c1_58 = arith.constant 1 : index
    %c0_59 = arith.constant 0 : index
    %c0_60 = arith.constant 0 : index
    %85 = vector.load %arg8[%c1_58, %c0_59, %c0_60] : memref<7x512x512xbf16, #tpu.memory_space<vmem>>, vector<1x512x512xbf16>
    %86 = vector.shape_cast %85 : vector<1x512x512xbf16> to vector<512x512xbf16>
    %cst_61 = arith.constant dense<0.000000e+00> : vector<10x512xf32>
    %87 = tpu.matmul %84, %86, %cst_61 {dimension_numbers = #tpu.dot_dimension_numbers<[1], [0], [0], [1], [0, 0, 1, 1], [], []>} : vector<10x512xbf16>, vector<512x512xbf16>, vector<10x512xf32> -> vector<10x512xf32>
    %88 = arith.addf %83, %87 : vector<10x512xf32>
    %89 = vector.extract_strided_slice %77 {offsets = [6, 0], sizes = [10, 512], strides = [1, 1]} : vector<28x512xbf16> to vector<10x512xbf16>
    %c2_62 = arith.constant 2 : index
    %c0_63 = arith.constant 0 : index
    %c0_64 = arith.constant 0 : index
    %90 = vector.load %arg8[%c2_62, %c0_63, %c0_64] : memref<7x512x512xbf16, #tpu.memory_space<vmem>>, vector<1x512x512xbf16>
    %91 = vector.shape_cast %90 : vector<1x512x512xbf16> to vector<512x512xbf16>
    %cst_65 = arith.constant dense<0.000000e+00> : vector<10x512xf32>
    %92 = tpu.matmul %89, %91, %cst_65 {dimension_numbers = #tpu.dot_dimension_numbers<[1], [0], [0], [1], [0, 0, 1, 1], [], []>} : vector<10x512xbf16>, vector<512x512xbf16>, vector<10x512xf32> -> vector<10x512xf32>
    %93 = arith.addf %88, %92 : vector<10x512xf32>
    %94 = vector.extract_strided_slice %77 {offsets = [9, 0], sizes = [10, 512], strides = [1, 1]} : vector<28x512xbf16> to vector<10x512xbf16>
    %c3_66 = arith.constant 3 : index
    %c0_67 = arith.constant 0 : index
    %c0_68 = arith.constant 0 : index
    %95 = vector.load %arg8[%c3_66, %c0_67, %c0_68] : memref<7x512x512xbf16, #tpu.memory_space<vmem>>, vector<1x512x512xbf16>
    %96 = vector.shape_cast %95 : vector<1x512x512xbf16> to vector<512x512xbf16>
    %cst_69 = arith.constant dense<0.000000e+00> : vector<10x512xf32>
    %97 = tpu.matmul %94, %96, %cst_69 {dimension_numbers = #tpu.dot_dimension_numbers<[1], [0], [0], [1], [0, 0, 1, 1], [], []>} : vector<10x512xbf16>, vector<512x512xbf16>, vector<10x512xf32> -> vector<10x512xf32>
    %98 = arith.addf %93, %97 : vector<10x512xf32>
    %99 = vector.extract_strided_slice %77 {offsets = [12, 0], sizes = [10, 512], strides = [1, 1]} : vector<28x512xbf16> to vector<10x512xbf16>
    %c4_70 = arith.constant 4 : index
    %c0_71 = arith.constant 0 : index
    %c0_72 = arith.constant 0 : index
    %100 = vector.load %arg8[%c4_70, %c0_71, %c0_72] : memref<7x512x512xbf16, #tpu.memory_space<vmem>>, vector<1x512x512xbf16>
    %101 = vector.shape_cast %100 : vector<1x512x512xbf16> to vector<512x512xbf16>
    %cst_73 = arith.constant dense<0.000000e+00> : vector<10x512xf32>
    %102 = tpu.matmul %99, %101, %cst_73 {dimension_numbers = #tpu.dot_dimension_numbers<[1], [0], [0], [1], [0, 0, 1, 1], [], []>} : vector<10x512xbf16>, vector<512x512xbf16>, vector<10x512xf32> -> vector<10x512xf32>
    %103 = arith.addf %98, %102 : vector<10x512xf32>
    %104 = vector.extract_strided_slice %77 {offsets = [15, 0], sizes = [10, 512], strides = [1, 1]} : vector<28x512xbf16> to vector<10x512xbf16>
    %c5 = arith.constant 5 : index
    %c0_74 = arith.constant 0 : index
    %c0_75 = arith.constant 0 : index
    %105 = vector.load %arg8[%c5, %c0_74, %c0_75] : memref<7x512x512xbf16, #tpu.memory_space<vmem>>, vector<1x512x512xbf16>
    %106 = vector.shape_cast %105 : vector<1x512x512xbf16> to vector<512x512xbf16>
    %cst_76 = arith.constant dense<0.000000e+00> : vector<10x512xf32>
    %107 = tpu.matmul %104, %106, %cst_76 {dimension_numbers = #tpu.dot_dimension_numbers<[1], [0], [0], [1], [0, 0, 1, 1], [], []>} : vector<10x512xbf16>, vector<512x512xbf16>, vector<10x512xf32> -> vector<10x512xf32>
    %108 = arith.addf %103, %107 : vector<10x512xf32>
    %109 = vector.extract_strided_slice %77 {offsets = [18, 0], sizes = [10, 512], strides = [1, 1]} : vector<28x512xbf16> to vector<10x512xbf16>
    %c6 = arith.constant 6 : index
    %c0_77 = arith.constant 0 : index
    %c0_78 = arith.constant 0 : index
    %110 = vector.load %arg8[%c6, %c0_77, %c0_78] : memref<7x512x512xbf16, #tpu.memory_space<vmem>>, vector<1x512x512xbf16>
    %111 = vector.shape_cast %110 : vector<1x512x512xbf16> to vector<512x512xbf16>
    %cst_79 = arith.constant dense<0.000000e+00> : vector<10x512xf32>
    %112 = tpu.matmul %109, %111, %cst_79 {dimension_numbers = #tpu.dot_dimension_numbers<[1], [0], [0], [1], [0, 0, 1, 1], [], []>} : vector<10x512xbf16>, vector<512x512xbf16>, vector<10x512xf32> -> vector<10x512xf32>
    %113 = arith.addf %108, %112 : vector<10x512xf32>
    %c0_80 = arith.constant 0 : index
    %c0_81 = arith.constant 0 : index
    %114 = vector.load %arg9[%c0_80, %c0_81] : memref<1x512xf32, #tpu.memory_space<vmem>>, vector<1x512xf32>
    %115 = vector.broadcast %114 : vector<1x512xf32> to vector<10x512xf32>
    %116 = arith.addf %113, %115 : vector<10x512xf32>
    %cst_82 = arith.constant 0.000000e+00 : f32
    %117 = vector.broadcast %cst_82 : f32 to vector<10x512xf32>
    %118 = arith.maximumf %116, %117 : vector<10x512xf32>
    %c0_83 = arith.constant 0 : index
    %c0_84 = arith.constant 0 : index
    %119 = vector.load %arg10[%c0_83, %c0_84] : memref<2x512xf32, #tpu.memory_space<vmem>>, vector<1x512xf32>
    %120 = vector.broadcast %119 : vector<1x512xf32> to vector<10x512xf32>
    %121 = arith.mulf %118, %120 : vector<10x512xf32>
    %c1_85 = arith.constant 1 : index
    %c0_86 = arith.constant 0 : index
    %122 = vector.load %arg10[%c1_85, %c0_86] : memref<2x512xf32, #tpu.memory_space<vmem>>, vector<1x512xf32>
    %123 = vector.broadcast %122 : vector<1x512xf32> to vector<10x512xf32>
    %124 = arith.addf %121, %123 : vector<10x512xf32>
    %125 = arith.truncf %124 : vector<10x512xf32> to vector<10x512xbf16>
    %cst_87 = arith.constant 0.000000e+00 : f32
    %126 = vector.broadcast %cst_87 : f32 to vector<10x512xf32>
    %c0_88 = arith.constant 0 : index
    %c0_89 = arith.constant 0 : index
    %c0_90 = arith.constant 0 : index
    %127 = vector.load %arg11[%c0_88, %c0_89, %c0_90] : memref<1x512x512xbf16, #tpu.memory_space<vmem>>, vector<1x512x512xbf16>
    %128 = vector.shape_cast %127 : vector<1x512x512xbf16> to vector<512x512xbf16>
    %cst_91 = arith.constant dense<0.000000e+00> : vector<10x512xf32>
    %129 = tpu.matmul %125, %128, %cst_91 {dimension_numbers = #tpu.dot_dimension_numbers<[1], [0], [0], [1], [0, 0, 1, 1], [], []>} : vector<10x512xbf16>, vector<512x512xbf16>, vector<10x512xf32> -> vector<10x512xf32>
    %130 = arith.addf %126, %129 : vector<10x512xf32>
    %c0_92 = arith.constant 0 : index
    %c0_93 = arith.constant 0 : index
    %131 = vector.load %arg12[%c0_92, %c0_93] : memref<1x512xf32, #tpu.memory_space<vmem>>, vector<1x512xf32>
    %132 = vector.broadcast %131 : vector<1x512xf32> to vector<10x512xf32>
    %133 = arith.addf %130, %132 : vector<10x512xf32>
    %cst_94 = arith.constant 0.000000e+00 : f32
    %134 = vector.broadcast %cst_94 : f32 to vector<10x512xf32>
    %135 = arith.maximumf %133, %134 : vector<10x512xf32>
    %c0_95 = arith.constant 0 : index
    %c0_96 = arith.constant 0 : index
    %136 = vector.load %arg13[%c0_95, %c0_96] : memref<2x512xf32, #tpu.memory_space<vmem>>, vector<1x512xf32>
    %137 = vector.broadcast %136 : vector<1x512xf32> to vector<10x512xf32>
    %138 = arith.mulf %135, %137 : vector<10x512xf32>
    %c1_97 = arith.constant 1 : index
    %c0_98 = arith.constant 0 : index
    %139 = vector.load %arg13[%c1_97, %c0_98] : memref<2x512xf32, #tpu.memory_space<vmem>>, vector<1x512xf32>
    %140 = vector.broadcast %139 : vector<1x512xf32> to vector<10x512xf32>
    %141 = arith.addf %138, %140 : vector<10x512xf32>
    %142 = arith.truncf %141 : vector<10x512xf32> to vector<10x512xbf16>
    %cst_99 = arith.constant 0.000000e+00 : f32
    %143 = vector.broadcast %cst_99 : f32 to vector<10x1536xf32>
    %c0_100 = arith.constant 0 : index
    %c0_101 = arith.constant 0 : index
    %c0_102 = arith.constant 0 : index
    %144 = vector.load %arg14[%c0_100, %c0_101, %c0_102] : memref<1x512x1536xbf16, #tpu.memory_space<vmem>>, vector<1x512x1536xbf16>
    %145 = vector.shape_cast %144 : vector<1x512x1536xbf16> to vector<512x1536xbf16>
    %cst_103 = arith.constant dense<0.000000e+00> : vector<10x1536xf32>
    %146 = tpu.matmul %142, %145, %cst_103 {dimension_numbers = #tpu.dot_dimension_numbers<[1], [0], [0], [1], [0, 0, 1, 1], [], []>} : vector<10x512xbf16>, vector<512x1536xbf16>, vector<10x1536xf32> -> vector<10x1536xf32>
    %147 = arith.addf %143, %146 : vector<10x1536xf32>
    %c0_104 = arith.constant 0 : index
    %c0_105 = arith.constant 0 : index
    %148 = vector.load %arg15[%c0_104, %c0_105] : memref<1x1536xf32, #tpu.memory_space<vmem>>, vector<1x1536xf32>
    %149 = vector.broadcast %148 : vector<1x1536xf32> to vector<10x1536xf32>
    %150 = arith.addf %147, %149 : vector<10x1536xf32>
    %cst_106 = arith.constant 0.000000e+00 : f32
    %151 = vector.broadcast %cst_106 : f32 to vector<10x1536xf32>
    %152 = arith.maximumf %150, %151 : vector<10x1536xf32>
    %c0_107 = arith.constant 0 : index
    %c0_108 = arith.constant 0 : index
    %153 = vector.load %arg16[%c0_107, %c0_108] : memref<2x1536xf32, #tpu.memory_space<vmem>>, vector<1x1536xf32>
    %154 = vector.broadcast %153 : vector<1x1536xf32> to vector<10x1536xf32>
    %155 = arith.mulf %152, %154 : vector<10x1536xf32>
    %c1_109 = arith.constant 1 : index
    %c0_110 = arith.constant 0 : index
    %156 = vector.load %arg16[%c1_109, %c0_110] : memref<2x1536xf32, #tpu.memory_space<vmem>>, vector<1x1536xf32>
    %157 = vector.broadcast %156 : vector<1x1536xf32> to vector<10x1536xf32>
    %158 = arith.addf %155, %157 : vector<10x1536xf32>
    %cst_111 = arith.constant dense<0.000000e+00> : vector<1536xf32>
    %159 = vector.multi_reduction <add>, %158, %cst_111 [0] : vector<10x1536xf32> to vector<1536xf32>
    %160 = vector.shape_cast %159 : vector<1536xf32> to vector<1x1536xf32>
    %cst_112 = arith.constant 1.000000e+01 : f32
    %161 = vector.broadcast %cst_112 : f32 to vector<1x1536xf32>
    %162 = arith.divf %160, %161 : vector<1x1536xf32>
    %163 = vector.broadcast %162 : vector<1x1536xf32> to vector<10x1536xf32>
    %164 = arith.subf %158, %163 : vector<10x1536xf32>
    %165 = arith.mulf %164, %164 : vector<10x1536xf32>
    %cst_113 = arith.constant dense<0.000000e+00> : vector<1536xf32>
    %166 = vector.multi_reduction <add>, %165, %cst_113 [0] : vector<10x1536xf32> to vector<1536xf32>
    %167 = vector.shape_cast %166 : vector<1536xf32> to vector<1x1536xf32>
    %cst_114 = arith.constant 9.000000e+00 : f32
    %168 = vector.broadcast %cst_114 : f32 to vector<1x1536xf32>
    %169 = arith.divf %167, %168 : vector<1x1536xf32>
    %170 = math.sqrt %169 : vector<1x1536xf32>
    %171 = tpu.concatenate %162, %170 in 0 : vector<1x1536xf32>, vector<1x1536xf32> -> vector<2x1536xf32>
    %c0_115 = arith.constant 0 : index
    %c0_116 = arith.constant 0 : index
    %c0_117 = arith.constant 0 : index
    %172 = vector.load %arg17[%c0_115, %c0_116, %c0_117] : memref<1x2x1536xf32, #tpu.memory_space<vmem>>, vector<1x2x1536xf32>
    %173 = vector.shape_cast %172 : vector<1x2x1536xf32> to vector<2x1536xf32>
    %174 = vector.shape_cast %171 : vector<2x1536xf32> to vector<1x2x1536xf32>
    tpu.vector_store %arg17[%c0_115, %c0_116, %c0_117], %174 {strides = array<i32>} : memref<1x2x1536xf32, #tpu.memory_space<vmem>>, vector<1x2x1536xf32>,
    return
  }
  func.func @transform_0(%arg0: i32) -> (i32, i32, i32) {
    %c0_i32 = arith.constant 0 : i32
    %c0_i32_0 = arith.constant 0 : i32
    %c0_i32_1 = arith.constant 0 : i32
    return %arg0, %c0_i32, %c0_i32_0 : i32, i32, i32
  }
  func.func @transform_1(%arg0: i32) -> (i32, i32, i32) {
    %c0_i32 = arith.constant 0 : i32
    %c0_i32_0 = arith.constant 0 : i32
    %c0_i32_1 = arith.constant 0 : i32
    %c0_i32_2 = arith.constant 0 : i32
    return %c0_i32, %c0_i32_0, %c0_i32_1 : i32, i32, i32
  }
  func.func @transform_2(%arg0: i32) -> (i32, i32) {
    %c0_i32 = arith.constant 0 : i32
    %c0_i32_0 = arith.constant 0 : i32
    %c0_i32_1 = arith.constant 0 : i32
    return %c0_i32, %c0_i32_0 : i32, i32
  }
  func.func @transform_3(%arg0: i32) -> (i32, i32) {
    %c0_i32 = arith.constant 0 : i32
    %c0_i32_0 = arith.constant 0 : i32
    %c0_i32_1 = arith.constant 0 : i32
    return %c0_i32, %c0_i32_0 : i32, i32
  }
  func.func @transform_4(%arg0: i32) -> (i32, i32, i32) {
    %c0_i32 = arith.constant 0 : i32
    %c0_i32_0 = arith.constant 0 : i32
    %c0_i32_1 = arith.constant 0 : i32
    %c0_i32_2 = arith.constant 0 : i32
    return %c0_i32, %c0_i32_0, %c0_i32_1 : i32, i32, i32
  }
  func.func @transform_5(%arg0: i32) -> (i32, i32) {
    %c0_i32 = arith.constant 0 : i32
    %c0_i32_0 = arith.constant 0 : i32
    %c0_i32_1 = arith.constant 0 : i32
    return %c0_i32, %c0_i32_0 : i32, i32
  }
  func.func @transform_6(%arg0: i32) -> (i32, i32) {
    %c0_i32 = arith.constant 0 : i32
    %c0_i32_0 = arith.constant 0 : i32
    %c0_i32_1 = arith.constant 0 : i32
    return %c0_i32, %c0_i32_0 : i32, i32
  }
  func.func @transform_7(%arg0: i32) -> (i32, i32, i32) {
    %c0_i32 = arith.constant 0 : i32
    %c0_i32_0 = arith.constant 0 : i32
    %c0_i32_1 = arith.constant 0 : i32
    %c0_i32_2 = arith.constant 0 : i32
    return %c0_i32, %c0_i32_0, %c0_i32_1 : i32, i32, i32
  }
  func.func @transform_8(%arg0: i32) -> (i32, i32) {
    %c0_i32 = arith.constant 0 : i32
    %c0_i32_0 = arith.constant 0 : i32
    %c0_i32_1 = arith.constant 0 : i32
    return %c0_i32, %c0_i32_0 : i32, i32
  }
  func.func @transform_9(%arg0: i32) -> (i32, i32) {
    %c0_i32 = arith.constant 0 : i32
    %c0_i32_0 = arith.constant 0 : i32
    %c0_i32_1 = arith.constant 0 : i32
    return %c0_i32, %c0_i32_0 : i32, i32
  }
  func.func @transform_10(%arg0: i32) -> (i32, i32, i32) {
    %c0_i32 = arith.constant 0 : i32
    %c0_i32_0 = arith.constant 0 : i32
    %c0_i32_1 = arith.constant 0 : i32
    %c0_i32_2 = arith.constant 0 : i32
    return %c0_i32, %c0_i32_0, %c0_i32_1 : i32, i32, i32
  }
  func.func @transform_11(%arg0: i32) -> (i32, i32) {
    %c0_i32 = arith.constant 0 : i32
    %c0_i32_0 = arith.constant 0 : i32
    %c0_i32_1 = arith.constant 0 : i32
    return %c0_i32, %c0_i32_0 : i32, i32
  }
  func.func @transform_12(%arg0: i32) -> (i32, i32) {
    %c0_i32 = arith.constant 0 : i32
    %c0_i32_0 = arith.constant 0 : i32
    %c0_i32_1 = arith.constant 0 : i32
    return %c0_i32, %c0_i32_0 : i32, i32
  }
  func.func @transform_13(%arg0: i32) -> (i32, i32, i32) {
    %c0_i32 = arith.constant 0 : i32
    %c0_i32_0 = arith.constant 0 : i32
    %c0_i32_1 = arith.constant 0 : i32
    %c0_i32_2 = arith.constant 0 : i32
    return %c0_i32, %c0_i32_0, %c0_i32_1 : i32, i32, i32
  }
  func.func @transform_14(%arg0: i32) -> (i32, i32) {
    %c0_i32 = arith.constant 0 : i32
    %c0_i32_0 = arith.constant 0 : i32
    %c0_i32_1 = arith.constant 0 : i32
    return %c0_i32, %c0_i32_0 : i32, i32
  }
  func.func @transform_15(%arg0: i32) -> (i32, i32) {
    %c0_i32 = arith.constant 0 : i32
    %c0_i32_0 = arith.constant 0 : i32
    %c0_i32_1 = arith.constant 0 : i32
    return %c0_i32, %c0_i32_0 : i32, i32
  }
  func.func @transform_16(%arg0: i32) -> (i32, i32, i32) {
    %c0_i32 = arith.constant 0 : i32
    %c0_i32_0 = arith.constant 0 : i32
    %c0_i32_1 = arith.constant 0 : i32
    return %arg0, %c0_i32, %c0_i32_0 : i32, i32, i32
  }
}

</mosaic_0001>

<bundles_post_ra>
// kernel: tpu_custom_call.1
= control target key start
LH: loop header
LB: loop body
LE: loop exit
PB: predicated region body
PF: predicated region fallthrough
CT: control target
= control target key end

     0   :  { %s26614_s0 = inlined_call_operand.vmem [shape: bf16[2,40,24], index: 0, kind: input, shape index: {}]   ;;  %s26615_s1 = inlined_call_operand.hbm [shape: bf16[5,24,512], index: 1, kind: input, shape index: {}]   ;;  %s26616_s2 = inlined_call_operand.hbm [shape: f32[1,512], index: 2, kind: input, shape index: {}]   ;;  %s26617_s3 = inlined_call_operand.hbm [shape: f32[2,512], index: 3, kind: input, shape index: {}]   ;;  %s26618_s4 = inlined_call_operand.hbm [shape: bf16[5,512,512], index: 4, kind: input, shape index: {}]   ;;  %s26619_s5 = inlined_call_operand.hbm [shape: f32[1,512], index: 5, kind: input, shape index: {}]   ;;  %s26620_s6 = inlined_call_operand.hbm [shape: f32[2,512], index: 6, kind: input, shape index: {}]   ;;  %s26621_s7 = inlined_call_operand.hbm [shape: bf16[7,512,512], index: 7, kind: input, shape index: {}]   ;;  %s26622_s8 = inlined_call_operand.hbm [shape: f32[1,512], index: 8, kind: input, shape index: {}]   ;;  %s26623_s9 = inlined_call_operand.hbm [shape: f32[2,512], index: 9, kind: input, shape index: {}]   ;;  %s26624_s10 = inlined_call_operand.hbm [shape: bf16[1,512,512], index: 10, kind: input, shape index: {}]   ;;  %s26625_s11 = inlined_call_operand.hbm [shape: f32[1,512], index: 11, kind: input, shape index: {}]   ;;  %s26626_s12 = inlined_call_operand.hbm [shape: f32[2,512], index: 12, kind: input, shape index: {}]   ;;  %s26627_s13 = inlined_call_operand.hbm [shape: bf16[1,512,1536], index: 13, kind: input, shape index: {}]   ;;  %s26628_s14 = inlined_call_operand.hbm [shape: f32[1,1536], index: 14, kind: input, shape index: {}]   ;;  %s26629_s15 = inlined_call_operand.hbm [shape: f32[2,1536], index: 15, kind: input, shape index: {}]   ;;  %s26630_s16 = inlined_call_operand.hbm [shape: f32[2,2,1536], index: 16, kind: output, shape index: {}]  }
   0x1   :  { %26649 = sst [smem:[#allocation44_spill]] %s26614_s0 }
   0x2   :  { %26650 = sst [smem:[#allocation45_spill]] %s26616_s2 }
   0x3   :  { %26651 = sst [smem:[#allocation46_spill]] %s26618_s4 }
   0x4   :  { %26652 = sst [smem:[#allocation47_spill]] %s26620_s6 }
   0x5   :  { %26653 = sst [smem:[#allocation48_spill]] %s26630_s16 }
   0x6   :  { %21 = vsyncpa [#allocation3], 0 }
   0x7   :  { %22 = vsyncpa [#allocation6], 0 }
   0x8   :  { %23 = vsyncpa [#allocation9], 0 }
   0x9   :  { %24 = vsyncpa [#allocation12], 0 }
   0xa   :  { %25 = vsyncpa [#allocation15], 0 }
   0xb   :  { %26 = vsyncpa [#allocation18], 0 }
   0xc   :  { %27 = vsyncpa [#allocation21], 0 }
   0xd   :  { %28 = vsyncpa [#allocation24], 0 }
   0xe   :  { %29 = vsyncpa [#allocation4], 0 }
   0xf   :  { %31 = vsyncpa [#allocation4 + $0x1], 0  ;;  %s25273_s21 = smov 0   ;;  %s25275_s22 = smov 0  }
  0x10   :  { %s25277_s23 = smov 0   ;;  %s25279_s24 = smov 0  }
  0x11 LB: > { %26654 = sst [smem:[#allocation36_spill]] %s25152_s21  ;;  %s25294_s25 = sadd.s32 4294967295, %s25164_s24   ;;  %s25164_s24 = sphi %s25279_s24, %s26697_s24   ;;  %s25160_s23 = sphi %s25277_s23, %s26700_s23   ;;  %s25156_s22 = sphi %s25275_s22, %s26699_s22   ;;  %s25152_s21 = sphi %s25273_s21, %s26698_s21  }
  0x12   : > { %26655 = sst [smem:[#allocation37_spill]] %s25156_s22  ;;  %s18757_s26 = sadd.s32 4294967294, %s25164_s24  }
  0x13   : > { %26656 = sst [smem:[#allocation38_spill]] %s25160_s23  ;;  %s25298_s27 = sadd.s32 1, %s25164_s24  }
  0x14   : > { %26657 = sst [smem:[#allocation39_spill]] %s25164_s24  ;;  %s385_s28 = sadd.s32 1, %s25160_s23 }
  0x15   : > { %26658 = sst [smem:[#allocation40_spill]] %s25298_s27  ;;  %s382_s29 = ssub.s32 %s25164_s24, %s25298_s27 }
  0x16   : > { %p395_p0 = scmp.ne.s32.totalorder %s25160_s23, %s25156_s22  ;;  %p383_p1 = scmp.eq.s32.totalorder %s382_s29, 0 }
  0x17   : > { %p396_p2 = scmp.eq.s32.totalorder %s25294_s25, 1  ;;  %p401_p3 = scmp.ne.s32.totalorder %s25156_s22, %s25152_s21 }
  0x18   : > { %p402_p4 = scmp.eq.s32.totalorder %s18757_s26, 1  ;;  %p18758_p7 = scmp.ge.s32.totalorder %s25164_s24, 1 }
  0x19   : > { %s25309_s30 = scalar_select %p383_p1, %s25160_s23, %s385_s28  }
  0x1a   : > { %p25311_p5 = por %p396_p2, %p395_p0  ;;  %p25315_p6 = por %p402_p4, %p401_p3 }
  0x1b   : > { %26659 = sst [smem:[#allocation41_spill]] %s25309_s30  ;;  %p409_p8 = scmp.lt.s32.totalorder %s25164_s24, 3 }
  0x1c   : > { %s26660_s0 = scalar_select %p25311_p5, 1, 0 }
  0x1d   : > { %s26662_s17 = scalar_select %p25315_p6, 1, 0 }
  0x1e   : > { %26661 = sst [smem:[#allocation42_spill]] %s26660_s0  ;;  %p26638_p9 = scmp.eq.s32.totalorder %s25294_s25, 0 }
  0x1f   : > { %26663 = sst [smem:[#allocation43_spill]] %s26662_s17  ;;  %p25322_p10 = pnand %p18758_p7, %p409_p8 }
  0x20   : > { %s25166_s19 = smov [#allocation5]   ;;  %s25167_s28 = smov [#allocation8]  }
  0x21   : > { %s26664_s18 = scalar_select %p25322_p10, 1, 0 }
  0x22   : > { %s435_s20 = sshll.u32 %s25166_s19, 4  ;;  %p21367_p11 = pneg %p25322_p10  ;;  %s436_s20 = int_to_ptr.vmem [resolvable:$true] %s435_s20 }
  0x23   : > { %s456_s29 = sshll.u32 %s25167_s28, 4  ;;  %s25168_s30 = smov [#allocation11]   ;;  %s25334_s29 = int_to_ptr.vmem [resolvable:$true] %s456_s29 }
  0x24   : > { %p25330_p12 = pnand %p26638_p9, %p21367_p11  ;;  %s25336_s23 = sshll.u32 %s25168_s30, 4  ;;  %s482_s23 = int_to_ptr.vmem [resolvable:$true] %s25336_s23 }
  0x25   : > { %s26666_s2 = sld [smem:[#allocation45_spill]] }
  0x26   : > { %p25346_p0 = pneg %p25330_p12 }
  0x2b   : > { %s24650_s19 = scalar_lea.hbm %s26666_s2, 64 }
  0x2c   : > { %p24651_p13 = scmp.ne.s32.totalorder %s26666_s2, %s24650_s19  ;;  %p24657_p3 = scmp.lt.u32.totalorder %s24650_s19, %s26666_s2 }
  0x2e   : > { %p24653_p1 = pnand %p25346_p0, %p24651_p13 }
  0x30   : > { %p24654_p2 = pneg %p24653_p1 }
  0x32   : > { %p24659_p4 = pnand %p24657_p3, %p24654_p2 }
  0x34   : > { %24662 = shalt.err (!%p24659_p4)
}
  0x35   : > { %s24663_s27 = scalar_lea.vmem %s436_s20, 64  ;;  %p24671_p9 = scmp.lt.s32.totalorder %s436_s20, %s436_s20 }
  0x36   : > { %p24664_p7 = scmp.ne.s32.totalorder %s436_s20, %s24663_s27  ;;  %p24672_p6 = scmp.lt.s32.totalorder %s24663_s27, %s24663_s27 }
  0x38   : > { %p24666_p8 = pnand %p24664_p7, %p25346_p0  ;;  %p24673_p5 = por %p24672_p6, %p24671_p9 }
  0x3a   : > { %p24667_p11 = pneg %p24666_p8 }
  0x3c   : > { %p24674_p10 = pnand %p24673_p5, %p24667_p11 }
  0x3e   : > { %24677 = shalt.err (!%p24674_p10)
}
  0x3f   : > { %21373 = dma.hbm_to_vmem [thread:$0]  (!%p25330_p12), %s26666_s2, 64, %s436_s20, [#allocation6]  }
  0x40   : > { %s26668_s4 = sld [smem:[#allocation46_spill]] }
  0x46   : > { %s24678_s28 = scalar_lea.hbm %s26668_s4, 81920 }
  0x47   : > { %p24679_p13 = scmp.ne.s32.totalorder %s26668_s4, %s24678_s28  ;;  %p24685_p5 = scmp.lt.u32.totalorder %s24678_s28, %s26668_s4 }
  0x49   : > { %p24681_p1 = pnand %p24679_p13, %p25346_p0 }
  0x4b   : > { %p24682_p6 = pneg %p24681_p1 }
  0x4d   : > { %p24687_p9 = pnand %p24685_p5, %p24682_p6 }
  0x4f   : > { %24690 = shalt.err (!%p24687_p9)
}
  0x50   : > { %s24691_s20 = scalar_lea.vmem %s25334_s29, 81920  ;;  %p24699_p4 = scmp.lt.s32.totalorder %s25334_s29, %s25334_s29 }
  0x51   : > { %p24692_p10 = scmp.ne.s32.totalorder %s25334_s29, %s24691_s20  ;;  %p24700_p7 = scmp.lt.s32.totalorder %s24691_s20, %s24691_s20 }
  0x53   : > { %p24694_p2 = pnand %p24692_p10, %p25346_p0  ;;  %p24701_p8 = por %p24700_p7, %p24699_p4 }
  0x55   : > { %p24695_p3 = pneg %p24694_p2 }
  0x57   : > { %p24702_p11 = pnand %p24701_p8, %p24695_p3 }
  0x59   : > { %24705 = shalt.err (!%p24702_p11)
}
  0x5a   : > { %s26645_s0 = smov 256   ;;  %s26647_s22 = smov 16  }
  0x5b   : > { %21379 = dma.hbm_to_vmem [thread:$0]  (!%p25330_p12), %s26668_s4, 81920, %s25334_s29, [#allocation9], %s26645_s0, %s26645_s0, %s26647_s22  }
  0x5c   : > { %s26669_s6 = sld [smem:[#allocation47_spill]] }
  0x62   : > { %s24706_s28 = scalar_lea.hbm %s26669_s6, 128 }
  0x63   : > { %p24707_p13 = scmp.ne.s32.totalorder %s26669_s6, %s24706_s28  ;;  %p24713_p5 = scmp.lt.u32.totalorder %s24706_s28, %s26669_s6 }
  0x65   : > { %p24709_p1 = pnand %p24707_p13, %p25346_p0 }
  0x67   : > { %p24710_p6 = pneg %p24709_p1 }
  0x69   : > { %p24715_p9 = pnand %p24713_p5, %p24710_p6 }
  0x6b   : > { %24718 = shalt.err (!%p24715_p9)
}
  0x6c   : > { %s24719_s21 = scalar_lea.vmem %s482_s23, 128  ;;  %p24727_p4 = scmp.lt.s32.totalorder %s482_s23, %s482_s23 }
  0x6d   : > { %p24720_p10 = scmp.ne.s32.totalorder %s482_s23, %s24719_s21  ;;  %p24728_p7 = scmp.lt.s32.totalorder %s24719_s21, %s24719_s21 }
  0x6f   : > { %p24722_p2 = pnand %p24720_p10, %p25346_p0  ;;  %p24729_p8 = por %p24728_p7, %p24727_p4 }
  0x71   : > { %p24723_p3 = pneg %p24722_p2 }
  0x73   : > { %p24730_p11 = pnand %p24729_p8, %p24723_p3 }
  0x75   : > { %24733 = shalt.err (!%p24730_p11)
}
  0x76   : > { %21385 = dma.hbm_to_vmem [thread:$0]  (!%p25330_p12), %s26669_s6, 128, %s482_s23, [#allocation12]  }
  0x77   : > { %s25171_s2 = smov [#allocation14]   ;;  %s25172_s19 = smov [#allocation17]  }
  0x78   : > { %s505_s17 = sshll.u32 %s25171_s2, 4  ;;  %s526_s28 = sshll.u32 %s25172_s19, 4  ;;  %s506_s17 = int_to_ptr.vmem [resolvable:$true] %s505_s17  ;;  %s527_s28 = int_to_ptr.vmem [resolvable:$true] %s526_s28 }
  0x79   : > { %s24734_s20 = scalar_lea.hbm %s26622_s8, 64 }
  0x7a   : > { %p24735_p13 = scmp.ne.s32.totalorder %s26622_s8, %s24734_s20  ;;  %p24741_p5 = scmp.lt.u32.totalorder %s24734_s20, %s26622_s8 }
  0x7c   : > { %p24737_p1 = pnand %p24735_p13, %p25346_p0 }
  0x7e   : > { %p24738_p6 = pneg %p24737_p1 }
  0x80   : > { %p24743_p9 = pnand %p24741_p5, %p24738_p6 }
  0x82   : > { %24746 = shalt.err (!%p24743_p9)
}
  0x83   : > { %s24747_s23 = scalar_lea.vmem %s506_s17, 64  ;;  %p24755_p4 = scmp.lt.s32.totalorder %s506_s17, %s506_s17 }
  0x84   : > { %p24748_p10 = scmp.ne.s32.totalorder %s506_s17, %s24747_s23  ;;  %p24756_p7 = scmp.lt.s32.totalorder %s24747_s23, %s24747_s23 }
  0x86   : > { %p24750_p2 = pnand %p24748_p10, %p25346_p0  ;;  %p24757_p8 = por %p24756_p7, %p24755_p4 }
  0x88   : > { %p24751_p3 = pneg %p24750_p2 }
  0x8a   : > { %p24758_p11 = pnand %p24757_p8, %p24751_p3 }
  0x8c   : > { %24761 = shalt.err (!%p24758_p11)
}
  0x8d   : > { %21391 = dma.hbm_to_vmem [thread:$0]  (!%p25330_p12), %s26622_s8, 64, %s506_s17, [#allocation15]  }
  0x8e   : > { %s24762_s19 = scalar_lea.hbm %s26624_s10, 16384 }
  0x8f   : > { %p24763_p13 = scmp.ne.s32.totalorder %s26624_s10, %s24762_s19  ;;  %p24769_p5 = scmp.lt.u32.totalorder %s24762_s19, %s26624_s10 }
  0x91   : > { %p24765_p1 = pnand %p24763_p13, %p25346_p0 }
  0x93   : > { %p24766_p6 = pneg %p24765_p1 }
  0x95   : > { %p24771_p9 = pnand %p24769_p5, %p24766_p6 }
  0x97   : > { %24774 = shalt.err (!%p24771_p9)
}
  0x98   : > { %s24775_s29 = scalar_lea.vmem %s527_s28, 16384  ;;  %p24783_p4 = scmp.lt.s32.totalorder %s527_s28, %s527_s28 }
  0x99   : > { %p24776_p10 = scmp.ne.s32.totalorder %s527_s28, %s24775_s29  ;;  %p24784_p7 = scmp.lt.s32.totalorder %s24775_s29, %s24775_s29 }
  0x9b   : > { %p24778_p2 = pnand %p24776_p10, %p25346_p0  ;;  %p24785_p8 = por %p24784_p7, %p24783_p4 }
  0x9d   : > { %p24779_p3 = pneg %p24778_p2 }
  0x9f   : > { %p24786_p11 = pnand %p24785_p8, %p24779_p3 }
  0xa1   : > { %24789 = shalt.err (!%p24786_p11)
}
  0xa2   : > { %s26670_s17 = smov 16   ;;  %s26671_s23 = smov 256  }
  0xa3   : > { %21397 = dma.hbm_to_vmem [thread:$0]  (!%p25330_p12), %s26624_s10, 16384, %s527_s28, [#allocation18], %s26671_s23, %s26671_s23, %s26670_s17  }
  0xa4   : > { %s25173_s22 = smov [#allocation20]   ;;  %s25174_s19 = smov [#allocation23]  }
  0xa5   : > { %s551_s2 = sshll.u32 %s25173_s22, 4  ;;  %s575_s30 = sshll.u32 %s25174_s19, 4  ;;  %s552_s2 = int_to_ptr.vmem [resolvable:$true] %s551_s2  ;;  %s576_s30 = int_to_ptr.vmem [resolvable:$true] %s575_s30 }
  0xa6   : > { %s24790_s21 = scalar_lea.hbm %s26626_s12, 128 }
  0xa7   : > { %p24791_p13 = scmp.ne.s32.totalorder %s26626_s12, %s24790_s21  ;;  %p24797_p5 = scmp.lt.u32.totalorder %s24790_s21, %s26626_s12 }
  0xa9   : > { %p24793_p1 = pnand %p24791_p13, %p25346_p0 }
  0xab   : > { %p24794_p6 = pneg %p24793_p1 }
  0xad   : > { %p24799_p9 = pnand %p24797_p5, %p24794_p6 }
  0xaf   : > { %24802 = shalt.err (!%p24799_p9)
}
  0xb0   : > { %s24803_s28 = scalar_lea.vmem %s552_s2, 128  ;;  %p24811_p4 = scmp.lt.s32.totalorder %s552_s2, %s552_s2 }
  0xb1   : > { %p24804_p10 = scmp.ne.s32.totalorder %s552_s2, %s24803_s28  ;;  %p24812_p7 = scmp.lt.s32.totalorder %s24803_s28, %s24803_s28 }
  0xb3   : > { %p24806_p2 = pnand %p24804_p10, %p25346_p0  ;;  %p24813_p8 = por %p24812_p7, %p24811_p4 }
  0xb5   : > { %p24807_p3 = pneg %p24806_p2 }
  0xb7   : > { %p24814_p11 = pnand %p24813_p8, %p24807_p3 }
  0xb9   : > { %24817 = shalt.err (!%p24814_p11)
}
  0xba   : > { %21403 = dma.hbm_to_vmem [thread:$0]  (!%p25330_p12), %s26626_s12, 128, %s552_s2, [#allocation21]  }
  0xbb   : > { %s24818_s19 = scalar_lea.hbm %s26628_s14, 192 }
  0xbc   : > { %p24819_p13 = scmp.ne.s32.totalorder %s26628_s14, %s24818_s19  ;;  %p24825_p5 = scmp.lt.u32.totalorder %s24818_s19, %s26628_s14 }
  0xbe   : > { %p24821_p1 = pnand %p24819_p13, %p25346_p0 }
  0xc0   : > { %p24822_p6 = pneg %p24821_p1 }
  0xc2   : > { %p24827_p9 = pnand %p24825_p5, %p24822_p6 }
  0xc4   : > { %24830 = shalt.err (!%p24827_p9)
}
  0xc5   : > { %s24831_s0 = scalar_lea.vmem %s576_s30, 192  ;;  %p24839_p4 = scmp.lt.s32.totalorder %s576_s30, %s576_s30 }
  0xc6   : > { %p24832_p10 = scmp.ne.s32.totalorder %s576_s30, %s24831_s0  ;;  %p24840_p7 = scmp.lt.s32.totalorder %s24831_s0, %s24831_s0 }
  0xc8   : > { %p24834_p2 = pnand %p24832_p10, %p25346_p0  ;;  %p24841_p8 = por %p24840_p7, %p24839_p4 }
  0xca   : > { %p24835_p3 = pneg %p24834_p2 }
  0xcc   : > { %p24842_p11 = pnand %p24841_p8, %p24835_p3 }
  0xce   : > { %24845 = shalt.err (!%p24842_p11)
}
  0xcf   : > { %21409 = dma.hbm_to_vmem [thread:$0]  (!%p25330_p12), %s26628_s14, 192, %s576_s30, [#allocation24]  }
  0xd0   : > { %s25175_s4 = smov [#allocation2]   ;;  %s25176_s6 = smov [#allocation7]  }
  0xd1   : > { %s421_s24 = sshll.u32 %s25175_s4, 4  ;;  %s446_s22 = sshll.u32 %s25176_s6, 4  ;;  %s422_s24 = int_to_ptr.vmem [resolvable:$true] %s421_s24  ;;  %s447_s22 = int_to_ptr.vmem [resolvable:$true] %s446_s22 }
  0xd2   : > { %s24846_s20 = scalar_lea.hbm %s26615_s1, 3840 }
  0xd3   : > { %p24847_p13 = scmp.ne.s32.totalorder %s26615_s1, %s24846_s20  ;;  %p24853_p5 = scmp.lt.u32.totalorder %s24846_s20, %s26615_s1 }
  0xd5   : > { %p24849_p1 = pnand %p24847_p13, %p25346_p0 }
  0xd7   : > { %p24850_p6 = pneg %p24849_p1 }
  0xd9   : > { %p24855_p9 = pnand %p24853_p5, %p24850_p6 }
  0xdb   : > { %24858 = shalt.err (!%p24855_p9)
}
  0xdc   : > { %s24859_s30 = scalar_lea.vmem %s422_s24, 3840  ;;  %p24867_p4 = scmp.lt.s32.totalorder %s422_s24, %s422_s24 }
  0xdd   : > { %p24860_p10 = scmp.ne.s32.totalorder %s422_s24, %s24859_s30  ;;  %p24868_p7 = scmp.lt.s32.totalorder %s24859_s30, %s24859_s30 }
  0xdf   : > { %p24862_p2 = pnand %p24860_p10, %p25346_p0  ;;  %p24869_p8 = por %p24868_p7, %p24867_p4 }
  0xe1   : > { %p24863_p3 = pneg %p24862_p2 }
  0xe3   : > { %p24870_p11 = pnand %p24869_p8, %p24863_p3 }
  0xe5   : > { %24873 = shalt.err (!%p24870_p11)
}
  0xe6   : > { %21370 = dma.hbm_to_vmem [thread:$0]  (!%p25330_p12), %s26615_s1, 3840, %s422_s24, [#allocation3], %s26671_s23, %s26671_s23, %s26670_s17  }
  0xe7   : > { %s24874_s27 = scalar_lea.hbm %s26617_s3, 128 }
  0xe8   : > { %p24875_p13 = scmp.ne.s32.totalorder %s26617_s3, %s24874_s27  ;;  %p24881_p5 = scmp.lt.u32.totalorder %s24874_s27, %s26617_s3 }
  0xea   : > { %p24877_p1 = pnand %p24875_p13, %p25346_p0 }
  0xec   : > { %p24878_p6 = pneg %p24877_p1 }
  0xee   : > { %p24883_p9 = pnand %p24881_p5, %p24878_p6 }
  0xf0   : > { %24886 = shalt.err (!%p24883_p9)
}
  0xf1   : > { %s24887_s2 = scalar_lea.vmem %s447_s22, 128  ;;  %p24895_p4 = scmp.lt.s32.totalorder %s447_s22, %s447_s22 }
  0xf2   : > { %p24888_p10 = scmp.ne.s32.totalorder %s447_s22, %s24887_s2  ;;  %p24896_p7 = scmp.lt.s32.totalorder %s24887_s2, %s24887_s2 }
  0xf4   : > { %p24890_p2 = pnand %p24888_p10, %p25346_p0  ;;  %p24897_p8 = por %p24896_p7, %p24895_p4 }
  0xf6   : > { %p24891_p3 = pneg %p24890_p2 }
  0xf8   : > { %p24898_p11 = pnand %p24897_p8, %p24891_p3 }
  0xfa   : > { %24901 = shalt.err (!%p24898_p11)
}
  0xfb   : > { %21376 = dma.hbm_to_vmem [thread:$0]  (!%p25330_p12), %s26617_s3, 128, %s447_s22, [#allocation6]  }
  0xfc   : > { %s25177_s28 = smov [#allocation10]   ;;  %s25178_s6 = smov [#allocation13]  }
  0xfd   : > { %s470_s4 = sshll.u32 %s25177_s28, 4  ;;  %s491_s19 = sshll.u32 %s25178_s6, 4  ;;  %s471_s4 = int_to_ptr.vmem [resolvable:$true] %s470_s4  ;;  %s492_s19 = int_to_ptr.vmem [resolvable:$true] %s491_s19 }
  0xfe   : > { %s24902_s21 = scalar_lea.hbm %s26619_s5, 64 }
  0xff   : > { %p24903_p13 = scmp.ne.s32.totalorder %s26619_s5, %s24902_s21  ;;  %p24909_p5 = scmp.lt.u32.totalorder %s24902_s21, %s26619_s5 }
 0x101   : > { %p24905_p1 = pnand %p24903_p13, %p25346_p0 }
 0x103   : > { %p24906_p6 = pneg %p24905_p1 }
 0x105   : > { %p24911_p9 = pnand %p24909_p5, %p24906_p6 }
 0x107   : > { %24914 = shalt.err (!%p24911_p9)
}
 0x108   : > { %s24915_s22 = scalar_lea.vmem %s471_s4, 64  ;;  %p24923_p4 = scmp.lt.s32.totalorder %s471_s4, %s471_s4 }
 0x109   : > { %p24916_p10 = scmp.ne.s32.totalorder %s471_s4, %s24915_s22  ;;  %p24924_p7 = scmp.lt.s32.totalorder %s24915_s22, %s24915_s22 }
 0x10b   : > { %p24918_p2 = pnand %p24916_p10, %p25346_p0  ;;  %p24925_p8 = por %p24924_p7, %p24923_p4 }
 0x10d   : > { %p24919_p3 = pneg %p24918_p2 }
 0x10f   : > { %p24926_p11 = pnand %p24925_p8, %p24919_p3 }
 0x111   : > { %24929 = shalt.err (!%p24926_p11)
}
 0x112   : > { %21382 = dma.hbm_to_vmem [thread:$0]  (!%p25330_p12), %s26619_s5, 64, %s471_s4, [#allocation9]  }
 0x113   : > { %s24930_s20 = scalar_lea.hbm %s26621_s7, 114688 }
 0x114   : > { %p24931_p13 = scmp.ne.s32.totalorder %s26621_s7, %s24930_s20  ;;  %p24937_p5 = scmp.lt.u32.totalorder %s24930_s20, %s26621_s7 }
 0x116   : > { %p24933_p1 = pnand %p24931_p13, %p25346_p0 }
 0x118   : > { %p24934_p6 = pneg %p24933_p1 }
 0x11a   : > { %p24939_p9 = pnand %p24937_p5, %p24934_p6 }
 0x11c   : > { %24942 = shalt.err (!%p24939_p9)
}
 0x11d   : > { %s24943_s24 = scalar_lea.vmem %s492_s19, 114688  ;;  %p24951_p4 = scmp.lt.s32.totalorder %s492_s19, %s492_s19 }
 0x11e   : > { %p24944_p10 = scmp.ne.s32.totalorder %s492_s19, %s24943_s24  ;;  %p24952_p7 = scmp.lt.s32.totalorder %s24943_s24, %s24943_s24 }
 0x120   : > { %p24946_p2 = pnand %p24944_p10, %p25346_p0  ;;  %p24953_p8 = por %p24952_p7, %p24951_p4 }
 0x122   : > { %p24947_p3 = pneg %p24946_p2 }
 0x124   : > { %p24954_p11 = pnand %p24953_p8, %p24947_p3 }
 0x126   : > { %24957 = shalt.err (!%p24954_p11)
}
 0x127   : > { %21388 = dma.hbm_to_vmem [thread:$0]  (!%p25330_p12), %s26621_s7, 114688, %s492_s19, [#allocation12], %s26671_s23, %s26671_s23, %s26670_s17  }
 0x128   : > { %s25179_s30 = smov [#allocation16]   ;;  %s25180_s6 = smov [#allocation19]  }
 0x129   : > { %s516_s28 = sshll.u32 %s25179_s30, 4  ;;  %s540_s27 = sshll.u32 %s25180_s6, 4  ;;  %s517_s28 = int_to_ptr.vmem [resolvable:$true] %s516_s28  ;;  %s541_s27 = int_to_ptr.vmem [resolvable:$true] %s540_s27 }
 0x12a   : > { %s24958_s29 = scalar_lea.hbm %s26623_s9, 128 }
 0x12b   : > { %p24959_p13 = scmp.ne.s32.totalorder %s26623_s9, %s24958_s29  ;;  %p24965_p5 = scmp.lt.u32.totalorder %s24958_s29, %s26623_s9 }
 0x12d   : > { %p24961_p1 = pnand %p24959_p13, %p25346_p0 }
 0x12f   : > { %p24962_p6 = pneg %p24961_p1 }
 0x131   : > { %p24967_p9 = pnand %p24965_p5, %p24962_p6 }
 0x133   : > { %24970 = shalt.err (!%p24967_p9)
}
 0x134   : > { %s24971_s17 = scalar_lea.vmem %s517_s28, 128  ;;  %p24979_p4 = scmp.lt.s32.totalorder %s517_s28, %s517_s28 }
 0x135   : > { %p24972_p10 = scmp.ne.s32.totalorder %s517_s28, %s24971_s17  ;;  %p24980_p7 = scmp.lt.s32.totalorder %s24971_s17, %s24971_s17 }
 0x137   : > { %p24974_p2 = pnand %p24972_p10, %p25346_p0  ;;  %p24981_p8 = por %p24980_p7, %p24979_p4 }
 0x139   : > { %p24975_p3 = pneg %p24974_p2 }
 0x13b   : > { %p24982_p11 = pnand %p24981_p8, %p24975_p3 }
 0x13d   : > { %24985 = shalt.err (!%p24982_p11)
}
 0x13e   : > { %21394 = dma.hbm_to_vmem [thread:$0]  (!%p25330_p12), %s26623_s9, 128, %s517_s28, [#allocation15]  }
 0x13f   : > { %s24986_s6 = scalar_lea.hbm %s26625_s11, 64 }
 0x140   : > { %p24987_p13 = scmp.ne.s32.totalorder %s26625_s11, %s24986_s6  ;;  %p24993_p5 = scmp.lt.u32.totalorder %s24986_s6, %s26625_s11 }
 0x142   : > { %p24989_p1 = pnand %p24987_p13, %p25346_p0 }
 0x144   : > { %p24990_p6 = pneg %p24989_p1 }
 0x146   : > { %p24995_p9 = pnand %p24993_p5, %p24990_p6 }
 0x148   : > { %24998 = shalt.err (!%p24995_p9)
}
 0x149   : > { %s24999_s2 = scalar_lea.vmem %s541_s27, 64  ;;  %p25007_p4 = scmp.lt.s32.totalorder %s541_s27, %s541_s27 }
 0x14a   : > { %p25000_p10 = scmp.ne.s32.totalorder %s541_s27, %s24999_s2  ;;  %p25008_p7 = scmp.lt.s32.totalorder %s24999_s2, %s24999_s2 }
 0x14c   : > { %p25002_p2 = pnand %p25000_p10, %p25346_p0  ;;  %p25009_p8 = por %p25008_p7, %p25007_p4 }
 0x14e   : > { %p25003_p3 = pneg %p25002_p2 }
 0x150   : > { %p25010_p11 = pnand %p25009_p8, %p25003_p3 }
 0x152   : > { %25013 = shalt.err (!%p25010_p11)
}
 0x153   : > { %21400 = dma.hbm_to_vmem [thread:$0]  (!%p25330_p12), %s26625_s11, 64, %s541_s27, [#allocation18]  }
 0x154   : > { %s25181_s4 = smov [#allocation22]   ;;  %s25014_s22 = scalar_lea.hbm %s26627_s13, 49152 }
 0x155   : > { %s561_s17 = sshll.u32 %s25181_s4, 4  ;;  %p25015_p13 = scmp.ne.s32.totalorder %s26627_s13, %s25014_s22  ;;  %s562_s17 = int_to_ptr.vmem [resolvable:$true] %s561_s17 }
 0x156   : > { %p25021_p5 = scmp.lt.u32.totalorder %s25014_s22, %s26627_s13 }
 0x157   : > { %p25017_p1 = pnand %p25015_p13, %p25346_p0 }
 0x159   : > { %p25018_p6 = pneg %p25017_p1 }
 0x15b   : > { %p25023_p9 = pnand %p25021_p5, %p25018_p6 }
 0x15d   : > { %25026 = shalt.err (!%p25023_p9)
}
 0x15e   : > { %s25027_s27 = scalar_lea.vmem %s562_s17, 49152  ;;  %p25035_p4 = scmp.lt.s32.totalorder %s562_s17, %s562_s17 }
 0x15f   : > { %p25028_p10 = scmp.ne.s32.totalorder %s562_s17, %s25027_s27  ;;  %p25036_p7 = scmp.lt.s32.totalorder %s25027_s27, %s25027_s27 }
 0x161   : > { %p25030_p2 = pnand %p25028_p10, %p25346_p0  ;;  %p25037_p8 = por %p25036_p7, %p25035_p4 }
 0x163   : > { %p25031_p3 = pneg %p25030_p2 }
 0x165   : > { %p25038_p11 = pnand %p25037_p8, %p25031_p3 }
 0x167   : > { %25041 = shalt.err (!%p25038_p11)
}
 0x168   : > { %s25182_s29 = smov 768   ;;  %s25183_s0 = smov 48  }
 0x169   : > { %21406 = dma.hbm_to_vmem [thread:$0]  (!%p25330_p12), %s26627_s13, 49152, %s562_s17, [#allocation21], %s25182_s29, %s25182_s29, %s25183_s0  }
 0x16a   : > { %s25184_s24 = smov [#allocation25]   ;;  %s25042_s22 = scalar_lea.hbm %s26629_s15, 384 }
 0x16b   : > { %s586_s4 = sshll.u32 %s25184_s24, 4  ;;  %p25043_p13 = scmp.ne.s32.totalorder %s26629_s15, %s25042_s22  ;;  %s587_s4 = int_to_ptr.vmem [resolvable:$true] %s586_s4 }
 0x16c   : > { %p25049_p5 = scmp.lt.u32.totalorder %s25042_s22, %s26629_s15 }
 0x16d   : > { %p25045_p1 = pnand %p25043_p13, %p25346_p0 }
 0x16f   : > { %p25046_p6 = pneg %p25045_p1 }
 0x171   : > { %p25051_p9 = pnand %p25049_p5, %p25046_p6 }
 0x173   : > { %25054 = shalt.err (!%p25051_p9)
}
 0x174   : > { %s25055_s17 = scalar_lea.vmem %s587_s4, 384  ;;  %p25063_p4 = scmp.lt.s32.totalorder %s587_s4, %s587_s4 }
 0x175   : > { %p25056_p10 = scmp.ne.s32.totalorder %s587_s4, %s25055_s17  ;;  %p25064_p7 = scmp.lt.s32.totalorder %s25055_s17, %s25055_s17 }
 0x177   : > { %p25058_p2 = pnand %p25056_p10, %p25346_p0  ;;  %p25065_p8 = por %p25064_p7, %p25063_p4 }
 0x179   : > { %p25059_p3 = pneg %p25058_p2 }
 0x17b   : > { %p25066_p11 = pnand %p25065_p8, %p25059_p3 }
 0x17d   : > { %25069 = shalt.err (!%p25066_p11)
}
 0x17e   : > { %21412 = dma.hbm_to_vmem [thread:$0]  (!%p25330_p12), %s26629_s15, 384, %s587_s4, [#allocation24]  }
 0x17f   : > { %p26672_p13 = scmp.ne.s32.totalorder %s26664_s18, 0 }
 0x180   : > { %p26673_p1 = scmp.eq.s32.totalorder (!%p26672_p13), %s25294_s25, 0 }
 0x181   : > { %607 = sbr.rel (%p26672_p13) target bundleno = 3552 (0xde0), region = 84 }
 0x188   : > { %25115 = dma.done.wait (%p26673_p1), [#allocation3], 3840   ;;  %p26674_p0 = pmov %p26673_p1 }
 0x18a   : > { %25117 = vsyncadd (%p26674_p0), [#allocation3], 4294963456  ;;  %p26675_p6 = pmov %p26674_p0 }
 0x18b   : > { %p26676_p5 = pmov %p26674_p0 }
 0x18c   : > { %25119 = dma.done.wait (%p26675_p6), [#allocation6], 192  }
 0x18d   : > { %25121 = vsyncadd (%p26676_p5), [#allocation6], 4294967104  ;;  %p26677_p9 = pmov %p26674_p0 }
 0x18e   : > { %p26678_p12 = pmov %p26674_p0 }
 0x18f   : > { %25123 = dma.done.wait (%p26677_p9), [#allocation9], 81984  }
 0x190   : > { %25125 = vsyncadd (%p26678_p12), [#allocation9], 4294885312  ;;  %p26679_p10 = pmov %p26674_p0 }
 0x191   : > { %p26680_p2 = pmov %p26674_p0 }
 0x192   : > { %25127 = dma.done.wait (%p26679_p10), [#allocation12], 114816  }
 0x193   : > { %25129 = vsyncadd (%p26680_p2), [#allocation12], 4294852480  ;;  %p26681_p3 = pmov %p26674_p0 }
 0x194   : > { %p26682_p4 = pmov %p26674_p0 }
 0x195   : > { %25131 = dma.done.wait (%p26681_p3), [#allocation15], 192  }
 0x196   : > { %25133 = vsyncadd (%p26682_p4), [#allocation15], 4294967104  ;;  %p26683_p7 = pmov %p26674_p0 }
 0x197   : > { %p26684_p8 = pmov %p26674_p0 }
 0x198   : > { %25135 = dma.done.wait (%p26683_p7), [#allocation18], 16448  }
 0x199   : > { %25137 = vsyncadd (%p26684_p8), [#allocation18], 4294950848  ;;  %p26685_p11 = pmov %p26674_p0 }
 0x19a   : > { %p26686_p13 = pmov %p26674_p0 }
 0x19b   : > { %25139 = dma.done.wait (%p26685_p11), [#allocation21], 49280  }
 0x19c   : > { %25141 = vsyncadd (%p26686_p13), [#allocation21], 4294918016  ;;  %p26687_p1 = pmov %p26674_p0 }
 0x19e   : > { %25143 = dma.done.wait (%p26687_p1), [#allocation24], 576  }
 0x19f   : > { %25145 = vsyncadd (%p26674_p0), [#allocation24], 4294966720  ;;  %p713_p6 = scmp.lt.s32.totalorder %s25294_s25, 1  ;;  %v25185_v0 = vmov 0   ;;  %v21501_v1 = vld [vmem:[#allocation2 + $0x34] ss:$16 sps:$4 sm:$0xff]  }
 0x1a0   : > { %859 = vmatprep.mubr.bf16.mxu0 %v25185_v0  ;;  %920 = vmatprep.mubr.bf16.mxu1 %v25185_v0  ;;  %v21503_v2 = vld [vmem:[#allocation2 + $0x3c] ss:$16 sps:$4 sm:$0xff]   ;;  %s26688_s2 = sld [smem:[#allocation44_spill]]  ;;  %v21505_v3 = vld [vmem:[#allocation2 + $0x30] ss:$16 sps:$4 sm:$0xff]   ;;  %vm814_vm0 = vcmask 1043456  }
 0x1a1   : > { %s714_s16 = scalar_select %p713_p6, %s25294_s25, 1  ;;  %827 = vmatprep.subr.bf16.mxu0 %v21501_v1  ;;  %v21506_v4 = vld [vmem:[#allocation2 + $0x38] ss:$16 sps:$4 sm:$0xff]   ;;  %v735_v5 = vld [vmem:[#allocation2 + $0x50] sm:$0xff]  ;;  %888 = vmatprep.subr.bf16.mxu1 %v21503_v2  ;;  %v728_v19 = vld [vmem:[#allocation2 + $0x20] sm:$0xff]  ;;  %vm804_vm2 = vcmask 195584  }
 0x1a2   : > { %v18800_v6 = vcombine.high %v735_v5, %v735_v5  ;;  %v736_v7 = vld [vmem:[#allocation2 + $0x58] sm:$0xff]  ;;  %v18799_v8 = vcombine.low %v735_v5, %v735_v5  ;;  %828 = vmatpush1.bf16.msra.mxu0 %v21505_v3  ;;  %889 = vmatpush1.bf16.msra.mxu1 %v21506_v4  ;;  %v21515_v18 = vld [vmem:[#allocation2 + $0x4] ss:$16 sps:$4 sm:$0xff]   ;;  %vm750_vm1 = vsmask.f32 7424  ;;  %v729_v30 = vld [vmem:[#allocation2 + $0x28] sm:$0xff]  ;;  %v18816_v33 = vcombine.high %v728_v19, %v728_v19 }
 0x1a3   : > { %s21303_s18 = smul.u32 20, %s714_s16  ;;  %v18802_v9 = vcombine.high %v736_v7, %v736_v7  ;;  %v18801_v10 = vcombine.low %v736_v7, %v736_v7  ;;  %v21513_v27 = vld [vmem:[#allocation2] ss:$16 sps:$4 sm:$0xff]   ;;  %v21521_v29 = vld [vmem:[#allocation2 + $0xc] ss:$16 sps:$4 sm:$0xff]   ;;  %v18815_v34 = vcombine.low %v728_v19, %v728_v19  ;;  %v18818_v39 = vcombine.high %v729_v30, %v729_v30  ;;  %s26689_s24 = sld [smem:[#allocation37_spill]] }
 0x1a4   : > { %18803 = vmatprep.subr.msk.bf16.mxu0 %vm814_vm0, %v18800_v6  ;;  %v816_v12 = vsel %vm814_vm0, %v18799_v8, 0  ;;  %v21519_v37 = vld [vmem:[#allocation2 + $0x8] ss:$16 sps:$4 sm:$0xff]   ;;  %v18817_v40 = vcombine.low %v729_v30, %v729_v30  ;;  %vm1332_vm3 = vsmask.f32 6400  ;;  %vm1544_vm4 = vcmask 1045504  }
 0x1a5   : > { %18807 = vmatprep.subr.msk.bf16.mxu1 %vm814_vm0, %v18802_v9  ;;  %v822_v14 = vsel %vm814_vm0, %v18801_v10, 0  ;;  %v986_v44 = vsel %vm814_vm0, %v18815_v34, 0  ;;  %v21526_v45 = vld [vmem:[#allocation2 + $0x64] ss:$16 sps:$4 sm:$0xff]   ;;  %v21531_v54 = vld [vmem:[#allocation2 + $0x6c] ss:$16 sps:$4 sm:$0xff]  }
 0x1a6   : > { %s717_s28 = scalar_lea.vmem %s26688_s2, %s21303_s18  ;;  %830 = vmatpush1.bf16.msra.mxu0 %v816_v12  ;;  %891 = vmatpush1.bf16.msra.mxu1 %v822_v14  ;;  %v992_v49 = vsel %vm814_vm0, %v18817_v40, 0  ;;  %v1124_v60 = vld [vmem:[#allocation2 + $0x80] sm:$0xff]  ;;  %v1125_v62 = vld [vmem:[#allocation2 + $0x88] sm:$0xff]  ;;  %v1330_v12 = vld [vmem:[#allocation2 + $0xb0] sm:$0xff]  ;;  %vm1126_vm5 = vcmask 1046528   ;;  %vm5041_vm6 = vcmask 1044480  }
 0x1a7   : > { %v25673_v11 = vld [vmem:[%s717_s28] sm:$0xff]   ;;  %v25677_v13 = vld [vmem:[%s717_s28 + $0x8] sm:$0xff]   ;;  %v25684_v23 = vld [vmem:[%s717_s28 + $0x10] ss:$0 sps:$4 sm:$0xff]   ;;  %997 = vmatprep.subr.bf16.mxu0 %v21515_v18  ;;  %1058 = vmatprep.subr.bf16.mxu1 %v21521_v29  ;;  %v18832_v1 = vcombine.high %v1124_v60, %v1124_v60  ;;  %v18831_v2 = vcombine.low %v1124_v60, %v1124_v60  ;;  %v18834_v3 = vcombine.high %v1125_v62, %v1125_v62  ;;  %vm10110_vm7 = vsmask.f32 3328 }
 0x1a8   : > { %v752_v15 = vshrl.u32 %v25673_v11, 16  ;;  %v754_v16 = vshll.u32 %v25673_v11, 16  ;;  %v759_v17 = vshll.u32 %v25677_v13, 16  ;;  %v763_v25 = vshrl.u32 %v25677_v13, 16  ;;  %v21524_v61 = vld [vmem:[#allocation2 + $0x60] ss:$16 sps:$4 sm:$0xff]  }
 0x1a9   : > { %v767_v28 = vshll.u32 %v25684_v23, 16  ;;  %v771_v36 = vshrl.u32 %v25684_v23, 16  ;;  %v1545_v48 = vrot.slane %v25673_v11, 2  ;;  %v1546_v51 = vrot.slane %v25677_v13, 2  ;;  %v21529_v63 = vld [vmem:[#allocation2 + $0x68] ss:$16 sps:$4 sm:$0xff]  }
 0x1aa   : > { %v756_v20 = vrot.slane %v754_v16, 1  ;;  %v1333_v21 = vrot.slane %v752_v15, 1  ;;  %v1334_v22 = vrot.slane %v754_v16, 2  ;;  %v761_v24 = vrot.slane %v759_v17, 1  ;;  %v21536_v5 = vld [vmem:[#allocation2 + $0x94] ss:$16 sps:$4 sm:$0xff]  }
 0x1ab   : > { %v1337_v31 = vrot.slane %v759_v17, 2  ;;  %v1336_v32 = vrot.slane %v763_v25, 1  ;;  %v769_v42 = vrot.slane %v767_v28, 1  ;;  %v1340_v43 = vrot.slane %v771_v36, 1  ;;  %v21541_v8 = vld [vmem:[#allocation2 + $0x9c] ss:$16 sps:$4 sm:$0xff]  }
 0x1ac   : > { %v757_v26 = vor.u32 %v756_v20, %v752_v15  ;;  %v1335_v38 = vor.u32 %v1334_v22, %v1333_v21  ;;  %v765_v41 = vor.u32 %v763_v25, %v761_v24  ;;  %v1341_v47 = vrot.slane %v767_v28, 2  ;;  %v21534_v14 = vld [vmem:[#allocation2 + $0x90] ss:$16 sps:$4 sm:$0xff]   ;;  %v1331_v15 = vld [vmem:[#allocation2 + $0xb8] sm:$0xff]  ;;  %v21546_v22 = vld [vmem:[#allocation2 + $0xc4] ss:$16 sps:$4 sm:$0xff]  }
 0x1ad   : > { %v1338_v46 = vor.u32 %v1337_v31, %v1336_v32  ;;  %v25707_v55 = vsel %vm1544_vm4, %v1545_v48, %v1546_v51  ;;  %v25710_v56 = vrot.slane %v25684_v23, 2  ;;  %v773_v59 = vor.u32 %v771_v36, %v769_v42  ;;  %v21539_v17 = vld [vmem:[#allocation2 + $0x98] ss:$16 sps:$4 sm:$0xff]   ;;  %v21551_v25 = vld [vmem:[#allocation2 + $0xcc] ss:$16 sps:$4 sm:$0xff]   ;;  %s710_s4 = sand.u32 1, %s26689_s24  }
 0x1ae   : > { %v762_v35 = vsel %vm750_vm1, %v757_v26, %v761_v24  ;;  %v770_v52 = vsel %vm750_vm1, %v765_v41, %v769_v42  ;;  %v25704_v53 = vor.u32 %v1341_v47, %v1340_v43  ;;  %v18833_v4 = vcombine.low %v1125_v62, %v1125_v62  ;;  %v1543_v28 = vld [vmem:[#allocation2 + $0xe8] sm:$0xff]  ;;  %v21562_v41 = vld [vmem:[#allocation8 + $0x424] ss:$16 sps:$4 sm:$0xff]   ;;  %v21563_v42 = vld [vmem:[#allocation8 + $0x428] ss:$16 sps:$4 sm:$0xff]   ;;  %s21302_s23 = smul.u32 24, %s710_s4 }
 0x1af   : > { %18804 = vmatmul.mubr.msk.bf16.vlgmr.msra.gmra.mrb[0].mxu0 %vm804_vm2, %v762_v35  ;;  %18808 = vmatmul.mubr.msk.bf16.vlgmr.msra.gmra.mrb[0].mxu1 %vm804_vm2, %v762_v35  ;;  %v25700_v50 = vsel %vm1332_vm3, %v1335_v38, %v1338_v46  ;;  %v25720_v58 = vsel %vm1544_vm4, %v1546_v51, %v25710_v56  ;;  %v1172_v6 = vsel %vm814_vm0, %v18831_v2, 0  ;;  %v1127_v9 = vrot.slane %v25673_v11, 1  ;;  %v21549_v29 = vld [vmem:[#allocation2 + $0xc8] ss:$16 sps:$4 sm:$0xff]   ;;  %v21554_v36 = vld [vmem:[#allocation8 + $0x400] ss:$16 sps:$4 sm:$0xff]  }
 0x1b0   : > { %998 = vmatpush1.bf16.msra.mxu0 %v21513_v27  ;;  %869 = vmatprep.mubr.bf16.mxu0 %v25185_v0  ;;  %v25714_v57 = vsel %vm1332_vm3, %v1338_v46, %v25704_v53  ;;  %v1178_v7 = vsel %vm814_vm0, %v18833_v4, 0  ;;  %v1128_v10 = vrot.slane %v25677_v13, 1  ;;  %v18848_v18 = vcombine.high %v1330_v12, %v1330_v12  ;;  %v21544_v27 = vld [vmem:[#allocation2 + $0xc0] ss:$16 sps:$4 sm:$0xff]   ;;  %v21557_v38 = vld [vmem:[#allocation8 + $0x408] ss:$16 sps:$4 sm:$0xff]  }
 0x1b1   : > { %930 = vmatprep.mubr.bf16.mxu1 %v25185_v0  ;;  %18819 = vmatprep.subr.msk.bf16.mxu0 %vm814_vm0, %v18816_v33  ;;  %v18847_v19 = vcombine.low %v1330_v12, %v1330_v12  ;;  %v18850_v20 = vcombine.high %v1331_v15, %v1331_v15  ;;  %v18849_v21 = vcombine.low %v1331_v15, %v1331_v15  ;;  %v21560_v40 = vld [vmem:[#allocation8 + $0x420] ss:$16 sps:$4 sm:$0xff]   ;;  %v21565_v43 = vld [vmem:[#allocation8 + $0x42c] ss:$16 sps:$4 sm:$0xff]   ;;  %v21569_v46 = vld [vmem:[#allocation8 + $0x448] ss:$16 sps:$4 sm:$0xff]  }
 0x1b2   : > { %1059 = vmatpush1.bf16.msra.mxu1 %v21519_v37  ;;  %v1129_v16 = vsel %vm1126_vm5, %v1127_v9, %v1128_v10  ;;  %v18866_v32 = vcombine.high %v1543_v28, %v1543_v28  ;;  %v18865_v33 = vcombine.low %v1543_v28, %v1543_v28  ;;  %v21556_v37 = vld [vmem:[#allocation8 + $0x404] ss:$16 sps:$4 sm:$0xff]   ;;  %v21572_v47 = vld [vmem:[#allocation8 + $0x460] ss:$16 sps:$4 sm:$0xff]   ;;  %v21595_v60 = vld [vmem:[#allocation8 + $0x4cc] ss:$16 sps:$4 sm:$0xff]  }
 0x1b3   : > { %18823 = vmatprep.subr.msk.bf16.mxu1 %vm814_vm0, %v18818_v39  ;;  %v1390_v24 = vsel %vm814_vm0, %v18849_v21, 0  ;;  %v21559_v39 = vld [vmem:[#allocation8 + $0x40c] ss:$16 sps:$4 sm:$0xff]   ;;  %v21574_v48 = vld [vmem:[#allocation8 + $0x464] ss:$16 sps:$4 sm:$0xff]   ;;  %vm11116_vm9 = vcmask 1041408  }
 0x1b4   : > { %1000 = vmatpush1.bf16.msra.mxu0 %v986_v44  ;;  %v1596_v35 = vsel %vm814_vm0, %v18865_v33, 0  ;;  %v21571_v44 = vld [vmem:[#allocation8 + $0x44c] ss:$16 sps:$4 sm:$0xff]   ;;  %v21580_v51 = vld [vmem:[#allocation8 + $0x484] ss:$16 sps:$4 sm:$0xff]   ;;  %vm18456_vm11 = vcmask 1040384  }
 0x1b5   : > { %1183 = vmatprep.subr.bf16.mxu0 %v21526_v45  ;;  %v21566_v45 = vld [vmem:[#allocation8 + $0x440] ss:$16 sps:$4 sm:$0xff]   ;;  %v21593_v62 = vld [vmem:[#allocation8 + $0x4c8] ss:$16 sps:$4 sm:$0xff]   ;;  %v21604_v4 = vld [vmem:[#allocation8 + $0x504] ss:$16 sps:$4 sm:$0xff]  }
 0x1b6   : > { %1061 = vmatpush1.bf16.msra.mxu1 %v992_v49  ;;  %v21575_v49 = vld [vmem:[#allocation8 + $0x468] ss:$16 sps:$4 sm:$0xff]   ;;  %v21596_v2 = vld [vmem:[#allocation8 + $0x4e0] ss:$16 sps:$4 sm:$0xff]   ;;  %v21610_v9 = vld [vmem:[#allocation8 + $0x524] ss:$16 sps:$4 sm:$0xff]  }
 0x1b7   : > { %18805 = vmatmul.mubr.msk.bf16.gmra.mrb[4].mxu0 %vm804_vm2, %v770_v52  ;;  %18809 = vmatmul.mubr.msk.bf16.gmra.mrb[4].mxu1 %vm804_vm2, %v770_v52  ;;  %v21583_v52 = vld [vmem:[#allocation8 + $0x48c] ss:$16 sps:$4 sm:$0xff]   ;;  %v21623_v21 = vld [vmem:[#allocation8 + $0x568] ss:$16 sps:$4 sm:$0xff]   ;;  %v21640_v28 = vld [vmem:[#allocation8 + $0x5c4] ss:$16 sps:$4 sm:$0xff]  }
 0x1b8   : > { %879 = vmatprep.mubr.bf16.mxu0 %v25185_v0  ;;  %940 = vmatprep.mubr.bf16.mxu1 %v25185_v0  ;;  %v21613_v12 = vld [vmem:[#allocation8 + $0x52c] ss:$16 sps:$4 sm:$0xff]   ;;  %vm12082_vm8 = vsmask.f32 256  ;;  %s26464_s19 = scalar_lea.vmem [#allocation26], %s21302_s23  ;;  %s26690_s22 = sld [smem:[#allocation42_spill]] }
 0x1b9   : > { %1244 = vmatprep.subr.bf16.mxu1 %v21531_v54  ;;  %v21581_v54 = vld [vmem:[#allocation8 + $0x488] ss:$16 sps:$4 sm:$0xff]   ;;  %v21619_v15 = vld [vmem:[#allocation8 + $0x54c] ss:$16 sps:$4 sm:$0xff]   ;;  %s21304_s30 = smul.u32 384, %s25294_s25  ;;  %s18553_s6 = sshll.u32 %s26464_s19, 4  ;;  %s26571_s6 = int_to_ptr.vmem [resolvable:$true] %s18553_s6 }
 0x1ba   : > { %v21649_v33 = vld [vmem:[#allocation8 + $0x5ec] ss:$16 sps:$4 sm:$0xff]   ;;  %s26691_s17 = sld [smem:[#allocation48_spill]]  ;;  %s18539_s29 = scalar_lea.sflag [#allocation4], %s710_s4 }
 0x1bb   : > { %s25070_s16 = scalar_lea.vmem %s26571_s6, 384  ;;  %s25187_s25 = smov [#allocation26]  }
 0x1bc   : > { %p25071_p5 = scmp.ne.s32.totalorder %s26571_s6, %s25070_s16  ;;  %s25074_s18 = sshll.u32 %s25187_s25, 4  ;;  %s25075_s18 = int_to_ptr.vmem [resolvable:$false] %s25074_s18 }
 0x1bd   : > { %s25076_s26 = scalar_lea.vmem %s25075_s18, 768  ;;  %p25077_p2 = scmp.lt.s32.totalorder %s26571_s6, %s25075_s18 }
 0x1be   : > { %p26692_p9 = scmp.ne.s32.totalorder %s26690_s22, 0  ;;  %p25078_p3 = scmp.lt.s32.totalorder %s25076_s26, %s25070_s16 }
 0x1bf   : > { %18806 = vmatmul.mubr.msk.bf16.gmra.mrb[8].mxu0 %vm804_vm2, %v773_v59  ;;  %18810 = vmatmul.mubr.msk.bf16.gmra.mrb[8].mxu1 %vm804_vm2, %v773_v59  ;;  %v21592_v59 = vld [vmem:[#allocation8 + $0x4c4] ss:$16 sps:$4 sm:$0xff]  }
 0x1c0   : > { %1029 = vmatprep.mubr.bf16.mxu0 %v25185_v0  ;;  %1090 = vmatprep.mubr.bf16.mxu1 %v25185_v0  ;;  %s26569_s27 = scalar_lea.hbm %s26691_s17, %s21304_s30  ;;  %p25072_p12 = pnand %p25071_p5, %p26692_p9 }
 0x1c1   : > { %p25079_p4 = por %p25078_p3, %p25077_p2 }
 0x1c2   : > { %p25073_p10 = pneg %p25072_p12 }
 0x1c4   : > { %p25080_p7 = pnand %p25079_p4, %p25073_p10 }
 0x1c7   : > { %18820 = vmatmul.mubr.msk.bf16.vlgmr.msra.gmra.mrb[0].mxu0 %vm804_vm2, %v25673_v11  ;;  %18824 = vmatmul.mubr.msk.bf16.vlgmr.msra.gmra.mrb[0].mxu1 %vm804_vm2, %v25673_v11  ;;  %v1130_v11 = vrot.slane %v25684_v23, 1 }
 0x1c8   : > { %1184 = vmatpush1.bf16.msra.mxu0 %v21524_v61  ;;  %1039 = vmatprep.mubr.bf16.mxu0 %v25185_v0  ;;  %v21590_v61 = vld [vmem:[#allocation8 + $0x4c0] ss:$16 sps:$4 sm:$0xff]  }
 0x1c9   : > { %1100 = vmatprep.mubr.bf16.mxu1 %v25185_v0  ;;  %18835 = vmatprep.subr.msk.bf16.mxu0 %vm814_vm0, %v18832_v1  ;;  %v1131_v26 = vsel %vm1126_vm5, %v1128_v10, %v1130_v11  ;;  %v21601_v1 = vld [vmem:[#allocation8 + $0x4ec] ss:$16 sps:$4 sm:$0xff]   ;;  %v21611_v10 = vld [vmem:[#allocation8 + $0x528] ss:$16 sps:$4 sm:$0xff]  }
 0x1ca   : > { %1245 = vmatpush1.bf16.msra.mxu1 %v21529_v63  ;;  %v21598_v63 = vld [vmem:[#allocation8 + $0x4e4] ss:$16 sps:$4 sm:$0xff]  }
 0x1cb   : > { %18839 = vmatprep.subr.msk.bf16.mxu1 %vm814_vm0, %v18834_v3  ;;  %v21599_v3 = vld [vmem:[#allocation8 + $0x4e8] ss:$16 sps:$4 sm:$0xff]  }
 0x1cc   : > { %1186 = vmatpush1.bf16.msra.mxu0 %v1172_v6  ;;  %v21602_v6 = vld [vmem:[#allocation8 + $0x500] ss:$16 sps:$4 sm:$0xff]  }
 0x1cd   : > { %1395 = vmatprep.subr.bf16.mxu0 %v21536_v5  ;;  %v21607_v5 = vld [vmem:[#allocation8 + $0x50c] ss:$16 sps:$4 sm:$0xff]  }
 0x1ce   : > { %1247 = vmatpush1.bf16.msra.mxu1 %v1178_v7  ;;  %v21605_v7 = vld [vmem:[#allocation8 + $0x508] ss:$16 sps:$4 sm:$0xff]  }
 0x1cf   : > { %18821 = vmatmul.mubr.msk.bf16.gmra.mrb[4].mxu0 %vm804_vm2, %v25677_v13  ;;  %18825 = vmatmul.mubr.msk.bf16.gmra.mrb[4].mxu1 %vm804_vm2, %v25677_v13  ;;  %v1384_v13 = vsel %vm814_vm0, %v18847_v19, 0  ;;  %v21625_v19 = vld [vmem:[#allocation8 + $0x56c] ss:$16 sps:$4 sm:$0xff]  }
 0x1d0   : > { %1049 = vmatprep.mubr.bf16.mxu0 %v25185_v0  ;;  %1110 = vmatprep.mubr.bf16.mxu1 %v25185_v0 }
 0x1d1   : > { %1456 = vmatprep.subr.bf16.mxu1 %v21541_v8  ;;  %v21608_v8 = vld [vmem:[#allocation8 + $0x520] ss:$16 sps:$4 sm:$0xff]  }
 0x1d7   : > { %18822 = vmatmul.mubr.msk.bf16.gmra.mrb[12].mxu0 %vm804_vm2, %v25684_v23  ;;  %18826 = vmatmul.mubr.msk.bf16.gmra.mrb[12].mxu1 %vm804_vm2, %v25684_v23  ;;  %v1542_v23 = vld [vmem:[#allocation2 + $0xe0] sm:$0xff] }
 0x1d8   : > { %1215 = vmatprep.mubr.bf16.mxu0 %v25185_v0  ;;  %1276 = vmatprep.mubr.bf16.mxu1 %v25185_v0  ;;  %v18864_v30 = vcombine.high %v1542_v23, %v1542_v23  ;;  %v18863_v31 = vcombine.low %v1542_v23, %v1542_v23  ;;  %v21632_v23 = vld [vmem:[#allocation8 + $0x5a0] ss:$16 sps:$4 sm:$0xff]  }
 0x1da   : > { %v1590_v34 = vsel %vm814_vm0, %v18863_v31, 0  ;;  %v21641_v31 = vld [vmem:[#allocation8 + $0x5c8] ss:$16 sps:$4 sm:$0xff]  }
 0x1df   : > { %18836 = vmatmul.mubr.msk.bf16.vlgmr.msra.gmra.mrb[0].mxu0 %vm804_vm2, %v1129_v16  ;;  %18840 = vmatmul.mubr.msk.bf16.vlgmr.msra.gmra.mrb[0].mxu1 %vm804_vm2, %v1129_v16  ;;  %v21614_v16 = vld [vmem:[#allocation8 + $0x540] ss:$16 sps:$4 sm:$0xff]  }
 0x1e0   : > { %1396 = vmatpush1.bf16.msra.mxu0 %v21534_v14  ;;  %1225 = vmatprep.mubr.bf16.mxu0 %v25185_v0  ;;  %v21616_v14 = vld [vmem:[#allocation8 + $0x544] ss:$16 sps:$4 sm:$0xff]  }
 0x1e1   : > { %1286 = vmatprep.mubr.bf16.mxu1 %v25185_v0  ;;  %18851 = vmatprep.subr.msk.bf16.mxu0 %vm814_vm0, %v18848_v18  ;;  %v21622_v18 = vld [vmem:[#allocation8 + $0x564] ss:$16 sps:$4 sm:$0xff]  }
 0x1e2   : > { %1457 = vmatpush1.bf16.msra.mxu1 %v21539_v17  ;;  %v21617_v17 = vld [vmem:[#allocation8 + $0x548] ss:$16 sps:$4 sm:$0xff]  }
 0x1e3   : > { %18855 = vmatprep.subr.msk.bf16.mxu1 %vm814_vm0, %v18850_v20  ;;  %v21620_v20 = vld [vmem:[#allocation8 + $0x560] ss:$16 sps:$4 sm:$0xff]  }
 0x1e4   : > { %1398 = vmatpush1.bf16.msra.mxu0 %v1384_v13  ;;  %v21626_v13 = vld [vmem:[#allocation8 + $0x580] ss:$16 sps:$4 sm:$0xff]  }
 0x1e5   : > { %1601 = vmatprep.subr.bf16.mxu0 %v21546_v22  ;;  %v21628_v22 = vld [vmem:[#allocation8 + $0x584] ss:$16 sps:$4 sm:$0xff]  }
 0x1e6   : > { %1459 = vmatpush1.bf16.msra.mxu1 %v1390_v24  ;;  %v21629_v24 = vld [vmem:[#allocation8 + $0x588] ss:$16 sps:$4 sm:$0xff]  }
 0x1e7   : > { %18837 = vmatmul.mubr.msk.bf16.gmra.mrb[4].mxu0 %vm804_vm2, %v1131_v26  ;;  %18841 = vmatmul.mubr.msk.bf16.gmra.mrb[4].mxu1 %vm804_vm2, %v1131_v26  ;;  %v21637_v26 = vld [vmem:[#allocation8 + $0x5ac] ss:$16 sps:$4 sm:$0xff]  }
 0x1e8   : > { %1235 = vmatprep.mubr.bf16.mxu0 %v25185_v0  ;;  %1296 = vmatprep.mubr.bf16.mxu1 %v25185_v0 }
 0x1e9   : > { %1662 = vmatprep.subr.bf16.mxu1 %v21551_v25  ;;  %v21634_v25 = vld [vmem:[#allocation8 + $0x5a4] ss:$16 sps:$4 sm:$0xff]  }
 0x1ef   : > { %18838 = vmatmul.mubr.msk.bf16.gmra.mrb[16].mxu0 %vm804_vm2, %v1130_v11  ;;  %18842 = vmatmul.mubr.msk.bf16.gmra.mrb[16].mxu1 %vm804_vm2, %v1130_v11  ;;  %v21631_v11 = vld [vmem:[#allocation8 + $0x58c] ss:$16 sps:$4 sm:$0xff]  }
 0x1f0   : > { %1427 = vmatprep.mubr.bf16.mxu0 %v25185_v0  ;;  %1488 = vmatprep.mubr.bf16.mxu1 %v25185_v0 }
 0x1f7   : > { %18852 = vmatmul.mubr.msk.bf16.vlgmr.msra.gmra.mrb[0].mxu0 %vm804_vm2, %v25700_v50  ;;  %18856 = vmatmul.mubr.msk.bf16.vlgmr.msra.gmra.mrb[0].mxu1 %vm804_vm2, %v25700_v50  ;;  %v21577_v50 = vld [vmem:[#allocation8 + $0x46c] ss:$16 sps:$4 sm:$0xff]  }
 0x1f8   : > { %1602 = vmatpush1.bf16.msra.mxu0 %v21544_v27  ;;  %1437 = vmatprep.mubr.bf16.mxu0 %v25185_v0  ;;  %v21635_v27 = vld [vmem:[#allocation8 + $0x5a8] ss:$16 sps:$4 sm:$0xff]  }
 0x1f9   : > { %1498 = vmatprep.mubr.bf16.mxu1 %v25185_v0  ;;  %18867 = vmatprep.subr.msk.bf16.mxu0 %vm814_vm0, %v18864_v30  ;;  %v21638_v30 = vld [vmem:[#allocation8 + $0x5c0] ss:$16 sps:$4 sm:$0xff]  }
 0x1fa   : > { %1663 = vmatpush1.bf16.msra.mxu1 %v21549_v29  ;;  %v21643_v29 = vld [vmem:[#allocation8 + $0x5cc] ss:$16 sps:$4 sm:$0xff]  }
 0x1fb   : > { %18871 = vmatprep.subr.msk.bf16.mxu1 %vm814_vm0, %v18866_v32  ;;  %v21646_v32 = vld [vmem:[#allocation8 + $0x5e4] ss:$16 sps:$4 sm:$0xff]  }
 0x1fc   : > { %1604 = vmatpush1.bf16.msra.mxu0 %v1590_v34  ;;  %v21644_v34 = vld [vmem:[#allocation8 + $0x5e0] ss:$16 sps:$4 sm:$0xff]  }
 0x1fd   : > { %2827 = vmatprep.subr.bf16.mxu0 %v21556_v37  ;;  %v21655_v37 = vld [vmem:[#allocation8 + $0x60c] ss:$16 sps:$4 sm:$0xff]  }
 0x1fe   : > { %1665 = vmatpush1.bf16.msra.mxu1 %v1596_v35  ;;  %v21647_v35 = vld [vmem:[#allocation8 + $0x5e8] ss:$16 sps:$4 sm:$0xff]  }
 0x1ff   : > { %18853 = vmatmul.mubr.msk.bf16.gmra.mrb[4].mxu0 %vm804_vm2, %v25714_v57  ;;  %18857 = vmatmul.mubr.msk.bf16.gmra.mrb[4].mxu1 %vm804_vm2, %v25714_v57  ;;  %v21589_v57 = vld [vmem:[#allocation8 + $0x4ac] ss:$16 sps:$4 sm:$0xff]  }
 0x200   : > { %1447 = vmatprep.mubr.bf16.mxu0 %v25185_v0  ;;  %1508 = vmatprep.mubr.bf16.mxu1 %v25185_v0 }
 0x201   : > { %2933 = vmatprep.subr.bf16.mxu1 %v21559_v39 }
 0x207   : > { %18854 = vmatmul.mubr.msk.bf16.gmra.mrb[20].mxu0 %vm804_vm2, %v25704_v53  ;;  %18858 = vmatmul.mubr.msk.bf16.gmra.mrb[20].mxu1 %vm804_vm2, %v25704_v53  ;;  %v21578_v53 = vld [vmem:[#allocation8 + $0x480] ss:$16 sps:$4 sm:$0xff]  }
 0x208   : > { %1633 = vmatprep.mubr.bf16.mxu0 %v25185_v0  ;;  %1694 = vmatprep.mubr.bf16.mxu1 %v25185_v0 }
 0x20f   : > { %18868 = vmatmul.mubr.msk.bf16.vlgmr.msra.gmra.mrb[0].mxu0 %vm804_vm2, %v25707_v55  ;;  %18872 = vmatmul.mubr.msk.bf16.vlgmr.msra.gmra.mrb[0].mxu1 %vm804_vm2, %v25707_v55  ;;  %v21586_v55 = vld [vmem:[#allocation8 + $0x4a4] ss:$16 sps:$4 sm:$0xff]  }
 0x210   : > { %1643 = vmatprep.mubr.bf16.mxu0 %v25185_v0  ;;  %1704 = vmatprep.mubr.bf16.mxu1 %v25185_v0 }
 0x211   : > { %2828 = vmatpush1.bf16.msra.mxu0 %v21554_v36  ;;  %2934 = vmatpush1.bf16.msra.mxu1 %v21557_v38  ;;  %v21652_v36 = vld [vmem:[#allocation8 + $0x604] ss:$16 sps:$4 sm:$0xff]  }
 0x212   : > { %2829 = vmatprep.subr.bf16.mxu0 %v21562_v41  ;;  %2935 = vmatprep.subr.bf16.mxu1 %v21565_v43 }
 0x215   : > { %2830 = vmatpush1.bf16.msra.mxu0 %v21560_v40  ;;  %2936 = vmatpush1.bf16.msra.mxu1 %v21563_v42 }
 0x216   : > { %2937 = vmatprep.subr.bf16.mxu1 %v21571_v44 }
 0x217   : > { %18869 = vmatmul.mubr.msk.bf16.gmra.mrb[4].mxu0 %vm804_vm2, %v25720_v58  ;;  %18873 = vmatmul.mubr.msk.bf16.gmra.mrb[4].mxu1 %vm804_vm2, %v25720_v58  ;;  %v21587_v58 = vld [vmem:[#allocation8 + $0x4a8] ss:$16 sps:$4 sm:$0xff]  }
 0x218   : > { %1653 = vmatprep.mubr.bf16.mxu0 %v25185_v0  ;;  %1714 = vmatprep.mubr.bf16.mxu1 %v25185_v0  ;;  %v21568_v0 = vld [vmem:[#allocation8 + $0x444] ss:$16 sps:$4 sm:$0xff]  }
 0x219   : > { %2831 = vmatprep.subr.bf16.mxu0 %v21568_v0  ;;  %2938 = vmatpush1.bf16.msra.mxu1 %v21569_v46 }
 0x21a   : > { %2832 = vmatpush1.bf16.msra.mxu0 %v21566_v45  ;;  %2939 = vmatprep.subr.bf16.mxu1 %v21577_v50 }
 0x21b   : > { %2833 = vmatprep.subr.bf16.mxu0 %v21574_v48 }
 0x21d   : > { %2940 = vmatpush1.bf16.msra.mxu1 %v21575_v49 }
 0x21e   : > { %2834 = vmatpush1.bf16.msra.mxu0 %v21572_v47  ;;  %2941 = vmatprep.subr.bf16.mxu1 %v21583_v52 }
 0x21f   : > { %18870 = vmatmul.mubr.msk.bf16.gmra.mrb[24].mxu0 %vm804_vm2, %v25710_v56  ;;  %18874 = vmatmul.mubr.msk.bf16.gmra.mrb[24].mxu1 %vm804_vm2, %v25710_v56  ;;  %v21584_v56 = vld [vmem:[#allocation8 + $0x4a0] ss:$16 sps:$4 sm:$0xff]  }
 0x220   : > { %2835 = vmatprep.subr.bf16.mxu0 %v21580_v51 }
 0x221   : > { %2942 = vmatpush1.bf16.msra.mxu1 %v21581_v54 }
 0x222   : > { %2836 = vmatpush1.bf16.msra.mxu0 %v21578_v53  ;;  %2943 = vmatprep.subr.bf16.mxu1 %v21589_v57 }
 0x223   : > { %2837 = vmatprep.subr.bf16.mxu0 %v21586_v55 }
 0x225   : > { %2944 = vmatpush1.bf16.msra.mxu1 %v21587_v58 }
 0x226   : > { %2838 = vmatpush1.bf16.msra.mxu0 %v21584_v56  ;;  %2945 = vmatprep.subr.bf16.mxu1 %v21595_v60 }
 0x227   : > { %2839 = vmatprep.subr.bf16.mxu0 %v21592_v59 }
 0x229   : > { %2946 = vmatpush1.bf16.msra.mxu1 %v21593_v62 }
 0x22a   : > { %2840 = vmatpush1.bf16.msra.mxu0 %v21590_v61  ;;  %2947 = vmatprep.subr.bf16.mxu1 %v21601_v1 }
 0x22b   : > { %2841 = vmatprep.subr.bf16.mxu0 %v21598_v63 }
 0x22d   : > { %2948 = vmatpush1.bf16.msra.mxu1 %v21599_v3 }
 0x22e   : > { %2842 = vmatpush1.bf16.msra.mxu0 %v21596_v2  ;;  %2949 = vmatprep.subr.bf16.mxu1 %v21607_v5 }
 0x22f   : > { %2843 = vmatprep.subr.bf16.mxu0 %v21604_v4 }
 0x231   : > { %2950 = vmatpush1.bf16.msra.mxu1 %v21605_v7 }
 0x232   : > { %2844 = vmatpush1.bf16.msra.mxu0 %v21602_v6  ;;  %2951 = vmatprep.subr.bf16.mxu1 %v21613_v12  ;;  %v1745_v6 = vlaneseq }
 0x233   : > { %2845 = vmatprep.subr.bf16.mxu0 %v21610_v9 }
 0x234   : > { %v25809_v7 = vshrl.u32 %v1745_v6, 7 }
 0x235   : > { %2952 = vmatpush1.bf16.msra.mxu1 %v21611_v10 }
 0x236   : > { %2846 = vmatpush1.bf16.msra.mxu0 %v21608_v8  ;;  %2953 = vmatprep.subr.bf16.mxu1 %v21619_v15  ;;  %v25812_v10 = vsub.s32 0, %v25809_v7 }
 0x237   : > { %2847 = vmatprep.subr.bf16.mxu0 %v21616_v14 }
 0x239   : > { %2954 = vmatpush1.bf16.msra.mxu1 %v21617_v17  ;;  %v25819_v17 = vsub.s32 2, %v25809_v7 }
 0x23a   : > { %2848 = vmatpush1.bf16.msra.mxu0 %v21614_v16  ;;  %2955 = vmatprep.subr.bf16.mxu1 %v21625_v19 }
 0x23b   : > { %2849 = vmatprep.subr.bf16.mxu0 %v21622_v18 }
 0x23d   : > { %2956 = vmatpush1.bf16.msra.mxu1 %v21623_v21 }
 0x23e   : > { %2850 = vmatpush1.bf16.msra.mxu0 %v21620_v20  ;;  %2957 = vmatprep.subr.bf16.mxu1 %v21631_v11  ;;  %v25826_v11 = vsub.s32 1, %v25809_v7 }
 0x23f   : > { %2851 = vmatprep.subr.bf16.mxu0 %v21628_v22  ;;  %v1743_v22 = vld [vmem:[#allocation5] sm:$0xf] }
 0x241   : > { %2958 = vmatpush1.bf16.msra.mxu1 %v21629_v24 }
 0x242   : > { %2852 = vmatpush1.bf16.msra.mxu0 %v21626_v13  ;;  %2959 = vmatprep.subr.bf16.mxu1 %v21637_v26  ;;  %v25829_v13 = vsub.s32 3, %v25809_v7  ;;  %v1805_v26 = vld [vmem:[#allocation7] ss:$2 sm:$0xf] }
 0x243   : > { %2853 = vmatprep.subr.bf16.mxu0 %v21634_v25 }
 0x245   : > { %2960 = vmatpush1.bf16.msra.mxu1 %v21635_v27  ;;  %v25835_v27 = vrot.slane %v1743_v22, %v25819_v17 }
 0x246   : > { %2854 = vmatpush1.bf16.msra.mxu0 %v21632_v23  ;;  %2961 = vmatprep.subr.bf16.mxu1 %v21643_v29  ;;  %v25832_v23 = vrot.slane %v1743_v22, %v25812_v10  ;;  %v25838_v29 = vrot.slane %v1743_v22, %v25826_v11 }
 0x247   : > { %2855 = vmatprep.subr.bf16.mxu0 %v21640_v28  ;;  %v1848_v28 = vld [vmem:[#allocation7 + $0x1] ss:$2 sm:$0xf] }
 0x249   : > { %2962 = vmatpush1.bf16.msra.mxu1 %v21641_v31 }
 0x24a   : > { %2856 = vmatpush1.bf16.msra.mxu0 %v21638_v30  ;;  %2963 = vmatprep.subr.bf16.mxu1 %v21649_v33  ;;  %v25841_v30 = vrot.slane %v1743_v22, %v25829_v13 }
 0x24b   : > { %2857 = vmatprep.subr.bf16.mxu0 %v21646_v32  ;;  %v25844_v32 = vrot.slane %v1805_v26, %v25812_v10 }
 0x24d   : > { %2964 = vmatpush1.bf16.msra.mxu1 %v21647_v35  ;;  %v25850_v35 = vrot.slane %v1805_v26, %v25826_v11 }
 0x24e   : > { %2858 = vmatpush1.bf16.msra.mxu0 %v21644_v34  ;;  %2986 = vmatprep.subr.bf16.mxu1 %v21655_v37  ;;  %v25847_v34 = vrot.slane %v1805_v26, %v25819_v17 }
 0x24f   : > { %2880 = vmatprep.subr.bf16.mxu0 %v21652_v36  ;;  %v25853_v36 = vrot.slane %v1805_v26, %v25829_v13 }
 0x292   : > { %v881_v38 = vpop.f32.mrb[8].mxu0  ;;  %v942_v39 = vpop.f32.mrb[8].mxu1 }
 0x293   : > { %v883_v40 = vpop.f32.mrb[9].mxu0  ;;  %v944_v41 = vpop.f32.mrb[9].mxu1 }
 0x294   : > { %v885_v42 = vpop.f32.mrb[10].mxu0  ;;  %v946_v43 = vpop.f32.mrb[10].mxu1 }
 0x295   : > { %v886_v0 = vpop.f32.mrb[11].mxu0  ;;  %v947_v44 = vpop.f32.mrb[11].mxu1 }
 0x296   : > { %v25865_v0 = vrot.slane %v1848_v28, %v25826_v11 }
 0x2aa   : > { %v1051_v45 = vpop.f32.mrb[12].mxu0  ;;  %v1112_v46 = vpop.f32.mrb[12].mxu1 }
 0x2ab   : > { %v1052_v47 = vadd.f32 %v1051_v45, %v881_v38  ;;  %v1053_v48 = vpop.f32.mrb[13].mxu0  ;;  %v1113_v49 = vadd.f32 %v1112_v46, %v942_v39  ;;  %v1114_v50 = vpop.f32.mrb[13].mxu1  ;;  %v25857_v38 = vrot.slane %v1848_v28, %v25812_v10  ;;  %v25869_v45 = vrot.slane %v1848_v28, %v25829_v13 }
 0x2ac   : > { %v1054_v51 = vadd.f32 %v1053_v48, %v883_v40  ;;  %v1055_v52 = vpop.f32.mrb[14].mxu0  ;;  %v1115_v53 = vadd.f32 %v1114_v50, %v944_v41  ;;  %v1116_v54 = vpop.f32.mrb[14].mxu1  ;;  %v25861_v40 = vrot.slane %v1848_v28, %v25819_v17 }
 0x2ad   : > { %v1056_v55 = vpop.f32.mrb[15].mxu0  ;;  %v1117_v56 = vpop.f32.mrb[15].mxu1 }
 0x2c2   : > { %v1237_v57 = vpop.f32.mrb[16].mxu0  ;;  %v1298_v58 = vpop.f32.mrb[16].mxu1 }
 0x2c3   : > { %v1321_v59 = vadd.f32 %v1237_v57, %v1052_v47  ;;  %v1239_v60 = vpop.f32.mrb[17].mxu0  ;;  %v1323_v61 = vadd.f32 %v1298_v58, %v1113_v49  ;;  %v1300_v62 = vpop.f32.mrb[17].mxu1 }
 0x2c4   : > { %v1322_v63 = vadd.f32 %v1239_v60, %v1054_v51  ;;  %v1241_v1 = vpop.f32.mrb[18].mxu0  ;;  %v1324_v2 = vadd.f32 %v1300_v62, %v1115_v53  ;;  %v1302_v3 = vpop.f32.mrb[18].mxu1 }
 0x2c5   : > { %v1242_v4 = vpop.f32.mrb[19].mxu0  ;;  %v1303_v5 = vpop.f32.mrb[19].mxu1 }
 0x2da   : > { %v1449_v8 = vpop.f32.mrb[20].mxu0  ;;  %v1510_v9 = vpop.f32.mrb[20].mxu1 }
 0x2db   : > { %v25814_v12 = vadd.f32 %v1449_v8, %v1321_v59  ;;  %v25816_v14 = vadd.f32 %v1510_v9, %v1323_v61  ;;  %v1451_v15 = vpop.f32.mrb[21].mxu0  ;;  %v1512_v16 = vpop.f32.mrb[21].mxu1 }
 0x2dc   : > { %v25821_v18 = vadd.f32 %v1451_v15, %v1322_v63  ;;  %v25823_v19 = vadd.f32 %v1512_v16, %v1324_v2  ;;  %v1453_v20 = vpop.f32.mrb[22].mxu0  ;;  %v1514_v21 = vpop.f32.mrb[22].mxu1 }
 0x2dd   : > { %v1454_v24 = vpop.f32.mrb[23].mxu0  ;;  %v1515_v25 = vpop.f32.mrb[23].mxu1 }
 0x2e2   : > { %v1635_v31 = vpop.f32.mrb[0].mxu0  ;;  %v1696_v33 = vpop.f32.mrb[0].mxu1 }
 0x2e3   : > { %v1765_v37 = vadd.f32 %v25832_v23, %v1635_v31  ;;  %v1767_v39 = vadd.f32 %v25835_v27, %v1696_v33  ;;  %v1637_v41 = vpop.f32.mrb[1].mxu0  ;;  %v1698_v42 = vpop.f32.mrb[1].mxu1 }
 0x2e4   : > { %v1766_v43 = vadd.f32 %v25838_v29, %v1637_v41  ;;  %v1768_v44 = vadd.f32 %v25841_v30, %v1698_v42  ;;  %v1639_v46 = vpop.f32.mrb[2].mxu0  ;;  %v1700_v47 = vpop.f32.mrb[2].mxu1 }
 0x2e5   : > { %v1785_v48 = vmax.f32 %v1765_v37, 0.0  ;;  %v1787_v49 = vmax.f32 %v1767_v39, 0.0  ;;  %v1769_v50 = vadd.f32 %v25832_v23, %v1639_v46  ;;  %v1771_v51 = vadd.f32 %v25835_v27, %v1700_v47  ;;  %v1641_v52 = vpop.f32.mrb[3].mxu0  ;;  %v1702_v53 = vpop.f32.mrb[3].mxu1 }
 0x2e6   : > { %v1786_v54 = vmax.f32 %v1766_v43, 0.0  ;;  %v1788_v55 = vmax.f32 %v1768_v44, 0.0  ;;  %v1770_v56 = vadd.f32 %v25838_v29, %v1641_v52  ;;  %v1772_v57 = vadd.f32 %v25841_v30, %v1702_v53 }
 0x2e7   : > { %v1827_v58 = vmul.f32 %v25844_v32, %v1785_v48  ;;  %v1829_v59 = vmul.f32 %v25847_v34, %v1787_v49  ;;  %v1789_v60 = vmax.f32 %v1769_v50, 0.0  ;;  %v1791_v61 = vmax.f32 %v1771_v51, 0.0 }
 0x2e8   : > { %v1828_v62 = vmul.f32 %v25850_v35, %v1786_v54  ;;  %v1830_v63 = vmul.f32 %v25853_v36, %v1788_v55  ;;  %v1790_v1 = vmax.f32 %v1770_v56, 0.0  ;;  %v1792_v2 = vmax.f32 %v1772_v57, 0.0 }
 0x2e9   : > { %v1870_v3 = vadd.f32 %v25857_v38, %v1827_v58  ;;  %v1872_v4 = vadd.f32 %v25861_v40, %v1829_v59  ;;  %v1831_v5 = vmul.f32 %v25844_v32, %v1789_v60  ;;  %v1833_v6 = vmul.f32 %v25847_v34, %v1791_v61 }
 0x2ea   : > { %v1871_v8 = vadd.f32 %v25865_v0, %v1828_v62  ;;  %v1873_v9 = vadd.f32 %v25869_v45, %v1830_v63  ;;  %v1832_v15 = vmul.f32 %v25850_v35, %v1790_v1  ;;  %v1834_v16 = vmul.f32 %v25853_v36, %v1792_v2  ;;  %v1645_v20 = vpop.f32.mrb[4].mxu0  ;;  %v1706_v21 = vpop.f32.mrb[4].mxu1 }
 0x2eb   : > { %v1874_v22 = vadd.f32 %v25857_v38, %v1831_v5  ;;  %v1876_v24 = vadd.f32 %v25861_v40, %v1833_v6  ;;  %v1773_v25 = vadd.f32 %v25832_v23, %v1645_v20  ;;  %v1775_v26 = vadd.f32 %v25835_v27, %v1706_v21  ;;  %v1647_v28 = vpop.f32.mrb[5].mxu0  ;;  %v1708_v31 = vpop.f32.mrb[5].mxu1 }
 0x2ec   : > { %v1875_v33 = vadd.f32 %v25865_v0, %v1832_v15  ;;  %v1877_v37 = vadd.f32 %v25869_v45, %v1834_v16  ;;  %v1774_v39 = vadd.f32 %v25838_v29, %v1647_v28  ;;  %v1776_v41 = vadd.f32 %v25841_v30, %v1708_v31  ;;  %v1649_v42 = vpop.f32.mrb[6].mxu0  ;;  %v1710_v43 = vpop.f32.mrb[6].mxu1 }
 0x2ed   : > { %v25895_v44 = vpack.c.bf16 %v1874_v22, %v1870_v3  ;;  %v25897_v46 = vpack.c.bf16 %v1876_v24, %v1872_v4  ;;  %v1793_v47 = vmax.f32 %v1773_v25, 0.0  ;;  %v1795_v48 = vmax.f32 %v1775_v26, 0.0  ;;  %v1651_v49 = vpop.f32.mrb[7].mxu0  ;;  %v1712_v50 = vpop.f32.mrb[7].mxu1 }
 0x2ee   : > { %v25899_v51 = vpack.c.bf16 %v1875_v33, %v1871_v8  ;;  %v25901_v52 = vpack.c.bf16 %v1877_v37, %v1873_v9  ;;  %v1794_v53 = vmax.f32 %v1774_v39, 0.0  ;;  %v1796_v54 = vmax.f32 %v1776_v41, 0.0 }
 0x2ef   : > { %v1835_v55 = vmul.f32 %v25844_v32, %v1793_v47  ;;  %v1837_v56 = vmul.f32 %v25847_v34, %v1795_v48  ;;  %v1777_v57 = vadd.f32 %v25832_v23, %v1649_v42  ;;  %v1779_v58 = vadd.f32 %v25835_v27, %v1710_v43 }
 0x2f0   : > { %v1836_v59 = vmul.f32 %v25850_v35, %v1794_v53  ;;  %v1838_v60 = vmul.f32 %v25853_v36, %v1796_v54  ;;  %v1778_v61 = vadd.f32 %v25838_v29, %v1651_v49  ;;  %v1780_v62 = vadd.f32 %v25841_v30, %v1712_v50 }
 0x2f1   : > { %v1878_v63 = vadd.f32 %v25857_v38, %v1835_v55  ;;  %v1880_v1 = vadd.f32 %v25861_v40, %v1837_v56  ;;  %v1797_v2 = vmax.f32 %v1777_v57, 0.0  ;;  %v1799_v3 = vmax.f32 %v1779_v58, 0.0 }
 0x2f2   : > { %v1879_v4 = vadd.f32 %v25865_v0, %v1836_v59  ;;  %v1881_v5 = vadd.f32 %v25869_v45, %v1838_v60  ;;  %v1798_v6 = vmax.f32 %v1778_v61, 0.0  ;;  %v1800_v8 = vmax.f32 %v1780_v62, 0.0  ;;  %v1655_v9 = vpop.f32.mrb[24].mxu0  ;;  %v1716_v15 = vpop.f32.mrb[24].mxu1  ;;  %v21650_v60 = vld [vmem:[#allocation8 + $0x600] ss:$16 sps:$4 sm:$0xff]  }
 0x2f3   : > { %v1839_v16 = vmul.f32 %v25844_v32, %v1797_v2  ;;  %v1841_v20 = vmul.f32 %v25847_v34, %v1799_v3  ;;  %v1739_v21 = vadd.f32 %v1655_v9, %v25814_v12  ;;  %v1741_v22 = vadd.f32 %v1716_v15, %v25816_v14  ;;  %v1657_v24 = vpop.f32.mrb[25].mxu0  ;;  %v1718_v25 = vpop.f32.mrb[25].mxu1  ;;  %v21667_v9 = vld [vmem:[#allocation8 + $0x64c] ss:$16 sps:$4 sm:$0xff]   ;;  %v21665_v15 = vld [vmem:[#allocation8 + $0x648] ss:$16 sps:$4 sm:$0xff]  }
 0x2f4   : > { %v1840_v26 = vmul.f32 %v25850_v35, %v1798_v6  ;;  %v1842_v28 = vmul.f32 %v25853_v36, %v1800_v8  ;;  %v1740_v31 = vadd.f32 %v1657_v24, %v25821_v18  ;;  %v1742_v33 = vadd.f32 %v1718_v25, %v25823_v19  ;;  %v1659_v37 = vpop.f32.mrb[26].mxu0  ;;  %v1720_v39 = vpop.f32.mrb[26].mxu1 }
 0x2f5   : > { %v1882_v41 = vadd.f32 %v25857_v38, %v1839_v16  ;;  %v1884_v42 = vadd.f32 %v25861_v40, %v1841_v20  ;;  %v1781_v12 = vadd.f32 %v25832_v23, %v1739_v21  ;;  %v1783_v14 = vadd.f32 %v25835_v27, %v1741_v22  ;;  %v1660_v43 = vpop.f32.mrb[27].mxu0  ;;  %v1721_v47 = vpop.f32.mrb[27].mxu1  ;;  %v21670_v20 = vld [vmem:[#allocation8 + $0x664] ss:$16 sps:$4 sm:$0xff]   ;;  %v21673_v21 = vld [vmem:[#allocation8 + $0x66c] ss:$16 sps:$4 sm:$0xff]  }
 0x2f6   : > { %v1883_v48 = vadd.f32 %v25865_v0, %v1840_v26  ;;  %v1885_v49 = vadd.f32 %v25869_v45, %v1842_v28  ;;  %v1782_v18 = vadd.f32 %v25838_v29, %v1740_v31  ;;  %v1784_v19 = vadd.f32 %v25841_v30, %v1742_v33  ;;  %v21653_v30 = vld [vmem:[#allocation8 + $0x608] ss:$16 sps:$4 sm:$0xff]   ;;  %v21668_v31 = vld [vmem:[#allocation8 + $0x660] ss:$16 sps:$4 sm:$0xff]  }
 0x2f7   : > { %v25931_v50 = vpack.c.bf16 %v1882_v41, %v1878_v63  ;;  %v25933_v53 = vpack.c.bf16 %v1884_v42, %v1880_v1  ;;  %v1801_v54 = vmax.f32 %v1781_v12, 0.0  ;;  %v1803_v55 = vmax.f32 %v1783_v14, 0.0  ;;  %v21671_v39 = vld [vmem:[#allocation8 + $0x668] ss:$16 sps:$4 sm:$0xff]   ;;  %v21676_v41 = vld [vmem:[#allocation8 + $0x684] ss:$16 sps:$4 sm:$0xff]  }
 0x2f8   : > { %v25935_v56 = vpack.c.bf16 %v1883_v48, %v1879_v4  ;;  %v25937_v23 = vpack.c.bf16 %v1885_v49, %v1881_v5  ;;  %v1802_v27 = vmax.f32 %v1782_v18, 0.0  ;;  %v1804_v57 = vmax.f32 %v1784_v19, 0.0  ;;  %v21658_v4 = vld [vmem:[#allocation8 + $0x624] ss:$16 sps:$4 sm:$0xff]   ;;  %v21679_v42 = vld [vmem:[#allocation8 + $0x68c] ss:$16 sps:$4 sm:$0xff]  }
 0x2f9   : > { %v1843_v58 = vmul.f32 %v25844_v32, %v1801_v54  ;;  %v1845_v59 = vmul.f32 %v25847_v34, %v1803_v55  ;;  %v2170_v29 = vrot.slane %v25899_v51, 1  ;;  %v2168_v1 = vrot.slane %v25931_v50, 1  ;;  %v21661_v34 = vld [vmem:[#allocation8 + $0x62c] ss:$16 sps:$4 sm:$0xff]   ;;  %v21674_v48 = vld [vmem:[#allocation8 + $0x680] ss:$16 sps:$4 sm:$0xff]  }
 0x2fa   : > { %v1844_v61 = vmul.f32 %v25850_v35, %v1802_v27  ;;  %v1846_v62 = vmul.f32 %v25853_v36, %v1804_v57  ;;  %v2171_v63 = vrot.slane %v25935_v56, 1  ;;  %v2167_v32 = vrot.slane %v25895_v44, 1  ;;  %v21677_v49 = vld [vmem:[#allocation8 + $0x688] ss:$16 sps:$4 sm:$0xff]   ;;  %v21682_v18 = vld [vmem:[#allocation8 + $0x6a4] ss:$16 sps:$4 sm:$0xff]  }
 0x2fb   : > { %v1886_v2 = vadd.f32 %v25857_v38, %v1843_v58  ;;  %v1888_v3 = vadd.f32 %v25861_v40, %v1845_v59  ;;  %v21656_v38 = vld [vmem:[#allocation8 + $0x620] ss:$16 sps:$4 sm:$0xff]   ;;  %v21659_v40 = vld [vmem:[#allocation8 + $0x628] ss:$16 sps:$4 sm:$0xff]   ;;  %v25958_v16 = vrot.slane %v25937_v23, 1  ;;  %v5043_v25 = vrot.slane %v25931_v50, 3 }
 0x2fc   : > { %v25950_v5 = vadd.f32 %v25865_v0, %v1844_v61  ;;  %v1889_v6 = vadd.f32 %v25869_v45, %v1846_v62  ;;  %v2172_v35 = vsel %vm1126_vm5, %v2170_v29, %v2171_v63  ;;  %v2169_v36 = vsel %vm1126_vm5, %v2167_v32, %v2168_v1  ;;  %v21664_v0 = vld [vmem:[#allocation8 + $0x644] ss:$16 sps:$4 sm:$0xff]   ;;  %v21662_v45 = vld [vmem:[#allocation8 + $0x640] ss:$16 sps:$4 sm:$0xff]   ;;  %v21685_v19 = vld [vmem:[#allocation8 + $0x6ac] ss:$16 sps:$4 sm:$0xff]  }
 0x2fd   : > { %2859 = vmatprep.mubr.bf16.mxu0 %v2172_v35  ;;  %2965 = vmatprep.mubr.bf16.mxu1 %v2172_v35  ;;  %v25955_v8 = vpack.c.bf16 %v1886_v2, %v1886_v2  ;;  %v25960_v22 = vpack.c.bf16 %v1888_v3, %v1888_v3  ;;  %v2176_v28 = vrot.slane %v25901_v52, 1  ;;  %v5052_v12 = vrot.slane %v25937_v23, 3  ;;  %v21680_v27 = vld [vmem:[#allocation8 + $0x6a0] ss:$16 sps:$4 sm:$0xff]   ;;  %v21683_v57 = vld [vmem:[#allocation8 + $0x6a8] ss:$16 sps:$4 sm:$0xff]  }
 0x2fe   : > { %2860 = vmatmul.mubr.bf16.vlgmr.msra.gmra.mrb[28].mxu0 %v2169_v36  ;;  %2966 = vmatmul.mubr.bf16.vlgmr.msra.gmra.mrb[28].mxu1 %v2169_v36  ;;  %v25962_v24 = vpack.c.bf16 %v1889_v6, %v1889_v6  ;;  %v5049_v14 = vrot.slane %v25933_v53, 3  ;;  %v21688_v58 = vld [vmem:[#allocation8 + $0x6c4] ss:$16 sps:$4 sm:$0xff]   ;;  %v21691_v59 = vld [vmem:[#allocation8 + $0x6cc] ss:$16 sps:$4 sm:$0xff]  }
 0x2ff   : > { %2881 = vmatpush1.bf16.msra.mxu0 %v21650_v60  ;;  %2987 = vmatpush1.bf16.msra.mxu1 %v21653_v30  ;;  %v5054_v26 = vrot.slane %v25955_v8, 3  ;;  %v2178_v37 = vsel %vm1126_vm5, %v2176_v28, %v25958_v16  ;;  %v5058_v47 = vrot.slane %v25960_v22, 3  ;;  %v21686_v29 = vld [vmem:[#allocation8 + $0x6c0] ss:$16 sps:$4 sm:$0xff]   ;;  %v21689_v60 = vld [vmem:[#allocation8 + $0x6c8] ss:$16 sps:$4 sm:$0xff]  }
 0x300   : > { %2869 = vmatprep.mubr.bf16.mxu0 %v2171_v63  ;;  %2975 = vmatprep.mubr.bf16.mxu1 %v2171_v63  ;;  %v5060_v43 = vrot.slane %v25962_v24, 3  ;;  %v21694_v30 = vld [vmem:[#allocation8 + $0x6e4] ss:$16 sps:$4 sm:$0xff]   ;;  %v21697_v61 = vld [vmem:[#allocation8 + $0x6ec] ss:$16 sps:$4 sm:$0xff]  }
 0x301   : > { %2882 = vmatprep.subr.bf16.mxu0 %v21658_v4  ;;  %2988 = vmatprep.subr.bf16.mxu1 %v21661_v34  ;;  %v25970_v33 = vsel %vm5041_vm6, %v5043_v25, %v5054_v26  ;;  %v25986_v55 = vsel %vm5041_vm6, %v5049_v14, %v5058_v47  ;;  %v21692_v62 = vld [vmem:[#allocation8 + $0x6e0] ss:$16 sps:$4 sm:$0xff]   ;;  %v21695_v63 = vld [vmem:[#allocation8 + $0x6e8] ss:$16 sps:$4 sm:$0xff]   ;;  %v21703_v2 = vld [vmem:[#allocation8 + $0x70c] ss:$16 sps:$4 sm:$0xff]  }
 0x302   : > { %v25981_v54 = vsel %vm5041_vm6, %v5052_v12, %v5060_v43  ;;  %v21698_v3 = vld [vmem:[#allocation8 + $0x700] ss:$16 sps:$4 sm:$0xff]   ;;  %v21701_v32 = vld [vmem:[#allocation8 + $0x708] ss:$16 sps:$4 sm:$0xff]   ;;  %v21706_v4 = vld [vmem:[#allocation8 + $0x724] ss:$16 sps:$4 sm:$0xff]  }
 0x303   : > { %2883 = vmatpush1.bf16.msra.mxu0 %v21656_v38  ;;  %2989 = vmatpush1.bf16.msra.mxu1 %v21659_v40  ;;  %v21709_v34 = vld [vmem:[#allocation8 + $0x72c] ss:$16 sps:$4 sm:$0xff]   ;;  %v21704_v6 = vld [vmem:[#allocation8 + $0x720] ss:$16 sps:$4 sm:$0xff]   ;;  %v21707_v35 = vld [vmem:[#allocation8 + $0x728] ss:$16 sps:$4 sm:$0xff]  }
 0x304   : > { %2884 = vmatprep.subr.bf16.mxu0 %v21664_v0  ;;  %2990 = vmatprep.subr.bf16.mxu1 %v21667_v9  ;;  %v21712_v36 = vld [vmem:[#allocation8 + $0x744] ss:$16 sps:$4 sm:$0xff]   ;;  %v21715_v38 = vld [vmem:[#allocation8 + $0x74c] ss:$16 sps:$4 sm:$0xff]   ;;  %v21710_v40 = vld [vmem:[#allocation8 + $0x740] ss:$16 sps:$4 sm:$0xff]  }
 0x305   : > { %v21713_v0 = vld [vmem:[#allocation8 + $0x748] ss:$16 sps:$4 sm:$0xff]   ;;  %v21718_v9 = vld [vmem:[#allocation8 + $0x764] ss:$16 sps:$4 sm:$0xff]   ;;  %v21727_v26 = vld [vmem:[#allocation8 + $0x78c] ss:$16 sps:$4 sm:$0xff]  }
 0x306   : > { %2870 = vmatmul.mubr.bf16.gmra.mrb[32].mxu0 %v2168_v1  ;;  %2976 = vmatmul.mubr.bf16.gmra.mrb[32].mxu1 %v2168_v1  ;;  %v21700_v1 = vld [vmem:[#allocation8 + $0x704] ss:$16 sps:$4 sm:$0xff]   ;;  %v21722_v28 = vld [vmem:[#allocation8 + $0x780] ss:$16 sps:$4 sm:$0xff]   ;;  %v21739_v47 = vld [vmem:[#allocation8 + $0x7cc] ss:$16 sps:$4 sm:$0xff]  }
 0x307   : > { %2885 = vmatpush1.bf16.msra.mxu0 %v21662_v45  ;;  %2991 = vmatpush1.bf16.msra.mxu1 %v21665_v15  ;;  %v21721_v45 = vld [vmem:[#allocation8 + $0x76c] ss:$16 sps:$4 sm:$0xff]   ;;  %v21716_v15 = vld [vmem:[#allocation8 + $0x760] ss:$16 sps:$4 sm:$0xff]   ;;  %v21736_v43 = vld [vmem:[#allocation8 + $0x7c4] ss:$16 sps:$4 sm:$0xff]  }
 0x308   : > { %2912 = vmatprep.mubr.bf16.mxu0 %v2178_v37  ;;  %3018 = vmatprep.mubr.bf16.mxu1 %v2178_v37  ;;  %v21730_v37 = vld [vmem:[#allocation8 + $0x7a4] ss:$16 sps:$4 sm:$0xff]  }
 0x309   : > { %2886 = vmatprep.subr.bf16.mxu0 %v21670_v20  ;;  %2992 = vmatprep.subr.bf16.mxu1 %v21673_v21  ;;  %v21719_v20 = vld [vmem:[#allocation8 + $0x768] ss:$16 sps:$4 sm:$0xff]   ;;  %v21724_v21 = vld [vmem:[#allocation8 + $0x784] ss:$16 sps:$4 sm:$0xff]  }
 0x30b   : > { %2887 = vmatpush1.bf16.msra.mxu0 %v21668_v31  ;;  %2993 = vmatpush1.bf16.msra.mxu1 %v21671_v39  ;;  %v21725_v31 = vld [vmem:[#allocation8 + $0x788] ss:$16 sps:$4 sm:$0xff]   ;;  %v21733_v39 = vld [vmem:[#allocation8 + $0x7ac] ss:$16 sps:$4 sm:$0xff]  }
 0x30c   : > { %2888 = vmatprep.subr.bf16.mxu0 %v21676_v41  ;;  %2994 = vmatprep.subr.bf16.mxu1 %v21679_v42  ;;  %v21728_v41 = vld [vmem:[#allocation8 + $0x7a0] ss:$16 sps:$4 sm:$0xff]   ;;  %v21731_v42 = vld [vmem:[#allocation8 + $0x7a8] ss:$16 sps:$4 sm:$0xff]  }
 0x30f   : > { %2889 = vmatpush1.bf16.msra.mxu0 %v21674_v48  ;;  %2995 = vmatpush1.bf16.msra.mxu1 %v21677_v49  ;;  %v21734_v48 = vld [vmem:[#allocation8 + $0x7c0] ss:$16 sps:$4 sm:$0xff]   ;;  %v21737_v49 = vld [vmem:[#allocation8 + $0x7c8] ss:$16 sps:$4 sm:$0xff]  }
 0x310   : > { %2890 = vmatprep.subr.bf16.mxu0 %v21682_v18  ;;  %2996 = vmatprep.subr.bf16.mxu1 %v21685_v19  ;;  %v21742_v18 = vld [vmem:[#allocation8 + $0x7e4] ss:$16 sps:$4 sm:$0xff]   ;;  %v21745_v19 = vld [vmem:[#allocation8 + $0x7ec] ss:$16 sps:$4 sm:$0xff]  }
 0x313   : > { %2891 = vmatpush1.bf16.msra.mxu0 %v21680_v27  ;;  %2997 = vmatpush1.bf16.msra.mxu1 %v21683_v57  ;;  %v21740_v27 = vld [vmem:[#allocation8 + $0x7e0] ss:$16 sps:$4 sm:$0xff]   ;;  %v21743_v57 = vld [vmem:[#allocation8 + $0x7e8] ss:$16 sps:$4 sm:$0xff]  }
 0x314   : > { %2892 = vmatprep.subr.bf16.mxu0 %v21688_v58  ;;  %2998 = vmatprep.subr.bf16.mxu1 %v21691_v59  ;;  %v21748_v58 = vld [vmem:[#allocation8 + $0x4] ss:$16 sps:$4 sm:$0xff]   ;;  %v21751_v59 = vld [vmem:[#allocation8 + $0xc] ss:$16 sps:$4 sm:$0xff]  }
 0x317   : > { %2893 = vmatpush1.bf16.msra.mxu0 %v21686_v29  ;;  %2999 = vmatpush1.bf16.msra.mxu1 %v21689_v60  ;;  %v2174_v29 = vrot.slane %v25933_v53, 1  ;;  %v21746_v60 = vld [vmem:[#allocation8] ss:$16 sps:$4 sm:$0xff]  }
 0x318   : > { %2894 = vmatprep.subr.bf16.mxu0 %v21694_v30  ;;  %3000 = vmatprep.subr.bf16.mxu1 %v21697_v61  ;;  %v21749_v30 = vld [vmem:[#allocation8 + $0x8] ss:$16 sps:$4 sm:$0xff]   ;;  %v2173_v61 = vrot.slane %v25897_v46, 1 }
 0x31b   : > { %2895 = vmatpush1.bf16.msra.mxu0 %v21692_v62  ;;  %3001 = vmatpush1.bf16.msra.mxu1 %v21695_v63  ;;  %v21754_v62 = vld [vmem:[#allocation8 + $0x24] ss:$16 sps:$4 sm:$0xff]   ;;  %v21757_v63 = vld [vmem:[#allocation8 + $0x2c] ss:$16 sps:$4 sm:$0xff]  }
 0x31c   : > { %2896 = vmatprep.subr.bf16.mxu0 %v21700_v1  ;;  %3002 = vmatprep.subr.bf16.mxu1 %v21703_v2  ;;  %v2175_v1 = vsel %vm1126_vm5, %v2173_v61, %v2174_v29  ;;  %v21752_v2 = vld [vmem:[#allocation8 + $0x20] ss:$16 sps:$4 sm:$0xff]   ;;  %v21809_v61 = vld [vmem:[#allocation8 + $0x148] ss:$16 sps:$4 sm:$0xff]  }
 0x31f   : > { %2897 = vmatpush1.bf16.msra.mxu0 %v21698_v3  ;;  %3003 = vmatpush1.bf16.msra.mxu1 %v21701_v32  ;;  %v21755_v3 = vld [vmem:[#allocation8 + $0x28] ss:$16 sps:$4 sm:$0xff]   ;;  %v21760_v32 = vld [vmem:[#allocation8 + $0x44] ss:$16 sps:$4 sm:$0xff]  }
 0x320   : > { %2898 = vmatprep.subr.bf16.mxu0 %v21706_v4  ;;  %3004 = vmatprep.subr.bf16.mxu1 %v21709_v34  ;;  %v21763_v4 = vld [vmem:[#allocation8 + $0x4c] ss:$16 sps:$4 sm:$0xff]   ;;  %v21758_v34 = vld [vmem:[#allocation8 + $0x40] ss:$16 sps:$4 sm:$0xff]  }
 0x323   : > { %2899 = vmatpush1.bf16.msra.mxu0 %v21704_v6  ;;  %3005 = vmatpush1.bf16.msra.mxu1 %v21707_v35  ;;  %v21761_v6 = vld [vmem:[#allocation8 + $0x48] ss:$16 sps:$4 sm:$0xff]   ;;  %v21766_v35 = vld [vmem:[#allocation8 + $0x64] ss:$16 sps:$4 sm:$0xff]  }
 0x324   : > { %2900 = vmatprep.subr.bf16.mxu0 %v21712_v36  ;;  %3006 = vmatprep.subr.bf16.mxu1 %v21715_v38  ;;  %v21769_v36 = vld [vmem:[#allocation8 + $0x6c] ss:$16 sps:$4 sm:$0xff]   ;;  %v21767_v38 = vld [vmem:[#allocation8 + $0x68] ss:$16 sps:$4 sm:$0xff]  }
 0x327   : > { %2901 = vmatpush1.bf16.msra.mxu0 %v21710_v40  ;;  %3007 = vmatpush1.bf16.msra.mxu1 %v21713_v0  ;;  %v21772_v40 = vld [vmem:[#allocation8 + $0x84] ss:$16 sps:$4 sm:$0xff]   ;;  %v21775_v0 = vld [vmem:[#allocation8 + $0x8c] ss:$16 sps:$4 sm:$0xff]  }
 0x328   : > { %2902 = vmatprep.subr.bf16.mxu0 %v21718_v9  ;;  %3008 = vmatprep.subr.bf16.mxu1 %v21721_v45  ;;  %v21770_v9 = vld [vmem:[#allocation8 + $0x80] ss:$16 sps:$4 sm:$0xff]   ;;  %v21773_v45 = vld [vmem:[#allocation8 + $0x88] ss:$16 sps:$4 sm:$0xff]  }
 0x32b   : > { %2903 = vmatpush1.bf16.msra.mxu0 %v21716_v15  ;;  %3009 = vmatpush1.bf16.msra.mxu1 %v21719_v20  ;;  %v21778_v15 = vld [vmem:[#allocation8 + $0xa4] ss:$16 sps:$4 sm:$0xff]   ;;  %v21781_v20 = vld [vmem:[#allocation8 + $0xac] ss:$16 sps:$4 sm:$0xff]  }
 0x32c   : > { %2904 = vmatprep.subr.bf16.mxu0 %v21724_v21  ;;  %3010 = vmatprep.subr.bf16.mxu1 %v21727_v26  ;;  %v21776_v21 = vld [vmem:[#allocation8 + $0xa0] ss:$16 sps:$4 sm:$0xff]   ;;  %v21779_v26 = vld [vmem:[#allocation8 + $0xa8] ss:$16 sps:$4 sm:$0xff]  }
 0x32f   : > { %2905 = vmatpush1.bf16.msra.mxu0 %v21722_v28  ;;  %3011 = vmatpush1.bf16.msra.mxu1 %v21725_v31  ;;  %v21784_v28 = vld [vmem:[#allocation8 + $0xc4] ss:$16 sps:$4 sm:$0xff]   ;;  %v21787_v31 = vld [vmem:[#allocation8 + $0xcc] ss:$16 sps:$4 sm:$0xff]  }
 0x330   : > { %2906 = vmatprep.subr.bf16.mxu0 %v21730_v37  ;;  %3012 = vmatprep.subr.bf16.mxu1 %v21733_v39  ;;  %v21782_v37 = vld [vmem:[#allocation8 + $0xc0] ss:$16 sps:$4 sm:$0xff]   ;;  %v21785_v39 = vld [vmem:[#allocation8 + $0xc8] ss:$16 sps:$4 sm:$0xff]  }
 0x333   : > { %2907 = vmatpush1.bf16.msra.mxu0 %v21728_v41  ;;  %3013 = vmatpush1.bf16.msra.mxu1 %v21731_v42  ;;  %v21790_v41 = vld [vmem:[#allocation8 + $0xe4] ss:$16 sps:$4 sm:$0xff]   ;;  %v21793_v42 = vld [vmem:[#allocation8 + $0xec] ss:$16 sps:$4 sm:$0xff]  }
 0x334   : > { %2908 = vmatprep.subr.bf16.mxu0 %v21736_v43  ;;  %3014 = vmatprep.subr.bf16.mxu1 %v21739_v47  ;;  %v21788_v43 = vld [vmem:[#allocation8 + $0xe0] ss:$16 sps:$4 sm:$0xff]   ;;  %v21791_v47 = vld [vmem:[#allocation8 + $0xe8] ss:$16 sps:$4 sm:$0xff]  }
 0x337   : > { %2909 = vmatpush1.bf16.msra.mxu0 %v21734_v48  ;;  %3015 = vmatpush1.bf16.msra.mxu1 %v21737_v49  ;;  %v21796_v48 = vld [vmem:[#allocation8 + $0x104] ss:$16 sps:$4 sm:$0xff]   ;;  %v21799_v49 = vld [vmem:[#allocation8 + $0x10c] ss:$16 sps:$4 sm:$0xff]  }
 0x338   : > { %2910 = vmatprep.subr.bf16.mxu0 %v21742_v18  ;;  %3016 = vmatprep.subr.bf16.mxu1 %v21745_v19  ;;  %v21794_v18 = vld [vmem:[#allocation8 + $0x100] ss:$16 sps:$4 sm:$0xff]   ;;  %v21797_v19 = vld [vmem:[#allocation8 + $0x108] ss:$16 sps:$4 sm:$0xff]  }
 0x33b   : > { %2911 = vmatpush1.bf16.msra.mxu0 %v21740_v27  ;;  %3017 = vmatpush1.bf16.msra.mxu1 %v21743_v57  ;;  %v21802_v27 = vld [vmem:[#allocation8 + $0x124] ss:$16 sps:$4 sm:$0xff]   ;;  %v21805_v57 = vld [vmem:[#allocation8 + $0x12c] ss:$16 sps:$4 sm:$0xff]  }
 0x33c   : > { %3679 = vmatprep.subr.bf16.mxu0 %v21748_v58  ;;  %3785 = vmatprep.subr.bf16.mxu1 %v21751_v59  ;;  %v21800_v58 = vld [vmem:[#allocation8 + $0x120] ss:$16 sps:$4 sm:$0xff]   ;;  %v21803_v59 = vld [vmem:[#allocation8 + $0x128] ss:$16 sps:$4 sm:$0xff]  }
 0x33e   : > { %2913 = vmatmul.mubr.bf16.vlgmr.msra.gmra.mrb[28].mxu0 %v2175_v1  ;;  %3019 = vmatmul.mubr.bf16.vlgmr.msra.gmra.mrb[28].mxu1 %v2175_v1  ;;  %v21812_v1 = vld [vmem:[#allocation8 + $0x160] ss:$16 sps:$4 sm:$0xff]  }
 0x33f   : > { %2922 = vmatprep.mubr.bf16.mxu0 %v25958_v16  ;;  %3028 = vmatprep.mubr.bf16.mxu1 %v25958_v16  ;;  %v21764_v16 = vld [vmem:[#allocation8 + $0x60] ss:$16 sps:$4 sm:$0xff]  }
 0x340   : > { %3680 = vmatpush1.bf16.msra.mxu0 %v21746_v60  ;;  %3786 = vmatpush1.bf16.msra.mxu1 %v21749_v30  ;;  %v21811_v60 = vld [vmem:[#allocation8 + $0x14c] ss:$16 sps:$4 sm:$0xff]   ;;  %v21806_v30 = vld [vmem:[#allocation8 + $0x140] ss:$16 sps:$4 sm:$0xff]  }
 0x341   : > { %3681 = vmatprep.subr.bf16.mxu0 %v21754_v62  ;;  %3787 = vmatprep.subr.bf16.mxu1 %v21757_v63  ;;  %v21814_v62 = vld [vmem:[#allocation8 + $0x164] ss:$16 sps:$4 sm:$0xff]   ;;  %v21817_v63 = vld [vmem:[#allocation8 + $0x16c] ss:$16 sps:$4 sm:$0xff]  }
 0x344   : > { %3682 = vmatpush1.bf16.msra.mxu0 %v21752_v2  ;;  %3788 = vmatpush1.bf16.msra.mxu1 %v21755_v3  ;;  %v21815_v2 = vld [vmem:[#allocation8 + $0x168] ss:$16 sps:$4 sm:$0xff]   ;;  %v21820_v3 = vld [vmem:[#allocation8 + $0x184] ss:$16 sps:$4 sm:$0xff]  }
 0x345   : > { %3683 = vmatprep.subr.bf16.mxu0 %v21760_v32  ;;  %3789 = vmatprep.subr.bf16.mxu1 %v21763_v4  ;;  %v21823_v32 = vld [vmem:[#allocation8 + $0x18c] ss:$16 sps:$4 sm:$0xff]   ;;  %v21818_v4 = vld [vmem:[#allocation8 + $0x180] ss:$16 sps:$4 sm:$0xff]  }
 0x346   : > { %2923 = vmatmul.mubr.bf16.gmra.mrb[32].mxu0 %v2174_v29  ;;  %3029 = vmatmul.mubr.bf16.gmra.mrb[32].mxu1 %v2174_v29  ;;  %v21808_v29 = vld [vmem:[#allocation8 + $0x144] ss:$16 sps:$4 sm:$0xff]  }
 0x347   : > { %3711 = vmatprep.mubr.bf16.mxu0 %v25899_v51  ;;  %3817 = vmatprep.mubr.bf16.mxu1 %v25899_v51 }
 0x348   : > { %3684 = vmatpush1.bf16.msra.mxu0 %v21758_v34  ;;  %3790 = vmatpush1.bf16.msra.mxu1 %v21761_v6  ;;  %v21821_v34 = vld [vmem:[#allocation8 + $0x188] ss:$16 sps:$4 sm:$0xff]   ;;  %v21826_v6 = vld [vmem:[#allocation8 + $0x1a4] ss:$16 sps:$4 sm:$0xff]  }
 0x349   : > { %3685 = vmatprep.subr.bf16.mxu0 %v21766_v35  ;;  %3791 = vmatprep.subr.bf16.mxu1 %v21769_v36  ;;  %v21829_v35 = vld [vmem:[#allocation8 + $0x1ac] ss:$16 sps:$4 sm:$0xff]   ;;  %v21824_v36 = vld [vmem:[#allocation8 + $0x1a0] ss:$16 sps:$4 sm:$0xff]  }
 0x34c   : > { %3686 = vmatpush1.bf16.msra.mxu0 %v21764_v16  ;;  %3792 = vmatpush1.bf16.msra.mxu1 %v21767_v38  ;;  %v21827_v16 = vld [vmem:[#allocation8 + $0x1a8] ss:$16 sps:$4 sm:$0xff]   ;;  %v21832_v38 = vld [vmem:[#allocation8 + $0x1c4] ss:$16 sps:$4 sm:$0xff]  }
 0x34d   : > { %3687 = vmatprep.subr.bf16.mxu0 %v21772_v40  ;;  %3793 = vmatprep.subr.bf16.mxu1 %v21775_v0  ;;  %v21835_v40 = vld [vmem:[#allocation8 + $0x1cc] ss:$16 sps:$4 sm:$0xff]   ;;  %v21830_v0 = vld [vmem:[#allocation8 + $0x1c0] ss:$16 sps:$4 sm:$0xff]  }
 0x350   : > { %3688 = vmatpush1.bf16.msra.mxu0 %v21770_v9  ;;  %3794 = vmatpush1.bf16.msra.mxu1 %v21773_v45  ;;  %v21833_v9 = vld [vmem:[#allocation8 + $0x1c8] ss:$16 sps:$4 sm:$0xff]   ;;  %v21838_v45 = vld [vmem:[#allocation8 + $0x1e4] ss:$16 sps:$4 sm:$0xff]  }
 0x351   : > { %3689 = vmatprep.subr.bf16.mxu0 %v21778_v15  ;;  %3795 = vmatprep.subr.bf16.mxu1 %v21781_v20  ;;  %v21841_v15 = vld [vmem:[#allocation8 + $0x1ec] ss:$16 sps:$4 sm:$0xff]   ;;  %v21836_v20 = vld [vmem:[#allocation8 + $0x1e0] ss:$16 sps:$4 sm:$0xff]  }
 0x354   : > { %3690 = vmatpush1.bf16.msra.mxu0 %v21776_v21  ;;  %3796 = vmatpush1.bf16.msra.mxu1 %v21779_v26  ;;  %v21839_v21 = vld [vmem:[#allocation8 + $0x1e8] ss:$16 sps:$4 sm:$0xff]   ;;  %v21844_v26 = vld [vmem:[#allocation8 + $0x204] ss:$16 sps:$4 sm:$0xff]  }
 0x355   : > { %3691 = vmatprep.subr.bf16.mxu0 %v21784_v28  ;;  %3797 = vmatprep.subr.bf16.mxu1 %v21787_v31  ;;  %v21847_v28 = vld [vmem:[#allocation8 + $0x20c] ss:$16 sps:$4 sm:$0xff]   ;;  %v21842_v31 = vld [vmem:[#allocation8 + $0x200] ss:$16 sps:$4 sm:$0xff]  }
 0x358   : > { %3692 = vmatpush1.bf16.msra.mxu0 %v21782_v37  ;;  %3798 = vmatpush1.bf16.msra.mxu1 %v21785_v39  ;;  %v21845_v37 = vld [vmem:[#allocation8 + $0x208] ss:$16 sps:$4 sm:$0xff]   ;;  %v21850_v39 = vld [vmem:[#allocation8 + $0x224] ss:$16 sps:$4 sm:$0xff]  }
 0x359   : > { %3693 = vmatprep.subr.bf16.mxu0 %v21790_v41  ;;  %3799 = vmatprep.subr.bf16.mxu1 %v21793_v42  ;;  %v21853_v41 = vld [vmem:[#allocation8 + $0x22c] ss:$16 sps:$4 sm:$0xff]   ;;  %v21848_v42 = vld [vmem:[#allocation8 + $0x220] ss:$16 sps:$4 sm:$0xff]  }
 0x35c   : > { %3694 = vmatpush1.bf16.msra.mxu0 %v21788_v43  ;;  %3800 = vmatpush1.bf16.msra.mxu1 %v21791_v47  ;;  %v21851_v43 = vld [vmem:[#allocation8 + $0x228] ss:$16 sps:$4 sm:$0xff]   ;;  %v21856_v47 = vld [vmem:[#allocation8 + $0x244] ss:$16 sps:$4 sm:$0xff]  }
 0x35d   : > { %3695 = vmatprep.subr.bf16.mxu0 %v21796_v48  ;;  %3801 = vmatprep.subr.bf16.mxu1 %v21799_v49  ;;  %v21859_v48 = vld [vmem:[#allocation8 + $0x24c] ss:$16 sps:$4 sm:$0xff]   ;;  %v21854_v49 = vld [vmem:[#allocation8 + $0x240] ss:$16 sps:$4 sm:$0xff]  }
 0x360   : > { %3696 = vmatpush1.bf16.msra.mxu0 %v21794_v18  ;;  %3802 = vmatpush1.bf16.msra.mxu1 %v21797_v19  ;;  %v21857_v18 = vld [vmem:[#allocation8 + $0x248] ss:$16 sps:$4 sm:$0xff]   ;;  %v21862_v19 = vld [vmem:[#allocation8 + $0x264] ss:$16 sps:$4 sm:$0xff]  }
 0x361   : > { %3697 = vmatprep.subr.bf16.mxu0 %v21802_v27  ;;  %3803 = vmatprep.subr.bf16.mxu1 %v21805_v57  ;;  %v21865_v27 = vld [vmem:[#allocation8 + $0x26c] ss:$16 sps:$4 sm:$0xff]   ;;  %v21860_v57 = vld [vmem:[#allocation8 + $0x260] ss:$16 sps:$4 sm:$0xff]  }
 0x364   : > { %3698 = vmatpush1.bf16.msra.mxu0 %v21800_v58  ;;  %3804 = vmatpush1.bf16.msra.mxu1 %v21803_v59  ;;  %v21863_v58 = vld [vmem:[#allocation8 + $0x268] ss:$16 sps:$4 sm:$0xff]   ;;  %v21868_v59 = vld [vmem:[#allocation8 + $0x284] ss:$16 sps:$4 sm:$0xff]  }
 0x365   : > { %3699 = vmatprep.subr.bf16.mxu0 %v21808_v29  ;;  %3805 = vmatprep.subr.bf16.mxu1 %v21811_v60  ;;  %v21871_v29 = vld [vmem:[#allocation8 + $0x28c] ss:$16 sps:$4 sm:$0xff]   ;;  %v21866_v60 = vld [vmem:[#allocation8 + $0x280] ss:$16 sps:$4 sm:$0xff]  }
 0x368   : > { %3700 = vmatpush1.bf16.msra.mxu0 %v21806_v30  ;;  %3806 = vmatpush1.bf16.msra.mxu1 %v21809_v61  ;;  %v21869_v30 = vld [vmem:[#allocation8 + $0x288] ss:$16 sps:$4 sm:$0xff]   ;;  %v21874_v61 = vld [vmem:[#allocation8 + $0x2a4] ss:$16 sps:$4 sm:$0xff]  }
 0x369   : > { %3701 = vmatprep.subr.bf16.mxu0 %v21814_v62  ;;  %3807 = vmatprep.subr.bf16.mxu1 %v21817_v63  ;;  %v21877_v62 = vld [vmem:[#allocation8 + $0x2ac] ss:$16 sps:$4 sm:$0xff]   ;;  %v21872_v63 = vld [vmem:[#allocation8 + $0x2a0] ss:$16 sps:$4 sm:$0xff]  }
 0x36c   : > { %3702 = vmatpush1.bf16.msra.mxu0 %v21812_v1  ;;  %3808 = vmatpush1.bf16.msra.mxu1 %v21815_v2  ;;  %v21875_v1 = vld [vmem:[#allocation8 + $0x2a8] ss:$16 sps:$4 sm:$0xff]   ;;  %v21880_v2 = vld [vmem:[#allocation8 + $0x2c4] ss:$16 sps:$4 sm:$0xff]  }
 0x36d   : > { %3703 = vmatprep.subr.bf16.mxu0 %v21820_v3  ;;  %3809 = vmatprep.subr.bf16.mxu1 %v21823_v32  ;;  %v21883_v3 = vld [vmem:[#allocation8 + $0x2cc] ss:$16 sps:$4 sm:$0xff]   ;;  %v21878_v32 = vld [vmem:[#allocation8 + $0x2c0] ss:$16 sps:$4 sm:$0xff]  }
 0x370   : > { %3704 = vmatpush1.bf16.msra.mxu0 %v21818_v4  ;;  %3810 = vmatpush1.bf16.msra.mxu1 %v21821_v34  ;;  %v21881_v4 = vld [vmem:[#allocation8 + $0x2c8] ss:$16 sps:$4 sm:$0xff]   ;;  %v21886_v34 = vld [vmem:[#allocation8 + $0x2e4] ss:$16 sps:$4 sm:$0xff]  }
 0x371   : > { %3705 = vmatprep.subr.bf16.mxu0 %v21826_v6  ;;  %3811 = vmatprep.subr.bf16.mxu1 %v21829_v35  ;;  %v21889_v6 = vld [vmem:[#allocation8 + $0x2ec] ss:$16 sps:$4 sm:$0xff]   ;;  %v21884_v35 = vld [vmem:[#allocation8 + $0x2e0] ss:$16 sps:$4 sm:$0xff]  }
 0x374   : > { %3706 = vmatpush1.bf16.msra.mxu0 %v21824_v36  ;;  %3812 = vmatpush1.bf16.msra.mxu1 %v21827_v16  ;;  %v21887_v36 = vld [vmem:[#allocation8 + $0x2e8] ss:$16 sps:$4 sm:$0xff]   ;;  %v21892_v16 = vld [vmem:[#allocation8 + $0x304] ss:$16 sps:$4 sm:$0xff]  }
 0x375   : > { %3707 = vmatprep.subr.bf16.mxu0 %v21832_v38  ;;  %3813 = vmatprep.subr.bf16.mxu1 %v21835_v40  ;;  %v21895_v38 = vld [vmem:[#allocation8 + $0x30c] ss:$16 sps:$4 sm:$0xff]   ;;  %v21890_v40 = vld [vmem:[#allocation8 + $0x300] ss:$16 sps:$4 sm:$0xff]  }
 0x378   : > { %3708 = vmatpush1.bf16.msra.mxu0 %v21830_v0  ;;  %3814 = vmatpush1.bf16.msra.mxu1 %v21833_v9  ;;  %v21893_v0 = vld [vmem:[#allocation8 + $0x308] ss:$16 sps:$4 sm:$0xff]   ;;  %v21898_v9 = vld [vmem:[#allocation8 + $0x324] ss:$16 sps:$4 sm:$0xff]  }
 0x379   : > { %3709 = vmatprep.subr.bf16.mxu0 %v21838_v45  ;;  %3815 = vmatprep.subr.bf16.mxu1 %v21841_v15  ;;  %v21901_v45 = vld [vmem:[#allocation8 + $0x32c] ss:$16 sps:$4 sm:$0xff]   ;;  %v21896_v15 = vld [vmem:[#allocation8 + $0x320] ss:$16 sps:$4 sm:$0xff]  }
 0x37c   : > { %3710 = vmatpush1.bf16.msra.mxu0 %v21836_v20  ;;  %3816 = vmatpush1.bf16.msra.mxu1 %v21839_v21  ;;  %v21899_v20 = vld [vmem:[#allocation8 + $0x328] ss:$16 sps:$4 sm:$0xff]   ;;  %v21904_v21 = vld [vmem:[#allocation8 + $0x344] ss:$16 sps:$4 sm:$0xff]  }
 0x37d   : > { %3732 = vmatprep.subr.bf16.mxu0 %v21844_v26  ;;  %3838 = vmatprep.subr.bf16.mxu1 %v21847_v28  ;;  %v21907_v26 = vld [vmem:[#allocation8 + $0x34c] ss:$16 sps:$4 sm:$0xff]   ;;  %v21902_v28 = vld [vmem:[#allocation8 + $0x340] ss:$16 sps:$4 sm:$0xff]  }
 0x37f   : > { %3712 = vmatmul.mubr.bf16.vlgmr.msra.gmra.mrb[28].mxu0 %v25895_v44  ;;  %3818 = vmatmul.mubr.bf16.vlgmr.msra.gmra.mrb[28].mxu1 %v25895_v44 }
 0x380   : > { %3721 = vmatprep.mubr.bf16.mxu0 %v25935_v56  ;;  %3733 = vmatpush1.bf16.msra.mxu0 %v21842_v31  ;;  %v21905_v31 = vld [vmem:[#allocation8 + $0x348] ss:$16 sps:$4 sm:$0xff]  }
 0x381   : > { %3827 = vmatprep.mubr.bf16.mxu1 %v25935_v56  ;;  %3839 = vmatpush1.bf16.msra.mxu1 %v21845_v37  ;;  %v21910_v37 = vld [vmem:[#allocation8 + $0x364] ss:$16 sps:$4 sm:$0xff]  }
 0x382   : > { %3734 = vmatprep.subr.bf16.mxu0 %v21850_v39  ;;  %3840 = vmatprep.subr.bf16.mxu1 %v21853_v41  ;;  %v21913_v39 = vld [vmem:[#allocation8 + $0x36c] ss:$16 sps:$4 sm:$0xff]   ;;  %v21908_v41 = vld [vmem:[#allocation8 + $0x360] ss:$16 sps:$4 sm:$0xff]  }
 0x384   : > { %3735 = vmatpush1.bf16.msra.mxu0 %v21848_v42  ;;  %v21911_v42 = vld [vmem:[#allocation8 + $0x368] ss:$16 sps:$4 sm:$0xff]  }
 0x385   : > { %3841 = vmatpush1.bf16.msra.mxu1 %v21851_v43  ;;  %3736 = vmatprep.subr.bf16.mxu0 %v21856_v47  ;;  %v21916_v43 = vld [vmem:[#allocation8 + $0x384] ss:$16 sps:$4 sm:$0xff]   ;;  %v21919_v47 = vld [vmem:[#allocation8 + $0x38c] ss:$16 sps:$4 sm:$0xff]  }
 0x386   : > { %3842 = vmatprep.subr.bf16.mxu1 %v21859_v48  ;;  %v21914_v48 = vld [vmem:[#allocation8 + $0x380] ss:$16 sps:$4 sm:$0xff]  }
 0x387   : > { %3722 = vmatmul.mubr.bf16.gmra.mrb[32].mxu0 %v25931_v50  ;;  %3828 = vmatmul.mubr.bf16.gmra.mrb[32].mxu1 %v25931_v50 }
 0x388   : > { %3737 = vmatpush1.bf16.msra.mxu0 %v21854_v49  ;;  %3764 = vmatprep.mubr.bf16.mxu0 %v25901_v52  ;;  %v21917_v49 = vld [vmem:[#allocation8 + $0x388] ss:$16 sps:$4 sm:$0xff]  }
 0x389   : > { %3843 = vmatpush1.bf16.msra.mxu1 %v21857_v18  ;;  %3870 = vmatprep.mubr.bf16.mxu1 %v25901_v52  ;;  %v21922_v18 = vld [vmem:[#allocation8 + $0x3a4] ss:$16 sps:$4 sm:$0xff]  }
 0x38a   : > { %3738 = vmatprep.subr.bf16.mxu0 %v21862_v19  ;;  %3844 = vmatprep.subr.bf16.mxu1 %v21865_v27  ;;  %v21925_v19 = vld [vmem:[#allocation8 + $0x3ac] ss:$16 sps:$4 sm:$0xff]   ;;  %v21920_v27 = vld [vmem:[#allocation8 + $0x3a0] ss:$16 sps:$4 sm:$0xff]  }
 0x38c   : > { %3739 = vmatpush1.bf16.msra.mxu0 %v21860_v57  ;;  %v21923_v57 = vld [vmem:[#allocation8 + $0x3a8] ss:$16 sps:$4 sm:$0xff]  }
 0x38d   : > { %3845 = vmatpush1.bf16.msra.mxu1 %v21863_v58  ;;  %3740 = vmatprep.subr.bf16.mxu0 %v21868_v59  ;;  %v21928_v58 = vld [vmem:[#allocation8 + $0x3c4] ss:$16 sps:$4 sm:$0xff]   ;;  %v21931_v59 = vld [vmem:[#allocation8 + $0x3cc] ss:$16 sps:$4 sm:$0xff]  }
 0x38e   : > { %3846 = vmatprep.subr.bf16.mxu1 %v21871_v29  ;;  %v21926_v29 = vld [vmem:[#allocation8 + $0x3c0] ss:$16 sps:$4 sm:$0xff]  }
 0x390   : > { %3741 = vmatpush1.bf16.msra.mxu0 %v21866_v60  ;;  %v21929_v60 = vld [vmem:[#allocation8 + $0x3c8] ss:$16 sps:$4 sm:$0xff]  }
 0x391   : > { %3847 = vmatpush1.bf16.msra.mxu1 %v21869_v30  ;;  %3742 = vmatprep.subr.bf16.mxu0 %v21874_v61  ;;  %v21934_v30 = vld [vmem:[#allocation8 + $0x3e4] ss:$16 sps:$4 sm:$0xff]   ;;  %v21937_v61 = vld [vmem:[#allocation8 + $0x3ec] ss:$16 sps:$4 sm:$0xff]  }
 0x392   : > { %3848 = vmatprep.subr.bf16.mxu1 %v21877_v62  ;;  %v21932_v62 = vld [vmem:[#allocation8 + $0x3e0] ss:$16 sps:$4 sm:$0xff]  }
 0x394   : > { %3743 = vmatpush1.bf16.msra.mxu0 %v21872_v63  ;;  %v21935_v63 = vld [vmem:[#allocation8 + $0x3e8] ss:$16 sps:$4 sm:$0xff]  }
 0x395   : > { %3849 = vmatpush1.bf16.msra.mxu1 %v21875_v1  ;;  %3744 = vmatprep.subr.bf16.mxu0 %v21880_v2  ;;  %v21940_v1 = vld [vmem:[#allocation8 + $0x804] ss:$16 sps:$4 sm:$0xff]   ;;  %v21943_v2 = vld [vmem:[#allocation8 + $0x80c] ss:$16 sps:$4 sm:$0xff]  }
 0x396   : > { %3850 = vmatprep.subr.bf16.mxu1 %v21883_v3  ;;  %v21938_v3 = vld [vmem:[#allocation8 + $0x800] ss:$16 sps:$4 sm:$0xff]  }
 0x398   : > { %3745 = vmatpush1.bf16.msra.mxu0 %v21878_v32  ;;  %v21941_v32 = vld [vmem:[#allocation8 + $0x808] ss:$16 sps:$4 sm:$0xff]  }
 0x399   : > { %3851 = vmatpush1.bf16.msra.mxu1 %v21881_v4  ;;  %3746 = vmatprep.subr.bf16.mxu0 %v21886_v34  ;;  %v21946_v4 = vld [vmem:[#allocation8 + $0x824] ss:$16 sps:$4 sm:$0xff]   ;;  %v21949_v34 = vld [vmem:[#allocation8 + $0x82c] ss:$16 sps:$4 sm:$0xff]  }
 0x39a   : > { %3852 = vmatprep.subr.bf16.mxu1 %v21889_v6  ;;  %v21944_v6 = vld [vmem:[#allocation8 + $0x820] ss:$16 sps:$4 sm:$0xff]  }
 0x39c   : > { %3747 = vmatpush1.bf16.msra.mxu0 %v21884_v35  ;;  %v21947_v35 = vld [vmem:[#allocation8 + $0x828] ss:$16 sps:$4 sm:$0xff]  }
 0x39d   : > { %3853 = vmatpush1.bf16.msra.mxu1 %v21887_v36  ;;  %3748 = vmatprep.subr.bf16.mxu0 %v21892_v16  ;;  %v21952_v36 = vld [vmem:[#allocation8 + $0x844] ss:$16 sps:$4 sm:$0xff]   ;;  %v21955_v16 = vld [vmem:[#allocation8 + $0x84c] ss:$16 sps:$4 sm:$0xff]  }
 0x39e   : > { %3854 = vmatprep.subr.bf16.mxu1 %v21895_v38  ;;  %v26008_v38 = vrot.slane %v25935_v56, 2 }
 0x3a0   : > { %3749 = vmatpush1.bf16.msra.mxu0 %v21890_v40  ;;  %v21950_v40 = vld [vmem:[#allocation8 + $0x840] ss:$16 sps:$4 sm:$0xff]  }
 0x3a1   : > { %3855 = vmatpush1.bf16.msra.mxu1 %v21893_v0  ;;  %3750 = vmatprep.subr.bf16.mxu0 %v21898_v9  ;;  %v21953_v0 = vld [vmem:[#allocation8 + $0x848] ss:$16 sps:$4 sm:$0xff]   ;;  %v21958_v9 = vld [vmem:[#allocation8 + $0x864] ss:$16 sps:$4 sm:$0xff]  }
 0x3a2   : > { %3856 = vmatprep.subr.bf16.mxu1 %v21901_v45  ;;  %v4023_v45 = vrot.slane %v25899_v51, 2 }
 0x3a4   : > { %3751 = vmatpush1.bf16.msra.mxu0 %v21896_v15  ;;  %v21961_v15 = vld [vmem:[#allocation8 + $0x86c] ss:$16 sps:$4 sm:$0xff]  }
 0x3a5   : > { %3857 = vmatpush1.bf16.msra.mxu1 %v21899_v20  ;;  %3752 = vmatprep.subr.bf16.mxu0 %v21904_v21  ;;  %v4025_v20 = vsel %vm1544_vm4, %v4023_v45, %v26008_v38  ;;  %v21956_v21 = vld [vmem:[#allocation8 + $0x860] ss:$16 sps:$4 sm:$0xff]   ;;  %v22013_v45 = vld [vmem:[#allocation8 + $0x988] ss:$16 sps:$4 sm:$0xff]  }
 0x3a6   : > { %3858 = vmatprep.subr.bf16.mxu1 %v21907_v26  ;;  %v21959_v26 = vld [vmem:[#allocation8 + $0x868] ss:$16 sps:$4 sm:$0xff]  }
 0x3a8   : > { %3753 = vmatpush1.bf16.msra.mxu0 %v21902_v28  ;;  %v21964_v28 = vld [vmem:[#allocation8 + $0x884] ss:$16 sps:$4 sm:$0xff]  }
 0x3a9   : > { %3859 = vmatpush1.bf16.msra.mxu1 %v21905_v31  ;;  %3754 = vmatprep.subr.bf16.mxu0 %v21910_v37  ;;  %v21967_v31 = vld [vmem:[#allocation8 + $0x88c] ss:$16 sps:$4 sm:$0xff]   ;;  %v21962_v37 = vld [vmem:[#allocation8 + $0x880] ss:$16 sps:$4 sm:$0xff]  }
 0x3aa   : > { %3860 = vmatprep.subr.bf16.mxu1 %v21913_v39  ;;  %v21965_v39 = vld [vmem:[#allocation8 + $0x888] ss:$16 sps:$4 sm:$0xff]  }
 0x3ac   : > { %3755 = vmatpush1.bf16.msra.mxu0 %v21908_v41  ;;  %v21970_v41 = vld [vmem:[#allocation8 + $0x8a4] ss:$16 sps:$4 sm:$0xff]  }
 0x3ad   : > { %3861 = vmatpush1.bf16.msra.mxu1 %v21911_v42  ;;  %3756 = vmatprep.subr.bf16.mxu0 %v21916_v43  ;;  %v21973_v42 = vld [vmem:[#allocation8 + $0x8ac] ss:$16 sps:$4 sm:$0xff]   ;;  %v21968_v43 = vld [vmem:[#allocation8 + $0x8a0] ss:$16 sps:$4 sm:$0xff]  }
 0x3ae   : > { %3862 = vmatprep.subr.bf16.mxu1 %v21919_v47  ;;  %v21971_v47 = vld [vmem:[#allocation8 + $0x8a8] ss:$16 sps:$4 sm:$0xff]  }
 0x3b0   : > { %3757 = vmatpush1.bf16.msra.mxu0 %v21914_v48  ;;  %v21976_v48 = vld [vmem:[#allocation8 + $0x8c4] ss:$16 sps:$4 sm:$0xff]  }
 0x3b1   : > { %3863 = vmatpush1.bf16.msra.mxu1 %v21917_v49  ;;  %3758 = vmatprep.subr.bf16.mxu0 %v21922_v18  ;;  %v21979_v49 = vld [vmem:[#allocation8 + $0x8cc] ss:$16 sps:$4 sm:$0xff]   ;;  %v21974_v18 = vld [vmem:[#allocation8 + $0x8c0] ss:$16 sps:$4 sm:$0xff]  }
 0x3b2   : > { %3864 = vmatprep.subr.bf16.mxu1 %v21925_v19  ;;  %v21977_v19 = vld [vmem:[#allocation8 + $0x8c8] ss:$16 sps:$4 sm:$0xff]  }
 0x3b4   : > { %3759 = vmatpush1.bf16.msra.mxu0 %v21920_v27  ;;  %v21982_v27 = vld [vmem:[#allocation8 + $0x8e4] ss:$16 sps:$4 sm:$0xff]  }
 0x3b5   : > { %3865 = vmatpush1.bf16.msra.mxu1 %v21923_v57  ;;  %3760 = vmatprep.subr.bf16.mxu0 %v21928_v58  ;;  %v21985_v57 = vld [vmem:[#allocation8 + $0x8ec] ss:$16 sps:$4 sm:$0xff]   ;;  %v21980_v58 = vld [vmem:[#allocation8 + $0x8e0] ss:$16 sps:$4 sm:$0xff]  }
 0x3b6   : > { %3866 = vmatprep.subr.bf16.mxu1 %v21931_v59  ;;  %v21983_v59 = vld [vmem:[#allocation8 + $0x8e8] ss:$16 sps:$4 sm:$0xff]  }
 0x3b8   : > { %3761 = vmatpush1.bf16.msra.mxu0 %v21926_v29  ;;  %v21988_v29 = vld [vmem:[#allocation8 + $0x904] ss:$16 sps:$4 sm:$0xff]  }
 0x3b9   : > { %3867 = vmatpush1.bf16.msra.mxu1 %v21929_v60  ;;  %3762 = vmatprep.subr.bf16.mxu0 %v21934_v30  ;;  %v21991_v60 = vld [vmem:[#allocation8 + $0x90c] ss:$16 sps:$4 sm:$0xff]   ;;  %v21986_v30 = vld [vmem:[#allocation8 + $0x900] ss:$16 sps:$4 sm:$0xff]  }
 0x3ba   : > { %3868 = vmatprep.subr.bf16.mxu1 %v21937_v61  ;;  %v21989_v61 = vld [vmem:[#allocation8 + $0x908] ss:$16 sps:$4 sm:$0xff]  }
 0x3bc   : > { %3763 = vmatpush1.bf16.msra.mxu0 %v21932_v62  ;;  %v21994_v62 = vld [vmem:[#allocation8 + $0x924] ss:$16 sps:$4 sm:$0xff]  }
 0x3bd   : > { %3869 = vmatpush1.bf16.msra.mxu1 %v21935_v63  ;;  %4680 = vmatprep.subr.bf16.mxu0 %v21940_v1  ;;  %v21997_v63 = vld [vmem:[#allocation8 + $0x92c] ss:$16 sps:$4 sm:$0xff]   ;;  %v21992_v1 = vld [vmem:[#allocation8 + $0x920] ss:$16 sps:$4 sm:$0xff]  }
 0x3be   : > { %4786 = vmatprep.subr.bf16.mxu1 %v21943_v2  ;;  %v21995_v2 = vld [vmem:[#allocation8 + $0x928] ss:$16 sps:$4 sm:$0xff]  }
 0x3bf   : > { %3765 = vmatmul.mubr.bf16.vlgmr.msra.gmra.mrb[28].mxu0 %v25897_v46 }
 0x3c0   : > { %3871 = vmatmul.mubr.bf16.vlgmr.msra.gmra.mrb[28].mxu1 %v25897_v46  ;;  %3774 = vmatprep.mubr.bf16.mxu0 %v25937_v23 }
 0x3c1   : > { %3880 = vmatprep.mubr.bf16.mxu1 %v25937_v23  ;;  %4681 = vmatpush1.bf16.msra.mxu0 %v21938_v3  ;;  %v22000_v3 = vld [vmem:[#allocation8 + $0x944] ss:$16 sps:$4 sm:$0xff]  }
 0x3c2   : > { %4787 = vmatpush1.bf16.msra.mxu1 %v21941_v32  ;;  %4682 = vmatprep.subr.bf16.mxu0 %v21946_v4  ;;  %v22003_v32 = vld [vmem:[#allocation8 + $0x94c] ss:$16 sps:$4 sm:$0xff]   ;;  %v21998_v4 = vld [vmem:[#allocation8 + $0x940] ss:$16 sps:$4 sm:$0xff]  }
 0x3c3   : > { %4788 = vmatprep.subr.bf16.mxu1 %v21949_v34  ;;  %v22001_v34 = vld [vmem:[#allocation8 + $0x948] ss:$16 sps:$4 sm:$0xff]  }
 0x3c5   : > { %4683 = vmatpush1.bf16.msra.mxu0 %v21944_v6  ;;  %v22006_v6 = vld [vmem:[#allocation8 + $0x964] ss:$16 sps:$4 sm:$0xff]  }
 0x3c6   : > { %4789 = vmatpush1.bf16.msra.mxu1 %v21947_v35  ;;  %4684 = vmatprep.subr.bf16.mxu0 %v21952_v36  ;;  %v22009_v35 = vld [vmem:[#allocation8 + $0x96c] ss:$16 sps:$4 sm:$0xff]   ;;  %v22004_v36 = vld [vmem:[#allocation8 + $0x960] ss:$16 sps:$4 sm:$0xff]  }
 0x3c7   : > { %3775 = vmatmul.mubr.bf16.gmra.mrb[32].mxu0 %v25933_v53  ;;  %4790 = vmatprep.subr.bf16.mxu1 %v21955_v16  ;;  %v22007_v16 = vld [vmem:[#allocation8 + $0x968] ss:$16 sps:$4 sm:$0xff]  }
 0x3c8   : > { %3881 = vmatmul.mubr.bf16.gmra.mrb[32].mxu1 %v25933_v53  ;;  %4712 = vmatprep.mubr.bf16.mxu0 %v4025_v20 }
 0x3c9   : > { %4685 = vmatpush1.bf16.msra.mxu0 %v21950_v40  ;;  %4818 = vmatprep.mubr.bf16.mxu1 %v4025_v20  ;;  %v22012_v40 = vld [vmem:[#allocation8 + $0x984] ss:$16 sps:$4 sm:$0xff]   ;;  %v22021_v20 = vld [vmem:[#allocation8 + $0x9ac] ss:$16 sps:$4 sm:$0xff]  }
 0x3ca   : > { %4791 = vmatpush1.bf16.msra.mxu1 %v21953_v0  ;;  %4686 = vmatprep.subr.bf16.mxu0 %v21958_v9  ;;  %v22015_v0 = vld [vmem:[#allocation8 + $0x98c] ss:$16 sps:$4 sm:$0xff]   ;;  %v22010_v9 = vld [vmem:[#allocation8 + $0x980] ss:$16 sps:$4 sm:$0xff]  }
 0x3cb   : > { %4792 = vmatprep.subr.bf16.mxu1 %v21961_v15  ;;  %v22018_v15 = vld [vmem:[#allocation8 + $0x9a4] ss:$16 sps:$4 sm:$0xff]  }
 0x3cd   : > { %4687 = vmatpush1.bf16.msra.mxu0 %v21956_v21  ;;  %v22016_v21 = vld [vmem:[#allocation8 + $0x9a0] ss:$16 sps:$4 sm:$0xff]  }
 0x3ce   : > { %4793 = vmatpush1.bf16.msra.mxu1 %v21959_v26  ;;  %4688 = vmatprep.subr.bf16.mxu0 %v21964_v28  ;;  %v22019_v26 = vld [vmem:[#allocation8 + $0x9a8] ss:$16 sps:$4 sm:$0xff]   ;;  %v22024_v28 = vld [vmem:[#allocation8 + $0x9c4] ss:$16 sps:$4 sm:$0xff]  }
 0x3cf   : > { %4794 = vmatprep.subr.bf16.mxu1 %v21967_v31  ;;  %v22027_v31 = vld [vmem:[#allocation8 + $0x9cc] ss:$16 sps:$4 sm:$0xff]  }
 0x3d1   : > { %4689 = vmatpush1.bf16.msra.mxu0 %v21962_v37  ;;  %v22022_v37 = vld [vmem:[#allocation8 + $0x9c0] ss:$16 sps:$4 sm:$0xff]  }
 0x3d2   : > { %4795 = vmatpush1.bf16.msra.mxu1 %v21965_v39  ;;  %4690 = vmatprep.subr.bf16.mxu0 %v21970_v41  ;;  %v22025_v39 = vld [vmem:[#allocation8 + $0x9c8] ss:$16 sps:$4 sm:$0xff]   ;;  %v22030_v41 = vld [vmem:[#allocation8 + $0x9e4] ss:$16 sps:$4 sm:$0xff]  }
 0x3d3   : > { %4796 = vmatprep.subr.bf16.mxu1 %v21973_v42  ;;  %v22033_v42 = vld [vmem:[#allocation8 + $0x9ec] ss:$16 sps:$4 sm:$0xff]  }
 0x3d5   : > { %4691 = vmatpush1.bf16.msra.mxu0 %v21968_v43  ;;  %v22028_v43 = vld [vmem:[#allocation8 + $0x9e0] ss:$16 sps:$4 sm:$0xff]  }
 0x3d6   : > { %4797 = vmatpush1.bf16.msra.mxu1 %v21971_v47  ;;  %4692 = vmatprep.subr.bf16.mxu0 %v21976_v48  ;;  %v22031_v47 = vld [vmem:[#allocation8 + $0x9e8] ss:$16 sps:$4 sm:$0xff]   ;;  %v22036_v48 = vld [vmem:[#allocation8 + $0xa04] ss:$16 sps:$4 sm:$0xff]  }
 0x3d7   : > { %4798 = vmatprep.subr.bf16.mxu1 %v21979_v49  ;;  %v22039_v49 = vld [vmem:[#allocation8 + $0xa0c] ss:$16 sps:$4 sm:$0xff]  }
 0x3d9   : > { %4693 = vmatpush1.bf16.msra.mxu0 %v21974_v18  ;;  %v4021_v18 = vrot.slane %v25931_v50, 2 }
 0x3da   : > { %4799 = vmatpush1.bf16.msra.mxu1 %v21977_v19  ;;  %4694 = vmatprep.subr.bf16.mxu0 %v21982_v27  ;;  %v22034_v19 = vld [vmem:[#allocation8 + $0xa00] ss:$16 sps:$4 sm:$0xff]   ;;  %v4020_v27 = vrot.slane %v25895_v44, 2 }
 0x3db   : > { %4800 = vmatprep.subr.bf16.mxu1 %v21985_v57  ;;  %v22037_v57 = vld [vmem:[#allocation8 + $0xa08] ss:$16 sps:$4 sm:$0xff]  }
 0x3dd   : > { %4695 = vmatpush1.bf16.msra.mxu0 %v21980_v58  ;;  %v22042_v58 = vld [vmem:[#allocation8 + $0xa24] ss:$16 sps:$4 sm:$0xff]  }
 0x3de   : > { %4801 = vmatpush1.bf16.msra.mxu1 %v21983_v59  ;;  %4696 = vmatprep.subr.bf16.mxu0 %v21988_v29  ;;  %v22045_v59 = vld [vmem:[#allocation8 + $0xa2c] ss:$16 sps:$4 sm:$0xff]   ;;  %v4022_v29 = vsel %vm1544_vm4, %v4020_v27, %v4021_v18  ;;  %v22091_v27 = vld [vmem:[#allocation8 + $0xb28] ss:$16 sps:$4 sm:$0xff]  }
 0x3df   : > { %4802 = vmatprep.subr.bf16.mxu1 %v21991_v60  ;;  %v22040_v60 = vld [vmem:[#allocation8 + $0xa20] ss:$16 sps:$4 sm:$0xff]  }
 0x3e1   : > { %4697 = vmatpush1.bf16.msra.mxu0 %v21986_v30  ;;  %v22043_v30 = vld [vmem:[#allocation8 + $0xa28] ss:$16 sps:$4 sm:$0xff]  }
 0x3e2   : > { %4803 = vmatpush1.bf16.msra.mxu1 %v21989_v61  ;;  %4698 = vmatprep.subr.bf16.mxu0 %v21994_v62  ;;  %v22048_v61 = vld [vmem:[#allocation8 + $0xa44] ss:$16 sps:$4 sm:$0xff]   ;;  %v22051_v62 = vld [vmem:[#allocation8 + $0xa4c] ss:$16 sps:$4 sm:$0xff]  }
 0x3e3   : > { %4804 = vmatprep.subr.bf16.mxu1 %v21997_v63  ;;  %v26021_v63 = vrot.slane %v25937_v23, 2 }
 0x3e5   : > { %4699 = vmatpush1.bf16.msra.mxu0 %v21992_v1  ;;  %v22046_v1 = vld [vmem:[#allocation8 + $0xa40] ss:$16 sps:$4 sm:$0xff]  }
 0x3e6   : > { %4805 = vmatpush1.bf16.msra.mxu1 %v21995_v2  ;;  %4700 = vmatprep.subr.bf16.mxu0 %v22000_v3  ;;  %v22049_v2 = vld [vmem:[#allocation8 + $0xa48] ss:$16 sps:$4 sm:$0xff]   ;;  %v22054_v3 = vld [vmem:[#allocation8 + $0xa64] ss:$16 sps:$4 sm:$0xff]  }
 0x3e7   : > { %4806 = vmatprep.subr.bf16.mxu1 %v22003_v32  ;;  %v4029_v32 = vrot.slane %v25901_v52, 2 }
 0x3e9   : > { %4701 = vmatpush1.bf16.msra.mxu0 %v21998_v4  ;;  %v22057_v4 = vld [vmem:[#allocation8 + $0xa6c] ss:$16 sps:$4 sm:$0xff]  }
 0x3ea   : > { %4807 = vmatpush1.bf16.msra.mxu1 %v22001_v34  ;;  %4702 = vmatprep.subr.bf16.mxu0 %v22006_v6  ;;  %v22052_v34 = vld [vmem:[#allocation8 + $0xa60] ss:$16 sps:$4 sm:$0xff]   ;;  %v22055_v6 = vld [vmem:[#allocation8 + $0xa68] ss:$16 sps:$4 sm:$0xff]  }
 0x3eb   : > { %4808 = vmatprep.subr.bf16.mxu1 %v22009_v35  ;;  %v22060_v35 = vld [vmem:[#allocation8 + $0xa84] ss:$16 sps:$4 sm:$0xff]  }
 0x3ed   : > { %4703 = vmatpush1.bf16.msra.mxu0 %v22004_v36  ;;  %v22063_v36 = vld [vmem:[#allocation8 + $0xa8c] ss:$16 sps:$4 sm:$0xff]  }
 0x3ee   : > { %4809 = vmatpush1.bf16.msra.mxu1 %v22007_v16  ;;  %4704 = vmatprep.subr.bf16.mxu0 %v22012_v40  ;;  %v22058_v16 = vld [vmem:[#allocation8 + $0xa80] ss:$16 sps:$4 sm:$0xff]   ;;  %v22061_v40 = vld [vmem:[#allocation8 + $0xa88] ss:$16 sps:$4 sm:$0xff]  }
 0x3ef   : > { %4810 = vmatprep.subr.bf16.mxu1 %v22015_v0  ;;  %v22066_v0 = vld [vmem:[#allocation8 + $0xaa4] ss:$16 sps:$4 sm:$0xff]  }
 0x3f1   : > { %4705 = vmatpush1.bf16.msra.mxu0 %v22010_v9  ;;  %v22069_v9 = vld [vmem:[#allocation8 + $0xaac] ss:$16 sps:$4 sm:$0xff]  }
 0x3f2   : > { %4811 = vmatpush1.bf16.msra.mxu1 %v22013_v45  ;;  %4706 = vmatprep.subr.bf16.mxu0 %v22018_v15  ;;  %v22064_v45 = vld [vmem:[#allocation8 + $0xaa0] ss:$16 sps:$4 sm:$0xff]   ;;  %v22067_v15 = vld [vmem:[#allocation8 + $0xaa8] ss:$16 sps:$4 sm:$0xff]  }
 0x3f3   : > { %4812 = vmatprep.subr.bf16.mxu1 %v22021_v20  ;;  %v22072_v20 = vld [vmem:[#allocation8 + $0xac4] ss:$16 sps:$4 sm:$0xff]  }
 0x3f5   : > { %4707 = vmatpush1.bf16.msra.mxu0 %v22016_v21  ;;  %v22075_v21 = vld [vmem:[#allocation8 + $0xacc] ss:$16 sps:$4 sm:$0xff]  }
 0x3f6   : > { %4813 = vmatpush1.bf16.msra.mxu1 %v22019_v26  ;;  %4708 = vmatprep.subr.bf16.mxu0 %v22024_v28  ;;  %v22070_v26 = vld [vmem:[#allocation8 + $0xac0] ss:$16 sps:$4 sm:$0xff]   ;;  %v22073_v28 = vld [vmem:[#allocation8 + $0xac8] ss:$16 sps:$4 sm:$0xff]  }
 0x3f7   : > { %4814 = vmatprep.subr.bf16.mxu1 %v22027_v31  ;;  %v22078_v31 = vld [vmem:[#allocation8 + $0xae4] ss:$16 sps:$4 sm:$0xff]  }
 0x3f9   : > { %4709 = vmatpush1.bf16.msra.mxu0 %v22022_v37  ;;  %v22081_v37 = vld [vmem:[#allocation8 + $0xaec] ss:$16 sps:$4 sm:$0xff]  }
 0x3fa   : > { %4815 = vmatpush1.bf16.msra.mxu1 %v22025_v39  ;;  %4710 = vmatprep.subr.bf16.mxu0 %v22030_v41  ;;  %v22076_v39 = vld [vmem:[#allocation8 + $0xae0] ss:$16 sps:$4 sm:$0xff]   ;;  %v22079_v41 = vld [vmem:[#allocation8 + $0xae8] ss:$16 sps:$4 sm:$0xff]  }
 0x3fb   : > { %4816 = vmatprep.subr.bf16.mxu1 %v22033_v42  ;;  %v22084_v42 = vld [vmem:[#allocation8 + $0xb04] ss:$16 sps:$4 sm:$0xff]  }
 0x3fd   : > { %4711 = vmatpush1.bf16.msra.mxu0 %v22028_v43  ;;  %v22087_v43 = vld [vmem:[#allocation8 + $0xb0c] ss:$16 sps:$4 sm:$0xff]  }
 0x3fe   : > { %4817 = vmatpush1.bf16.msra.mxu1 %v22031_v47  ;;  %4733 = vmatprep.subr.bf16.mxu0 %v22036_v48  ;;  %v22082_v47 = vld [vmem:[#allocation8 + $0xb00] ss:$16 sps:$4 sm:$0xff]   ;;  %v22085_v48 = vld [vmem:[#allocation8 + $0xb08] ss:$16 sps:$4 sm:$0xff]  }
 0x3ff   : > { %4839 = vmatprep.subr.bf16.mxu1 %v22039_v49  ;;  %v22090_v49 = vld [vmem:[#allocation8 + $0xb24] ss:$16 sps:$4 sm:$0xff]  }
 0x400   : > { %4713 = vmatmul.mubr.bf16.vlgmr.msra.gmra.mrb[28].mxu0 %v4022_v29 }
 0x401   : > { %4819 = vmatmul.mubr.bf16.vlgmr.msra.gmra.mrb[28].mxu1 %v4022_v29  ;;  %4722 = vmatprep.mubr.bf16.mxu0 %v26008_v38  ;;  %v22097_v29 = vld [vmem:[#allocation8 + $0xb48] ss:$16 sps:$4 sm:$0xff]  }
 0x402   : > { %4734 = vmatpush1.bf16.msra.mxu0 %v22034_v19  ;;  %4828 = vmatprep.mubr.bf16.mxu1 %v26008_v38  ;;  %v4031_v38 = vsel %vm1544_vm4, %v4029_v32, %v26021_v63  ;;  %v22088_v19 = vld [vmem:[#allocation8 + $0xb20] ss:$16 sps:$4 sm:$0xff]   ;;  %v22109_v32 = vld [vmem:[#allocation8 + $0xb88] ss:$16 sps:$4 sm:$0xff]  }
 0x403   : > { %4840 = vmatpush1.bf16.msra.mxu1 %v22037_v57  ;;  %4735 = vmatprep.subr.bf16.mxu0 %v22042_v58  ;;  %v22096_v57 = vld [vmem:[#allocation8 + $0xb44] ss:$16 sps:$4 sm:$0xff]   ;;  %v22099_v58 = vld [vmem:[#allocation8 + $0xb4c] ss:$16 sps:$4 sm:$0xff]  }
 0x404   : > { %4841 = vmatprep.subr.bf16.mxu1 %v22045_v59  ;;  %v22094_v59 = vld [vmem:[#allocation8 + $0xb40] ss:$16 sps:$4 sm:$0xff]  }
 0x406   : > { %4736 = vmatpush1.bf16.msra.mxu0 %v22040_v60  ;;  %v22102_v60 = vld [vmem:[#allocation8 + $0xb64] ss:$16 sps:$4 sm:$0xff]  }
 0x407   : > { %4842 = vmatpush1.bf16.msra.mxu1 %v22043_v30  ;;  %4737 = vmatprep.subr.bf16.mxu0 %v22048_v61  ;;  %v22105_v30 = vld [vmem:[#allocation8 + $0xb6c] ss:$16 sps:$4 sm:$0xff]   ;;  %v22100_v61 = vld [vmem:[#allocation8 + $0xb60] ss:$16 sps:$4 sm:$0xff]  }
 0x408   : > { %4723 = vmatmul.mubr.bf16.gmra.mrb[32].mxu0 %v4021_v18  ;;  %4843 = vmatprep.subr.bf16.mxu1 %v22051_v62  ;;  %v22103_v62 = vld [vmem:[#allocation8 + $0xb68] ss:$16 sps:$4 sm:$0xff]  }
 0x409   : > { %4829 = vmatmul.mubr.bf16.gmra.mrb[32].mxu1 %v4021_v18  ;;  %4765 = vmatprep.mubr.bf16.mxu0 %v4031_v38  ;;  %v22093_v18 = vld [vmem:[#allocation8 + $0xb2c] ss:$16 sps:$4 sm:$0xff]  }
 0x40a   : > { %4738 = vmatpush1.bf16.msra.mxu0 %v22046_v1  ;;  %4871 = vmatprep.mubr.bf16.mxu1 %v4031_v38  ;;  %v22108_v1 = vld [vmem:[#allocation8 + $0xb84] ss:$16 sps:$4 sm:$0xff]   ;;  %v22117_v38 = vld [vmem:[#allocation8 + $0xbac] ss:$16 sps:$4 sm:$0xff]  }
 0x40b   : > { %4844 = vmatpush1.bf16.msra.mxu1 %v22049_v2  ;;  %4739 = vmatprep.subr.bf16.mxu0 %v22054_v3  ;;  %v22111_v2 = vld [vmem:[#allocation8 + $0xb8c] ss:$16 sps:$4 sm:$0xff]   ;;  %v22106_v3 = vld [vmem:[#allocation8 + $0xb80] ss:$16 sps:$4 sm:$0xff]  }
 0x40c   : > { %4845 = vmatprep.subr.bf16.mxu1 %v22057_v4  ;;  %v22114_v4 = vld [vmem:[#allocation8 + $0xba4] ss:$16 sps:$4 sm:$0xff]  }
 0x40e   : > { %4740 = vmatpush1.bf16.msra.mxu0 %v22052_v34  ;;  %v22112_v34 = vld [vmem:[#allocation8 + $0xba0] ss:$16 sps:$4 sm:$0xff]  }
 0x40f   : > { %4846 = vmatpush1.bf16.msra.mxu1 %v22055_v6  ;;  %4741 = vmatprep.subr.bf16.mxu0 %v22060_v35  ;;  %v22115_v6 = vld [vmem:[#allocation8 + $0xba8] ss:$16 sps:$4 sm:$0xff]   ;;  %v22120_v35 = vld [vmem:[#allocation8 + $0xbc4] ss:$16 sps:$4 sm:$0xff]  }
 0x410   : > { %4847 = vmatprep.subr.bf16.mxu1 %v22063_v36  ;;  %v22123_v36 = vld [vmem:[#allocation8 + $0xbcc] ss:$16 sps:$4 sm:$0xff]  }
 0x412   : > { %4742 = vmatpush1.bf16.msra.mxu0 %v22058_v16  ;;  %v22118_v16 = vld [vmem:[#allocation8 + $0xbc0] ss:$16 sps:$4 sm:$0xff]  }
 0x413   : > { %4848 = vmatpush1.bf16.msra.mxu1 %v22061_v40  ;;  %4743 = vmatprep.subr.bf16.mxu0 %v22066_v0  ;;  %v22121_v40 = vld [vmem:[#allocation8 + $0xbc8] ss:$16 sps:$4 sm:$0xff]   ;;  %v22126_v0 = vld [vmem:[#allocation8 + $0xbe4] ss:$16 sps:$4 sm:$0xff]  }
 0x414   : > { %4849 = vmatprep.subr.bf16.mxu1 %v22069_v9  ;;  %v22129_v9 = vld [vmem:[#allocation8 + $0xbec] ss:$16 sps:$4 sm:$0xff]  }
 0x416   : > { %4744 = vmatpush1.bf16.msra.mxu0 %v22064_v45  ;;  %v22124_v45 = vld [vmem:[#allocation8 + $0xbe0] ss:$16 sps:$4 sm:$0xff]  }
 0x417   : > { %4850 = vmatpush1.bf16.msra.mxu1 %v22067_v15  ;;  %4745 = vmatprep.subr.bf16.mxu0 %v22072_v20  ;;  %v22127_v15 = vld [vmem:[#allocation8 + $0xbe8] ss:$16 sps:$4 sm:$0xff]   ;;  %v22132_v20 = vld [vmem:[#allocation8 + $0xc04] ss:$16 sps:$4 sm:$0xff]  }
 0x418   : > { %4851 = vmatprep.subr.bf16.mxu1 %v22075_v21  ;;  %v22135_v21 = vld [vmem:[#allocation8 + $0xc0c] ss:$16 sps:$4 sm:$0xff]  }
 0x41a   : > { %4746 = vmatpush1.bf16.msra.mxu0 %v22070_v26  ;;  %v4027_v26 = vrot.slane %v25933_v53, 2 }
 0x41b   : > { %4852 = vmatpush1.bf16.msra.mxu1 %v22073_v28  ;;  %4747 = vmatprep.subr.bf16.mxu0 %v22078_v31  ;;  %v22130_v28 = vld [vmem:[#allocation8 + $0xc00] ss:$16 sps:$4 sm:$0xff]   ;;  %v4026_v31 = vrot.slane %v25897_v46, 2 }
 0x41c   : > { %4853 = vmatprep.subr.bf16.mxu1 %v22081_v37  ;;  %v22133_v37 = vld [vmem:[#allocation8 + $0xc08] ss:$16 sps:$4 sm:$0xff]  }
 0x41e   : > { %4748 = vmatpush1.bf16.msra.mxu0 %v22076_v39  ;;  %v22138_v39 = vld [vmem:[#allocation8 + $0xc24] ss:$16 sps:$4 sm:$0xff]  }
 0x41f   : > { %4854 = vmatpush1.bf16.msra.mxu1 %v22079_v41  ;;  %4749 = vmatprep.subr.bf16.mxu0 %v22084_v42  ;;  %v22141_v41 = vld [vmem:[#allocation8 + $0xc2c] ss:$16 sps:$4 sm:$0xff]   ;;  %v4028_v42 = vsel %vm1544_vm4, %v4026_v31, %v4027_v26  ;;  %v22187_v31 = vld [vmem:[#allocation8 + $0xd28] ss:$16 sps:$4 sm:$0xff]  }
 0x420   : > { %4855 = vmatprep.subr.bf16.mxu1 %v22087_v43  ;;  %v22136_v43 = vld [vmem:[#allocation8 + $0xc20] ss:$16 sps:$4 sm:$0xff]  }
 0x422   : > { %4750 = vmatpush1.bf16.msra.mxu0 %v22082_v47  ;;  %v22139_v47 = vld [vmem:[#allocation8 + $0xc28] ss:$16 sps:$4 sm:$0xff]  }
 0x423   : > { %4856 = vmatpush1.bf16.msra.mxu1 %v22085_v48  ;;  %4751 = vmatprep.subr.bf16.mxu0 %v22090_v49  ;;  %v22144_v48 = vld [vmem:[#allocation8 + $0xc44] ss:$16 sps:$4 sm:$0xff]   ;;  %v22147_v49 = vld [vmem:[#allocation8 + $0xc4c] ss:$16 sps:$4 sm:$0xff]  }
 0x424   : > { %4857 = vmatprep.subr.bf16.mxu1 %v22093_v18  ;;  %v5046_v18 = vrot.slane %v25935_v56, 3 }
 0x426   : > { %4752 = vmatpush1.bf16.msra.mxu0 %v22088_v19  ;;  %v22142_v19 = vld [vmem:[#allocation8 + $0xc40] ss:$16 sps:$4 sm:$0xff]  }
 0x427   : > { %4858 = vmatpush1.bf16.msra.mxu1 %v22091_v27  ;;  %4753 = vmatprep.subr.bf16.mxu0 %v22096_v57  ;;  %v22145_v27 = vld [vmem:[#allocation8 + $0xc48] ss:$16 sps:$4 sm:$0xff]   ;;  %v22150_v57 = vld [vmem:[#allocation8 + $0xc64] ss:$16 sps:$4 sm:$0xff]  }
 0x428   : > { %4859 = vmatprep.subr.bf16.mxu1 %v22099_v58  ;;  %v5045_v58 = vrot.slane %v25899_v51, 3 }
 0x42a   : > { %4754 = vmatpush1.bf16.msra.mxu0 %v22094_v59  ;;  %v22153_v59 = vld [vmem:[#allocation8 + $0xc6c] ss:$16 sps:$4 sm:$0xff]  }
 0x42b   : > { %4860 = vmatpush1.bf16.msra.mxu1 %v22097_v29  ;;  %4755 = vmatprep.subr.bf16.mxu0 %v22102_v60  ;;  %v22148_v29 = vld [vmem:[#allocation8 + $0xc60] ss:$16 sps:$4 sm:$0xff]   ;;  %v22151_v60 = vld [vmem:[#allocation8 + $0xc68] ss:$16 sps:$4 sm:$0xff]  }
 0x42c   : > { %4861 = vmatprep.subr.bf16.mxu1 %v22105_v30  ;;  %v22156_v30 = vld [vmem:[#allocation8 + $0xc84] ss:$16 sps:$4 sm:$0xff]  }
 0x42e   : > { %4756 = vmatpush1.bf16.msra.mxu0 %v22100_v61  ;;  %v22159_v61 = vld [vmem:[#allocation8 + $0xc8c] ss:$16 sps:$4 sm:$0xff]  }
 0x42f   : > { %4862 = vmatpush1.bf16.msra.mxu1 %v22103_v62  ;;  %4757 = vmatprep.subr.bf16.mxu0 %v22108_v1  ;;  %v22154_v62 = vld [vmem:[#allocation8 + $0xc80] ss:$16 sps:$4 sm:$0xff]   ;;  %v22157_v1 = vld [vmem:[#allocation8 + $0xc88] ss:$16 sps:$4 sm:$0xff]  }
 0x430   : > { %4863 = vmatprep.subr.bf16.mxu1 %v22111_v2  ;;  %v22162_v2 = vld [vmem:[#allocation8 + $0xca4] ss:$16 sps:$4 sm:$0xff]  }
 0x432   : > { %4758 = vmatpush1.bf16.msra.mxu0 %v22106_v3  ;;  %v22165_v3 = vld [vmem:[#allocation8 + $0xcac] ss:$16 sps:$4 sm:$0xff]  }
 0x433   : > { %4864 = vmatpush1.bf16.msra.mxu1 %v22109_v32  ;;  %4759 = vmatprep.subr.bf16.mxu0 %v22114_v4  ;;  %v22160_v32 = vld [vmem:[#allocation8 + $0xca0] ss:$16 sps:$4 sm:$0xff]   ;;  %v22163_v4 = vld [vmem:[#allocation8 + $0xca8] ss:$16 sps:$4 sm:$0xff]  }
 0x434   : > { %4865 = vmatprep.subr.bf16.mxu1 %v22117_v38  ;;  %v22168_v38 = vld [vmem:[#allocation8 + $0xcc4] ss:$16 sps:$4 sm:$0xff]  }
 0x436   : > { %4760 = vmatpush1.bf16.msra.mxu0 %v22112_v34  ;;  %v22171_v34 = vld [vmem:[#allocation8 + $0xccc] ss:$16 sps:$4 sm:$0xff]  }
 0x437   : > { %4866 = vmatpush1.bf16.msra.mxu1 %v22115_v6  ;;  %4761 = vmatprep.subr.bf16.mxu0 %v22120_v35  ;;  %v22166_v6 = vld [vmem:[#allocation8 + $0xcc0] ss:$16 sps:$4 sm:$0xff]   ;;  %v22169_v35 = vld [vmem:[#allocation8 + $0xcc8] ss:$16 sps:$4 sm:$0xff]  }
 0x438   : > { %4867 = vmatprep.subr.bf16.mxu1 %v22123_v36  ;;  %v22174_v36 = vld [vmem:[#allocation8 + $0xce4] ss:$16 sps:$4 sm:$0xff]  }
 0x43a   : > { %4762 = vmatpush1.bf16.msra.mxu0 %v22118_v16  ;;  %v22177_v16 = vld [vmem:[#allocation8 + $0xcec] ss:$16 sps:$4 sm:$0xff]  }
 0x43b   : > { %4868 = vmatpush1.bf16.msra.mxu1 %v22121_v40  ;;  %4763 = vmatprep.subr.bf16.mxu0 %v22126_v0  ;;  %v22172_v40 = vld [vmem:[#allocation8 + $0xce0] ss:$16 sps:$4 sm:$0xff]   ;;  %v22175_v0 = vld [vmem:[#allocation8 + $0xce8] ss:$16 sps:$4 sm:$0xff]  }
 0x43c   : > { %4869 = vmatprep.subr.bf16.mxu1 %v22129_v9  ;;  %v22180_v9 = vld [vmem:[#allocation8 + $0xd04] ss:$16 sps:$4 sm:$0xff]  }
 0x43e   : > { %4764 = vmatpush1.bf16.msra.mxu0 %v22124_v45  ;;  %v22183_v45 = vld [vmem:[#allocation8 + $0xd0c] ss:$16 sps:$4 sm:$0xff]  }
 0x43f   : > { %4870 = vmatpush1.bf16.msra.mxu1 %v22127_v15  ;;  %5710 = vmatprep.subr.bf16.mxu0 %v22132_v20  ;;  %v22178_v15 = vld [vmem:[#allocation8 + $0xd00] ss:$16 sps:$4 sm:$0xff]   ;;  %v22181_v20 = vld [vmem:[#allocation8 + $0xd08] ss:$16 sps:$4 sm:$0xff]  }
 0x440   : > { %5816 = vmatprep.subr.bf16.mxu1 %v22135_v21  ;;  %v22186_v21 = vld [vmem:[#allocation8 + $0xd24] ss:$16 sps:$4 sm:$0xff]  }
 0x441   : > { %4766 = vmatmul.mubr.bf16.vlgmr.msra.gmra.mrb[28].mxu0 %v4028_v42 }
 0x442   : > { %4872 = vmatmul.mubr.bf16.vlgmr.msra.gmra.mrb[28].mxu1 %v4028_v42  ;;  %4775 = vmatprep.mubr.bf16.mxu0 %v26021_v63  ;;  %v22193_v42 = vld [vmem:[#allocation8 + $0xd48] ss:$16 sps:$4 sm:$0xff]  }
 0x443   : > { %4881 = vmatprep.mubr.bf16.mxu1 %v26021_v63  ;;  %5711 = vmatpush1.bf16.msra.mxu0 %v22130_v28  ;;  %v5047_v63 = vsel %vm5041_vm6, %v5045_v58, %v5046_v18  ;;  %v22184_v28 = vld [vmem:[#allocation8 + $0xd20] ss:$16 sps:$4 sm:$0xff]   ;;  %v22205_v58 = vld [vmem:[#allocation8 + $0xd88] ss:$16 sps:$4 sm:$0xff]  }
 0x444   : > { %5817 = vmatpush1.bf16.msra.mxu1 %v22133_v37  ;;  %5712 = vmatprep.subr.bf16.mxu0 %v22138_v39  ;;  %v22192_v37 = vld [vmem:[#allocation8 + $0xd44] ss:$16 sps:$4 sm:$0xff]   ;;  %v22195_v39 = vld [vmem:[#allocation8 + $0xd4c] ss:$16 sps:$4 sm:$0xff]  }
 0x445   : > { %5818 = vmatprep.subr.bf16.mxu1 %v22141_v41  ;;  %v22190_v41 = vld [vmem:[#allocation8 + $0xd40] ss:$16 sps:$4 sm:$0xff]  }
 0x447   : > { %5713 = vmatpush1.bf16.msra.mxu0 %v22136_v43  ;;  %v22198_v43 = vld [vmem:[#allocation8 + $0xd64] ss:$16 sps:$4 sm:$0xff]  }
 0x448   : > { %5819 = vmatpush1.bf16.msra.mxu1 %v22139_v47  ;;  %5714 = vmatprep.subr.bf16.mxu0 %v22144_v48  ;;  %v22201_v47 = vld [vmem:[#allocation8 + $0xd6c] ss:$16 sps:$4 sm:$0xff]   ;;  %v22196_v48 = vld [vmem:[#allocation8 + $0xd60] ss:$16 sps:$4 sm:$0xff]  }
 0x449   : > { %4776 = vmatmul.mubr.bf16.gmra.mrb[32].mxu0 %v4027_v26  ;;  %5820 = vmatprep.subr.bf16.mxu1 %v22147_v49  ;;  %v22199_v49 = vld [vmem:[#allocation8 + $0xd68] ss:$16 sps:$4 sm:$0xff]  }
 0x44a   : > { %4882 = vmatmul.mubr.bf16.gmra.mrb[32].mxu1 %v4027_v26  ;;  %5742 = vmatprep.mubr.bf16.mxu0 %v5047_v63  ;;  %v22189_v26 = vld [vmem:[#allocation8 + $0xd2c] ss:$16 sps:$4 sm:$0xff]  }
 0x44b   : > { %5715 = vmatpush1.bf16.msra.mxu0 %v22142_v19  ;;  %5848 = vmatprep.mubr.bf16.mxu1 %v5047_v63  ;;  %v22204_v19 = vld [vmem:[#allocation8 + $0xd84] ss:$16 sps:$4 sm:$0xff]   ;;  %v22213_v63 = vld [vmem:[#allocation8 + $0xdac] ss:$16 sps:$4 sm:$0xff]  }
 0x44c   : > { %5821 = vmatpush1.bf16.msra.mxu1 %v22145_v27  ;;  %5716 = vmatprep.subr.bf16.mxu0 %v22150_v57  ;;  %v22207_v27 = vld [vmem:[#allocation8 + $0xd8c] ss:$16 sps:$4 sm:$0xff]   ;;  %v22202_v57 = vld [vmem:[#allocation8 + $0xd80] ss:$16 sps:$4 sm:$0xff]  }
 0x44d   : > { %5822 = vmatprep.subr.bf16.mxu1 %v22153_v59  ;;  %v22210_v59 = vld [vmem:[#allocation8 + $0xda4] ss:$16 sps:$4 sm:$0xff]  }
 0x44f   : > { %5717 = vmatpush1.bf16.msra.mxu0 %v22148_v29  ;;  %v22208_v29 = vld [vmem:[#allocation8 + $0xda0] ss:$16 sps:$4 sm:$0xff]  }
 0x450   : > { %5823 = vmatpush1.bf16.msra.mxu1 %v22151_v60  ;;  %5718 = vmatprep.subr.bf16.mxu0 %v22156_v30  ;;  %v22211_v60 = vld [vmem:[#allocation8 + $0xda8] ss:$16 sps:$4 sm:$0xff]   ;;  %v22216_v30 = vld [vmem:[#allocation8 + $0xdc4] ss:$16 sps:$4 sm:$0xff]  }
 0x451   : > { %5824 = vmatprep.subr.bf16.mxu1 %v22159_v61  ;;  %v22219_v61 = vld [vmem:[#allocation8 + $0xdcc] ss:$16 sps:$4 sm:$0xff]  }
 0x453   : > { %5719 = vmatpush1.bf16.msra.mxu0 %v22154_v62  ;;  %v22214_v62 = vld [vmem:[#allocation8 + $0xdc0] ss:$16 sps:$4 sm:$0xff]  }
 0x454   : > { %5825 = vmatpush1.bf16.msra.mxu1 %v22157_v1  ;;  %5720 = vmatprep.subr.bf16.mxu0 %v22162_v2  ;;  %v22217_v1 = vld [vmem:[#allocation8 + $0xdc8] ss:$16 sps:$4 sm:$0xff]   ;;  %v22222_v2 = vld [vmem:[#allocation8 + $0xde4] ss:$16 sps:$4 sm:$0xff]  }
 0x455   : > { %5826 = vmatprep.subr.bf16.mxu1 %v22165_v3  ;;  %v22225_v3 = vld [vmem:[#allocation8 + $0xdec] ss:$16 sps:$4 sm:$0xff]  }
 0x457   : > { %5721 = vmatpush1.bf16.msra.mxu0 %v22160_v32  ;;  %v26038_v32 = vpack.c.bf16 %v25950_v5, %v25950_v5  ;;  %v22237_v5 = vld [vmem:[#allocation8 + $0xe2c] ss:$16 sps:$4 sm:$0xff]  }
 0x458   : > { %5827 = vmatpush1.bf16.msra.mxu1 %v22163_v4  ;;  %5722 = vmatprep.subr.bf16.mxu0 %v22168_v38  ;;  %v22220_v4 = vld [vmem:[#allocation8 + $0xde0] ss:$16 sps:$4 sm:$0xff]   ;;  %v22223_v38 = vld [vmem:[#allocation8 + $0xde8] ss:$16 sps:$4 sm:$0xff]  }
 0x459   : > { %5828 = vmatprep.subr.bf16.mxu1 %v22171_v34  ;;  %v22228_v34 = vld [vmem:[#allocation8 + $0xe04] ss:$16 sps:$4 sm:$0xff]  }
 0x45b   : > { %5723 = vmatpush1.bf16.msra.mxu0 %v22166_v6  ;;  %v22231_v6 = vld [vmem:[#allocation8 + $0xe0c] ss:$16 sps:$4 sm:$0xff]  }
 0x45c   : > { %5829 = vmatpush1.bf16.msra.mxu1 %v22169_v35  ;;  %5724 = vmatprep.subr.bf16.mxu0 %v22174_v36  ;;  %v22226_v35 = vld [vmem:[#allocation8 + $0xe00] ss:$16 sps:$4 sm:$0xff]   ;;  %v5056_v36 = vrot.slane %v26038_v32, 3 }
 0x45d   : > { %5830 = vmatprep.subr.bf16.mxu1 %v22177_v16  ;;  %v5042_v16 = vrot.slane %v25895_v44, 3 }
 0x45f   : > { %5725 = vmatpush1.bf16.msra.mxu0 %v22172_v40  ;;  %v22229_v40 = vld [vmem:[#allocation8 + $0xe08] ss:$16 sps:$4 sm:$0xff]  }
 0x460   : > { %5831 = vmatpush1.bf16.msra.mxu1 %v22175_v0  ;;  %5726 = vmatprep.subr.bf16.mxu0 %v22180_v9  ;;  %v22234_v0 = vld [vmem:[#allocation8 + $0xe24] ss:$16 sps:$4 sm:$0xff]   ;;  %v5044_v9 = vsel %vm5041_vm6, %v5042_v16, %v5043_v25  ;;  %v22286_v16 = vld [vmem:[#allocation8 + $0xf40] ss:$16 sps:$4 sm:$0xff]  }
 0x461   : > { %5832 = vmatprep.subr.bf16.mxu1 %v22183_v45  ;;  %v5057_v45 = vsel %vm5041_vm6, %v5046_v18, %v5056_v36  ;;  %v22246_v25 = vld [vmem:[#allocation8 + $0xe64] ss:$16 sps:$4 sm:$0xff]   ;;  %v22291_v36 = vld [vmem:[#allocation8 + $0xf4c] ss:$16 sps:$4 sm:$0xff]  }
 0x463   : > { %5727 = vmatpush1.bf16.msra.mxu0 %v22178_v15  ;;  %v22232_v15 = vld [vmem:[#allocation8 + $0xe20] ss:$16 sps:$4 sm:$0xff]  }
 0x464   : > { %5833 = vmatpush1.bf16.msra.mxu1 %v22181_v20  ;;  %5728 = vmatprep.subr.bf16.mxu0 %v22186_v21  ;;  %v22235_v20 = vld [vmem:[#allocation8 + $0xe28] ss:$16 sps:$4 sm:$0xff]   ;;  %v22240_v21 = vld [vmem:[#allocation8 + $0xe44] ss:$16 sps:$4 sm:$0xff]  }
 0x465   : > { %5834 = vmatprep.subr.bf16.mxu1 %v22189_v26  ;;  %v22243_v26 = vld [vmem:[#allocation8 + $0xe4c] ss:$16 sps:$4 sm:$0xff]  }
 0x467   : > { %5729 = vmatpush1.bf16.msra.mxu0 %v22184_v28  ;;  %v22238_v28 = vld [vmem:[#allocation8 + $0xe40] ss:$16 sps:$4 sm:$0xff]  }
 0x468   : > { %5835 = vmatpush1.bf16.msra.mxu1 %v22187_v31  ;;  %5730 = vmatprep.subr.bf16.mxu0 %v22192_v37  ;;  %v22241_v31 = vld [vmem:[#allocation8 + $0xe48] ss:$16 sps:$4 sm:$0xff]   ;;  %v5051_v37 = vrot.slane %v25901_v52, 3 }
 0x469   : > { %5836 = vmatprep.subr.bf16.mxu1 %v22195_v39  ;;  %v22249_v39 = vld [vmem:[#allocation8 + $0xe6c] ss:$16 sps:$4 sm:$0xff]  }
 0x46a   : > { %v5053_v18 = vsel %vm5041_vm6, %v5051_v37, %v5052_v12  ;;  %v22256_v12 = vld [vmem:[#allocation8 + $0xea0] ss:$16 sps:$4 sm:$0xff]   ;;  %v22307_v37 = vld [vmem:[#allocation8 + $0xfa8] ss:$16 sps:$4 sm:$0xff]  }
 0x46b   : > { %5731 = vmatpush1.bf16.msra.mxu0 %v22190_v41  ;;  %v22244_v41 = vld [vmem:[#allocation8 + $0xe60] ss:$16 sps:$4 sm:$0xff]  }
 0x46c   : > { %5837 = vmatpush1.bf16.msra.mxu1 %v22193_v42  ;;  %5732 = vmatprep.subr.bf16.mxu0 %v22198_v43  ;;  %v22247_v42 = vld [vmem:[#allocation8 + $0xe68] ss:$16 sps:$4 sm:$0xff]   ;;  %v22252_v43 = vld [vmem:[#allocation8 + $0xe84] ss:$16 sps:$4 sm:$0xff]  }
 0x46d   : > { %5838 = vmatprep.subr.bf16.mxu1 %v22201_v47  ;;  %v22255_v47 = vld [vmem:[#allocation8 + $0xe8c] ss:$16 sps:$4 sm:$0xff]  }
 0x46f   : > { %5733 = vmatpush1.bf16.msra.mxu0 %v22196_v48  ;;  %v22250_v48 = vld [vmem:[#allocation8 + $0xe80] ss:$16 sps:$4 sm:$0xff]  }
 0x470   : > { %5839 = vmatpush1.bf16.msra.mxu1 %v22199_v49  ;;  %5734 = vmatprep.subr.bf16.mxu0 %v22204_v19  ;;  %v22253_v49 = vld [vmem:[#allocation8 + $0xe88] ss:$16 sps:$4 sm:$0xff]   ;;  %v22258_v19 = vld [vmem:[#allocation8 + $0xea4] ss:$16 sps:$4 sm:$0xff]  }
 0x471   : > { %5840 = vmatprep.subr.bf16.mxu1 %v22207_v27  ;;  %v22261_v27 = vld [vmem:[#allocation8 + $0xeac] ss:$16 sps:$4 sm:$0xff]  }
 0x473   : > { %5735 = vmatpush1.bf16.msra.mxu0 %v22202_v57  ;;  %v22264_v57 = vld [vmem:[#allocation8 + $0xec4] ss:$16 sps:$4 sm:$0xff]  }
 0x474   : > { %5841 = vmatpush1.bf16.msra.mxu1 %v22205_v58  ;;  %5736 = vmatprep.subr.bf16.mxu0 %v22210_v59  ;;  %v22267_v58 = vld [vmem:[#allocation8 + $0xecc] ss:$16 sps:$4 sm:$0xff]   ;;  %v22262_v59 = vld [vmem:[#allocation8 + $0xec0] ss:$16 sps:$4 sm:$0xff]  }
 0x475   : > { %5842 = vmatprep.subr.bf16.mxu1 %v22213_v63  ;;  %v22265_v63 = vld [vmem:[#allocation8 + $0xec8] ss:$16 sps:$4 sm:$0xff]  }
 0x477   : > { %5737 = vmatpush1.bf16.msra.mxu0 %v22208_v29  ;;  %v22270_v29 = vld [vmem:[#allocation8 + $0xee4] ss:$16 sps:$4 sm:$0xff]  }
 0x478   : > { %5843 = vmatpush1.bf16.msra.mxu1 %v22211_v60  ;;  %5738 = vmatprep.subr.bf16.mxu0 %v22216_v30  ;;  %v22273_v60 = vld [vmem:[#allocation8 + $0xeec] ss:$16 sps:$4 sm:$0xff]   ;;  %v22268_v30 = vld [vmem:[#allocation8 + $0xee0] ss:$16 sps:$4 sm:$0xff]  }
 0x479   : > { %5844 = vmatprep.subr.bf16.mxu1 %v22219_v61  ;;  %v22271_v61 = vld [vmem:[#allocation8 + $0xee8] ss:$16 sps:$4 sm:$0xff]  }
 0x47b   : > { %5739 = vmatpush1.bf16.msra.mxu0 %v22214_v62  ;;  %v22276_v62 = vld [vmem:[#allocation8 + $0xf04] ss:$16 sps:$4 sm:$0xff]  }
 0x47c   : > { %5845 = vmatpush1.bf16.msra.mxu1 %v22217_v1  ;;  %5740 = vmatprep.subr.bf16.mxu0 %v22222_v2  ;;  %v22279_v1 = vld [vmem:[#allocation8 + $0xf0c] ss:$16 sps:$4 sm:$0xff]   ;;  %v22274_v2 = vld [vmem:[#allocation8 + $0xf00] ss:$16 sps:$4 sm:$0xff]  }
 0x47d   : > { %5846 = vmatprep.subr.bf16.mxu1 %v22225_v3  ;;  %v22277_v3 = vld [vmem:[#allocation8 + $0xf08] ss:$16 sps:$4 sm:$0xff]  }
 0x47f   : > { %5741 = vmatpush1.bf16.msra.mxu0 %v22220_v4  ;;  %v22282_v4 = vld [vmem:[#allocation8 + $0xf24] ss:$16 sps:$4 sm:$0xff]  }
 0x480   : > { %5847 = vmatpush1.bf16.msra.mxu1 %v22223_v38  ;;  %5763 = vmatprep.subr.bf16.mxu0 %v22228_v34  ;;  %v22285_v38 = vld [vmem:[#allocation8 + $0xf2c] ss:$16 sps:$4 sm:$0xff]   ;;  %v22280_v34 = vld [vmem:[#allocation8 + $0xf20] ss:$16 sps:$4 sm:$0xff]  }
 0x481   : > { %5869 = vmatprep.subr.bf16.mxu1 %v22231_v6  ;;  %v22283_v6 = vld [vmem:[#allocation8 + $0xf28] ss:$16 sps:$4 sm:$0xff]  }
 0x482   : > { %5743 = vmatmul.mubr.bf16.vlgmr.msra.gmra.mrb[28].mxu0 %v5044_v9 }
 0x483   : > { %5849 = vmatmul.mubr.bf16.vlgmr.msra.gmra.mrb[28].mxu1 %v5044_v9  ;;  %5752 = vmatprep.mubr.bf16.mxu0 %v5057_v45  ;;  %v22292_v9 = vld [vmem:[#allocation8 + $0xf60] ss:$16 sps:$4 sm:$0xff]  }
 0x484   : > { %5764 = vmatpush1.bf16.msra.mxu0 %v22226_v35  ;;  %5858 = vmatprep.mubr.bf16.mxu1 %v5057_v45  ;;  %v22288_v35 = vld [vmem:[#allocation8 + $0xf44] ss:$16 sps:$4 sm:$0xff]   ;;  %v22295_v45 = vld [vmem:[#allocation8 + $0xf68] ss:$16 sps:$4 sm:$0xff]  }
 0x485   : > { %5870 = vmatpush1.bf16.msra.mxu1 %v22229_v40  ;;  %5765 = vmatprep.subr.bf16.mxu0 %v22234_v0  ;;  %v22289_v40 = vld [vmem:[#allocation8 + $0xf48] ss:$16 sps:$4 sm:$0xff]   ;;  %v22294_v0 = vld [vmem:[#allocation8 + $0xf64] ss:$16 sps:$4 sm:$0xff]  }
 0x486   : > { %5871 = vmatprep.subr.bf16.mxu1 %v22237_v5  ;;  %v22297_v5 = vld [vmem:[#allocation8 + $0xf6c] ss:$16 sps:$4 sm:$0xff]  }
 0x488   : > { %5766 = vmatpush1.bf16.msra.mxu0 %v22232_v15  ;;  %v22300_v15 = vld [vmem:[#allocation8 + $0xf84] ss:$16 sps:$4 sm:$0xff]  }
 0x489   : > { %5872 = vmatpush1.bf16.msra.mxu1 %v22235_v20  ;;  %5767 = vmatprep.subr.bf16.mxu0 %v22240_v21  ;;  %v22303_v20 = vld [vmem:[#allocation8 + $0xf8c] ss:$16 sps:$4 sm:$0xff]   ;;  %v22298_v21 = vld [vmem:[#allocation8 + $0xf80] ss:$16 sps:$4 sm:$0xff]  }
 0x48a   : > { %5753 = vmatmul.mubr.bf16.gmra.mrb[32].mxu0 %v25970_v33  ;;  %5873 = vmatprep.subr.bf16.mxu1 %v22243_v26  ;;  %v22301_v26 = vld [vmem:[#allocation8 + $0xf88] ss:$16 sps:$4 sm:$0xff]  }
 0x48b   : > { %5859 = vmatmul.mubr.bf16.gmra.mrb[32].mxu1 %v25970_v33  ;;  %5795 = vmatprep.mubr.bf16.mxu0 %v5053_v18  ;;  %v22259_v33 = vld [vmem:[#allocation8 + $0xea8] ss:$16 sps:$4 sm:$0xff]  }
 0x48c   : > { %5768 = vmatpush1.bf16.msra.mxu0 %v22238_v28  ;;  %5901 = vmatprep.mubr.bf16.mxu1 %v5053_v18  ;;  %v22306_v28 = vld [vmem:[#allocation8 + $0xfa4] ss:$16 sps:$4 sm:$0xff]   ;;  %v22315_v18 = vld [vmem:[#allocation8 + $0xfcc] ss:$16 sps:$4 sm:$0xff]  }
 0x48d   : > { %5874 = vmatpush1.bf16.msra.mxu1 %v22241_v31  ;;  %5769 = vmatprep.subr.bf16.mxu0 %v22246_v25  ;;  %v22309_v31 = vld [vmem:[#allocation8 + $0xfac] ss:$16 sps:$4 sm:$0xff]   ;;  %v22304_v25 = vld [vmem:[#allocation8 + $0xfa0] ss:$16 sps:$4 sm:$0xff]  }
 0x48e   : > { %5875 = vmatprep.subr.bf16.mxu1 %v22249_v39  ;;  %v22312_v39 = vld [vmem:[#allocation8 + $0xfc4] ss:$16 sps:$4 sm:$0xff]  }
 0x490   : > { %5770 = vmatpush1.bf16.msra.mxu0 %v22244_v41  ;;  %v22310_v41 = vld [vmem:[#allocation8 + $0xfc0] ss:$16 sps:$4 sm:$0xff]  }
 0x491   : > { %5876 = vmatpush1.bf16.msra.mxu1 %v22247_v42  ;;  %5771 = vmatprep.subr.bf16.mxu0 %v22252_v43  ;;  %v22313_v42 = vld [vmem:[#allocation8 + $0xfc8] ss:$16 sps:$4 sm:$0xff]   ;;  %v22318_v43 = vld [vmem:[#allocation8 + $0xfe4] ss:$16 sps:$4 sm:$0xff]  }
 0x492   : > { %5877 = vmatprep.subr.bf16.mxu1 %v22255_v47  ;;  %v22321_v47 = vld [vmem:[#allocation8 + $0xfec] ss:$16 sps:$4 sm:$0xff]  }
 0x494   : > { %5772 = vmatpush1.bf16.msra.mxu0 %v22250_v48  ;;  %v22316_v48 = vld [vmem:[#allocation8 + $0xfe0] ss:$16 sps:$4 sm:$0xff]  }
 0x495   : > { %5878 = vmatpush1.bf16.msra.mxu1 %v22253_v49  ;;  %5773 = vmatprep.subr.bf16.mxu0 %v22258_v19  ;;  %v22319_v49 = vld [vmem:[#allocation8 + $0xfe8] ss:$16 sps:$4 sm:$0xff]   ;;  %v22324_v19 = vld [vmem:[#allocation8 + $0x1004] ss:$16 sps:$4 sm:$0xff]  }
 0x496   : > { %5879 = vmatprep.subr.bf16.mxu1 %v22261_v27  ;;  %v22327_v27 = vld [vmem:[#allocation8 + $0x100c] ss:$16 sps:$4 sm:$0xff]  }
 0x498   : > { %5774 = vmatpush1.bf16.msra.mxu0 %v22256_v12  ;;  %v22322_v12 = vld [vmem:[#allocation8 + $0x1000] ss:$16 sps:$4 sm:$0xff]  }
 0x499   : > { %5880 = vmatpush1.bf16.msra.mxu1 %v22259_v33  ;;  %5775 = vmatprep.subr.bf16.mxu0 %v22264_v57  ;;  %v5048_v33 = vrot.slane %v25897_v46, 3  ;;  %v22325_v57 = vld [vmem:[#allocation8 + $0x1008] ss:$16 sps:$4 sm:$0xff]  }
 0x49a   : > { %5881 = vmatprep.subr.bf16.mxu1 %v22267_v58  ;;  %v22330_v58 = vld [vmem:[#allocation8 + $0x1024] ss:$16 sps:$4 sm:$0xff]  }
 0x49c   : > { %5776 = vmatpush1.bf16.msra.mxu0 %v22262_v59  ;;  %v22333_v59 = vld [vmem:[#allocation8 + $0x102c] ss:$16 sps:$4 sm:$0xff]  }
 0x49d   : > { %5882 = vmatpush1.bf16.msra.mxu1 %v22265_v63  ;;  %5777 = vmatprep.subr.bf16.mxu0 %v22270_v29  ;;  %v5050_v63 = vsel %vm5041_vm6, %v5048_v33, %v5049_v14  ;;  %v22328_v29 = vld [vmem:[#allocation8 + $0x1020] ss:$16 sps:$4 sm:$0xff]   ;;  %v22342_v14 = vld [vmem:[#allocation8 + $0x1064] ss:$16 sps:$4 sm:$0xff]  }
 0x49e   : > { %5883 = vmatprep.subr.bf16.mxu1 %v22273_v60  ;;  %v22331_v60 = vld [vmem:[#allocation8 + $0x1028] ss:$16 sps:$4 sm:$0xff]   ;;  %v22388_v33 = vld [vmem:[#allocation8 + $0x1160] ss:$16 sps:$4 sm:$0xff]  }
 0x4a0   : > { %5778 = vmatpush1.bf16.msra.mxu0 %v22268_v30  ;;  %v22336_v30 = vld [vmem:[#allocation8 + $0x1044] ss:$16 sps:$4 sm:$0xff]  }
 0x4a1   : > { %5884 = vmatpush1.bf16.msra.mxu1 %v22271_v61  ;;  %5779 = vmatprep.subr.bf16.mxu0 %v22276_v62  ;;  %v22339_v61 = vld [vmem:[#allocation8 + $0x104c] ss:$16 sps:$4 sm:$0xff]   ;;  %v22334_v62 = vld [vmem:[#allocation8 + $0x1040] ss:$16 sps:$4 sm:$0xff]  }
 0x4a2   : > { %5885 = vmatprep.subr.bf16.mxu1 %v22279_v1  ;;  %v6072_v1 = vrot.slane %v25935_v56, 4  ;;  %v22438_v56 = vld [vmem:[#allocation8 + $0x1264] ss:$16 sps:$4 sm:$0xff]  }
 0x4a4   : > { %5780 = vmatpush1.bf16.msra.mxu0 %v22274_v2  ;;  %v22337_v2 = vld [vmem:[#allocation8 + $0x1048] ss:$16 sps:$4 sm:$0xff]  }
 0x4a5   : > { %5886 = vmatpush1.bf16.msra.mxu1 %v22277_v3  ;;  %5781 = vmatprep.subr.bf16.mxu0 %v22282_v4  ;;  %v6071_v3 = vrot.slane %v25899_v51, 4  ;;  %v22345_v4 = vld [vmem:[#allocation8 + $0x106c] ss:$16 sps:$4 sm:$0xff]   ;;  %v22348_v51 = vld [vmem:[#allocation8 + $0x1084] ss:$16 sps:$4 sm:$0xff]  }
 0x4a6   : > { %5887 = vmatprep.subr.bf16.mxu1 %v22285_v38  ;;  %v22340_v38 = vld [vmem:[#allocation8 + $0x1060] ss:$16 sps:$4 sm:$0xff]  }
 0x4a8   : > { %5782 = vmatpush1.bf16.msra.mxu0 %v22280_v34  ;;  %v22343_v34 = vld [vmem:[#allocation8 + $0x1068] ss:$16 sps:$4 sm:$0xff]  }
 0x4a9   : > { %5888 = vmatpush1.bf16.msra.mxu1 %v22283_v6  ;;  %5783 = vmatprep.subr.bf16.mxu0 %v22288_v35  ;;  %v22351_v6 = vld [vmem:[#allocation8 + $0x108c] ss:$16 sps:$4 sm:$0xff]   ;;  %v22346_v35 = vld [vmem:[#allocation8 + $0x1080] ss:$16 sps:$4 sm:$0xff]  }
 0x4aa   : > { %5889 = vmatprep.subr.bf16.mxu1 %v22291_v36  ;;  %v22349_v36 = vld [vmem:[#allocation8 + $0x1088] ss:$16 sps:$4 sm:$0xff]  }
 0x4ac   : > { %5784 = vmatpush1.bf16.msra.mxu0 %v22286_v16  ;;  %v22354_v16 = vld [vmem:[#allocation8 + $0x10a4] ss:$16 sps:$4 sm:$0xff]  }
 0x4ad   : > { %5890 = vmatpush1.bf16.msra.mxu1 %v22289_v40  ;;  %5785 = vmatprep.subr.bf16.mxu0 %v22294_v0  ;;  %v22357_v40 = vld [vmem:[#allocation8 + $0x10ac] ss:$16 sps:$4 sm:$0xff]   ;;  %v22352_v0 = vld [vmem:[#allocation8 + $0x10a0] ss:$16 sps:$4 sm:$0xff]  }
 0x4ae   : > { %5891 = vmatprep.subr.bf16.mxu1 %v22297_v5  ;;  %v22355_v5 = vld [vmem:[#allocation8 + $0x10a8] ss:$16 sps:$4 sm:$0xff]  }
 0x4b0   : > { %5786 = vmatpush1.bf16.msra.mxu0 %v22292_v9  ;;  %v22363_v9 = vld [vmem:[#allocation8 + $0x10cc] ss:$16 sps:$4 sm:$0xff]  }
 0x4b1   : > { %5892 = vmatpush1.bf16.msra.mxu1 %v22295_v45  ;;  %5787 = vmatprep.subr.bf16.mxu0 %v22300_v15  ;;  %v22358_v45 = vld [vmem:[#allocation8 + $0x10c0] ss:$16 sps:$4 sm:$0xff]   ;;  %v22361_v15 = vld [vmem:[#allocation8 + $0x10c8] ss:$16 sps:$4 sm:$0xff]  }
 0x4b2   : > { %5893 = vmatprep.subr.bf16.mxu1 %v22303_v20  ;;  %v22366_v20 = vld [vmem:[#allocation8 + $0x10e4] ss:$16 sps:$4 sm:$0xff]  }
 0x4b4   : > { %5788 = vmatpush1.bf16.msra.mxu0 %v22298_v21  ;;  %v22369_v21 = vld [vmem:[#allocation8 + $0x10ec] ss:$16 sps:$4 sm:$0xff]  }
 0x4b5   : > { %5894 = vmatpush1.bf16.msra.mxu1 %v22301_v26  ;;  %5789 = vmatprep.subr.bf16.mxu0 %v22306_v28  ;;  %v22364_v26 = vld [vmem:[#allocation8 + $0x10e0] ss:$16 sps:$4 sm:$0xff]   ;;  %v22367_v28 = vld [vmem:[#allocation8 + $0x10e8] ss:$16 sps:$4 sm:$0xff]  }
 0x4b6   : > { %5895 = vmatprep.subr.bf16.mxu1 %v22309_v31  ;;  %v22372_v31 = vld [vmem:[#allocation8 + $0x1104] ss:$16 sps:$4 sm:$0xff]  }
 0x4b8   : > { %5790 = vmatpush1.bf16.msra.mxu0 %v22304_v25  ;;  %v22375_v25 = vld [vmem:[#allocation8 + $0x110c] ss:$16 sps:$4 sm:$0xff]  }
 0x4b9   : > { %5896 = vmatpush1.bf16.msra.mxu1 %v22307_v37  ;;  %5791 = vmatprep.subr.bf16.mxu0 %v22312_v39  ;;  %v22370_v37 = vld [vmem:[#allocation8 + $0x1100] ss:$16 sps:$4 sm:$0xff]   ;;  %v22373_v39 = vld [vmem:[#allocation8 + $0x1108] ss:$16 sps:$4 sm:$0xff]  }
 0x4ba   : > { %5897 = vmatprep.subr.bf16.mxu1 %v22315_v18  ;;  %v22378_v18 = vld [vmem:[#allocation8 + $0x1124] ss:$16 sps:$4 sm:$0xff]  }
 0x4bc   : > { %5792 = vmatpush1.bf16.msra.mxu0 %v22310_v41  ;;  %v22381_v41 = vld [vmem:[#allocation8 + $0x112c] ss:$16 sps:$4 sm:$0xff]  }
 0x4bd   : > { %5898 = vmatpush1.bf16.msra.mxu1 %v22313_v42  ;;  %5793 = vmatprep.subr.bf16.mxu0 %v22318_v43  ;;  %v22376_v42 = vld [vmem:[#allocation8 + $0x1120] ss:$16 sps:$4 sm:$0xff]   ;;  %v22379_v43 = vld [vmem:[#allocation8 + $0x1128] ss:$16 sps:$4 sm:$0xff]  }
 0x4be   : > { %5899 = vmatprep.subr.bf16.mxu1 %v22321_v47  ;;  %v22384_v47 = vld [vmem:[#allocation8 + $0x1144] ss:$16 sps:$4 sm:$0xff]  }
 0x4c0   : > { %5794 = vmatpush1.bf16.msra.mxu0 %v22316_v48  ;;  %v22387_v48 = vld [vmem:[#allocation8 + $0x114c] ss:$16 sps:$4 sm:$0xff]  }
 0x4c1   : > { %5900 = vmatpush1.bf16.msra.mxu1 %v22319_v49  ;;  %6736 = vmatprep.subr.bf16.mxu0 %v22324_v19  ;;  %v22382_v49 = vld [vmem:[#allocation8 + $0x1140] ss:$16 sps:$4 sm:$0xff]   ;;  %v22385_v19 = vld [vmem:[#allocation8 + $0x1148] ss:$16 sps:$4 sm:$0xff]  }
 0x4c2   : > { %6842 = vmatprep.subr.bf16.mxu1 %v22327_v27  ;;  %v22390_v27 = vld [vmem:[#allocation8 + $0x1164] ss:$16 sps:$4 sm:$0xff]  }
 0x4c3   : > { %5796 = vmatmul.mubr.bf16.vlgmr.msra.gmra.mrb[28].mxu0 %v5050_v63 }
 0x4c4   : > { %5902 = vmatmul.mubr.bf16.vlgmr.msra.gmra.mrb[28].mxu1 %v5050_v63  ;;  %5805 = vmatprep.mubr.bf16.mxu0 %v25981_v54  ;;  %v22394_v63 = vld [vmem:[#allocation8 + $0x1180] ss:$16 sps:$4 sm:$0xff]  }
 0x4c5   : > { %5911 = vmatprep.mubr.bf16.mxu1 %v25981_v54  ;;  %6737 = vmatpush1.bf16.msra.mxu0 %v22322_v12  ;;  %v6073_v54 = vsel %vm814_vm0, %v6071_v3, %v6072_v1  ;;  %v22393_v12 = vld [vmem:[#allocation8 + $0x116c] ss:$16 sps:$4 sm:$0xff]   ;;  %v22406_v3 = vld [vmem:[#allocation8 + $0x11c0] ss:$16 sps:$4 sm:$0xff]  }
 0x4c6   : > { %6843 = vmatpush1.bf16.msra.mxu1 %v22325_v57  ;;  %6738 = vmatprep.subr.bf16.mxu0 %v22330_v58  ;;  %v22391_v57 = vld [vmem:[#allocation8 + $0x1168] ss:$16 sps:$4 sm:$0xff]   ;;  %v22396_v58 = vld [vmem:[#allocation8 + $0x1184] ss:$16 sps:$4 sm:$0xff]  }
 0x4c7   : > { %6844 = vmatprep.subr.bf16.mxu1 %v22333_v59  ;;  %v22399_v59 = vld [vmem:[#allocation8 + $0x118c] ss:$16 sps:$4 sm:$0xff]  }
 0x4c9   : > { %6739 = vmatpush1.bf16.msra.mxu0 %v22328_v29  ;;  %v22397_v29 = vld [vmem:[#allocation8 + $0x1188] ss:$16 sps:$4 sm:$0xff]  }
 0x4ca   : > { %6845 = vmatpush1.bf16.msra.mxu1 %v22331_v60  ;;  %6740 = vmatprep.subr.bf16.mxu0 %v22336_v30  ;;  %v22402_v60 = vld [vmem:[#allocation8 + $0x11a4] ss:$16 sps:$4 sm:$0xff]   ;;  %v22405_v30 = vld [vmem:[#allocation8 + $0x11ac] ss:$16 sps:$4 sm:$0xff]  }
 0x4cb   : > { %5806 = vmatmul.mubr.bf16.gmra.mrb[32].mxu0 %v25986_v55  ;;  %6846 = vmatprep.subr.bf16.mxu1 %v22339_v61  ;;  %v22400_v61 = vld [vmem:[#allocation8 + $0x11a0] ss:$16 sps:$4 sm:$0xff]  }
 0x4cc   : > { %5912 = vmatmul.mubr.bf16.gmra.mrb[32].mxu1 %v25986_v55  ;;  %6768 = vmatprep.mubr.bf16.mxu0 %v6073_v54  ;;  %v22360_v55 = vld [vmem:[#allocation8 + $0x10c4] ss:$16 sps:$4 sm:$0xff]  }
 0x4cd   : > { %6741 = vmatpush1.bf16.msra.mxu0 %v22334_v62  ;;  %6874 = vmatprep.mubr.bf16.mxu1 %v6073_v54  ;;  %v22403_v62 = vld [vmem:[#allocation8 + $0x11a8] ss:$16 sps:$4 sm:$0xff]   ;;  %v22414_v54 = vld [vmem:[#allocation8 + $0x11e4] ss:$16 sps:$4 sm:$0xff]  }
 0x4ce   : > { %6847 = vmatpush1.bf16.msra.mxu1 %v22337_v2  ;;  %6742 = vmatprep.subr.bf16.mxu0 %v22342_v14  ;;  %v22408_v2 = vld [vmem:[#allocation8 + $0x11c4] ss:$16 sps:$4 sm:$0xff]   ;;  %v22411_v14 = vld [vmem:[#allocation8 + $0x11cc] ss:$16 sps:$4 sm:$0xff]  }
 0x4cf   : > { %6848 = vmatprep.subr.bf16.mxu1 %v22345_v4  ;;  %v22409_v4 = vld [vmem:[#allocation8 + $0x11c8] ss:$16 sps:$4 sm:$0xff]  }
 0x4d1   : > { %6743 = vmatpush1.bf16.msra.mxu0 %v22340_v38  ;;  %v22417_v38 = vld [vmem:[#allocation8 + $0x11ec] ss:$16 sps:$4 sm:$0xff]  }
 0x4d2   : > { %6849 = vmatpush1.bf16.msra.mxu1 %v22343_v34  ;;  %6744 = vmatprep.subr.bf16.mxu0 %v22348_v51  ;;  %v22412_v34 = vld [vmem:[#allocation8 + $0x11e0] ss:$16 sps:$4 sm:$0xff]   ;;  %v22415_v51 = vld [vmem:[#allocation8 + $0x11e8] ss:$16 sps:$4 sm:$0xff]  }
 0x4d3   : > { %6850 = vmatprep.subr.bf16.mxu1 %v22351_v6  ;;  %v22420_v6 = vld [vmem:[#allocation8 + $0x1204] ss:$16 sps:$4 sm:$0xff]  }
 0x4d5   : > { %6745 = vmatpush1.bf16.msra.mxu0 %v22346_v35  ;;  %v22423_v35 = vld [vmem:[#allocation8 + $0x120c] ss:$16 sps:$4 sm:$0xff]  }
 0x4d6   : > { %6851 = vmatpush1.bf16.msra.mxu1 %v22349_v36  ;;  %6746 = vmatprep.subr.bf16.mxu0 %v22354_v16  ;;  %v6069_v36 = vrot.slane %v25931_v50, 4  ;;  %v22418_v16 = vld [vmem:[#allocation8 + $0x1200] ss:$16 sps:$4 sm:$0xff]  }
 0x4d7   : > { %6852 = vmatprep.subr.bf16.mxu1 %v22357_v40  ;;  %v6082_v40 = vrot.slane %v26038_v32, 4  ;;  %v22424_v50 = vld [vmem:[#allocation8 + $0x1220] ss:$16 sps:$4 sm:$0xff]   ;;  %v22427_v32 = vld [vmem:[#allocation8 + $0x1228] ss:$16 sps:$4 sm:$0xff]  }
 0x4d9   : > { %6747 = vmatpush1.bf16.msra.mxu0 %v22352_v0  ;;  %v6068_v0 = vrot.slane %v25895_v44, 4  ;;  %v22435_v44 = vld [vmem:[#allocation8 + $0x124c] ss:$16 sps:$4 sm:$0xff]  }
 0x4da   : > { %6853 = vmatpush1.bf16.msra.mxu1 %v22355_v5  ;;  %6748 = vmatprep.subr.bf16.mxu0 %v22360_v55  ;;  %v22421_v5 = vld [vmem:[#allocation8 + $0x1208] ss:$16 sps:$4 sm:$0xff]   ;;  %v22426_v55 = vld [vmem:[#allocation8 + $0x1224] ss:$16 sps:$4 sm:$0xff]  }
 0x4db   : > { %6854 = vmatprep.subr.bf16.mxu1 %v22363_v9  ;;  %v22429_v9 = vld [vmem:[#allocation8 + $0x122c] ss:$16 sps:$4 sm:$0xff]  }
 0x4dd   : > { %6749 = vmatpush1.bf16.msra.mxu0 %v22358_v45  ;;  %v6070_v45 = vsel %vm814_vm0, %v6068_v0, %v6069_v36  ;;  %v22495_v0 = vld [vmem:[#allocation8 + $0x138c] ss:$16 sps:$4 sm:$0xff]  }
 0x4de   : > { %6855 = vmatpush1.bf16.msra.mxu1 %v22361_v15  ;;  %6750 = vmatprep.subr.bf16.mxu0 %v22366_v20  ;;  %v6083_v15 = vsel %vm814_vm0, %v6072_v1, %v6082_v40  ;;  %v22432_v20 = vld [vmem:[#allocation8 + $0x1244] ss:$16 sps:$4 sm:$0xff]   ;;  %v6077_v1 = vrot.slane %v25901_v52, 4  ;;  %v22442_v52 = vld [vmem:[#allocation8 + $0x1280] ss:$16 sps:$4 sm:$0xff]  }
 0x4df   : > { %6856 = vmatprep.subr.bf16.mxu1 %v22369_v21  ;;  %v6080_v21 = vrot.slane %v25955_v8, 4  ;;  %v22492_v40 = vld [vmem:[#allocation8 + $0x1384] ss:$16 sps:$4 sm:$0xff]  }
 0x4e1   : > { %6751 = vmatpush1.bf16.msra.mxu0 %v22364_v26  ;;  %v22430_v26 = vld [vmem:[#allocation8 + $0x1240] ss:$16 sps:$4 sm:$0xff]  }
 0x4e2   : > { %6857 = vmatpush1.bf16.msra.mxu1 %v22367_v28  ;;  %6752 = vmatprep.subr.bf16.mxu0 %v22372_v31  ;;  %v6078_v28 = vrot.slane %v25937_v23, 4  ;;  %v22433_v31 = vld [vmem:[#allocation8 + $0x1248] ss:$16 sps:$4 sm:$0xff]  }
 0x4e3   : > { %6858 = vmatprep.subr.bf16.mxu1 %v22375_v25  ;;  %v22441_v25 = vld [vmem:[#allocation8 + $0x126c] ss:$16 sps:$4 sm:$0xff]   ;;  %v22537_v23 = vld [vmem:[#allocation13 + $0x46c] ss:$16 sps:$4 sm:$0xff]  }
 0x4e4   : > { %v6079_v8 = vsel %vm814_vm0, %v6077_v1, %v6078_v28  ;;  %v22511_v1 = vld [vmem:[#allocation8 + $0x13e8] ss:$16 sps:$4 sm:$0xff]  }
 0x4e5   : > { %6753 = vmatpush1.bf16.msra.mxu0 %v22370_v37  ;;  %v6081_v37 = vsel %vm814_vm0, %v6069_v36, %v6080_v21  ;;  %v22484_v36 = vld [vmem:[#allocation8 + $0x1360] ss:$16 sps:$4 sm:$0xff]   ;;  %v22505_v21 = vld [vmem:[#allocation8 + $0x13c8] ss:$16 sps:$4 sm:$0xff]  }
 0x4e6   : > { %6859 = vmatpush1.bf16.msra.mxu1 %v22373_v39  ;;  %6754 = vmatprep.subr.bf16.mxu0 %v22378_v18  ;;  %v22436_v39 = vld [vmem:[#allocation8 + $0x1260] ss:$16 sps:$4 sm:$0xff]   ;;  %v22439_v18 = vld [vmem:[#allocation8 + $0x1268] ss:$16 sps:$4 sm:$0xff]  }
 0x4e7   : > { %6860 = vmatprep.subr.bf16.mxu1 %v22381_v41  ;;  %v22444_v41 = vld [vmem:[#allocation8 + $0x1284] ss:$16 sps:$4 sm:$0xff]  }
 0x4e9   : > { %6755 = vmatpush1.bf16.msra.mxu0 %v22376_v42  ;;  %v22447_v42 = vld [vmem:[#allocation8 + $0x128c] ss:$16 sps:$4 sm:$0xff]  }
 0x4ea   : > { %6861 = vmatpush1.bf16.msra.mxu1 %v22379_v43  ;;  %6756 = vmatprep.subr.bf16.mxu0 %v22384_v47  ;;  %v22445_v43 = vld [vmem:[#allocation8 + $0x1288] ss:$16 sps:$4 sm:$0xff]   ;;  %v22450_v47 = vld [vmem:[#allocation8 + $0x12a4] ss:$16 sps:$4 sm:$0xff]  }
 0x4eb   : > { %6862 = vmatprep.subr.bf16.mxu1 %v22387_v48  ;;  %v22453_v48 = vld [vmem:[#allocation8 + $0x12ac] ss:$16 sps:$4 sm:$0xff]  }
 0x4ed   : > { %6757 = vmatpush1.bf16.msra.mxu0 %v22382_v49  ;;  %v22448_v49 = vld [vmem:[#allocation8 + $0x12a0] ss:$16 sps:$4 sm:$0xff]  }
 0x4ee   : > { %6863 = vmatpush1.bf16.msra.mxu1 %v22385_v19  ;;  %6758 = vmatprep.subr.bf16.mxu0 %v22390_v27  ;;  %v22451_v19 = vld [vmem:[#allocation8 + $0x12a8] ss:$16 sps:$4 sm:$0xff]   ;;  %v22456_v27 = vld [vmem:[#allocation8 + $0x12c4] ss:$16 sps:$4 sm:$0xff]  }
 0x4ef   : > { %6864 = vmatprep.subr.bf16.mxu1 %v22393_v12  ;;  %v22459_v12 = vld [vmem:[#allocation8 + $0x12cc] ss:$16 sps:$4 sm:$0xff]  }
 0x4f1   : > { %6759 = vmatpush1.bf16.msra.mxu0 %v22388_v33  ;;  %v22454_v33 = vld [vmem:[#allocation8 + $0x12c0] ss:$16 sps:$4 sm:$0xff]  }
 0x4f2   : > { %6865 = vmatpush1.bf16.msra.mxu1 %v22391_v57  ;;  %6760 = vmatprep.subr.bf16.mxu0 %v22396_v58  ;;  %v22457_v57 = vld [vmem:[#allocation8 + $0x12c8] ss:$16 sps:$4 sm:$0xff]   ;;  %v22462_v58 = vld [vmem:[#allocation8 + $0x12e4] ss:$16 sps:$4 sm:$0xff]  }
 0x4f3   : > { %6866 = vmatprep.subr.bf16.mxu1 %v22399_v59  ;;  %v22465_v59 = vld [vmem:[#allocation8 + $0x12ec] ss:$16 sps:$4 sm:$0xff]  }
 0x4f5   : > { %6761 = vmatpush1.bf16.msra.mxu0 %v22394_v63  ;;  %v22460_v63 = vld [vmem:[#allocation8 + $0x12e0] ss:$16 sps:$4 sm:$0xff]  }
 0x4f6   : > { %6867 = vmatpush1.bf16.msra.mxu1 %v22397_v29  ;;  %6762 = vmatprep.subr.bf16.mxu0 %v22402_v60  ;;  %v22463_v29 = vld [vmem:[#allocation8 + $0x12e8] ss:$16 sps:$4 sm:$0xff]   ;;  %v22468_v60 = vld [vmem:[#allocation8 + $0x1304] ss:$16 sps:$4 sm:$0xff]  }
 0x4f7   : > { %6868 = vmatprep.subr.bf16.mxu1 %v22405_v30  ;;  %v22471_v30 = vld [vmem:[#allocation8 + $0x130c] ss:$16 sps:$4 sm:$0xff]  }
 0x4f9   : > { %6763 = vmatpush1.bf16.msra.mxu0 %v22400_v61  ;;  %v22466_v61 = vld [vmem:[#allocation8 + $0x1300] ss:$16 sps:$4 sm:$0xff]  }
 0x4fa   : > { %6869 = vmatpush1.bf16.msra.mxu1 %v22403_v62  ;;  %6764 = vmatprep.subr.bf16.mxu0 %v22408_v2  ;;  %v22469_v62 = vld [vmem:[#allocation8 + $0x1308] ss:$16 sps:$4 sm:$0xff]   ;;  %v22474_v2 = vld [vmem:[#allocation8 + $0x1324] ss:$16 sps:$4 sm:$0xff]  }
 0x4fb   : > { %6870 = vmatprep.subr.bf16.mxu1 %v22411_v14  ;;  %v22477_v14 = vld [vmem:[#allocation8 + $0x132c] ss:$16 sps:$4 sm:$0xff]  }
 0x4fd   : > { %6765 = vmatpush1.bf16.msra.mxu0 %v22406_v3  ;;  %v22472_v3 = vld [vmem:[#allocation8 + $0x1320] ss:$16 sps:$4 sm:$0xff]  }
 0x4fe   : > { %6871 = vmatpush1.bf16.msra.mxu1 %v22409_v4  ;;  %6766 = vmatprep.subr.bf16.mxu0 %v22414_v54  ;;  %v22475_v4 = vld [vmem:[#allocation8 + $0x1328] ss:$16 sps:$4 sm:$0xff]   ;;  %v22480_v54 = vld [vmem:[#allocation8 + $0x1344] ss:$16 sps:$4 sm:$0xff]  }
 0x4ff   : > { %6872 = vmatprep.subr.bf16.mxu1 %v22417_v38  ;;  %v22483_v38 = vld [vmem:[#allocation8 + $0x134c] ss:$16 sps:$4 sm:$0xff]  }
 0x501   : > { %6767 = vmatpush1.bf16.msra.mxu0 %v22412_v34  ;;  %v22478_v34 = vld [vmem:[#allocation8 + $0x1340] ss:$16 sps:$4 sm:$0xff]  }
 0x502   : > { %6873 = vmatpush1.bf16.msra.mxu1 %v22415_v51  ;;  %6789 = vmatprep.subr.bf16.mxu0 %v22420_v6  ;;  %v22481_v51 = vld [vmem:[#allocation8 + $0x1348] ss:$16 sps:$4 sm:$0xff]   ;;  %v22486_v6 = vld [vmem:[#allocation8 + $0x1364] ss:$16 sps:$4 sm:$0xff]  }
 0x503   : > { %6895 = vmatprep.subr.bf16.mxu1 %v22423_v35  ;;  %v22489_v35 = vld [vmem:[#allocation8 + $0x136c] ss:$16 sps:$4 sm:$0xff]  }
 0x504   : > { %6769 = vmatmul.mubr.bf16.vlgmr.msra.gmra.mrb[28].mxu0 %v6070_v45 }
 0x505   : > { %6875 = vmatmul.mubr.bf16.vlgmr.msra.gmra.mrb[28].mxu1 %v6070_v45  ;;  %6778 = vmatprep.mubr.bf16.mxu0 %v6083_v15  ;;  %v22501_v45 = vld [vmem:[#allocation8 + $0x13ac] ss:$16 sps:$4 sm:$0xff]  }
 0x506   : > { %6790 = vmatpush1.bf16.msra.mxu0 %v22418_v16  ;;  %6884 = vmatprep.mubr.bf16.mxu1 %v6083_v15  ;;  %v22487_v16 = vld [vmem:[#allocation8 + $0x1368] ss:$16 sps:$4 sm:$0xff]   ;;  %v22496_v15 = vld [vmem:[#allocation8 + $0x13a0] ss:$16 sps:$4 sm:$0xff]  }
 0x507   : > { %6896 = vmatpush1.bf16.msra.mxu1 %v22421_v5  ;;  %6791 = vmatprep.subr.bf16.mxu0 %v22426_v55  ;;  %v22490_v5 = vld [vmem:[#allocation8 + $0x1380] ss:$16 sps:$4 sm:$0xff]   ;;  %v22493_v55 = vld [vmem:[#allocation8 + $0x1388] ss:$16 sps:$4 sm:$0xff]  }
 0x508   : > { %6897 = vmatprep.subr.bf16.mxu1 %v22429_v9  ;;  %v22498_v9 = vld [vmem:[#allocation8 + $0x13a4] ss:$16 sps:$4 sm:$0xff]  }
 0x50a   : > { %6792 = vmatpush1.bf16.msra.mxu0 %v22424_v50  ;;  %v22499_v50 = vld [vmem:[#allocation8 + $0x13a8] ss:$16 sps:$4 sm:$0xff]  }
 0x50b   : > { %6898 = vmatpush1.bf16.msra.mxu1 %v22427_v32  ;;  %6793 = vmatprep.subr.bf16.mxu0 %v22432_v20  ;;  %v22504_v32 = vld [vmem:[#allocation8 + $0x13c4] ss:$16 sps:$4 sm:$0xff]   ;;  %v22507_v20 = vld [vmem:[#allocation8 + $0x13cc] ss:$16 sps:$4 sm:$0xff]  }
 0x50c   : > { %6779 = vmatmul.mubr.bf16.gmra.mrb[32].mxu0 %v6081_v37  ;;  %6899 = vmatprep.subr.bf16.mxu1 %v22435_v44  ;;  %v22502_v44 = vld [vmem:[#allocation8 + $0x13c0] ss:$16 sps:$4 sm:$0xff]  }
 0x50d   : > { %6885 = vmatmul.mubr.bf16.gmra.mrb[32].mxu1 %v6081_v37  ;;  %6821 = vmatprep.mubr.bf16.mxu0 %v6079_v8  ;;  %v22519_v37 = vld [vmem:[#allocation13 + $0x40c] ss:$16 sps:$4 sm:$0xff]  }
 0x50e   : > { %6794 = vmatpush1.bf16.msra.mxu0 %v22430_v26  ;;  %6927 = vmatprep.mubr.bf16.mxu1 %v6079_v8  ;;  %v22510_v26 = vld [vmem:[#allocation8 + $0x13e4] ss:$16 sps:$4 sm:$0xff]   ;;  %v6075_v8 = vrot.slane %v25933_v53, 4  ;;  %v22520_v53 = vld [vmem:[#allocation13 + $0x420] ss:$16 sps:$4 sm:$0xff]  }
 0x50f   : > { %6900 = vmatpush1.bf16.msra.mxu1 %v22433_v31  ;;  %6795 = vmatprep.subr.bf16.mxu0 %v22438_v56  ;;  %v22513_v31 = vld [vmem:[#allocation8 + $0x13ec] ss:$16 sps:$4 sm:$0xff]   ;;  %v22508_v56 = vld [vmem:[#allocation8 + $0x13e0] ss:$16 sps:$4 sm:$0xff]  }
 0x510   : > { %6901 = vmatprep.subr.bf16.mxu1 %v22441_v25  ;;  %v22516_v25 = vld [vmem:[#allocation13 + $0x404] ss:$16 sps:$4 sm:$0xff]  }
 0x512   : > { %6796 = vmatpush1.bf16.msra.mxu0 %v22436_v39  ;;  %v6086_v39 = vrot.slane %v25962_v24, 4  ;;  %v22523_v24 = vld [vmem:[#allocation13 + $0x428] ss:$16 sps:$4 sm:$0xff]  }
 0x513   : > { %6902 = vmatpush1.bf16.msra.mxu1 %v22439_v18  ;;  %6797 = vmatprep.subr.bf16.mxu0 %v22444_v41  ;;  %v22514_v18 = vld [vmem:[#allocation13 + $0x400] ss:$16 sps:$4 sm:$0xff]   ;;  %v6074_v41 = vrot.slane %v25897_v46, 4  ;;  %v22531_v46 = vld [vmem:[#allocation13 + $0x44c] ss:$16 sps:$4 sm:$0xff]  }
 0x514   : > { %6903 = vmatprep.subr.bf16.mxu1 %v22447_v42  ;;  %v22517_v42 = vld [vmem:[#allocation13 + $0x408] ss:$16 sps:$4 sm:$0xff]  }
 0x516   : > { %6798 = vmatpush1.bf16.msra.mxu0 %v22442_v52  ;;  %v22522_v52 = vld [vmem:[#allocation13 + $0x424] ss:$16 sps:$4 sm:$0xff]  }
 0x517   : > { %6904 = vmatpush1.bf16.msra.mxu1 %v22445_v43  ;;  %6799 = vmatprep.subr.bf16.mxu0 %v22450_v47  ;;  %v22525_v43 = vld [vmem:[#allocation13 + $0x42c] ss:$16 sps:$4 sm:$0xff]   ;;  %v6076_v47 = vsel %vm814_vm0, %v6074_v41, %v6075_v8  ;;  %v22600_v41 = vld [vmem:[#allocation13 + $0x5c4] ss:$16 sps:$4 sm:$0xff]  }
 0x518   : > { %6905 = vmatprep.subr.bf16.mxu1 %v22453_v48  ;;  %v6087_v48 = vsel %vm814_vm0, %v6078_v28, %v6086_v39  ;;  %v22597_v39 = vld [vmem:[#allocation13 + $0x5ac] ss:$16 sps:$4 sm:$0xff]  }
 0x51a   : > { %6800 = vmatpush1.bf16.msra.mxu0 %v22448_v49  ;;  %v22528_v49 = vld [vmem:[#allocation13 + $0x444] ss:$16 sps:$4 sm:$0xff]  }
 0x51b   : > { %6906 = vmatpush1.bf16.msra.mxu1 %v22451_v19  ;;  %6801 = vmatprep.subr.bf16.mxu0 %v22456_v27  ;;  %v6084_v19 = vrot.slane %v25960_v22, 4  ;;  %v22526_v27 = vld [vmem:[#allocation13 + $0x440] ss:$16 sps:$4 sm:$0xff]   ;;  %v22535_v22 = vld [vmem:[#allocation13 + $0x468] ss:$16 sps:$4 sm:$0xff]  }
 0x51c   : > { %6907 = vmatprep.subr.bf16.mxu1 %v22459_v12  ;;  %v22529_v12 = vld [vmem:[#allocation13 + $0x448] ss:$16 sps:$4 sm:$0xff]  }
 0x51d   : > { %v6085_v28 = vsel %vm814_vm0, %v6075_v8, %v6084_v19  ;;  %v22595_v8 = vld [vmem:[#allocation13 + $0x5a8] ss:$16 sps:$4 sm:$0xff]  }
 0x51e   : > { %6802 = vmatpush1.bf16.msra.mxu0 %v22454_v33  ;;  %v22534_v33 = vld [vmem:[#allocation13 + $0x464] ss:$16 sps:$4 sm:$0xff]  }
 0x51f   : > { %6908 = vmatpush1.bf16.msra.mxu1 %v22457_v57  ;;  %6803 = vmatprep.subr.bf16.mxu0 %v22462_v58  ;;  %v22532_v57 = vld [vmem:[#allocation13 + $0x460] ss:$16 sps:$4 sm:$0xff]   ;;  %v22540_v58 = vld [vmem:[#allocation13 + $0x484] ss:$16 sps:$4 sm:$0xff]  }
 0x520   : > { %6909 = vmatprep.subr.bf16.mxu1 %v22465_v59  ;;  %v22543_v59 = vld [vmem:[#allocation13 + $0x48c] ss:$16 sps:$4 sm:$0xff]  }
 0x522   : > { %6804 = vmatpush1.bf16.msra.mxu0 %v22460_v63  ;;  %v22538_v63 = vld [vmem:[#allocation13 + $0x480] ss:$16 sps:$4 sm:$0xff]  }
 0x523   : > { %6910 = vmatpush1.bf16.msra.mxu1 %v22463_v29  ;;  %6805 = vmatprep.subr.bf16.mxu0 %v22468_v60  ;;  %v22541_v29 = vld [vmem:[#allocation13 + $0x488] ss:$16 sps:$4 sm:$0xff]   ;;  %v22546_v60 = vld [vmem:[#allocation13 + $0x4a4] ss:$16 sps:$4 sm:$0xff]  }
 0x524   : > { %6911 = vmatprep.subr.bf16.mxu1 %v22471_v30  ;;  %v22549_v30 = vld [vmem:[#allocation13 + $0x4ac] ss:$16 sps:$4 sm:$0xff]  }
 0x526   : > { %6806 = vmatpush1.bf16.msra.mxu0 %v22466_v61  ;;  %v22544_v61 = vld [vmem:[#allocation13 + $0x4a0] ss:$16 sps:$4 sm:$0xff]  }
 0x527   : > { %6912 = vmatpush1.bf16.msra.mxu1 %v22469_v62  ;;  %6807 = vmatprep.subr.bf16.mxu0 %v22474_v2  ;;  %v22547_v62 = vld [vmem:[#allocation13 + $0x4a8] ss:$16 sps:$4 sm:$0xff]   ;;  %v22552_v2 = vld [vmem:[#allocation13 + $0x4c4] ss:$16 sps:$4 sm:$0xff]  }
 0x528   : > { %6913 = vmatprep.subr.bf16.mxu1 %v22477_v14  ;;  %v22555_v14 = vld [vmem:[#allocation13 + $0x4cc] ss:$16 sps:$4 sm:$0xff]  }
 0x52a   : > { %6808 = vmatpush1.bf16.msra.mxu0 %v22472_v3  ;;  %v22550_v3 = vld [vmem:[#allocation13 + $0x4c0] ss:$16 sps:$4 sm:$0xff]  }
 0x52b   : > { %6914 = vmatpush1.bf16.msra.mxu1 %v22475_v4  ;;  %6809 = vmatprep.subr.bf16.mxu0 %v22480_v54  ;;  %v22553_v4 = vld [vmem:[#allocation13 + $0x4c8] ss:$16 sps:$4 sm:$0xff]   ;;  %v22558_v54 = vld [vmem:[#allocation13 + $0x4e4] ss:$16 sps:$4 sm:$0xff]  }
 0x52c   : > { %6915 = vmatprep.subr.bf16.mxu1 %v22483_v38  ;;  %v22561_v38 = vld [vmem:[#allocation13 + $0x4ec] ss:$16 sps:$4 sm:$0xff]  }
 0x52e   : > { %6810 = vmatpush1.bf16.msra.mxu0 %v22478_v34  ;;  %v22556_v34 = vld [vmem:[#allocation13 + $0x4e0] ss:$16 sps:$4 sm:$0xff]  }
 0x52f   : > { %6916 = vmatpush1.bf16.msra.mxu1 %v22481_v51  ;;  %6811 = vmatprep.subr.bf16.mxu0 %v22486_v6  ;;  %v22559_v51 = vld [vmem:[#allocation13 + $0x4e8] ss:$16 sps:$4 sm:$0xff]   ;;  %v22564_v6 = vld [vmem:[#allocation13 + $0x504] ss:$16 sps:$4 sm:$0xff]  }
 0x530   : > { %6917 = vmatprep.subr.bf16.mxu1 %v22489_v35  ;;  %v22567_v35 = vld [vmem:[#allocation13 + $0x50c] ss:$16 sps:$4 sm:$0xff]  }
 0x532   : > { %6812 = vmatpush1.bf16.msra.mxu0 %v22484_v36  ;;  %v22562_v36 = vld [vmem:[#allocation13 + $0x500] ss:$16 sps:$4 sm:$0xff]  }
 0x533   : > { %6918 = vmatpush1.bf16.msra.mxu1 %v22487_v16  ;;  %6813 = vmatprep.subr.bf16.mxu0 %v22492_v40  ;;  %v22565_v16 = vld [vmem:[#allocation13 + $0x508] ss:$16 sps:$4 sm:$0xff]   ;;  %v22570_v40 = vld [vmem:[#allocation13 + $0x524] ss:$16 sps:$4 sm:$0xff]  }
 0x534   : > { %6919 = vmatprep.subr.bf16.mxu1 %v22495_v0  ;;  %v22573_v0 = vld [vmem:[#allocation13 + $0x52c] ss:$16 sps:$4 sm:$0xff]  }
 0x536   : > { %6814 = vmatpush1.bf16.msra.mxu0 %v22490_v5  ;;  %v22568_v5 = vld [vmem:[#allocation13 + $0x520] ss:$16 sps:$4 sm:$0xff]  }
 0x537   : > { %6920 = vmatpush1.bf16.msra.mxu1 %v22493_v55  ;;  %6815 = vmatprep.subr.bf16.mxu0 %v22498_v9  ;;  %v22571_v55 = vld [vmem:[#allocation13 + $0x528] ss:$16 sps:$4 sm:$0xff]   ;;  %v22576_v9 = vld [vmem:[#allocation13 + $0x544] ss:$16 sps:$4 sm:$0xff]  }
 0x538   : > { %6921 = vmatprep.subr.bf16.mxu1 %v22501_v45  ;;  %v22579_v45 = vld [vmem:[#allocation13 + $0x54c] ss:$16 sps:$4 sm:$0xff]  }
 0x53a   : > { %6816 = vmatpush1.bf16.msra.mxu0 %v22496_v15  ;;  %v22574_v15 = vld [vmem:[#allocation13 + $0x540] ss:$16 sps:$4 sm:$0xff]  }
 0x53b   : > { %6922 = vmatpush1.bf16.msra.mxu1 %v22499_v50  ;;  %6817 = vmatprep.subr.bf16.mxu0 %v22504_v32  ;;  %v22577_v50 = vld [vmem:[#allocation13 + $0x548] ss:$16 sps:$4 sm:$0xff]   ;;  %v22580_v32 = vld [vmem:[#allocation13 + $0x560] ss:$16 sps:$4 sm:$0xff]  }
 0x53c   : > { %6923 = vmatprep.subr.bf16.mxu1 %v22507_v20  ;;  %v22582_v20 = vld [vmem:[#allocation13 + $0x564] ss:$16 sps:$4 sm:$0xff]  }
 0x53e   : > { %6818 = vmatpush1.bf16.msra.mxu0 %v22502_v44  ;;  %v22583_v44 = vld [vmem:[#allocation13 + $0x568] ss:$16 sps:$4 sm:$0xff]  }
 0x53f   : > { %6924 = vmatpush1.bf16.msra.mxu1 %v22505_v21  ;;  %6819 = vmatprep.subr.bf16.mxu0 %v22510_v26  ;;  %v22585_v21 = vld [vmem:[#allocation13 + $0x56c] ss:$16 sps:$4 sm:$0xff]   ;;  %v22586_v26 = vld [vmem:[#allocation13 + $0x580] ss:$16 sps:$4 sm:$0xff]  }
 0x540   : > { %6925 = vmatprep.subr.bf16.mxu1 %v22513_v31  ;;  %v22588_v31 = vld [vmem:[#allocation13 + $0x584] ss:$16 sps:$4 sm:$0xff]  }
 0x542   : > { %6820 = vmatpush1.bf16.msra.mxu0 %v22508_v56  ;;  %v22589_v56 = vld [vmem:[#allocation13 + $0x588] ss:$16 sps:$4 sm:$0xff]  }
 0x543   : > { %6926 = vmatpush1.bf16.msra.mxu1 %v22511_v1  ;;  %8036 = vmatprep.subr.bf16.mxu0 %v22516_v25  ;;  %v22591_v1 = vld [vmem:[#allocation13 + $0x58c] ss:$16 sps:$4 sm:$0xff]   ;;  %v22592_v25 = vld [vmem:[#allocation13 + $0x5a0] ss:$16 sps:$4 sm:$0xff]  }
 0x544   : > { %8122 = vmatprep.subr.bf16.mxu1 %v22519_v37  ;;  %v22594_v37 = vld [vmem:[#allocation13 + $0x5a4] ss:$16 sps:$4 sm:$0xff]  }
 0x545   : > { %6822 = vmatmul.mubr.bf16.vlgmr.msra.gmra.mrb[28].mxu0 %v6076_v47 }
 0x546   : > { %6928 = vmatmul.mubr.bf16.vlgmr.msra.gmra.mrb[28].mxu1 %v6076_v47  ;;  %6831 = vmatprep.mubr.bf16.mxu0 %v6087_v48  ;;  %v22609_v47 = vld [vmem:[#allocation13 + $0x5ec] ss:$16 sps:$4 sm:$0xff]  }
 0x547   : > { %6937 = vmatprep.mubr.bf16.mxu1 %v6087_v48  ;;  %8037 = vmatpush1.bf16.msra.mxu0 %v22514_v18  ;;  %v22598_v18 = vld [vmem:[#allocation13 + $0x5c0] ss:$16 sps:$4 sm:$0xff]  }
 0x548   : > { %8123 = vmatpush1.bf16.msra.mxu1 %v22517_v42  ;;  %8038 = vmatprep.subr.bf16.mxu0 %v22522_v52  ;;  %v22601_v42 = vld [vmem:[#allocation13 + $0x5c8] ss:$16 sps:$4 sm:$0xff]   ;;  %v22603_v52 = vld [vmem:[#allocation13 + $0x5cc] ss:$16 sps:$4 sm:$0xff]   ;;  %v22604_v48 = vld [vmem:[#allocation13 + $0x5e0] ss:$16 sps:$4 sm:$0xff]  }
 0x549   : > { %8124 = vmatprep.subr.bf16.mxu1 %v22525_v43  ;;  %v22606_v43 = vld [vmem:[#allocation13 + $0x5e4] ss:$16 sps:$4 sm:$0xff]  }
 0x54b   : > { %8039 = vmatpush1.bf16.msra.mxu0 %v22520_v53  ;;  %v22607_v53 = vld [vmem:[#allocation13 + $0x5e8] ss:$16 sps:$4 sm:$0xff]  }
 0x54c   : > { %8125 = vmatpush1.bf16.msra.mxu1 %v22523_v24  ;;  %8040 = vmatprep.subr.bf16.mxu0 %v22528_v49  ;;  %v22612_v24 = vld [vmem:[#allocation13 + $0x604] ss:$16 sps:$4 sm:$0xff]   ;;  %v22615_v49 = vld [vmem:[#allocation13 + $0x60c] ss:$16 sps:$4 sm:$0xff]  }
 0x54d   : > { %6832 = vmatmul.mubr.bf16.gmra.mrb[32].mxu0 %v6085_v28  ;;  %8126 = vmatprep.subr.bf16.mxu1 %v22531_v46  ;;  %v6964_v46 = vld [vmem:[#allocation10] sm:$0xf] }
 0x54e   : > { %6938 = vmatmul.mubr.bf16.gmra.mrb[32].mxu1 %v6085_v28  ;;  %v26091_v19 = vrot.slane %v6964_v46, %v25812_v10  ;;  %v26100_v28 = vrot.slane %v6964_v46, %v25829_v13 }
 0x54f   : > { %8041 = vmatpush1.bf16.msra.mxu0 %v22526_v27  ;;  %v7018_v27 = vld [vmem:[#allocation11] ss:$2 sm:$0xf] }
 0x550   : > { %8127 = vmatpush1.bf16.msra.mxu1 %v22529_v12  ;;  %8042 = vmatprep.subr.bf16.mxu0 %v22534_v33  ;;  %v7057_v12 = vld [vmem:[#allocation11 + $0x1] ss:$2 sm:$0xf]  ;;  %v26094_v33 = vrot.slane %v6964_v46, %v25819_v17 }
 0x551   : > { %8128 = vmatprep.subr.bf16.mxu1 %v22537_v23  ;;  %v26097_v23 = vrot.slane %v6964_v46, %v25826_v11 }
 0x553   : > { %8043 = vmatpush1.bf16.msra.mxu0 %v22532_v57 }
 0x554   : > { %8129 = vmatpush1.bf16.msra.mxu1 %v22535_v22  ;;  %8044 = vmatprep.subr.bf16.mxu0 %v22540_v58  ;;  %v26103_v22 = vrot.slane %v7018_v27, %v25812_v10  ;;  %v26106_v58 = vrot.slane %v7057_v12, %v25812_v10 }
 0x555   : > { %8130 = vmatprep.subr.bf16.mxu1 %v22543_v59 }
 0x557   : > { %8045 = vmatpush1.bf16.msra.mxu0 %v22538_v63 }
 0x558   : > { %8131 = vmatpush1.bf16.msra.mxu1 %v22541_v29  ;;  %8046 = vmatprep.subr.bf16.mxu0 %v22546_v60  ;;  %v26110_v29 = vrot.slane %v7018_v27, %v25819_v17  ;;  %v26113_v60 = vrot.slane %v7057_v12, %v25819_v17 }
 0x559   : > { %8132 = vmatprep.subr.bf16.mxu1 %v22549_v30 }
 0x55b   : > { %8047 = vmatpush1.bf16.msra.mxu0 %v22544_v61  ;;  %v26116_v61 = vrot.slane %v7018_v27, %v25826_v11 }
 0x55c   : > { %8133 = vmatpush1.bf16.msra.mxu1 %v22547_v62  ;;  %8048 = vmatprep.subr.bf16.mxu0 %v22552_v2 }
 0x55d   : > { %8134 = vmatprep.subr.bf16.mxu1 %v22555_v14  ;;  %v26121_v14 = vrot.slane %v7057_v12, %v25826_v11 }
 0x55f   : > { %8049 = vmatpush1.bf16.msra.mxu0 %v22550_v3 }
 0x560   : > { %8135 = vmatpush1.bf16.msra.mxu1 %v22553_v4  ;;  %8050 = vmatprep.subr.bf16.mxu0 %v22558_v54  ;;  %v26124_v4 = vrot.slane %v7018_v27, %v25829_v13 }
 0x561   : > { %8136 = vmatprep.subr.bf16.mxu1 %v22561_v38 }
 0x563   : > { %8051 = vmatpush1.bf16.msra.mxu0 %v22556_v34 }
 0x564   : > { %8137 = vmatpush1.bf16.msra.mxu1 %v22559_v51  ;;  %8052 = vmatprep.subr.bf16.mxu0 %v22564_v6  ;;  %v26128_v51 = vrot.slane %v7057_v12, %v25829_v13 }
 0x565   : > { %8138 = vmatprep.subr.bf16.mxu1 %v22567_v35 }
 0x567   : > { %8053 = vmatpush1.bf16.msra.mxu0 %v22562_v36 }
 0x568   : > { %8139 = vmatpush1.bf16.msra.mxu1 %v22565_v16  ;;  %8054 = vmatprep.subr.bf16.mxu0 %v22570_v40 }
 0x569   : > { %8140 = vmatprep.subr.bf16.mxu1 %v22573_v0 }
 0x56b   : > { %8055 = vmatpush1.bf16.msra.mxu0 %v22568_v5 }
 0x56c   : > { %8141 = vmatpush1.bf16.msra.mxu1 %v22571_v55  ;;  %8056 = vmatprep.subr.bf16.mxu0 %v22576_v9 }
 0x56d   : > { %8142 = vmatprep.subr.bf16.mxu1 %v22579_v45 }
 0x56f   : > { %8057 = vmatpush1.bf16.msra.mxu0 %v22574_v15 }
 0x570   : > { %8143 = vmatpush1.bf16.msra.mxu1 %v22577_v50  ;;  %8058 = vmatprep.subr.bf16.mxu0 %v22582_v20 }
 0x571   : > { %8144 = vmatprep.subr.bf16.mxu1 %v22585_v21 }
 0x573   : > { %8059 = vmatpush1.bf16.msra.mxu0 %v22580_v32 }
 0x574   : > { %8145 = vmatpush1.bf16.msra.mxu1 %v22583_v44  ;;  %8060 = vmatprep.subr.bf16.mxu0 %v22588_v31 }
 0x575   : > { %8146 = vmatprep.subr.bf16.mxu1 %v22591_v1 }
 0x577   : > { %8061 = vmatpush1.bf16.msra.mxu0 %v22586_v26 }
 0x578   : > { %8147 = vmatpush1.bf16.msra.mxu1 %v22589_v56  ;;  %8062 = vmatprep.subr.bf16.mxu0 %v22594_v37 }
 0x579   : > { %8148 = vmatprep.subr.bf16.mxu1 %v22597_v39 }
 0x57b   : > { %8063 = vmatpush1.bf16.msra.mxu0 %v22592_v25 }
 0x57c   : > { %8149 = vmatpush1.bf16.msra.mxu1 %v22595_v8  ;;  %8064 = vmatprep.subr.bf16.mxu0 %v22600_v41 }
 0x57d   : > { %8150 = vmatprep.subr.bf16.mxu1 %v22603_v52 }
 0x57f   : > { %8065 = vmatpush1.bf16.msra.mxu0 %v22598_v18 }
 0x580   : > { %8151 = vmatpush1.bf16.msra.mxu1 %v22601_v42  ;;  %8066 = vmatprep.subr.bf16.mxu0 %v22606_v43 }
 0x581   : > { %8152 = vmatprep.subr.bf16.mxu1 %v22609_v47 }
 0x583   : > { %8067 = vmatpush1.bf16.msra.mxu0 %v22604_v48 }
 0x584   : > { %8153 = vmatpush1.bf16.msra.mxu1 %v22607_v53  ;;  %8079 = vmatprep.subr.bf16.mxu0 %v22612_v24 }
 0x585   : > { %8165 = vmatprep.subr.bf16.mxu1 %v22615_v49 }
 0x618   : > { %v6823_v57 = vpop.f32.mrb[28].mxu0 }
 0x619   : > { %v6986_v59 = vadd.f32 %v26091_v19, %v6823_v57  ;;  %v6929_v63 = vpop.f32.mrb[28].mxu1  ;;  %v6825_v30 = vpop.f32.mrb[29].mxu0 }
 0x61a   : > { %v6988_v62 = vadd.f32 %v26094_v33, %v6929_v63  ;;  %v6987_v2 = vadd.f32 %v26097_v23, %v6825_v30  ;;  %v6931_v3 = vpop.f32.mrb[29].mxu1  ;;  %v6827_v54 = vpop.f32.mrb[30].mxu0 }
 0x61b   : > { %v7002_v38 = vmax.f32 %v6986_v59, 0.0  ;;  %v6989_v34 = vadd.f32 %v26100_v28, %v6931_v3  ;;  %v6990_v6 = vadd.f32 %v26091_v19, %v6827_v54  ;;  %v6933_v35 = vpop.f32.mrb[30].mxu1  ;;  %v6829_v36 = vpop.f32.mrb[31].mxu0 }
 0x61c   : > { %v7004_v16 = vmax.f32 %v6988_v62, 0.0  ;;  %v7003_v40 = vmax.f32 %v6987_v2, 0.0  ;;  %v6992_v0 = vadd.f32 %v26094_v33, %v6933_v35  ;;  %v6991_v5 = vadd.f32 %v26097_v23, %v6829_v36  ;;  %v6935_v55 = vpop.f32.mrb[31].mxu1 }
 0x61d   : > { %v7040_v9 = vmul.f32 %v26103_v22, %v7002_v38  ;;  %v7005_v45 = vmax.f32 %v6989_v34, 0.0  ;;  %v7006_v15 = vmax.f32 %v6990_v6, 0.0  ;;  %v6993_v50 = vadd.f32 %v26100_v28, %v6935_v55 }
 0x61e   : > { %v7042_v32 = vmul.f32 %v26110_v29, %v7004_v16  ;;  %v7041_v20 = vmul.f32 %v26116_v61, %v7003_v40  ;;  %v7008_v44 = vmax.f32 %v6992_v0, 0.0  ;;  %v7007_v21 = vmax.f32 %v6991_v5, 0.0 }
 0x61f   : > { %v7079_v26 = vadd.f32 %v26106_v58, %v7040_v9  ;;  %v7043_v31 = vmul.f32 %v26124_v4, %v7005_v45  ;;  %v7044_v56 = vmul.f32 %v26103_v22, %v7006_v15  ;;  %v7009_v1 = vmax.f32 %v6993_v50, 0.0 }
 0x620   : > { %v7081_v25 = vadd.f32 %v26113_v60, %v7042_v32  ;;  %v7080_v37 = vadd.f32 %v26121_v14, %v7041_v20  ;;  %v7046_v8 = vmul.f32 %v26110_v29, %v7008_v44  ;;  %v7045_v39 = vmul.f32 %v26116_v61, %v7007_v21  ;;  %v6833_v18 = vpop.f32.mrb[32].mxu0 }
 0x621   : > { %v7082_v41 = vadd.f32 %v26128_v51, %v7043_v31  ;;  %v7083_v42 = vadd.f32 %v26106_v58, %v7044_v56  ;;  %v7047_v52 = vmul.f32 %v26124_v4, %v7009_v1  ;;  %v6994_v43 = vadd.f32 %v26091_v19, %v6833_v18  ;;  %v6939_v47 = vpop.f32.mrb[32].mxu1  ;;  %v6835_v48 = vpop.f32.mrb[33].mxu0 }
 0x622   : > { %v7085_v53 = vadd.f32 %v26113_v60, %v7046_v8  ;;  %v7084_v24 = vadd.f32 %v26121_v14, %v7045_v39  ;;  %v6996_v49 = vadd.f32 %v26094_v33, %v6939_v47  ;;  %v6995_v46 = vadd.f32 %v26097_v23, %v6835_v48  ;;  %v6941_v27 = vpop.f32.mrb[33].mxu1  ;;  %v6837_v12 = vpop.f32.mrb[34].mxu0 }
 0x623   : > { %v26152_v57 = vpack.c.bf16 %v7083_v42, %v7079_v26  ;;  %v7086_v59 = vadd.f32 %v26128_v51, %v7047_v52  ;;  %v7010_v63 = vmax.f32 %v6994_v43, 0.0  ;;  %v6997_v30 = vadd.f32 %v26100_v28, %v6941_v27  ;;  %v6943_v62 = vpop.f32.mrb[34].mxu1  ;;  %v6839_v2 = vpop.f32.mrb[35].mxu0  ;;  %v22618_v27 = vld [vmem:[#allocation13 + $0x624] ss:$16 sps:$4 sm:$0xff]  }
 0x624   : > { %v26156_v3 = vpack.c.bf16 %v7085_v53, %v7081_v25  ;;  %v26158_v54 = vpack.c.bf16 %v7084_v24, %v7080_v37  ;;  %v7012_v38 = vmax.f32 %v6996_v49, 0.0  ;;  %v7011_v34 = vmax.f32 %v6995_v46, 0.0  ;;  %v6945_v6 = vpop.f32.mrb[35].mxu1  ;;  %v22610_v53 = vld [vmem:[#allocation13 + $0x600] ss:$16 sps:$4 sm:$0xff]  }
 0x625   : > { %v26160_v35 = vpack.c.bf16 %v7086_v59, %v7082_v41  ;;  %v7048_v36 = vmul.f32 %v26103_v22, %v7010_v63  ;;  %v7013_v16 = vmax.f32 %v6997_v30, 0.0  ;;  %v6998_v40 = vadd.f32 %v26091_v19, %v6837_v12  ;;  %v22616_v63 = vld [vmem:[#allocation13 + $0x620] ss:$16 sps:$4 sm:$0xff]   ;;  %v22619_v30 = vld [vmem:[#allocation13 + $0x628] ss:$16 sps:$4 sm:$0xff]  }
 0x626   : > { %v7050_v0 = vmul.f32 %v26110_v29, %v7012_v38  ;;  %v7049_v5 = vmul.f32 %v26116_v61, %v7011_v34  ;;  %v7000_v55 = vadd.f32 %v26094_v33, %v6943_v62  ;;  %v6999_v9 = vadd.f32 %v26097_v23, %v6839_v2  ;;  %v22624_v62 = vld [vmem:[#allocation13 + $0x644] ss:$16 sps:$4 sm:$0xff]   ;;  %v22627_v2 = vld [vmem:[#allocation13 + $0x64c] ss:$16 sps:$4 sm:$0xff]  }
 0x627   : > { %v7087_v45 = vadd.f32 %v26106_v58, %v7048_v36  ;;  %v7051_v15 = vmul.f32 %v26124_v4, %v7013_v16  ;;  %v7014_v50 = vmax.f32 %v6998_v40, 0.0  ;;  %v7001_v32 = vadd.f32 %v26100_v28, %v6945_v6 }
 0x628   : > { %v7089_v20 = vadd.f32 %v26113_v60, %v7050_v0  ;;  %v7088_v44 = vadd.f32 %v26121_v14, %v7049_v5  ;;  %v7016_v19 = vmax.f32 %v7000_v55, 0.0  ;;  %v7015_v21 = vmax.f32 %v6999_v9, 0.0  ;;  %v22622_v0 = vld [vmem:[#allocation13 + $0x640] ss:$16 sps:$4 sm:$0xff]  }
 0x629   : > { %v7090_v26 = vadd.f32 %v26128_v51, %v7051_v15  ;;  %v7052_v31 = vmul.f32 %v26103_v22, %v7014_v50  ;;  %v7017_v33 = vmax.f32 %v7001_v32, 0.0  ;;  %v26176_v23 = vshrl.u32 %v26158_v54, 16  ;;  %v22625_v15 = vld [vmem:[#allocation13 + $0x648] ss:$16 sps:$4 sm:$0xff]  }
 0x62a   : > { %v7054_v56 = vmul.f32 %v26110_v29, %v7016_v19  ;;  %v7053_v1 = vmul.f32 %v26116_v61, %v7015_v21  ;;  %v7372_v28 = vshll.u32 %v26158_v54, 16  ;;  %v26182_v25 = vshrl.u32 %v26152_v57, 16  ;;  %v22630_v19 = vld [vmem:[#allocation13 + $0x664] ss:$16 sps:$4 sm:$0xff]   ;;  %v22633_v21 = vld [vmem:[#allocation13 + $0x66c] ss:$16 sps:$4 sm:$0xff]  }
 0x62b   : > { %v7091_v37 = vadd.f32 %v26106_v58, %v7052_v31  ;;  %v7055_v8 = vmul.f32 %v26124_v4, %v7017_v33  ;;  %v7371_v39 = vrot.slane %v26176_v23, 1  ;;  %v7364_v22 = vshll.u32 %v26152_v57, 16 }
 0x62c   : > { %v7093_v18 = vadd.f32 %v26113_v60, %v7054_v56  ;;  %v7092_v41 = vadd.f32 %v26121_v14, %v7053_v1  ;;  %v7374_v29 = vrot.slane %v7372_v28, 2  ;;  %v7363_v61 = vrot.slane %v26182_v25, 1  ;;  %v22613_v60 = vld [vmem:[#allocation13 + $0x608] ss:$16 sps:$4 sm:$0xff]  }
 0x62d   : > { %v26191_v42 = vpack.c.bf16 %v7091_v37, %v7087_v45  ;;  %v7094_v52 = vadd.f32 %v26128_v51, %v7055_v8  ;;  %v7366_v43 = vrot.slane %v7364_v22, 2  ;;  %v26195_v58 = vshrl.u32 %v26160_v35, 16  ;;  %v22621_v51 = vld [vmem:[#allocation13 + $0x62c] ss:$16 sps:$4 sm:$0xff]  }
 0x62e   : > { %v26197_v4 = vpack.c.bf16 %v7093_v18, %v7089_v20  ;;  %v26199_v47 = vpack.c.bf16 %v7092_v41, %v7088_v44  ;;  %v7375_v48 = vor.u32 %v7374_v29, %v7371_v39  ;;  %v7388_v14 = vshll.u32 %v26160_v35, 16  ;;  %v22631_v18 = vld [vmem:[#allocation13 + $0x668] ss:$16 sps:$4 sm:$0xff]  }
 0x62f   : > { %v26202_v24 = vpack.c.bf16 %v7094_v52, %v7090_v26  ;;  %v7367_v49 = vor.u32 %v7366_v43, %v7363_v61  ;;  %v7387_v46 = vrot.slane %v26195_v58, 1  ;;  %v10123_v38 = vrot.slane %v26176_v23, 4  ;;  %v22636_v43 = vld [vmem:[#allocation13 + $0x684] ss:$16 sps:$4 sm:$0xff]  }
 0x630   : > { %8068 = vmatprep.mubr.bf16.mxu0 %v7375_v48  ;;  %8154 = vmatprep.mubr.bf16.mxu1 %v7375_v48  ;;  %v7390_v12 = vrot.slane %v7388_v14, 2  ;;  %v10124_v34 = vrot.slane %v7372_v28, 5  ;;  %v10127_v6 = vshrl.u32 %v26199_v47, 16  ;;  %v10130_v36 = vshll.u32 %v26199_v47, 16  ;;  %v22639_v48 = vld [vmem:[#allocation13 + $0x68c] ss:$16 sps:$4 sm:$0xff]  }
 0x631   : > { %8069 = vmatmul.mubr.bf16.vlgmr.msra.gmra.mrb[36].mxu0 %v7367_v49  ;;  %8155 = vmatmul.mubr.bf16.vlgmr.msra.gmra.mrb[36].mxu1 %v7367_v49  ;;  %v26209_v16 = vshrl.u32 %v26156_v3, 16  ;;  %v7380_v40 = vshll.u32 %v26156_v3, 16  ;;  %v10111_v45 = vrot.slane %v26182_v25, 4  ;;  %v10112_v50 = vrot.slane %v7364_v22, 5  ;;  %v22628_v22 = vld [vmem:[#allocation13 + $0x660] ss:$16 sps:$4 sm:$0xff]  }
 0x632   : > { %8080 = vmatpush1.bf16.msra.mxu0 %v22610_v53  ;;  %8166 = vmatpush1.bf16.msra.mxu1 %v22613_v60  ;;  %v7391_v59 = vor.u32 %v7390_v12, %v7387_v46  ;;  %v10125_v5 = vor.u32 %v10124_v34, %v10123_v38  ;;  %v10129_v55 = vrot.slane %v10127_v6, 4  ;;  %v10132_v9 = vrot.slane %v10130_v36, 5  ;;  %v22640_v38 = vld [vmem:[#allocation13 + $0x6a0] ss:$16 sps:$4 sm:$0xff]  }
 0x633   : > { %8081 = vmatprep.subr.bf16.mxu0 %v22618_v27  ;;  %8167 = vmatprep.subr.bf16.mxu1 %v22621_v51  ;;  %v10115_v32 = vshrl.u32 %v26191_v42, 16  ;;  %v10118_v20 = vshll.u32 %v26191_v42, 16  ;;  %v10147_v44 = vrot.slane %v26195_v58, 4  ;;  %v10113_v31 = vor.u32 %v10112_v50, %v10111_v45  ;;  %v22634_v27 = vld [vmem:[#allocation13 + $0x680] ss:$16 sps:$4 sm:$0xff]  }
 0x634   : > { %8111 = vmatprep.mubr.bf16.mxu0 %v7391_v59  ;;  %8197 = vmatprep.mubr.bf16.mxu1 %v7391_v59  ;;  %v10133_v26 = vor.u32 %v10132_v9, %v10129_v55  ;;  %v10148_v1 = vrot.slane %v7388_v14, 5  ;;  %v10151_v37 = vshrl.u32 %v26202_v24, 16  ;;  %v10154_v8 = vshll.u32 %v26202_v24, 16  ;;  %v22637_v51 = vld [vmem:[#allocation13 + $0x688] ss:$16 sps:$4 sm:$0xff]  }
 0x635   : > { %v10117_v33 = vrot.slane %v10115_v32, 4  ;;  %v10120_v56 = vrot.slane %v10118_v20, 5  ;;  %v10135_v39 = vrot.slane %v26209_v16, 4  ;;  %v10136_v61 = vrot.slane %v7380_v40, 5  ;;  %v22648_v9 = vld [vmem:[#allocation13 + $0x6c4] ss:$16 sps:$4 sm:$0xff]  }
 0x636   : > { %8082 = vmatpush1.bf16.msra.mxu0 %v22616_v63  ;;  %8168 = vmatpush1.bf16.msra.mxu1 %v22619_v30  ;;  %v26219_v28 = vsel %vm10110_vm7, %v10125_v5, %v10133_v26  ;;  %v10149_v29 = vor.u32 %v10148_v1, %v10147_v44  ;;  %v10139_v52 = vshrl.u32 %v26197_v4, 16  ;;  %v10153_v60 = vrot.slane %v10151_v37, 4  ;;  %v22642_v63 = vld [vmem:[#allocation13 + $0x6a4] ss:$16 sps:$4 sm:$0xff]   ;;  %v22645_v30 = vld [vmem:[#allocation13 + $0x6ac] ss:$16 sps:$4 sm:$0xff]  }
 0x637   : > { %8083 = vmatprep.subr.bf16.mxu0 %v22624_v62  ;;  %8169 = vmatprep.subr.bf16.mxu1 %v22627_v2  ;;  %v10121_v41 = vor.u32 %v10120_v56, %v10117_v33  ;;  %v10156_v14 = vrot.slane %v10154_v8, 5  ;;  %v10137_v49 = vor.u32 %v10136_v61, %v10135_v39  ;;  %v10142_v46 = vshll.u32 %v26197_v4, 16  ;;  %v22651_v45 = vld [vmem:[#allocation13 + $0x6cc] ss:$16 sps:$4 sm:$0xff]   ;;  %v22649_v33 = vld [vmem:[#allocation13 + $0x6c8] ss:$16 sps:$4 sm:$0xff]  }
 0x638   : > { %v10141_v59 = vrot.slane %v10139_v52, 4  ;;  %v12088_v34 = vrot.slane %v10127_v6, 7  ;;  %v12084_v55 = vrot.slane %v10115_v32, 7  ;;  %v12083_v6 = vrot.slane %v26182_v25, 7  ;;  %v22654_v1 = vld [vmem:[#allocation13 + $0x6e4] ss:$16 sps:$4 sm:$0xff]  }
 0x639   : > { %v26228_v53 = vsel %vm10110_vm7, %v10113_v31, %v10121_v41  ;;  %v10157_v12 = vor.u32 %v10156_v14, %v10153_v60  ;;  %v10144_v2 = vrot.slane %v10142_v46, 5  ;;  %v12092_v32 = vrot.slane %v10139_v52, 7  ;;  %v22646_v31 = vld [vmem:[#allocation13 + $0x6c0] ss:$16 sps:$4 sm:$0xff]   ;;  %v22657_v25 = vld [vmem:[#allocation13 + $0x6ec] ss:$16 sps:$4 sm:$0xff]  }
 0x63a   : > { %8084 = vmatpush1.bf16.msra.mxu0 %v22622_v0  ;;  %8170 = vmatpush1.bf16.msra.mxu1 %v22625_v15  ;;  %v22643_v0 = vld [vmem:[#allocation13 + $0x6a8] ss:$16 sps:$4 sm:$0xff]   ;;  %v12087_v15 = vrot.slane %v26176_v23, 7  ;;  %v12089_v50 = vor.u32 %v12088_v34, %v10130_v36  ;;  %v12095_v36 = vrot.slane %v26195_v58, 7  ;;  %v22660_v58 = vld [vmem:[#allocation13 + $0x704] ss:$16 sps:$4 sm:$0xff]  }
 0x63b   : > { %8085 = vmatprep.subr.bf16.mxu0 %v22630_v19  ;;  %8171 = vmatprep.subr.bf16.mxu1 %v22633_v21  ;;  %v26232_v62 = vsel %vm10110_vm7, %v10149_v29, %v10157_v12  ;;  %v10145_v5 = vor.u32 %v10144_v2, %v10141_v59  ;;  %v12085_v19 = vor.u32 %v12084_v55, %v10118_v20  ;;  %v12096_v21 = vrot.slane %v10151_v37, 7  ;;  %v22655_v41 = vld [vmem:[#allocation13 + $0x6e8] ss:$16 sps:$4 sm:$0xff]   ;;  %v22658_v29 = vld [vmem:[#allocation13 + $0x700] ss:$16 sps:$4 sm:$0xff]  }
 0x63c   : > { %v26242_v26 = vsel %vm12082_vm8, %v12087_v15, %v12089_v50  ;;  %v12091_v20 = vrot.slane %v26209_v16, 7  ;;  %v12093_v37 = vor.u32 %v12092_v32, %v10142_v46  ;;  %v22661_v61 = vld [vmem:[#allocation13 + $0x708] ss:$16 sps:$4 sm:$0xff]   ;;  %v22666_v52 = vld [vmem:[#allocation13 + $0x724] ss:$16 sps:$4 sm:$0xff]  }
 0x63d   : > { %v26238_v44 = vsel %vm10110_vm7, %v10137_v49, %v10145_v5  ;;  %v26245_v23 = vsel %vm12082_vm8, %v12083_v6, %v12085_v19  ;;  %v12097_v56 = vor.u32 %v12096_v21, %v10154_v8  ;;  %v22663_v8 = vld [vmem:[#allocation13 + $0x70c] ss:$16 sps:$4 sm:$0xff]   ;;  %v22667_v60 = vld [vmem:[#allocation13 + $0x728] ss:$16 sps:$4 sm:$0xff]   ;;  %v22672_v14 = vld [vmem:[#allocation13 + $0x744] ss:$16 sps:$4 sm:$0xff]  }
 0x63e   : > { %8086 = vmatpush1.bf16.msra.mxu0 %v22628_v22  ;;  %8172 = vmatpush1.bf16.msra.mxu1 %v22631_v18  ;;  %v26253_v22 = vsel %vm12082_vm8, %v12091_v20, %v12093_v37  ;;  %v22652_v18 = vld [vmem:[#allocation13 + $0x6e0] ss:$16 sps:$4 sm:$0xff]   ;;  %v22675_v49 = vld [vmem:[#allocation13 + $0x74c] ss:$16 sps:$4 sm:$0xff]   ;;  %v22685_v34 = vld [vmem:[#allocation13 + $0x788] ss:$16 sps:$4 sm:$0xff]  }
 0x63f   : > { %8087 = vmatprep.subr.bf16.mxu0 %v22636_v43  ;;  %8173 = vmatprep.subr.bf16.mxu1 %v22639_v48  ;;  %v26250_v39 = vsel %vm12082_vm8, %v12095_v36, %v12097_v56  ;;  %v22669_v43 = vld [vmem:[#allocation13 + $0x72c] ss:$16 sps:$4 sm:$0xff]   ;;  %v22664_v48 = vld [vmem:[#allocation13 + $0x720] ss:$16 sps:$4 sm:$0xff]   ;;  %v22697_v6 = vld [vmem:[#allocation13 + $0x7c8] ss:$16 sps:$4 sm:$0xff]  }
 0x640   : > { %v22670_v46 = vld [vmem:[#allocation13 + $0x740] ss:$16 sps:$4 sm:$0xff]   ;;  %v22681_v12 = vld [vmem:[#allocation13 + $0x76c] ss:$16 sps:$4 sm:$0xff]   ;;  %v22702_v19 = vld [vmem:[#allocation13 + $0x7e4] ss:$16 sps:$4 sm:$0xff]  }
 0x641   : > { %v22676_v59 = vld [vmem:[#allocation13 + $0x760] ss:$16 sps:$4 sm:$0xff]   ;;  %v22687_v2 = vld [vmem:[#allocation13 + $0x78c] ss:$16 sps:$4 sm:$0xff]   ;;  %v7382_v36 = vrot.slane %v7380_v40, 2 }
 0x642   : > { %8088 = vmatpush1.bf16.msra.mxu0 %v22634_v27  ;;  %8174 = vmatpush1.bf16.msra.mxu1 %v22637_v51  ;;  %v22673_v27 = vld [vmem:[#allocation13 + $0x748] ss:$16 sps:$4 sm:$0xff]   ;;  %v22678_v51 = vld [vmem:[#allocation13 + $0x764] ss:$16 sps:$4 sm:$0xff]   ;;  %v22693_v5 = vld [vmem:[#allocation13 + $0x7ac] ss:$16 sps:$4 sm:$0xff]  }
 0x643   : > { %8089 = vmatprep.subr.bf16.mxu0 %v22642_v63  ;;  %8175 = vmatprep.subr.bf16.mxu1 %v22645_v30  ;;  %v22679_v63 = vld [vmem:[#allocation13 + $0x768] ss:$16 sps:$4 sm:$0xff]   ;;  %v22684_v30 = vld [vmem:[#allocation13 + $0x784] ss:$16 sps:$4 sm:$0xff]   ;;  %v22688_v55 = vld [vmem:[#allocation13 + $0x7a0] ss:$16 sps:$4 sm:$0xff]  }
 0x644   : > { %v22699_v15 = vld [vmem:[#allocation13 + $0x7cc] ss:$16 sps:$4 sm:$0xff]   ;;  %v22694_v50 = vld [vmem:[#allocation13 + $0x7c0] ss:$16 sps:$4 sm:$0xff]   ;;  %v22708_v56 = vld [vmem:[#allocation13 + $0x4] ss:$16 sps:$4 sm:$0xff]  }
 0x645   : > { %v22705_v21 = vld [vmem:[#allocation13 + $0x7ec] ss:$16 sps:$4 sm:$0xff]   ;;  %v22700_v32 = vld [vmem:[#allocation13 + $0x7e0] ss:$16 sps:$4 sm:$0xff]   ;;  %v22709_v37 = vld [vmem:[#allocation13 + $0x8] ss:$16 sps:$4 sm:$0xff]  }
 0x646   : > { %8090 = vmatpush1.bf16.msra.mxu0 %v22640_v38  ;;  %8176 = vmatpush1.bf16.msra.mxu1 %v22643_v0  ;;  %v22682_v38 = vld [vmem:[#allocation13 + $0x780] ss:$16 sps:$4 sm:$0xff]   ;;  %v22690_v0 = vld [vmem:[#allocation13 + $0x7a4] ss:$16 sps:$4 sm:$0xff]   ;;  %v22715_v40 = vld [vmem:[#allocation13 + $0x28] ss:$16 sps:$4 sm:$0xff]  }
 0x647   : > { %8091 = vmatprep.subr.bf16.mxu0 %v22648_v9  ;;  %8177 = vmatprep.subr.bf16.mxu1 %v22651_v45  ;;  %v22691_v9 = vld [vmem:[#allocation13 + $0x7a8] ss:$16 sps:$4 sm:$0xff]   ;;  %v22696_v45 = vld [vmem:[#allocation13 + $0x7c4] ss:$16 sps:$4 sm:$0xff]  }
 0x64a   : > { %8092 = vmatpush1.bf16.msra.mxu0 %v22646_v31  ;;  %8178 = vmatpush1.bf16.msra.mxu1 %v22649_v33  ;;  %v22703_v31 = vld [vmem:[#allocation13 + $0x7e8] ss:$16 sps:$4 sm:$0xff]   ;;  %v7379_v33 = vrot.slane %v26209_v16, 1  ;;  %v22712_v16 = vld [vmem:[#allocation13 + $0x20] ss:$16 sps:$4 sm:$0xff]  }
 0x64b   : > { %8093 = vmatprep.subr.bf16.mxu0 %v22654_v1  ;;  %8179 = vmatprep.subr.bf16.mxu1 %v22657_v25  ;;  %v22711_v1 = vld [vmem:[#allocation13 + $0xc] ss:$16 sps:$4 sm:$0xff]   ;;  %v22706_v25 = vld [vmem:[#allocation13] ss:$16 sps:$4 sm:$0xff]  }
 0x64c   : > { %v7383_v20 = vor.u32 %v7382_v36, %v7379_v33  ;;  %v22768_v33 = vld [vmem:[#allocation13 + $0x144] ss:$16 sps:$4 sm:$0xff]   ;;  %v22771_v36 = vld [vmem:[#allocation13 + $0x14c] ss:$16 sps:$4 sm:$0xff]  }
 0x64e   : > { %8094 = vmatpush1.bf16.msra.mxu0 %v22652_v18  ;;  %8180 = vmatpush1.bf16.msra.mxu1 %v22655_v41  ;;  %v22714_v18 = vld [vmem:[#allocation13 + $0x24] ss:$16 sps:$4 sm:$0xff]   ;;  %v22717_v41 = vld [vmem:[#allocation13 + $0x2c] ss:$16 sps:$4 sm:$0xff]  }
 0x64f   : > { %8095 = vmatprep.subr.bf16.mxu0 %v22660_v58  ;;  %8181 = vmatprep.subr.bf16.mxu1 %v22663_v8  ;;  %v22720_v58 = vld [vmem:[#allocation13 + $0x44] ss:$16 sps:$4 sm:$0xff]   ;;  %v22723_v8 = vld [vmem:[#allocation13 + $0x4c] ss:$16 sps:$4 sm:$0xff]  }
 0x652   : > { %8096 = vmatpush1.bf16.msra.mxu0 %v22658_v29  ;;  %8182 = vmatpush1.bf16.msra.mxu1 %v22661_v61  ;;  %v22718_v29 = vld [vmem:[#allocation13 + $0x40] ss:$16 sps:$4 sm:$0xff]   ;;  %v22721_v61 = vld [vmem:[#allocation13 + $0x48] ss:$16 sps:$4 sm:$0xff]  }
 0x653   : > { %8097 = vmatprep.subr.bf16.mxu0 %v22666_v52  ;;  %8183 = vmatprep.subr.bf16.mxu1 %v22669_v43  ;;  %v22726_v52 = vld [vmem:[#allocation13 + $0x64] ss:$16 sps:$4 sm:$0xff]   ;;  %v22729_v43 = vld [vmem:[#allocation13 + $0x6c] ss:$16 sps:$4 sm:$0xff]  }
 0x656   : > { %8098 = vmatpush1.bf16.msra.mxu0 %v22664_v48  ;;  %8184 = vmatpush1.bf16.msra.mxu1 %v22667_v60  ;;  %v22724_v48 = vld [vmem:[#allocation13 + $0x60] ss:$16 sps:$4 sm:$0xff]   ;;  %v22727_v60 = vld [vmem:[#allocation13 + $0x68] ss:$16 sps:$4 sm:$0xff]  }
 0x657   : > { %8099 = vmatprep.subr.bf16.mxu0 %v22672_v14  ;;  %8185 = vmatprep.subr.bf16.mxu1 %v22675_v49  ;;  %v22732_v14 = vld [vmem:[#allocation13 + $0x84] ss:$16 sps:$4 sm:$0xff]   ;;  %v22735_v49 = vld [vmem:[#allocation13 + $0x8c] ss:$16 sps:$4 sm:$0xff]  }
 0x65a   : > { %8100 = vmatpush1.bf16.msra.mxu0 %v22670_v46  ;;  %8186 = vmatpush1.bf16.msra.mxu1 %v22673_v27  ;;  %v22730_v46 = vld [vmem:[#allocation13 + $0x80] ss:$16 sps:$4 sm:$0xff]   ;;  %v22733_v27 = vld [vmem:[#allocation13 + $0x88] ss:$16 sps:$4 sm:$0xff]  }
 0x65b   : > { %8101 = vmatprep.subr.bf16.mxu0 %v22678_v51  ;;  %8187 = vmatprep.subr.bf16.mxu1 %v22681_v12  ;;  %v22738_v51 = vld [vmem:[#allocation13 + $0xa4] ss:$16 sps:$4 sm:$0xff]   ;;  %v22741_v12 = vld [vmem:[#allocation13 + $0xac] ss:$16 sps:$4 sm:$0xff]  }
 0x65e   : > { %8102 = vmatpush1.bf16.msra.mxu0 %v22676_v59  ;;  %8188 = vmatpush1.bf16.msra.mxu1 %v22679_v63  ;;  %v22736_v59 = vld [vmem:[#allocation13 + $0xa0] ss:$16 sps:$4 sm:$0xff]   ;;  %v22739_v63 = vld [vmem:[#allocation13 + $0xa8] ss:$16 sps:$4 sm:$0xff]  }
 0x65f   : > { %8103 = vmatprep.subr.bf16.mxu0 %v22684_v30  ;;  %8189 = vmatprep.subr.bf16.mxu1 %v22687_v2  ;;  %v22744_v30 = vld [vmem:[#allocation13 + $0xc4] ss:$16 sps:$4 sm:$0xff]   ;;  %v22747_v2 = vld [vmem:[#allocation13 + $0xcc] ss:$16 sps:$4 sm:$0xff]  }
 0x662   : > { %8104 = vmatpush1.bf16.msra.mxu0 %v22682_v38  ;;  %8190 = vmatpush1.bf16.msra.mxu1 %v22685_v34  ;;  %v22742_v38 = vld [vmem:[#allocation13 + $0xc0] ss:$16 sps:$4 sm:$0xff]   ;;  %v22745_v34 = vld [vmem:[#allocation13 + $0xc8] ss:$16 sps:$4 sm:$0xff]  }
 0x663   : > { %8105 = vmatprep.subr.bf16.mxu0 %v22690_v0  ;;  %8191 = vmatprep.subr.bf16.mxu1 %v22693_v5  ;;  %v22750_v0 = vld [vmem:[#allocation13 + $0xe4] ss:$16 sps:$4 sm:$0xff]   ;;  %v22753_v5 = vld [vmem:[#allocation13 + $0xec] ss:$16 sps:$4 sm:$0xff]  }
 0x666   : > { %8106 = vmatpush1.bf16.msra.mxu0 %v22688_v55  ;;  %8192 = vmatpush1.bf16.msra.mxu1 %v22691_v9  ;;  %v22748_v55 = vld [vmem:[#allocation13 + $0xe0] ss:$16 sps:$4 sm:$0xff]   ;;  %v22751_v9 = vld [vmem:[#allocation13 + $0xe8] ss:$16 sps:$4 sm:$0xff]  }
 0x667   : > { %8107 = vmatprep.subr.bf16.mxu0 %v22696_v45  ;;  %8193 = vmatprep.subr.bf16.mxu1 %v22699_v15  ;;  %v22756_v45 = vld [vmem:[#allocation13 + $0x104] ss:$16 sps:$4 sm:$0xff]   ;;  %v22759_v15 = vld [vmem:[#allocation13 + $0x10c] ss:$16 sps:$4 sm:$0xff]  }
 0x66a   : > { %8108 = vmatpush1.bf16.msra.mxu0 %v22694_v50  ;;  %8194 = vmatpush1.bf16.msra.mxu1 %v22697_v6  ;;  %v22754_v50 = vld [vmem:[#allocation13 + $0x100] ss:$16 sps:$4 sm:$0xff]   ;;  %v22757_v6 = vld [vmem:[#allocation13 + $0x108] ss:$16 sps:$4 sm:$0xff]  }
 0x66b   : > { %8109 = vmatprep.subr.bf16.mxu0 %v22702_v19  ;;  %8195 = vmatprep.subr.bf16.mxu1 %v22705_v21  ;;  %v22762_v19 = vld [vmem:[#allocation13 + $0x124] ss:$16 sps:$4 sm:$0xff]   ;;  %v22765_v21 = vld [vmem:[#allocation13 + $0x12c] ss:$16 sps:$4 sm:$0xff]  }
 0x66e   : > { %8110 = vmatpush1.bf16.msra.mxu0 %v22700_v32  ;;  %8196 = vmatpush1.bf16.msra.mxu1 %v22703_v31  ;;  %v22760_v32 = vld [vmem:[#allocation13 + $0x120] ss:$16 sps:$4 sm:$0xff]   ;;  %v22763_v31 = vld [vmem:[#allocation13 + $0x128] ss:$16 sps:$4 sm:$0xff]  }
 0x66f   : > { %8848 = vmatprep.subr.bf16.mxu0 %v22708_v56  ;;  %8934 = vmatprep.subr.bf16.mxu1 %v22711_v1  ;;  %v22766_v56 = vld [vmem:[#allocation13 + $0x140] ss:$16 sps:$4 sm:$0xff]   ;;  %v22769_v1 = vld [vmem:[#allocation13 + $0x148] ss:$16 sps:$4 sm:$0xff]  }
 0x671   : > { %8112 = vmatmul.mubr.bf16.vlgmr.msra.gmra.mrb[36].mxu0 %v7383_v20  ;;  %8198 = vmatmul.mubr.bf16.vlgmr.msra.gmra.mrb[36].mxu1 %v7383_v20  ;;  %v22777_v20 = vld [vmem:[#allocation13 + $0x16c] ss:$16 sps:$4 sm:$0xff]  }
 0x672   : > { %8849 = vmatpush1.bf16.msra.mxu0 %v22706_v25  ;;  %8880 = vmatprep.mubr.bf16.mxu0 %v26158_v54  ;;  %v22774_v25 = vld [vmem:[#allocation13 + $0x164] ss:$16 sps:$4 sm:$0xff]  }
 0x673   : > { %8935 = vmatpush1.bf16.msra.mxu1 %v22709_v37  ;;  %8966 = vmatprep.mubr.bf16.mxu1 %v26158_v54  ;;  %v22772_v37 = vld [vmem:[#allocation13 + $0x160] ss:$16 sps:$4 sm:$0xff]  }
 0x674   : > { %8850 = vmatprep.subr.bf16.mxu0 %v22714_v18  ;;  %8936 = vmatprep.subr.bf16.mxu1 %v22717_v41  ;;  %v22775_v18 = vld [vmem:[#allocation13 + $0x168] ss:$16 sps:$4 sm:$0xff]   ;;  %v22780_v41 = vld [vmem:[#allocation13 + $0x184] ss:$16 sps:$4 sm:$0xff]  }
 0x676   : > { %8851 = vmatpush1.bf16.msra.mxu0 %v22712_v16  ;;  %v22783_v16 = vld [vmem:[#allocation13 + $0x18c] ss:$16 sps:$4 sm:$0xff]  }
 0x677   : > { %8937 = vmatpush1.bf16.msra.mxu1 %v22715_v40  ;;  %8852 = vmatprep.subr.bf16.mxu0 %v22720_v58  ;;  %v22778_v40 = vld [vmem:[#allocation13 + $0x180] ss:$16 sps:$4 sm:$0xff]   ;;  %v22781_v58 = vld [vmem:[#allocation13 + $0x188] ss:$16 sps:$4 sm:$0xff]  }
 0x678   : > { %8938 = vmatprep.subr.bf16.mxu1 %v22723_v8  ;;  %v22786_v8 = vld [vmem:[#allocation13 + $0x1a4] ss:$16 sps:$4 sm:$0xff]  }
 0x67a   : > { %8853 = vmatpush1.bf16.msra.mxu0 %v22718_v29  ;;  %v22789_v29 = vld [vmem:[#allocation13 + $0x1ac] ss:$16 sps:$4 sm:$0xff]  }
 0x67b   : > { %8939 = vmatpush1.bf16.msra.mxu1 %v22721_v61  ;;  %8854 = vmatprep.subr.bf16.mxu0 %v22726_v52  ;;  %v22784_v61 = vld [vmem:[#allocation13 + $0x1a0] ss:$16 sps:$4 sm:$0xff]   ;;  %v22787_v52 = vld [vmem:[#allocation13 + $0x1a8] ss:$16 sps:$4 sm:$0xff]  }
 0x67c   : > { %8940 = vmatprep.subr.bf16.mxu1 %v22729_v43  ;;  %v22792_v43 = vld [vmem:[#allocation13 + $0x1c4] ss:$16 sps:$4 sm:$0xff]  }
 0x67e   : > { %8855 = vmatpush1.bf16.msra.mxu0 %v22724_v48  ;;  %v22795_v48 = vld [vmem:[#allocation13 + $0x1cc] ss:$16 sps:$4 sm:$0xff]  }
 0x67f   : > { %8941 = vmatpush1.bf16.msra.mxu1 %v22727_v60  ;;  %8856 = vmatprep.subr.bf16.mxu0 %v22732_v14  ;;  %v22790_v60 = vld [vmem:[#allocation13 + $0x1c0] ss:$16 sps:$4 sm:$0xff]   ;;  %v22793_v14 = vld [vmem:[#allocation13 + $0x1c8] ss:$16 sps:$4 sm:$0xff]  }
 0x680   : > { %8942 = vmatprep.subr.bf16.mxu1 %v22735_v49  ;;  %v22798_v49 = vld [vmem:[#allocation13 + $0x1e4] ss:$16 sps:$4 sm:$0xff]  }
 0x682   : > { %8857 = vmatpush1.bf16.msra.mxu0 %v22730_v46  ;;  %v22801_v46 = vld [vmem:[#allocation13 + $0x1ec] ss:$16 sps:$4 sm:$0xff]  }
 0x683   : > { %8943 = vmatpush1.bf16.msra.mxu1 %v22733_v27  ;;  %8858 = vmatprep.subr.bf16.mxu0 %v22738_v51  ;;  %v22796_v27 = vld [vmem:[#allocation13 + $0x1e0] ss:$16 sps:$4 sm:$0xff]   ;;  %v22799_v51 = vld [vmem:[#allocation13 + $0x1e8] ss:$16 sps:$4 sm:$0xff]  }
 0x684   : > { %8944 = vmatprep.subr.bf16.mxu1 %v22741_v12  ;;  %v22804_v12 = vld [vmem:[#allocation13 + $0x204] ss:$16 sps:$4 sm:$0xff]  }
 0x686   : > { %8859 = vmatpush1.bf16.msra.mxu0 %v22736_v59  ;;  %v22807_v59 = vld [vmem:[#allocation13 + $0x20c] ss:$16 sps:$4 sm:$0xff]  }
 0x687   : > { %8945 = vmatpush1.bf16.msra.mxu1 %v22739_v63  ;;  %8860 = vmatprep.subr.bf16.mxu0 %v22744_v30  ;;  %v22802_v63 = vld [vmem:[#allocation13 + $0x200] ss:$16 sps:$4 sm:$0xff]   ;;  %v22805_v30 = vld [vmem:[#allocation13 + $0x208] ss:$16 sps:$4 sm:$0xff]  }
 0x688   : > { %8946 = vmatprep.subr.bf16.mxu1 %v22747_v2  ;;  %v22810_v2 = vld [vmem:[#allocation13 + $0x224] ss:$16 sps:$4 sm:$0xff]  }
 0x68a   : > { %8861 = vmatpush1.bf16.msra.mxu0 %v22742_v38  ;;  %v22813_v38 = vld [vmem:[#allocation13 + $0x22c] ss:$16 sps:$4 sm:$0xff]  }
 0x68b   : > { %8947 = vmatpush1.bf16.msra.mxu1 %v22745_v34  ;;  %8862 = vmatprep.subr.bf16.mxu0 %v22750_v0  ;;  %v22808_v34 = vld [vmem:[#allocation13 + $0x220] ss:$16 sps:$4 sm:$0xff]   ;;  %v22811_v0 = vld [vmem:[#allocation13 + $0x228] ss:$16 sps:$4 sm:$0xff]  }
 0x68c   : > { %8948 = vmatprep.subr.bf16.mxu1 %v22753_v5  ;;  %v22816_v5 = vld [vmem:[#allocation13 + $0x244] ss:$16 sps:$4 sm:$0xff]  }
 0x68e   : > { %8863 = vmatpush1.bf16.msra.mxu0 %v22748_v55  ;;  %v22819_v55 = vld [vmem:[#allocation13 + $0x24c] ss:$16 sps:$4 sm:$0xff]  }
 0x68f   : > { %8949 = vmatpush1.bf16.msra.mxu1 %v22751_v9  ;;  %8864 = vmatprep.subr.bf16.mxu0 %v22756_v45  ;;  %v22814_v9 = vld [vmem:[#allocation13 + $0x240] ss:$16 sps:$4 sm:$0xff]   ;;  %v22817_v45 = vld [vmem:[#allocation13 + $0x248] ss:$16 sps:$4 sm:$0xff]  }
 0x690   : > { %8950 = vmatprep.subr.bf16.mxu1 %v22759_v15  ;;  %v22822_v15 = vld [vmem:[#allocation13 + $0x264] ss:$16 sps:$4 sm:$0xff]  }
 0x692   : > { %8865 = vmatpush1.bf16.msra.mxu0 %v22754_v50  ;;  %v22825_v50 = vld [vmem:[#allocation13 + $0x26c] ss:$16 sps:$4 sm:$0xff]  }
 0x693   : > { %8951 = vmatpush1.bf16.msra.mxu1 %v22757_v6  ;;  %8866 = vmatprep.subr.bf16.mxu0 %v22762_v19  ;;  %v22820_v6 = vld [vmem:[#allocation13 + $0x260] ss:$16 sps:$4 sm:$0xff]   ;;  %v22823_v19 = vld [vmem:[#allocation13 + $0x268] ss:$16 sps:$4 sm:$0xff]  }
 0x694   : > { %8952 = vmatprep.subr.bf16.mxu1 %v22765_v21  ;;  %v22828_v21 = vld [vmem:[#allocation13 + $0x284] ss:$16 sps:$4 sm:$0xff]  }
 0x696   : > { %8867 = vmatpush1.bf16.msra.mxu0 %v22760_v32  ;;  %v22831_v32 = vld [vmem:[#allocation13 + $0x28c] ss:$16 sps:$4 sm:$0xff]  }
 0x697   : > { %8953 = vmatpush1.bf16.msra.mxu1 %v22763_v31  ;;  %8868 = vmatprep.subr.bf16.mxu0 %v22768_v33  ;;  %v22826_v31 = vld [vmem:[#allocation13 + $0x280] ss:$16 sps:$4 sm:$0xff]   ;;  %v22829_v33 = vld [vmem:[#allocation13 + $0x288] ss:$16 sps:$4 sm:$0xff]  }
 0x698   : > { %8954 = vmatprep.subr.bf16.mxu1 %v22771_v36  ;;  %v22834_v36 = vld [vmem:[#allocation13 + $0x2a4] ss:$16 sps:$4 sm:$0xff]  }
 0x69a   : > { %8869 = vmatpush1.bf16.msra.mxu0 %v22766_v56  ;;  %v22837_v56 = vld [vmem:[#allocation13 + $0x2ac] ss:$16 sps:$4 sm:$0xff]  }
 0x69b   : > { %8955 = vmatpush1.bf16.msra.mxu1 %v22769_v1  ;;  %8870 = vmatprep.subr.bf16.mxu0 %v22774_v25  ;;  %v22832_v1 = vld [vmem:[#allocation13 + $0x2a0] ss:$16 sps:$4 sm:$0xff]   ;;  %v22835_v25 = vld [vmem:[#allocation13 + $0x2a8] ss:$16 sps:$4 sm:$0xff]  }
 0x69c   : > { %8956 = vmatprep.subr.bf16.mxu1 %v22777_v20  ;;  %v22840_v20 = vld [vmem:[#allocation13 + $0x2c4] ss:$16 sps:$4 sm:$0xff]  }
 0x69e   : > { %8871 = vmatpush1.bf16.msra.mxu0 %v22772_v37  ;;  %v22843_v37 = vld [vmem:[#allocation13 + $0x2cc] ss:$16 sps:$4 sm:$0xff]  }
 0x69f   : > { %8957 = vmatpush1.bf16.msra.mxu1 %v22775_v18  ;;  %8872 = vmatprep.subr.bf16.mxu0 %v22780_v41  ;;  %v22838_v18 = vld [vmem:[#allocation13 + $0x2c0] ss:$16 sps:$4 sm:$0xff]   ;;  %v22841_v41 = vld [vmem:[#allocation13 + $0x2c8] ss:$16 sps:$4 sm:$0xff]  }
 0x6a0   : > { %8958 = vmatprep.subr.bf16.mxu1 %v22783_v16  ;;  %v22846_v16 = vld [vmem:[#allocation13 + $0x2e4] ss:$16 sps:$4 sm:$0xff]  }
 0x6a2   : > { %8873 = vmatpush1.bf16.msra.mxu0 %v22778_v40  ;;  %v22849_v40 = vld [vmem:[#allocation13 + $0x2ec] ss:$16 sps:$4 sm:$0xff]  }
 0x6a3   : > { %8959 = vmatpush1.bf16.msra.mxu1 %v22781_v58  ;;  %8874 = vmatprep.subr.bf16.mxu0 %v22786_v8  ;;  %v22844_v58 = vld [vmem:[#allocation13 + $0x2e0] ss:$16 sps:$4 sm:$0xff]   ;;  %v22847_v8 = vld [vmem:[#allocation13 + $0x2e8] ss:$16 sps:$4 sm:$0xff]  }
 0x6a4   : > { %8960 = vmatprep.subr.bf16.mxu1 %v22789_v29  ;;  %v22852_v29 = vld [vmem:[#allocation13 + $0x304] ss:$16 sps:$4 sm:$0xff]  }
 0x6a6   : > { %8875 = vmatpush1.bf16.msra.mxu0 %v22784_v61  ;;  %v22855_v61 = vld [vmem:[#allocation13 + $0x30c] ss:$16 sps:$4 sm:$0xff]  }
 0x6a7   : > { %8961 = vmatpush1.bf16.msra.mxu1 %v22787_v52  ;;  %8876 = vmatprep.subr.bf16.mxu0 %v22792_v43  ;;  %v22850_v52 = vld [vmem:[#allocation13 + $0x300] ss:$16 sps:$4 sm:$0xff]   ;;  %v22853_v43 = vld [vmem:[#allocation13 + $0x308] ss:$16 sps:$4 sm:$0xff]  }
 0x6a8   : > { %8962 = vmatprep.subr.bf16.mxu1 %v22795_v48  ;;  %v22858_v48 = vld [vmem:[#allocation13 + $0x324] ss:$16 sps:$4 sm:$0xff]  }
 0x6aa   : > { %8877 = vmatpush1.bf16.msra.mxu0 %v22790_v60  ;;  %v22861_v60 = vld [vmem:[#allocation13 + $0x32c] ss:$16 sps:$4 sm:$0xff]  }
 0x6ab   : > { %8963 = vmatpush1.bf16.msra.mxu1 %v22793_v14  ;;  %8878 = vmatprep.subr.bf16.mxu0 %v22798_v49  ;;  %v22856_v14 = vld [vmem:[#allocation13 + $0x320] ss:$16 sps:$4 sm:$0xff]   ;;  %v22859_v49 = vld [vmem:[#allocation13 + $0x328] ss:$16 sps:$4 sm:$0xff]  }
 0x6ac   : > { %8964 = vmatprep.subr.bf16.mxu1 %v22801_v46  ;;  %v22864_v46 = vld [vmem:[#allocation13 + $0x344] ss:$16 sps:$4 sm:$0xff]  }
 0x6ae   : > { %8879 = vmatpush1.bf16.msra.mxu0 %v22796_v27  ;;  %v22867_v27 = vld [vmem:[#allocation13 + $0x34c] ss:$16 sps:$4 sm:$0xff]  }
 0x6af   : > { %8965 = vmatpush1.bf16.msra.mxu1 %v22799_v51  ;;  %8891 = vmatprep.subr.bf16.mxu0 %v22804_v12  ;;  %v22862_v51 = vld [vmem:[#allocation13 + $0x340] ss:$16 sps:$4 sm:$0xff]   ;;  %v22865_v12 = vld [vmem:[#allocation13 + $0x348] ss:$16 sps:$4 sm:$0xff]  }
 0x6b0   : > { %8977 = vmatprep.subr.bf16.mxu1 %v22807_v59  ;;  %v22870_v59 = vld [vmem:[#allocation13 + $0x364] ss:$16 sps:$4 sm:$0xff]  }
 0x6b1   : > { %8881 = vmatmul.mubr.bf16.vlgmr.msra.gmra.mrb[36].mxu0 %v26152_v57 }
 0x6b2   : > { %8967 = vmatmul.mubr.bf16.vlgmr.msra.gmra.mrb[36].mxu1 %v26152_v57  ;;  %8892 = vmatpush1.bf16.msra.mxu0 %v22802_v63  ;;  %v22873_v63 = vld [vmem:[#allocation13 + $0x36c] ss:$16 sps:$4 sm:$0xff]  }
 0x6b3   : > { %8923 = vmatprep.mubr.bf16.mxu0 %v26160_v35  ;;  %8978 = vmatpush1.bf16.msra.mxu1 %v22805_v30  ;;  %v22868_v30 = vld [vmem:[#allocation13 + $0x360] ss:$16 sps:$4 sm:$0xff]  }
 0x6b4   : > { %9009 = vmatprep.mubr.bf16.mxu1 %v26160_v35  ;;  %8893 = vmatprep.subr.bf16.mxu0 %v22810_v2  ;;  %v22871_v2 = vld [vmem:[#allocation13 + $0x368] ss:$16 sps:$4 sm:$0xff]  }
 0x6b5   : > { %8979 = vmatprep.subr.bf16.mxu1 %v22813_v38  ;;  %v22876_v38 = vld [vmem:[#allocation13 + $0x384] ss:$16 sps:$4 sm:$0xff]  }
 0x6b6   : > { %8894 = vmatpush1.bf16.msra.mxu0 %v22808_v34  ;;  %v22879_v34 = vld [vmem:[#allocation13 + $0x38c] ss:$16 sps:$4 sm:$0xff]  }
 0x6b7   : > { %8980 = vmatpush1.bf16.msra.mxu1 %v22811_v0  ;;  %8895 = vmatprep.subr.bf16.mxu0 %v22816_v5  ;;  %v22874_v0 = vld [vmem:[#allocation13 + $0x380] ss:$16 sps:$4 sm:$0xff]   ;;  %v22877_v5 = vld [vmem:[#allocation13 + $0x388] ss:$16 sps:$4 sm:$0xff]  }
 0x6b8   : > { %8981 = vmatprep.subr.bf16.mxu1 %v22819_v55  ;;  %v22882_v55 = vld [vmem:[#allocation13 + $0x3a4] ss:$16 sps:$4 sm:$0xff]  }
 0x6ba   : > { %8896 = vmatpush1.bf16.msra.mxu0 %v22814_v9  ;;  %v22885_v9 = vld [vmem:[#allocation13 + $0x3ac] ss:$16 sps:$4 sm:$0xff]  }
 0x6bb   : > { %8982 = vmatpush1.bf16.msra.mxu1 %v22817_v45  ;;  %8897 = vmatprep.subr.bf16.mxu0 %v22822_v15  ;;  %v22880_v45 = vld [vmem:[#allocation13 + $0x3a0] ss:$16 sps:$4 sm:$0xff]   ;;  %v22883_v15 = vld [vmem:[#allocation13 + $0x3a8] ss:$16 sps:$4 sm:$0xff]  }
 0x6bc   : > { %8983 = vmatprep.subr.bf16.mxu1 %v22825_v50  ;;  %v22888_v50 = vld [vmem:[#allocation13 + $0x3c4] ss:$16 sps:$4 sm:$0xff]  }
 0x6be   : > { %8898 = vmatpush1.bf16.msra.mxu0 %v22820_v6  ;;  %v22891_v6 = vld [vmem:[#allocation13 + $0x3cc] ss:$16 sps:$4 sm:$0xff]  }
 0x6bf   : > { %8984 = vmatpush1.bf16.msra.mxu1 %v22823_v19  ;;  %8899 = vmatprep.subr.bf16.mxu0 %v22828_v21  ;;  %v22886_v19 = vld [vmem:[#allocation13 + $0x3c0] ss:$16 sps:$4 sm:$0xff]   ;;  %v22889_v21 = vld [vmem:[#allocation13 + $0x3c8] ss:$16 sps:$4 sm:$0xff]  }
 0x6c0   : > { %8985 = vmatprep.subr.bf16.mxu1 %v22831_v32  ;;  %v22894_v32 = vld [vmem:[#allocation13 + $0x3e4] ss:$16 sps:$4 sm:$0xff]  }
 0x6c2   : > { %8900 = vmatpush1.bf16.msra.mxu0 %v22826_v31  ;;  %v22897_v31 = vld [vmem:[#allocation13 + $0x3ec] ss:$16 sps:$4 sm:$0xff]  }
 0x6c3   : > { %8986 = vmatpush1.bf16.msra.mxu1 %v22829_v33  ;;  %8901 = vmatprep.subr.bf16.mxu0 %v22834_v36  ;;  %v22892_v33 = vld [vmem:[#allocation13 + $0x3e0] ss:$16 sps:$4 sm:$0xff]   ;;  %v22895_v36 = vld [vmem:[#allocation13 + $0x3e8] ss:$16 sps:$4 sm:$0xff]  }
 0x6c4   : > { %8987 = vmatprep.subr.bf16.mxu1 %v22837_v56  ;;  %v22900_v56 = vld [vmem:[#allocation13 + $0x804] ss:$16 sps:$4 sm:$0xff]  }
 0x6c6   : > { %8902 = vmatpush1.bf16.msra.mxu0 %v22832_v1  ;;  %v22903_v1 = vld [vmem:[#allocation13 + $0x80c] ss:$16 sps:$4 sm:$0xff]  }
 0x6c7   : > { %8988 = vmatpush1.bf16.msra.mxu1 %v22835_v25  ;;  %8903 = vmatprep.subr.bf16.mxu0 %v22840_v20  ;;  %v22898_v25 = vld [vmem:[#allocation13 + $0x800] ss:$16 sps:$4 sm:$0xff]   ;;  %v22901_v20 = vld [vmem:[#allocation13 + $0x808] ss:$16 sps:$4 sm:$0xff]  }
 0x6c8   : > { %8989 = vmatprep.subr.bf16.mxu1 %v22843_v37  ;;  %v22906_v37 = vld [vmem:[#allocation13 + $0x824] ss:$16 sps:$4 sm:$0xff]  }
 0x6ca   : > { %8904 = vmatpush1.bf16.msra.mxu0 %v22838_v18  ;;  %v9154_v18 = vrot.slane %v26158_v54, 3 }
 0x6cb   : > { %8990 = vmatpush1.bf16.msra.mxu1 %v22841_v41  ;;  %8905 = vmatprep.subr.bf16.mxu0 %v22846_v16  ;;  %v22909_v41 = vld [vmem:[#allocation13 + $0x82c] ss:$16 sps:$4 sm:$0xff]   ;;  %v22904_v16 = vld [vmem:[#allocation13 + $0x820] ss:$16 sps:$4 sm:$0xff]  }
 0x6cc   : > { %8991 = vmatprep.subr.bf16.mxu1 %v22849_v40  ;;  %v22907_v40 = vld [vmem:[#allocation13 + $0x828] ss:$16 sps:$4 sm:$0xff]  }
 0x6ce   : > { %8906 = vmatpush1.bf16.msra.mxu0 %v22844_v58  ;;  %v22912_v58 = vld [vmem:[#allocation13 + $0x844] ss:$16 sps:$4 sm:$0xff]  }
 0x6cf   : > { %8992 = vmatpush1.bf16.msra.mxu1 %v22847_v8  ;;  %8907 = vmatprep.subr.bf16.mxu0 %v22852_v29  ;;  %v22915_v8 = vld [vmem:[#allocation13 + $0x84c] ss:$16 sps:$4 sm:$0xff]   ;;  %v22910_v29 = vld [vmem:[#allocation13 + $0x840] ss:$16 sps:$4 sm:$0xff]  }
 0x6d0   : > { %8993 = vmatprep.subr.bf16.mxu1 %v22855_v61  ;;  %v22913_v61 = vld [vmem:[#allocation13 + $0x848] ss:$16 sps:$4 sm:$0xff]  }
 0x6d2   : > { %8908 = vmatpush1.bf16.msra.mxu0 %v22850_v52  ;;  %v22918_v52 = vld [vmem:[#allocation13 + $0x864] ss:$16 sps:$4 sm:$0xff]  }
 0x6d3   : > { %8994 = vmatpush1.bf16.msra.mxu1 %v22853_v43  ;;  %8909 = vmatprep.subr.bf16.mxu0 %v22858_v48  ;;  %v22921_v43 = vld [vmem:[#allocation13 + $0x86c] ss:$16 sps:$4 sm:$0xff]   ;;  %v22916_v48 = vld [vmem:[#allocation13 + $0x860] ss:$16 sps:$4 sm:$0xff]  }
 0x6d4   : > { %8995 = vmatprep.subr.bf16.mxu1 %v22861_v60  ;;  %v22919_v60 = vld [vmem:[#allocation13 + $0x868] ss:$16 sps:$4 sm:$0xff]  }
 0x6d6   : > { %8910 = vmatpush1.bf16.msra.mxu0 %v22856_v14  ;;  %v22924_v14 = vld [vmem:[#allocation13 + $0x884] ss:$16 sps:$4 sm:$0xff]  }
 0x6d7   : > { %8996 = vmatpush1.bf16.msra.mxu1 %v22859_v49  ;;  %8911 = vmatprep.subr.bf16.mxu0 %v22864_v46  ;;  %v22927_v49 = vld [vmem:[#allocation13 + $0x88c] ss:$16 sps:$4 sm:$0xff]   ;;  %v22922_v46 = vld [vmem:[#allocation13 + $0x880] ss:$16 sps:$4 sm:$0xff]  }
 0x6d8   : > { %8997 = vmatprep.subr.bf16.mxu1 %v22867_v27  ;;  %v22925_v27 = vld [vmem:[#allocation13 + $0x888] ss:$16 sps:$4 sm:$0xff]  }
 0x6da   : > { %8912 = vmatpush1.bf16.msra.mxu0 %v22862_v51  ;;  %v22930_v51 = vld [vmem:[#allocation13 + $0x8a4] ss:$16 sps:$4 sm:$0xff]  }
 0x6db   : > { %8998 = vmatpush1.bf16.msra.mxu1 %v22865_v12  ;;  %8913 = vmatprep.subr.bf16.mxu0 %v22870_v59  ;;  %v22933_v12 = vld [vmem:[#allocation13 + $0x8ac] ss:$16 sps:$4 sm:$0xff]   ;;  %v22928_v59 = vld [vmem:[#allocation13 + $0x8a0] ss:$16 sps:$4 sm:$0xff]  }
 0x6dc   : > { %8999 = vmatprep.subr.bf16.mxu1 %v22873_v63  ;;  %v22931_v63 = vld [vmem:[#allocation13 + $0x8a8] ss:$16 sps:$4 sm:$0xff]  }
 0x6de   : > { %8914 = vmatpush1.bf16.msra.mxu0 %v22868_v30  ;;  %v22936_v30 = vld [vmem:[#allocation13 + $0x8c4] ss:$16 sps:$4 sm:$0xff]  }
 0x6df   : > { %9000 = vmatpush1.bf16.msra.mxu1 %v22871_v2  ;;  %8915 = vmatprep.subr.bf16.mxu0 %v22876_v38  ;;  %v22939_v2 = vld [vmem:[#allocation13 + $0x8cc] ss:$16 sps:$4 sm:$0xff]   ;;  %v22934_v38 = vld [vmem:[#allocation13 + $0x8c0] ss:$16 sps:$4 sm:$0xff]  }
 0x6e0   : > { %9001 = vmatprep.subr.bf16.mxu1 %v22879_v34  ;;  %v22937_v34 = vld [vmem:[#allocation13 + $0x8c8] ss:$16 sps:$4 sm:$0xff]  }
 0x6e2   : > { %8916 = vmatpush1.bf16.msra.mxu0 %v22874_v0  ;;  %v22942_v0 = vld [vmem:[#allocation13 + $0x8e4] ss:$16 sps:$4 sm:$0xff]  }
 0x6e3   : > { %9002 = vmatpush1.bf16.msra.mxu1 %v22877_v5  ;;  %8917 = vmatprep.subr.bf16.mxu0 %v22882_v55  ;;  %v22945_v5 = vld [vmem:[#allocation13 + $0x8ec] ss:$16 sps:$4 sm:$0xff]   ;;  %v22940_v55 = vld [vmem:[#allocation13 + $0x8e0] ss:$16 sps:$4 sm:$0xff]  }
 0x6e4   : > { %9003 = vmatprep.subr.bf16.mxu1 %v22885_v9  ;;  %v22943_v9 = vld [vmem:[#allocation13 + $0x8e8] ss:$16 sps:$4 sm:$0xff]  }
 0x6e6   : > { %8918 = vmatpush1.bf16.msra.mxu0 %v22880_v45  ;;  %v22948_v45 = vld [vmem:[#allocation13 + $0x904] ss:$16 sps:$4 sm:$0xff]  }
 0x6e7   : > { %9004 = vmatpush1.bf16.msra.mxu1 %v22883_v15  ;;  %8919 = vmatprep.subr.bf16.mxu0 %v22888_v50  ;;  %v22951_v15 = vld [vmem:[#allocation13 + $0x90c] ss:$16 sps:$4 sm:$0xff]   ;;  %v22946_v50 = vld [vmem:[#allocation13 + $0x900] ss:$16 sps:$4 sm:$0xff]  }
 0x6e8   : > { %9005 = vmatprep.subr.bf16.mxu1 %v22891_v6  ;;  %v22949_v6 = vld [vmem:[#allocation13 + $0x908] ss:$16 sps:$4 sm:$0xff]  }
 0x6ea   : > { %8920 = vmatpush1.bf16.msra.mxu0 %v22886_v19  ;;  %v22954_v19 = vld [vmem:[#allocation13 + $0x924] ss:$16 sps:$4 sm:$0xff]  }
 0x6eb   : > { %9006 = vmatpush1.bf16.msra.mxu1 %v22889_v21  ;;  %8921 = vmatprep.subr.bf16.mxu0 %v22894_v32  ;;  %v22957_v21 = vld [vmem:[#allocation13 + $0x92c] ss:$16 sps:$4 sm:$0xff]   ;;  %v22952_v32 = vld [vmem:[#allocation13 + $0x920] ss:$16 sps:$4 sm:$0xff]  }
 0x6ec   : > { %9007 = vmatprep.subr.bf16.mxu1 %v22897_v31  ;;  %v22955_v31 = vld [vmem:[#allocation13 + $0x928] ss:$16 sps:$4 sm:$0xff]  }
 0x6ee   : > { %8922 = vmatpush1.bf16.msra.mxu0 %v22892_v33  ;;  %v22960_v33 = vld [vmem:[#allocation13 + $0x944] ss:$16 sps:$4 sm:$0xff]  }
 0x6ef   : > { %9008 = vmatpush1.bf16.msra.mxu1 %v22895_v36  ;;  %9801 = vmatprep.subr.bf16.mxu0 %v22900_v56  ;;  %v22963_v36 = vld [vmem:[#allocation13 + $0x94c] ss:$16 sps:$4 sm:$0xff]   ;;  %v22958_v56 = vld [vmem:[#allocation13 + $0x940] ss:$16 sps:$4 sm:$0xff]  }
 0x6f0   : > { %9887 = vmatprep.subr.bf16.mxu1 %v22903_v1  ;;  %v22961_v1 = vld [vmem:[#allocation13 + $0x948] ss:$16 sps:$4 sm:$0xff]  }
 0x6f1   : > { %8924 = vmatmul.mubr.bf16.vlgmr.msra.gmra.mrb[36].mxu0 %v26156_v3 }
 0x6f2   : > { %9010 = vmatmul.mubr.bf16.vlgmr.msra.gmra.mrb[36].mxu1 %v26156_v3  ;;  %9802 = vmatpush1.bf16.msra.mxu0 %v22898_v25  ;;  %v22966_v25 = vld [vmem:[#allocation13 + $0x964] ss:$16 sps:$4 sm:$0xff]  }
 0x6f3   : > { %9833 = vmatprep.mubr.bf16.mxu0 %v9154_v18  ;;  %9888 = vmatpush1.bf16.msra.mxu1 %v22901_v20  ;;  %v22969_v20 = vld [vmem:[#allocation13 + $0x96c] ss:$16 sps:$4 sm:$0xff]  }
 0x6f4   : > { %9919 = vmatprep.mubr.bf16.mxu1 %v9154_v18  ;;  %9803 = vmatprep.subr.bf16.mxu0 %v22906_v37  ;;  %v22964_v37 = vld [vmem:[#allocation13 + $0x960] ss:$16 sps:$4 sm:$0xff]   ;;  %v22967_v18 = vld [vmem:[#allocation13 + $0x968] ss:$16 sps:$4 sm:$0xff]  }
 0x6f5   : > { %9889 = vmatprep.subr.bf16.mxu1 %v22909_v41  ;;  %v22972_v41 = vld [vmem:[#allocation13 + $0x984] ss:$16 sps:$4 sm:$0xff]  }
 0x6f6   : > { %9804 = vmatpush1.bf16.msra.mxu0 %v22904_v16  ;;  %v22975_v16 = vld [vmem:[#allocation13 + $0x98c] ss:$16 sps:$4 sm:$0xff]  }
 0x6f7   : > { %9890 = vmatpush1.bf16.msra.mxu1 %v22907_v40  ;;  %9805 = vmatprep.subr.bf16.mxu0 %v22912_v58  ;;  %v22970_v40 = vld [vmem:[#allocation13 + $0x980] ss:$16 sps:$4 sm:$0xff]   ;;  %v22973_v58 = vld [vmem:[#allocation13 + $0x988] ss:$16 sps:$4 sm:$0xff]  }
 0x6f8   : > { %9891 = vmatprep.subr.bf16.mxu1 %v22915_v8  ;;  %v22978_v8 = vld [vmem:[#allocation13 + $0x9a4] ss:$16 sps:$4 sm:$0xff]  }
 0x6fa   : > { %9806 = vmatpush1.bf16.msra.mxu0 %v22910_v29  ;;  %v22981_v29 = vld [vmem:[#allocation13 + $0x9ac] ss:$16 sps:$4 sm:$0xff]  }
 0x6fb   : > { %9892 = vmatpush1.bf16.msra.mxu1 %v22913_v61  ;;  %9807 = vmatprep.subr.bf16.mxu0 %v22918_v52  ;;  %v22976_v61 = vld [vmem:[#allocation13 + $0x9a0] ss:$16 sps:$4 sm:$0xff]   ;;  %v22979_v52 = vld [vmem:[#allocation13 + $0x9a8] ss:$16 sps:$4 sm:$0xff]  }
 0x6fc   : > { %9893 = vmatprep.subr.bf16.mxu1 %v22921_v43  ;;  %v22984_v43 = vld [vmem:[#allocation13 + $0x9c4] ss:$16 sps:$4 sm:$0xff]  }
 0x6fe   : > { %9808 = vmatpush1.bf16.msra.mxu0 %v22916_v48  ;;  %v22987_v48 = vld [vmem:[#allocation13 + $0x9cc] ss:$16 sps:$4 sm:$0xff]  }
 0x6ff   : > { %9894 = vmatpush1.bf16.msra.mxu1 %v22919_v60  ;;  %9809 = vmatprep.subr.bf16.mxu0 %v22924_v14  ;;  %v22982_v60 = vld [vmem:[#allocation13 + $0x9c0] ss:$16 sps:$4 sm:$0xff]   ;;  %v22985_v14 = vld [vmem:[#allocation13 + $0x9c8] ss:$16 sps:$4 sm:$0xff]  }
 0x700   : > { %9895 = vmatprep.subr.bf16.mxu1 %v22927_v49  ;;  %v22990_v49 = vld [vmem:[#allocation13 + $0x9e4] ss:$16 sps:$4 sm:$0xff]  }
 0x702   : > { %9810 = vmatpush1.bf16.msra.mxu0 %v22922_v46  ;;  %v22993_v46 = vld [vmem:[#allocation13 + $0x9ec] ss:$16 sps:$4 sm:$0xff]  }
 0x703   : > { %9896 = vmatpush1.bf16.msra.mxu1 %v22925_v27  ;;  %9811 = vmatprep.subr.bf16.mxu0 %v22930_v51  ;;  %v22988_v27 = vld [vmem:[#allocation13 + $0x9e0] ss:$16 sps:$4 sm:$0xff]   ;;  %v22991_v51 = vld [vmem:[#allocation13 + $0x9e8] ss:$16 sps:$4 sm:$0xff]  }
 0x704   : > { %9897 = vmatprep.subr.bf16.mxu1 %v22933_v12  ;;  %v22996_v12 = vld [vmem:[#allocation13 + $0xa04] ss:$16 sps:$4 sm:$0xff]  }
 0x706   : > { %9812 = vmatpush1.bf16.msra.mxu0 %v22928_v59  ;;  %v22999_v59 = vld [vmem:[#allocation13 + $0xa0c] ss:$16 sps:$4 sm:$0xff]  }
 0x707   : > { %9898 = vmatpush1.bf16.msra.mxu1 %v22931_v63  ;;  %9813 = vmatprep.subr.bf16.mxu0 %v22936_v30  ;;  %v22994_v63 = vld [vmem:[#allocation13 + $0xa00] ss:$16 sps:$4 sm:$0xff]   ;;  %v9153_v30 = vrot.slane %v26152_v57, 3 }
 0x708   : > { %9899 = vmatprep.subr.bf16.mxu1 %v22939_v2  ;;  %v22997_v2 = vld [vmem:[#allocation13 + $0xa08] ss:$16 sps:$4 sm:$0xff]  }
 0x70a   : > { %9814 = vmatpush1.bf16.msra.mxu0 %v22934_v38  ;;  %v23002_v38 = vld [vmem:[#allocation13 + $0xa24] ss:$16 sps:$4 sm:$0xff]  }
 0x70b   : > { %9900 = vmatpush1.bf16.msra.mxu1 %v22937_v34  ;;  %9815 = vmatprep.subr.bf16.mxu0 %v22942_v0  ;;  %v9156_v34 = vrot.slane %v26160_v35, 3  ;;  %v23005_v0 = vld [vmem:[#allocation13 + $0xa2c] ss:$16 sps:$4 sm:$0xff]  }
 0x70c   : > { %9901 = vmatprep.subr.bf16.mxu1 %v22945_v5  ;;  %v23000_v5 = vld [vmem:[#allocation13 + $0xa20] ss:$16 sps:$4 sm:$0xff]  }
 0x70e   : > { %9816 = vmatpush1.bf16.msra.mxu0 %v22940_v55  ;;  %v23003_v55 = vld [vmem:[#allocation13 + $0xa28] ss:$16 sps:$4 sm:$0xff]  }
 0x70f   : > { %9902 = vmatpush1.bf16.msra.mxu1 %v22943_v9  ;;  %9817 = vmatprep.subr.bf16.mxu0 %v22948_v45  ;;  %v23008_v9 = vld [vmem:[#allocation13 + $0xa44] ss:$16 sps:$4 sm:$0xff]   ;;  %v23011_v45 = vld [vmem:[#allocation13 + $0xa4c] ss:$16 sps:$4 sm:$0xff]  }
 0x710   : > { %9903 = vmatprep.subr.bf16.mxu1 %v22951_v15  ;;  %v23006_v15 = vld [vmem:[#allocation13 + $0xa40] ss:$16 sps:$4 sm:$0xff]  }
 0x712   : > { %9818 = vmatpush1.bf16.msra.mxu0 %v22946_v50  ;;  %v23009_v50 = vld [vmem:[#allocation13 + $0xa48] ss:$16 sps:$4 sm:$0xff]  }
 0x713   : > { %9904 = vmatpush1.bf16.msra.mxu1 %v22949_v6  ;;  %9819 = vmatprep.subr.bf16.mxu0 %v22954_v19  ;;  %v23014_v6 = vld [vmem:[#allocation13 + $0xa64] ss:$16 sps:$4 sm:$0xff]   ;;  %v23017_v19 = vld [vmem:[#allocation13 + $0xa6c] ss:$16 sps:$4 sm:$0xff]  }
 0x714   : > { %9905 = vmatprep.subr.bf16.mxu1 %v22957_v21  ;;  %v23012_v21 = vld [vmem:[#allocation13 + $0xa60] ss:$16 sps:$4 sm:$0xff]  }
 0x716   : > { %9820 = vmatpush1.bf16.msra.mxu0 %v22952_v32  ;;  %v23015_v32 = vld [vmem:[#allocation13 + $0xa68] ss:$16 sps:$4 sm:$0xff]  }
 0x717   : > { %9906 = vmatpush1.bf16.msra.mxu1 %v22955_v31  ;;  %9821 = vmatprep.subr.bf16.mxu0 %v22960_v33  ;;  %v23020_v31 = vld [vmem:[#allocation13 + $0xa84] ss:$16 sps:$4 sm:$0xff]   ;;  %v23023_v33 = vld [vmem:[#allocation13 + $0xa8c] ss:$16 sps:$4 sm:$0xff]  }
 0x718   : > { %9907 = vmatprep.subr.bf16.mxu1 %v22963_v36  ;;  %v23018_v36 = vld [vmem:[#allocation13 + $0xa80] ss:$16 sps:$4 sm:$0xff]  }
 0x71a   : > { %9822 = vmatpush1.bf16.msra.mxu0 %v22958_v56  ;;  %v23021_v56 = vld [vmem:[#allocation13 + $0xa88] ss:$16 sps:$4 sm:$0xff]  }
 0x71b   : > { %9908 = vmatpush1.bf16.msra.mxu1 %v22961_v1  ;;  %9823 = vmatprep.subr.bf16.mxu0 %v22966_v25  ;;  %v23026_v1 = vld [vmem:[#allocation13 + $0xaa4] ss:$16 sps:$4 sm:$0xff]   ;;  %v23029_v25 = vld [vmem:[#allocation13 + $0xaac] ss:$16 sps:$4 sm:$0xff]  }
 0x71c   : > { %9909 = vmatprep.subr.bf16.mxu1 %v22969_v20  ;;  %v23024_v20 = vld [vmem:[#allocation13 + $0xaa0] ss:$16 sps:$4 sm:$0xff]  }
 0x71e   : > { %9824 = vmatpush1.bf16.msra.mxu0 %v22964_v37  ;;  %v23027_v37 = vld [vmem:[#allocation13 + $0xaa8] ss:$16 sps:$4 sm:$0xff]  }
 0x71f   : > { %9910 = vmatpush1.bf16.msra.mxu1 %v22967_v18  ;;  %9825 = vmatprep.subr.bf16.mxu0 %v22972_v41  ;;  %v23032_v18 = vld [vmem:[#allocation13 + $0xac4] ss:$16 sps:$4 sm:$0xff]   ;;  %v23035_v41 = vld [vmem:[#allocation13 + $0xacc] ss:$16 sps:$4 sm:$0xff]  }
 0x720   : > { %9911 = vmatprep.subr.bf16.mxu1 %v22975_v16  ;;  %v23030_v16 = vld [vmem:[#allocation13 + $0xac0] ss:$16 sps:$4 sm:$0xff]  }
 0x722   : > { %9826 = vmatpush1.bf16.msra.mxu0 %v22970_v40  ;;  %v23033_v40 = vld [vmem:[#allocation13 + $0xac8] ss:$16 sps:$4 sm:$0xff]  }
 0x723   : > { %9912 = vmatpush1.bf16.msra.mxu1 %v22973_v58  ;;  %9827 = vmatprep.subr.bf16.mxu0 %v22978_v8  ;;  %v23038_v58 = vld [vmem:[#allocation13 + $0xae4] ss:$16 sps:$4 sm:$0xff]   ;;  %v23041_v8 = vld [vmem:[#allocation13 + $0xaec] ss:$16 sps:$4 sm:$0xff]  }
 0x724   : > { %9913 = vmatprep.subr.bf16.mxu1 %v22981_v29  ;;  %v23036_v29 = vld [vmem:[#allocation13 + $0xae0] ss:$16 sps:$4 sm:$0xff]  }
 0x726   : > { %9828 = vmatpush1.bf16.msra.mxu0 %v22976_v61  ;;  %v23039_v61 = vld [vmem:[#allocation13 + $0xae8] ss:$16 sps:$4 sm:$0xff]  }
 0x727   : > { %9914 = vmatpush1.bf16.msra.mxu1 %v22979_v52  ;;  %9829 = vmatprep.subr.bf16.mxu0 %v22984_v43  ;;  %v23044_v52 = vld [vmem:[#allocation13 + $0xb04] ss:$16 sps:$4 sm:$0xff]   ;;  %v23047_v43 = vld [vmem:[#allocation13 + $0xb0c] ss:$16 sps:$4 sm:$0xff]  }
 0x728   : > { %9915 = vmatprep.subr.bf16.mxu1 %v22987_v48  ;;  %v23042_v48 = vld [vmem:[#allocation13 + $0xb00] ss:$16 sps:$4 sm:$0xff]  }
 0x72a   : > { %9830 = vmatpush1.bf16.msra.mxu0 %v22982_v60  ;;  %v23045_v60 = vld [vmem:[#allocation13 + $0xb08] ss:$16 sps:$4 sm:$0xff]  }
 0x72b   : > { %9916 = vmatpush1.bf16.msra.mxu1 %v22985_v14  ;;  %9831 = vmatprep.subr.bf16.mxu0 %v22990_v49  ;;  %v23050_v14 = vld [vmem:[#allocation13 + $0xb24] ss:$16 sps:$4 sm:$0xff]   ;;  %v23053_v49 = vld [vmem:[#allocation13 + $0xb2c] ss:$16 sps:$4 sm:$0xff]  }
 0x72c   : > { %9917 = vmatprep.subr.bf16.mxu1 %v22993_v46  ;;  %v23048_v46 = vld [vmem:[#allocation13 + $0xb20] ss:$16 sps:$4 sm:$0xff]  }
 0x72e   : > { %9832 = vmatpush1.bf16.msra.mxu0 %v22988_v27  ;;  %v23051_v27 = vld [vmem:[#allocation13 + $0xb28] ss:$16 sps:$4 sm:$0xff]  }
 0x72f   : > { %9918 = vmatpush1.bf16.msra.mxu1 %v22991_v51  ;;  %9844 = vmatprep.subr.bf16.mxu0 %v22996_v12  ;;  %v23056_v51 = vld [vmem:[#allocation13 + $0xb44] ss:$16 sps:$4 sm:$0xff]   ;;  %v23059_v12 = vld [vmem:[#allocation13 + $0xb4c] ss:$16 sps:$4 sm:$0xff]  }
 0x730   : > { %9930 = vmatprep.subr.bf16.mxu1 %v22999_v59  ;;  %v23054_v59 = vld [vmem:[#allocation13 + $0xb40] ss:$16 sps:$4 sm:$0xff]  }
 0x731   : > { %9834 = vmatmul.mubr.bf16.vlgmr.msra.gmra.mrb[36].mxu0 %v9153_v30 }
 0x732   : > { %9920 = vmatmul.mubr.bf16.vlgmr.msra.gmra.mrb[36].mxu1 %v9153_v30  ;;  %9845 = vmatpush1.bf16.msra.mxu0 %v22994_v63  ;;  %v23057_v63 = vld [vmem:[#allocation13 + $0xb48] ss:$16 sps:$4 sm:$0xff]   ;;  %v23062_v30 = vld [vmem:[#allocation13 + $0xb64] ss:$16 sps:$4 sm:$0xff]  }
 0x733   : > { %9876 = vmatprep.mubr.bf16.mxu0 %v9156_v34  ;;  %9931 = vmatpush1.bf16.msra.mxu1 %v22997_v2  ;;  %v23065_v2 = vld [vmem:[#allocation13 + $0xb6c] ss:$16 sps:$4 sm:$0xff]  }
 0x734   : > { %9962 = vmatprep.mubr.bf16.mxu1 %v9156_v34  ;;  %9846 = vmatprep.subr.bf16.mxu0 %v23002_v38  ;;  %v23060_v38 = vld [vmem:[#allocation13 + $0xb60] ss:$16 sps:$4 sm:$0xff]   ;;  %v23063_v34 = vld [vmem:[#allocation13 + $0xb68] ss:$16 sps:$4 sm:$0xff]  }
 0x735   : > { %9932 = vmatprep.subr.bf16.mxu1 %v23005_v0  ;;  %v23068_v0 = vld [vmem:[#allocation13 + $0xb84] ss:$16 sps:$4 sm:$0xff]  }
 0x736   : > { %9847 = vmatpush1.bf16.msra.mxu0 %v23000_v5  ;;  %v23071_v5 = vld [vmem:[#allocation13 + $0xb8c] ss:$16 sps:$4 sm:$0xff]  }
 0x737   : > { %9933 = vmatpush1.bf16.msra.mxu1 %v23003_v55  ;;  %9848 = vmatprep.subr.bf16.mxu0 %v23008_v9  ;;  %v23066_v55 = vld [vmem:[#allocation13 + $0xb80] ss:$16 sps:$4 sm:$0xff]   ;;  %v23069_v9 = vld [vmem:[#allocation13 + $0xb88] ss:$16 sps:$4 sm:$0xff]  }
 0x738   : > { %9934 = vmatprep.subr.bf16.mxu1 %v23011_v45  ;;  %v23074_v45 = vld [vmem:[#allocation13 + $0xba4] ss:$16 sps:$4 sm:$0xff]  }
 0x73a   : > { %9849 = vmatpush1.bf16.msra.mxu0 %v23006_v15  ;;  %v23077_v15 = vld [vmem:[#allocation13 + $0xbac] ss:$16 sps:$4 sm:$0xff]  }
 0x73b   : > { %9935 = vmatpush1.bf16.msra.mxu1 %v23009_v50  ;;  %9850 = vmatprep.subr.bf16.mxu0 %v23014_v6  ;;  %v23072_v50 = vld [vmem:[#allocation13 + $0xba0] ss:$16 sps:$4 sm:$0xff]   ;;  %v23075_v6 = vld [vmem:[#allocation13 + $0xba8] ss:$16 sps:$4 sm:$0xff]  }
 0x73c   : > { %9936 = vmatprep.subr.bf16.mxu1 %v23017_v19  ;;  %v23080_v19 = vld [vmem:[#allocation13 + $0xbc4] ss:$16 sps:$4 sm:$0xff]  }
 0x73e   : > { %9851 = vmatpush1.bf16.msra.mxu0 %v23012_v21  ;;  %v23083_v21 = vld [vmem:[#allocation13 + $0xbcc] ss:$16 sps:$4 sm:$0xff]  }
 0x73f   : > { %9937 = vmatpush1.bf16.msra.mxu1 %v23015_v32  ;;  %9852 = vmatprep.subr.bf16.mxu0 %v23020_v31  ;;  %v23078_v32 = vld [vmem:[#allocation13 + $0xbc0] ss:$16 sps:$4 sm:$0xff]   ;;  %v23081_v31 = vld [vmem:[#allocation13 + $0xbc8] ss:$16 sps:$4 sm:$0xff]  }
 0x740   : > { %9938 = vmatprep.subr.bf16.mxu1 %v23023_v33  ;;  %v23086_v33 = vld [vmem:[#allocation13 + $0xbe4] ss:$16 sps:$4 sm:$0xff]  }
 0x742   : > { %9853 = vmatpush1.bf16.msra.mxu0 %v23018_v36  ;;  %v23089_v36 = vld [vmem:[#allocation13 + $0xbec] ss:$16 sps:$4 sm:$0xff]  }
 0x743   : > { %9939 = vmatpush1.bf16.msra.mxu1 %v23021_v56  ;;  %9854 = vmatprep.subr.bf16.mxu0 %v23026_v1  ;;  %v23084_v56 = vld [vmem:[#allocation13 + $0xbe0] ss:$16 sps:$4 sm:$0xff]   ;;  %v23087_v1 = vld [vmem:[#allocation13 + $0xbe8] ss:$16 sps:$4 sm:$0xff]  }
 0x744   : > { %9940 = vmatprep.subr.bf16.mxu1 %v23029_v25  ;;  %v23092_v25 = vld [vmem:[#allocation13 + $0xc04] ss:$16 sps:$4 sm:$0xff]  }
 0x746   : > { %9855 = vmatpush1.bf16.msra.mxu0 %v23024_v20  ;;  %v23095_v20 = vld [vmem:[#allocation13 + $0xc0c] ss:$16 sps:$4 sm:$0xff]  }
 0x747   : > { %9941 = vmatpush1.bf16.msra.mxu1 %v23027_v37  ;;  %9856 = vmatprep.subr.bf16.mxu0 %v23032_v18  ;;  %v23090_v37 = vld [vmem:[#allocation13 + $0xc00] ss:$16 sps:$4 sm:$0xff]   ;;  %v9155_v18 = vrot.slane %v26156_v3, 3 }
 0x748   : > { %9942 = vmatprep.subr.bf16.mxu1 %v23035_v41  ;;  %v23093_v41 = vld [vmem:[#allocation13 + $0xc08] ss:$16 sps:$4 sm:$0xff]  }
 0x74a   : > { %9857 = vmatpush1.bf16.msra.mxu0 %v23030_v16  ;;  %v23098_v16 = vld [vmem:[#allocation13 + $0xc24] ss:$16 sps:$4 sm:$0xff]  }
 0x74b   : > { %9943 = vmatpush1.bf16.msra.mxu1 %v23033_v40  ;;  %9858 = vmatprep.subr.bf16.mxu0 %v23038_v58  ;;  %v23101_v40 = vld [vmem:[#allocation13 + $0xc2c] ss:$16 sps:$4 sm:$0xff]   ;;  %v23096_v58 = vld [vmem:[#allocation13 + $0xc20] ss:$16 sps:$4 sm:$0xff]  }
 0x74c   : > { %9944 = vmatprep.subr.bf16.mxu1 %v23041_v8  ;;  %v23099_v8 = vld [vmem:[#allocation13 + $0xc28] ss:$16 sps:$4 sm:$0xff]  }
 0x74e   : > { %9859 = vmatpush1.bf16.msra.mxu0 %v23036_v29  ;;  %v23104_v29 = vld [vmem:[#allocation13 + $0xc44] ss:$16 sps:$4 sm:$0xff]  }
 0x74f   : > { %9945 = vmatpush1.bf16.msra.mxu1 %v23039_v61  ;;  %9860 = vmatprep.subr.bf16.mxu0 %v23044_v52  ;;  %v23107_v61 = vld [vmem:[#allocation13 + $0xc4c] ss:$16 sps:$4 sm:$0xff]   ;;  %v23102_v52 = vld [vmem:[#allocation13 + $0xc40] ss:$16 sps:$4 sm:$0xff]  }
 0x750   : > { %9946 = vmatprep.subr.bf16.mxu1 %v23047_v43  ;;  %v23105_v43 = vld [vmem:[#allocation13 + $0xc48] ss:$16 sps:$4 sm:$0xff]  }
 0x752   : > { %9861 = vmatpush1.bf16.msra.mxu0 %v23042_v48  ;;  %v23110_v48 = vld [vmem:[#allocation13 + $0xc64] ss:$16 sps:$4 sm:$0xff]  }
 0x753   : > { %9947 = vmatpush1.bf16.msra.mxu1 %v23045_v60  ;;  %9862 = vmatprep.subr.bf16.mxu0 %v23050_v14  ;;  %v23113_v60 = vld [vmem:[#allocation13 + $0xc6c] ss:$16 sps:$4 sm:$0xff]   ;;  %v23108_v14 = vld [vmem:[#allocation13 + $0xc60] ss:$16 sps:$4 sm:$0xff]  }
 0x754   : > { %9948 = vmatprep.subr.bf16.mxu1 %v23053_v49  ;;  %v23111_v49 = vld [vmem:[#allocation13 + $0xc68] ss:$16 sps:$4 sm:$0xff]  }
 0x756   : > { %9863 = vmatpush1.bf16.msra.mxu0 %v23048_v46  ;;  %v23116_v46 = vld [vmem:[#allocation13 + $0xc84] ss:$16 sps:$4 sm:$0xff]  }
 0x757   : > { %9949 = vmatpush1.bf16.msra.mxu1 %v23051_v27  ;;  %9864 = vmatprep.subr.bf16.mxu0 %v23056_v51  ;;  %v23119_v27 = vld [vmem:[#allocation13 + $0xc8c] ss:$16 sps:$4 sm:$0xff]   ;;  %v23117_v51 = vld [vmem:[#allocation13 + $0xc88] ss:$16 sps:$4 sm:$0xff]  }
 0x758   : > { %9950 = vmatprep.subr.bf16.mxu1 %v23059_v12  ;;  %v23122_v12 = vld [vmem:[#allocation13 + $0xca4] ss:$16 sps:$4 sm:$0xff]  }
 0x75a   : > { %9865 = vmatpush1.bf16.msra.mxu0 %v23054_v59  ;;  %v23125_v59 = vld [vmem:[#allocation13 + $0xcac] ss:$16 sps:$4 sm:$0xff]  }
 0x75b   : > { %9951 = vmatpush1.bf16.msra.mxu1 %v23057_v63  ;;  %9866 = vmatprep.subr.bf16.mxu0 %v23062_v30  ;;  %v23120_v63 = vld [vmem:[#allocation13 + $0xca0] ss:$16 sps:$4 sm:$0xff]   ;;  %v23123_v30 = vld [vmem:[#allocation13 + $0xca8] ss:$16 sps:$4 sm:$0xff]  }
 0x75c   : > { %9952 = vmatprep.subr.bf16.mxu1 %v23065_v2  ;;  %v23128_v2 = vld [vmem:[#allocation13 + $0xcc4] ss:$16 sps:$4 sm:$0xff]  }
 0x75e   : > { %9867 = vmatpush1.bf16.msra.mxu0 %v23060_v38  ;;  %v23131_v38 = vld [vmem:[#allocation13 + $0xccc] ss:$16 sps:$4 sm:$0xff]  }
 0x75f   : > { %9953 = vmatpush1.bf16.msra.mxu1 %v23063_v34  ;;  %9868 = vmatprep.subr.bf16.mxu0 %v23068_v0  ;;  %v23126_v34 = vld [vmem:[#allocation13 + $0xcc0] ss:$16 sps:$4 sm:$0xff]   ;;  %v23129_v0 = vld [vmem:[#allocation13 + $0xcc8] ss:$16 sps:$4 sm:$0xff]  }
 0x760   : > { %9954 = vmatprep.subr.bf16.mxu1 %v23071_v5  ;;  %v23134_v5 = vld [vmem:[#allocation13 + $0xce4] ss:$16 sps:$4 sm:$0xff]  }
 0x762   : > { %9869 = vmatpush1.bf16.msra.mxu0 %v23066_v55  ;;  %v23137_v55 = vld [vmem:[#allocation13 + $0xcec] ss:$16 sps:$4 sm:$0xff]  }
 0x763   : > { %9955 = vmatpush1.bf16.msra.mxu1 %v23069_v9  ;;  %9870 = vmatprep.subr.bf16.mxu0 %v23074_v45  ;;  %v23132_v9 = vld [vmem:[#allocation13 + $0xce0] ss:$16 sps:$4 sm:$0xff]   ;;  %v23135_v45 = vld [vmem:[#allocation13 + $0xce8] ss:$16 sps:$4 sm:$0xff]  }
 0x764   : > { %9956 = vmatprep.subr.bf16.mxu1 %v23077_v15  ;;  %v23140_v15 = vld [vmem:[#allocation13 + $0xd04] ss:$16 sps:$4 sm:$0xff]  }
 0x766   : > { %9871 = vmatpush1.bf16.msra.mxu0 %v23072_v50  ;;  %v23143_v50 = vld [vmem:[#allocation13 + $0xd0c] ss:$16 sps:$4 sm:$0xff]  }
 0x767   : > { %9957 = vmatpush1.bf16.msra.mxu1 %v23075_v6  ;;  %9872 = vmatprep.subr.bf16.mxu0 %v23080_v19  ;;  %v23138_v6 = vld [vmem:[#allocation13 + $0xd00] ss:$16 sps:$4 sm:$0xff]   ;;  %v23141_v19 = vld [vmem:[#allocation13 + $0xd08] ss:$16 sps:$4 sm:$0xff]  }
 0x768   : > { %9958 = vmatprep.subr.bf16.mxu1 %v23083_v21  ;;  %v23146_v21 = vld [vmem:[#allocation13 + $0xd24] ss:$16 sps:$4 sm:$0xff]  }
 0x76a   : > { %9873 = vmatpush1.bf16.msra.mxu0 %v23078_v32  ;;  %v23149_v32 = vld [vmem:[#allocation13 + $0xd2c] ss:$16 sps:$4 sm:$0xff]  }
 0x76b   : > { %9959 = vmatpush1.bf16.msra.mxu1 %v23081_v31  ;;  %9874 = vmatprep.subr.bf16.mxu0 %v23086_v33  ;;  %v23144_v31 = vld [vmem:[#allocation13 + $0xd20] ss:$16 sps:$4 sm:$0xff]   ;;  %v23147_v33 = vld [vmem:[#allocation13 + $0xd28] ss:$16 sps:$4 sm:$0xff]  }
 0x76c   : > { %9960 = vmatprep.subr.bf16.mxu1 %v23089_v36  ;;  %v23152_v36 = vld [vmem:[#allocation13 + $0xd44] ss:$16 sps:$4 sm:$0xff]  }
 0x76e   : > { %9875 = vmatpush1.bf16.msra.mxu0 %v23084_v56  ;;  %v23155_v56 = vld [vmem:[#allocation13 + $0xd4c] ss:$16 sps:$4 sm:$0xff]  }
 0x76f   : > { %9961 = vmatpush1.bf16.msra.mxu1 %v23087_v1  ;;  %10803 = vmatprep.subr.bf16.mxu0 %v23092_v25  ;;  %v23150_v1 = vld [vmem:[#allocation13 + $0xd40] ss:$16 sps:$4 sm:$0xff]   ;;  %v23153_v25 = vld [vmem:[#allocation13 + $0xd48] ss:$16 sps:$4 sm:$0xff]  }
 0x770   : > { %10889 = vmatprep.subr.bf16.mxu1 %v23095_v20  ;;  %v23158_v20 = vld [vmem:[#allocation13 + $0xd64] ss:$16 sps:$4 sm:$0xff]  }
 0x771   : > { %9877 = vmatmul.mubr.bf16.vlgmr.msra.gmra.mrb[36].mxu0 %v9155_v18 }
 0x772   : > { %9963 = vmatmul.mubr.bf16.vlgmr.msra.gmra.mrb[36].mxu1 %v9155_v18  ;;  %10804 = vmatpush1.bf16.msra.mxu0 %v23090_v37  ;;  %v23161_v37 = vld [vmem:[#allocation13 + $0xd6c] ss:$16 sps:$4 sm:$0xff]   ;;  %v23156_v18 = vld [vmem:[#allocation13 + $0xd60] ss:$16 sps:$4 sm:$0xff]  }
 0x773   : > { %10835 = vmatprep.mubr.bf16.mxu0 %v26219_v28  ;;  %10890 = vmatpush1.bf16.msra.mxu1 %v23093_v41  ;;  %v23159_v41 = vld [vmem:[#allocation13 + $0xd68] ss:$16 sps:$4 sm:$0xff]  }
 0x774   : > { %10921 = vmatprep.mubr.bf16.mxu1 %v26219_v28  ;;  %10805 = vmatprep.subr.bf16.mxu0 %v23098_v16  ;;  %v23114_v28 = vld [vmem:[#allocation13 + $0xc80] ss:$16 sps:$4 sm:$0xff]   ;;  %v23164_v16 = vld [vmem:[#allocation13 + $0xd84] ss:$16 sps:$4 sm:$0xff]  }
 0x775   : > { %10891 = vmatprep.subr.bf16.mxu1 %v23101_v40  ;;  %v23167_v40 = vld [vmem:[#allocation13 + $0xd8c] ss:$16 sps:$4 sm:$0xff]  }
 0x776   : > { %10806 = vmatpush1.bf16.msra.mxu0 %v23096_v58  ;;  %v23162_v58 = vld [vmem:[#allocation13 + $0xd80] ss:$16 sps:$4 sm:$0xff]  }
 0x777   : > { %10892 = vmatpush1.bf16.msra.mxu1 %v23099_v8  ;;  %10807 = vmatprep.subr.bf16.mxu0 %v23104_v29  ;;  %v23165_v8 = vld [vmem:[#allocation13 + $0xd88] ss:$16 sps:$4 sm:$0xff]   ;;  %v23170_v29 = vld [vmem:[#allocation13 + $0xda4] ss:$16 sps:$4 sm:$0xff]  }
 0x778   : > { %10893 = vmatprep.subr.bf16.mxu1 %v23107_v61  ;;  %v23173_v61 = vld [vmem:[#allocation13 + $0xdac] ss:$16 sps:$4 sm:$0xff]  }
 0x77a   : > { %10808 = vmatpush1.bf16.msra.mxu0 %v23102_v52  ;;  %v23168_v52 = vld [vmem:[#allocation13 + $0xda0] ss:$16 sps:$4 sm:$0xff]  }
 0x77b   : > { %10894 = vmatpush1.bf16.msra.mxu1 %v23105_v43  ;;  %10809 = vmatprep.subr.bf16.mxu0 %v23110_v48  ;;  %v23171_v43 = vld [vmem:[#allocation13 + $0xda8] ss:$16 sps:$4 sm:$0xff]   ;;  %v23176_v48 = vld [vmem:[#allocation13 + $0xdc4] ss:$16 sps:$4 sm:$0xff]  }
 0x77c   : > { %10895 = vmatprep.subr.bf16.mxu1 %v23113_v60  ;;  %v23179_v60 = vld [vmem:[#allocation13 + $0xdcc] ss:$16 sps:$4 sm:$0xff]  }
 0x77e   : > { %10810 = vmatpush1.bf16.msra.mxu0 %v23108_v14  ;;  %v23174_v14 = vld [vmem:[#allocation13 + $0xdc0] ss:$16 sps:$4 sm:$0xff]  }
 0x77f   : > { %10896 = vmatpush1.bf16.msra.mxu1 %v23111_v49  ;;  %10811 = vmatprep.subr.bf16.mxu0 %v23116_v46  ;;  %v23177_v49 = vld [vmem:[#allocation13 + $0xdc8] ss:$16 sps:$4 sm:$0xff]   ;;  %v23182_v46 = vld [vmem:[#allocation13 + $0xde4] ss:$16 sps:$4 sm:$0xff]  }
 0x780   : > { %10897 = vmatprep.subr.bf16.mxu1 %v23119_v27  ;;  %v23185_v27 = vld [vmem:[#allocation13 + $0xdec] ss:$16 sps:$4 sm:$0xff]  }
 0x782   : > { %10812 = vmatpush1.bf16.msra.mxu0 %v23114_v28  ;;  %v23180_v28 = vld [vmem:[#allocation13 + $0xde0] ss:$16 sps:$4 sm:$0xff]  }
 0x783   : > { %10898 = vmatpush1.bf16.msra.mxu1 %v23117_v51  ;;  %10813 = vmatprep.subr.bf16.mxu0 %v23122_v12  ;;  %v23183_v51 = vld [vmem:[#allocation13 + $0xde8] ss:$16 sps:$4 sm:$0xff]   ;;  %v23188_v12 = vld [vmem:[#allocation13 + $0xe04] ss:$16 sps:$4 sm:$0xff]  }
 0x784   : > { %10899 = vmatprep.subr.bf16.mxu1 %v23125_v59  ;;  %v23191_v59 = vld [vmem:[#allocation13 + $0xe0c] ss:$16 sps:$4 sm:$0xff]  }
 0x786   : > { %10814 = vmatpush1.bf16.msra.mxu0 %v23120_v63  ;;  %v23186_v63 = vld [vmem:[#allocation13 + $0xe00] ss:$16 sps:$4 sm:$0xff]  }
 0x787   : > { %10900 = vmatpush1.bf16.msra.mxu1 %v23123_v30  ;;  %10815 = vmatprep.subr.bf16.mxu0 %v23128_v2  ;;  %v23189_v30 = vld [vmem:[#allocation13 + $0xe08] ss:$16 sps:$4 sm:$0xff]   ;;  %v23194_v2 = vld [vmem:[#allocation13 + $0xe24] ss:$16 sps:$4 sm:$0xff]  }
 0x788   : > { %10901 = vmatprep.subr.bf16.mxu1 %v23131_v38  ;;  %v23197_v38 = vld [vmem:[#allocation13 + $0xe2c] ss:$16 sps:$4 sm:$0xff]  }
 0x78a   : > { %10816 = vmatpush1.bf16.msra.mxu0 %v23126_v34  ;;  %v23192_v34 = vld [vmem:[#allocation13 + $0xe20] ss:$16 sps:$4 sm:$0xff]  }
 0x78b   : > { %10902 = vmatpush1.bf16.msra.mxu1 %v23129_v0  ;;  %10817 = vmatprep.subr.bf16.mxu0 %v23134_v5  ;;  %v23195_v0 = vld [vmem:[#allocation13 + $0xe28] ss:$16 sps:$4 sm:$0xff]   ;;  %v23200_v5 = vld [vmem:[#allocation13 + $0xe44] ss:$16 sps:$4 sm:$0xff]  }
 0x78c   : > { %10903 = vmatprep.subr.bf16.mxu1 %v23137_v55  ;;  %v23203_v55 = vld [vmem:[#allocation13 + $0xe4c] ss:$16 sps:$4 sm:$0xff]  }
 0x78e   : > { %10818 = vmatpush1.bf16.msra.mxu0 %v23132_v9  ;;  %v23198_v9 = vld [vmem:[#allocation13 + $0xe40] ss:$16 sps:$4 sm:$0xff]  }
 0x78f   : > { %10904 = vmatpush1.bf16.msra.mxu1 %v23135_v45  ;;  %10819 = vmatprep.subr.bf16.mxu0 %v23140_v15  ;;  %v23201_v45 = vld [vmem:[#allocation13 + $0xe48] ss:$16 sps:$4 sm:$0xff]   ;;  %v23206_v15 = vld [vmem:[#allocation13 + $0xe64] ss:$16 sps:$4 sm:$0xff]  }
 0x790   : > { %10905 = vmatprep.subr.bf16.mxu1 %v23143_v50  ;;  %v23204_v50 = vld [vmem:[#allocation13 + $0xe60] ss:$16 sps:$4 sm:$0xff]  }
 0x792   : > { %10820 = vmatpush1.bf16.msra.mxu0 %v23138_v6  ;;  %v23207_v6 = vld [vmem:[#allocation13 + $0xe68] ss:$16 sps:$4 sm:$0xff]  }
 0x793   : > { %10906 = vmatpush1.bf16.msra.mxu1 %v23141_v19  ;;  %10821 = vmatprep.subr.bf16.mxu0 %v23146_v21  ;;  %v23212_v19 = vld [vmem:[#allocation13 + $0xe84] ss:$16 sps:$4 sm:$0xff]   ;;  %v23215_v21 = vld [vmem:[#allocation13 + $0xe8c] ss:$16 sps:$4 sm:$0xff]  }
 0x794   : > { %10907 = vmatprep.subr.bf16.mxu1 %v23149_v32  ;;  %v23213_v32 = vld [vmem:[#allocation13 + $0xe88] ss:$16 sps:$4 sm:$0xff]  }
 0x796   : > { %10822 = vmatpush1.bf16.msra.mxu0 %v23144_v31  ;;  %v23218_v31 = vld [vmem:[#allocation13 + $0xea4] ss:$16 sps:$4 sm:$0xff]  }
 0x797   : > { %10908 = vmatpush1.bf16.msra.mxu1 %v23147_v33  ;;  %10823 = vmatprep.subr.bf16.mxu0 %v23152_v36  ;;  %v23221_v33 = vld [vmem:[#allocation13 + $0xeac] ss:$16 sps:$4 sm:$0xff]   ;;  %v23216_v36 = vld [vmem:[#allocation13 + $0xea0] ss:$16 sps:$4 sm:$0xff]  }
 0x798   : > { %10909 = vmatprep.subr.bf16.mxu1 %v23155_v56  ;;  %v23219_v56 = vld [vmem:[#allocation13 + $0xea8] ss:$16 sps:$4 sm:$0xff]  }
 0x79a   : > { %10824 = vmatpush1.bf16.msra.mxu0 %v23150_v1  ;;  %v23224_v1 = vld [vmem:[#allocation13 + $0xec4] ss:$16 sps:$4 sm:$0xff]  }
 0x79b   : > { %10910 = vmatpush1.bf16.msra.mxu1 %v23153_v25  ;;  %10825 = vmatprep.subr.bf16.mxu0 %v23158_v20  ;;  %v23227_v25 = vld [vmem:[#allocation13 + $0xecc] ss:$16 sps:$4 sm:$0xff]   ;;  %v23222_v20 = vld [vmem:[#allocation13 + $0xec0] ss:$16 sps:$4 sm:$0xff]  }
 0x79c   : > { %10911 = vmatprep.subr.bf16.mxu1 %v23161_v37  ;;  %v23225_v37 = vld [vmem:[#allocation13 + $0xec8] ss:$16 sps:$4 sm:$0xff]  }
 0x79e   : > { %10826 = vmatpush1.bf16.msra.mxu0 %v23156_v18  ;;  %v23230_v18 = vld [vmem:[#allocation13 + $0xee4] ss:$16 sps:$4 sm:$0xff]  }
 0x79f   : > { %10912 = vmatpush1.bf16.msra.mxu1 %v23159_v41  ;;  %10827 = vmatprep.subr.bf16.mxu0 %v23164_v16  ;;  %v23233_v41 = vld [vmem:[#allocation13 + $0xeec] ss:$16 sps:$4 sm:$0xff]   ;;  %v23228_v16 = vld [vmem:[#allocation13 + $0xee0] ss:$16 sps:$4 sm:$0xff]  }
 0x7a0   : > { %10913 = vmatprep.subr.bf16.mxu1 %v23167_v40  ;;  %v23231_v40 = vld [vmem:[#allocation13 + $0xee8] ss:$16 sps:$4 sm:$0xff]  }
 0x7a2   : > { %10828 = vmatpush1.bf16.msra.mxu0 %v23162_v58  ;;  %v23236_v58 = vld [vmem:[#allocation13 + $0xf04] ss:$16 sps:$4 sm:$0xff]  }
 0x7a3   : > { %10914 = vmatpush1.bf16.msra.mxu1 %v23165_v8  ;;  %10829 = vmatprep.subr.bf16.mxu0 %v23170_v29  ;;  %v23239_v8 = vld [vmem:[#allocation13 + $0xf0c] ss:$16 sps:$4 sm:$0xff]   ;;  %v23234_v29 = vld [vmem:[#allocation13 + $0xf00] ss:$16 sps:$4 sm:$0xff]  }
 0x7a4   : > { %10915 = vmatprep.subr.bf16.mxu1 %v23173_v61  ;;  %v23237_v61 = vld [vmem:[#allocation13 + $0xf08] ss:$16 sps:$4 sm:$0xff]  }
 0x7a6   : > { %10830 = vmatpush1.bf16.msra.mxu0 %v23168_v52  ;;  %v23242_v52 = vld [vmem:[#allocation13 + $0xf24] ss:$16 sps:$4 sm:$0xff]  }
 0x7a7   : > { %10916 = vmatpush1.bf16.msra.mxu1 %v23171_v43  ;;  %10831 = vmatprep.subr.bf16.mxu0 %v23176_v48  ;;  %v23245_v43 = vld [vmem:[#allocation13 + $0xf2c] ss:$16 sps:$4 sm:$0xff]   ;;  %v23240_v48 = vld [vmem:[#allocation13 + $0xf20] ss:$16 sps:$4 sm:$0xff]  }
 0x7a8   : > { %10917 = vmatprep.subr.bf16.mxu1 %v23179_v60  ;;  %v23243_v60 = vld [vmem:[#allocation13 + $0xf28] ss:$16 sps:$4 sm:$0xff]  }
 0x7aa   : > { %10832 = vmatpush1.bf16.msra.mxu0 %v23174_v14  ;;  %v23248_v14 = vld [vmem:[#allocation13 + $0xf44] ss:$16 sps:$4 sm:$0xff]  }
 0x7ab   : > { %10918 = vmatpush1.bf16.msra.mxu1 %v23177_v49  ;;  %10833 = vmatprep.subr.bf16.mxu0 %v23182_v46  ;;  %v23251_v49 = vld [vmem:[#allocation13 + $0xf4c] ss:$16 sps:$4 sm:$0xff]   ;;  %v23246_v46 = vld [vmem:[#allocation13 + $0xf40] ss:$16 sps:$4 sm:$0xff]  }
 0x7ac   : > { %10919 = vmatprep.subr.bf16.mxu1 %v23185_v27  ;;  %v23249_v27 = vld [vmem:[#allocation13 + $0xf48] ss:$16 sps:$4 sm:$0xff]  }
 0x7ae   : > { %10834 = vmatpush1.bf16.msra.mxu0 %v23180_v28  ;;  %v23254_v28 = vld [vmem:[#allocation13 + $0xf64] ss:$16 sps:$4 sm:$0xff]  }
 0x7af   : > { %10920 = vmatpush1.bf16.msra.mxu1 %v23183_v51  ;;  %10846 = vmatprep.subr.bf16.mxu0 %v23188_v12  ;;  %v23257_v51 = vld [vmem:[#allocation13 + $0xf6c] ss:$16 sps:$4 sm:$0xff]   ;;  %v23252_v12 = vld [vmem:[#allocation13 + $0xf60] ss:$16 sps:$4 sm:$0xff]  }
 0x7b0   : > { %10932 = vmatprep.subr.bf16.mxu1 %v23191_v59  ;;  %v23255_v59 = vld [vmem:[#allocation13 + $0xf68] ss:$16 sps:$4 sm:$0xff]  }
 0x7b1   : > { %10836 = vmatmul.mubr.bf16.vlgmr.msra.gmra.mrb[36].mxu0 %v26228_v53 }
 0x7b2   : > { %10922 = vmatmul.mubr.bf16.vlgmr.msra.gmra.mrb[36].mxu1 %v26228_v53  ;;  %10847 = vmatpush1.bf16.msra.mxu0 %v23186_v63  ;;  %v23209_v53 = vld [vmem:[#allocation13 + $0xe6c] ss:$16 sps:$4 sm:$0xff]   ;;  %v23260_v63 = vld [vmem:[#allocation13 + $0xf84] ss:$16 sps:$4 sm:$0xff]  }
 0x7b3   : > { %10878 = vmatprep.mubr.bf16.mxu0 %v26232_v62  ;;  %10933 = vmatpush1.bf16.msra.mxu1 %v23189_v30  ;;  %v23263_v30 = vld [vmem:[#allocation13 + $0xf8c] ss:$16 sps:$4 sm:$0xff]  }
 0x7b4   : > { %10964 = vmatprep.mubr.bf16.mxu1 %v26232_v62  ;;  %10848 = vmatprep.subr.bf16.mxu0 %v23194_v2  ;;  %v23210_v62 = vld [vmem:[#allocation13 + $0xe80] ss:$16 sps:$4 sm:$0xff]  }
 0x7b5   : > { %10934 = vmatprep.subr.bf16.mxu1 %v23197_v38  ;;  %v23258_v2 = vld [vmem:[#allocation13 + $0xf80] ss:$16 sps:$4 sm:$0xff]   ;;  %v23261_v38 = vld [vmem:[#allocation13 + $0xf88] ss:$16 sps:$4 sm:$0xff]  }
 0x7b6   : > { %10849 = vmatpush1.bf16.msra.mxu0 %v23192_v34  ;;  %v23266_v34 = vld [vmem:[#allocation13 + $0xfa4] ss:$16 sps:$4 sm:$0xff]  }
 0x7b7   : > { %10935 = vmatpush1.bf16.msra.mxu1 %v23195_v0  ;;  %10850 = vmatprep.subr.bf16.mxu0 %v23200_v5  ;;  %v23269_v0 = vld [vmem:[#allocation13 + $0xfac] ss:$16 sps:$4 sm:$0xff]   ;;  %v23264_v5 = vld [vmem:[#allocation13 + $0xfa0] ss:$16 sps:$4 sm:$0xff]  }
 0x7b8   : > { %10936 = vmatprep.subr.bf16.mxu1 %v23203_v55  ;;  %v23267_v55 = vld [vmem:[#allocation13 + $0xfa8] ss:$16 sps:$4 sm:$0xff]  }
 0x7ba   : > { %10851 = vmatpush1.bf16.msra.mxu0 %v23198_v9  ;;  %v23272_v9 = vld [vmem:[#allocation13 + $0xfc4] ss:$16 sps:$4 sm:$0xff]  }
 0x7bb   : > { %10937 = vmatpush1.bf16.msra.mxu1 %v23201_v45  ;;  %10852 = vmatprep.subr.bf16.mxu0 %v23206_v15  ;;  %v23275_v45 = vld [vmem:[#allocation13 + $0xfcc] ss:$16 sps:$4 sm:$0xff]   ;;  %v23270_v15 = vld [vmem:[#allocation13 + $0xfc0] ss:$16 sps:$4 sm:$0xff]  }
 0x7bc   : > { %10938 = vmatprep.subr.bf16.mxu1 %v23209_v53  ;;  %v23273_v53 = vld [vmem:[#allocation13 + $0xfc8] ss:$16 sps:$4 sm:$0xff]  }
 0x7be   : > { %10853 = vmatpush1.bf16.msra.mxu0 %v23204_v50  ;;  %v23278_v50 = vld [vmem:[#allocation13 + $0xfe4] ss:$16 sps:$4 sm:$0xff]  }
 0x7bf   : > { %10939 = vmatpush1.bf16.msra.mxu1 %v23207_v6  ;;  %10854 = vmatprep.subr.bf16.mxu0 %v23212_v19  ;;  %v23281_v6 = vld [vmem:[#allocation13 + $0xfec] ss:$16 sps:$4 sm:$0xff]   ;;  %v23276_v19 = vld [vmem:[#allocation13 + $0xfe0] ss:$16 sps:$4 sm:$0xff]  }
 0x7c0   : > { %10940 = vmatprep.subr.bf16.mxu1 %v23215_v21  ;;  %v23279_v21 = vld [vmem:[#allocation13 + $0xfe8] ss:$16 sps:$4 sm:$0xff]  }
 0x7c2   : > { %10855 = vmatpush1.bf16.msra.mxu0 %v23210_v62  ;;  %v23284_v62 = vld [vmem:[#allocation13 + $0x1004] ss:$16 sps:$4 sm:$0xff]  }
 0x7c3   : > { %10941 = vmatpush1.bf16.msra.mxu1 %v23213_v32  ;;  %10856 = vmatprep.subr.bf16.mxu0 %v23218_v31  ;;  %v23287_v32 = vld [vmem:[#allocation13 + $0x100c] ss:$16 sps:$4 sm:$0xff]   ;;  %v23282_v31 = vld [vmem:[#allocation13 + $0x1000] ss:$16 sps:$4 sm:$0xff]  }
 0x7c4   : > { %10942 = vmatprep.subr.bf16.mxu1 %v23221_v33  ;;  %v11121_v33 = vrot.slane %v26199_v47, 6 }
 0x7c6   : > { %10857 = vmatpush1.bf16.msra.mxu0 %v23216_v36  ;;  %v23285_v36 = vld [vmem:[#allocation13 + $0x1008] ss:$16 sps:$4 sm:$0xff]  }
 0x7c7   : > { %10943 = vmatpush1.bf16.msra.mxu1 %v23219_v56  ;;  %10858 = vmatprep.subr.bf16.mxu0 %v23224_v1  ;;  %v11120_v56 = vrot.slane %v26158_v54, 6  ;;  %v23290_v1 = vld [vmem:[#allocation13 + $0x1024] ss:$16 sps:$4 sm:$0xff]   ;;  %v23294_v54 = vld [vmem:[#allocation13 + $0x1040] ss:$16 sps:$4 sm:$0xff]  }
 0x7c8   : > { %10944 = vmatprep.subr.bf16.mxu1 %v23227_v25  ;;  %v23293_v25 = vld [vmem:[#allocation13 + $0x102c] ss:$16 sps:$4 sm:$0xff]  }
 0x7ca   : > { %10859 = vmatpush1.bf16.msra.mxu0 %v23222_v20  ;;  %v11122_v20 = vsel %vm11116_vm9, %v11120_v56, %v11121_v33  ;;  %v23356_v33 = vld [vmem:[#allocation13 + $0x1184] ss:$16 sps:$4 sm:$0xff]   ;;  %v23354_v56 = vld [vmem:[#allocation13 + $0x1180] ss:$16 sps:$4 sm:$0xff]  }
 0x7cb   : > { %10945 = vmatpush1.bf16.msra.mxu1 %v23225_v37  ;;  %10860 = vmatprep.subr.bf16.mxu0 %v23230_v18  ;;  %v23288_v37 = vld [vmem:[#allocation13 + $0x1020] ss:$16 sps:$4 sm:$0xff]   ;;  %v23291_v18 = vld [vmem:[#allocation13 + $0x1028] ss:$16 sps:$4 sm:$0xff]  }
 0x7cc   : > { %10946 = vmatprep.subr.bf16.mxu1 %v23233_v41  ;;  %v23296_v41 = vld [vmem:[#allocation13 + $0x1044] ss:$16 sps:$4 sm:$0xff]  }
 0x7ce   : > { %10861 = vmatpush1.bf16.msra.mxu0 %v23228_v16  ;;  %v23299_v16 = vld [vmem:[#allocation13 + $0x104c] ss:$16 sps:$4 sm:$0xff]  }
 0x7cf   : > { %10947 = vmatpush1.bf16.msra.mxu1 %v23231_v40  ;;  %10862 = vmatprep.subr.bf16.mxu0 %v23236_v58  ;;  %v23297_v40 = vld [vmem:[#allocation13 + $0x1048] ss:$16 sps:$4 sm:$0xff]   ;;  %v23302_v58 = vld [vmem:[#allocation13 + $0x1064] ss:$16 sps:$4 sm:$0xff]  }
 0x7d0   : > { %10948 = vmatprep.subr.bf16.mxu1 %v23239_v8  ;;  %v23300_v8 = vld [vmem:[#allocation13 + $0x1060] ss:$16 sps:$4 sm:$0xff]  }
 0x7d2   : > { %10863 = vmatpush1.bf16.msra.mxu0 %v23234_v29  ;;  %v23303_v29 = vld [vmem:[#allocation13 + $0x1068] ss:$16 sps:$4 sm:$0xff]  }
 0x7d3   : > { %10949 = vmatpush1.bf16.msra.mxu1 %v23237_v61  ;;  %10864 = vmatprep.subr.bf16.mxu0 %v23242_v52  ;;  %v23308_v61 = vld [vmem:[#allocation13 + $0x1084] ss:$16 sps:$4 sm:$0xff]   ;;  %v23311_v52 = vld [vmem:[#allocation13 + $0x108c] ss:$16 sps:$4 sm:$0xff]  }
 0x7d4   : > { %10950 = vmatprep.subr.bf16.mxu1 %v23245_v43  ;;  %v23306_v43 = vld [vmem:[#allocation13 + $0x1080] ss:$16 sps:$4 sm:$0xff]  }
 0x7d6   : > { %10865 = vmatpush1.bf16.msra.mxu0 %v23240_v48  ;;  %v23309_v48 = vld [vmem:[#allocation13 + $0x1088] ss:$16 sps:$4 sm:$0xff]  }
 0x7d7   : > { %10951 = vmatpush1.bf16.msra.mxu1 %v23243_v60  ;;  %10866 = vmatprep.subr.bf16.mxu0 %v23248_v14  ;;  %v23314_v60 = vld [vmem:[#allocation13 + $0x10a4] ss:$16 sps:$4 sm:$0xff]   ;;  %v23317_v14 = vld [vmem:[#allocation13 + $0x10ac] ss:$16 sps:$4 sm:$0xff]  }
 0x7d8   : > { %10952 = vmatprep.subr.bf16.mxu1 %v23251_v49  ;;  %v23312_v49 = vld [vmem:[#allocation13 + $0x10a0] ss:$16 sps:$4 sm:$0xff]  }
 0x7da   : > { %10867 = vmatpush1.bf16.msra.mxu0 %v23246_v46  ;;  %v23315_v46 = vld [vmem:[#allocation13 + $0x10a8] ss:$16 sps:$4 sm:$0xff]  }
 0x7db   : > { %10953 = vmatpush1.bf16.msra.mxu1 %v23249_v27  ;;  %10868 = vmatprep.subr.bf16.mxu0 %v23254_v28  ;;  %v23320_v27 = vld [vmem:[#allocation13 + $0x10c4] ss:$16 sps:$4 sm:$0xff]   ;;  %v23323_v28 = vld [vmem:[#allocation13 + $0x10cc] ss:$16 sps:$4 sm:$0xff]  }
 0x7dc   : > { %10954 = vmatprep.subr.bf16.mxu1 %v23257_v51  ;;  %v23318_v51 = vld [vmem:[#allocation13 + $0x10c0] ss:$16 sps:$4 sm:$0xff]  }
 0x7de   : > { %10869 = vmatpush1.bf16.msra.mxu0 %v23252_v12  ;;  %v23321_v12 = vld [vmem:[#allocation13 + $0x10c8] ss:$16 sps:$4 sm:$0xff]  }
 0x7df   : > { %10955 = vmatpush1.bf16.msra.mxu1 %v23255_v59  ;;  %10870 = vmatprep.subr.bf16.mxu0 %v23260_v63  ;;  %v23326_v59 = vld [vmem:[#allocation13 + $0x10e4] ss:$16 sps:$4 sm:$0xff]   ;;  %v23329_v63 = vld [vmem:[#allocation13 + $0x10ec] ss:$16 sps:$4 sm:$0xff]  }
 0x7e0   : > { %10956 = vmatprep.subr.bf16.mxu1 %v23263_v30  ;;  %v23324_v30 = vld [vmem:[#allocation13 + $0x10e0] ss:$16 sps:$4 sm:$0xff]  }
 0x7e2   : > { %10871 = vmatpush1.bf16.msra.mxu0 %v23258_v2  ;;  %v23327_v2 = vld [vmem:[#allocation13 + $0x10e8] ss:$16 sps:$4 sm:$0xff]  }
 0x7e3   : > { %10957 = vmatpush1.bf16.msra.mxu1 %v23261_v38  ;;  %10872 = vmatprep.subr.bf16.mxu0 %v23266_v34  ;;  %v23332_v38 = vld [vmem:[#allocation13 + $0x1104] ss:$16 sps:$4 sm:$0xff]   ;;  %v23335_v34 = vld [vmem:[#allocation13 + $0x110c] ss:$16 sps:$4 sm:$0xff]  }
 0x7e4   : > { %10958 = vmatprep.subr.bf16.mxu1 %v23269_v0  ;;  %v23330_v0 = vld [vmem:[#allocation13 + $0x1100] ss:$16 sps:$4 sm:$0xff]  }
 0x7e6   : > { %10873 = vmatpush1.bf16.msra.mxu0 %v23264_v5  ;;  %v23333_v5 = vld [vmem:[#allocation13 + $0x1108] ss:$16 sps:$4 sm:$0xff]  }
 0x7e7   : > { %10959 = vmatpush1.bf16.msra.mxu1 %v23267_v55  ;;  %10874 = vmatprep.subr.bf16.mxu0 %v23272_v9  ;;  %v23338_v55 = vld [vmem:[#allocation13 + $0x1124] ss:$16 sps:$4 sm:$0xff]   ;;  %v23341_v9 = vld [vmem:[#allocation13 + $0x112c] ss:$16 sps:$4 sm:$0xff]  }
 0x7e8   : > { %10960 = vmatprep.subr.bf16.mxu1 %v23275_v45  ;;  %v23336_v45 = vld [vmem:[#allocation13 + $0x1120] ss:$16 sps:$4 sm:$0xff]  }
 0x7ea   : > { %10875 = vmatpush1.bf16.msra.mxu0 %v23270_v15  ;;  %v23339_v15 = vld [vmem:[#allocation13 + $0x1128] ss:$16 sps:$4 sm:$0xff]  }
 0x7eb   : > { %10961 = vmatpush1.bf16.msra.mxu1 %v23273_v53  ;;  %10876 = vmatprep.subr.bf16.mxu0 %v23278_v50  ;;  %v23344_v53 = vld [vmem:[#allocation13 + $0x1144] ss:$16 sps:$4 sm:$0xff]   ;;  %v23347_v50 = vld [vmem:[#allocation13 + $0x114c] ss:$16 sps:$4 sm:$0xff]  }
 0x7ec   : > { %10962 = vmatprep.subr.bf16.mxu1 %v23281_v6  ;;  %v23342_v6 = vld [vmem:[#allocation13 + $0x1140] ss:$16 sps:$4 sm:$0xff]  }
 0x7ee   : > { %10877 = vmatpush1.bf16.msra.mxu0 %v23276_v19  ;;  %v23345_v19 = vld [vmem:[#allocation13 + $0x1148] ss:$16 sps:$4 sm:$0xff]  }
 0x7ef   : > { %10963 = vmatpush1.bf16.msra.mxu1 %v23279_v21  ;;  %11773 = vmatprep.subr.bf16.mxu0 %v23284_v62  ;;  %v23350_v21 = vld [vmem:[#allocation13 + $0x1164] ss:$16 sps:$4 sm:$0xff]   ;;  %v23353_v62 = vld [vmem:[#allocation13 + $0x116c] ss:$16 sps:$4 sm:$0xff]  }
 0x7f0   : > { %11859 = vmatprep.subr.bf16.mxu1 %v23287_v32  ;;  %v23348_v32 = vld [vmem:[#allocation13 + $0x1160] ss:$16 sps:$4 sm:$0xff]  }
 0x7f1   : > { %10879 = vmatmul.mubr.bf16.vlgmr.msra.gmra.mrb[36].mxu0 %v26238_v44 }
 0x7f2   : > { %10965 = vmatmul.mubr.bf16.vlgmr.msra.gmra.mrb[36].mxu1 %v26238_v44  ;;  %11774 = vmatpush1.bf16.msra.mxu0 %v23282_v31  ;;  %v23305_v44 = vld [vmem:[#allocation13 + $0x106c] ss:$16 sps:$4 sm:$0xff]   ;;  %v23351_v31 = vld [vmem:[#allocation13 + $0x1168] ss:$16 sps:$4 sm:$0xff]  }
 0x7f3   : > { %11805 = vmatprep.mubr.bf16.mxu0 %v11122_v20  ;;  %11860 = vmatpush1.bf16.msra.mxu1 %v23285_v36  ;;  %v23359_v36 = vld [vmem:[#allocation13 + $0x118c] ss:$16 sps:$4 sm:$0xff]  }
 0x7f4   : > { %11891 = vmatprep.mubr.bf16.mxu1 %v11122_v20  ;;  %11775 = vmatprep.subr.bf16.mxu0 %v23290_v1  ;;  %v23357_v1 = vld [vmem:[#allocation13 + $0x1188] ss:$16 sps:$4 sm:$0xff]   ;;  %v23365_v20 = vld [vmem:[#allocation13 + $0x11ac] ss:$16 sps:$4 sm:$0xff]  }
 0x7f5   : > { %11861 = vmatprep.subr.bf16.mxu1 %v23293_v25  ;;  %v23362_v25 = vld [vmem:[#allocation13 + $0x11a4] ss:$16 sps:$4 sm:$0xff]  }
 0x7f6   : > { %11776 = vmatpush1.bf16.msra.mxu0 %v23288_v37  ;;  %v23360_v37 = vld [vmem:[#allocation13 + $0x11a0] ss:$16 sps:$4 sm:$0xff]  }
 0x7f7   : > { %11862 = vmatpush1.bf16.msra.mxu1 %v23291_v18  ;;  %11777 = vmatprep.subr.bf16.mxu0 %v23296_v41  ;;  %v23363_v18 = vld [vmem:[#allocation13 + $0x11a8] ss:$16 sps:$4 sm:$0xff]   ;;  %v23368_v41 = vld [vmem:[#allocation13 + $0x11c4] ss:$16 sps:$4 sm:$0xff]  }
 0x7f8   : > { %11863 = vmatprep.subr.bf16.mxu1 %v23299_v16  ;;  %v23371_v16 = vld [vmem:[#allocation13 + $0x11cc] ss:$16 sps:$4 sm:$0xff]  }
 0x7fa   : > { %11778 = vmatpush1.bf16.msra.mxu0 %v23294_v54  ;;  %v23366_v54 = vld [vmem:[#allocation13 + $0x11c0] ss:$16 sps:$4 sm:$0xff]  }
 0x7fb   : > { %11864 = vmatpush1.bf16.msra.mxu1 %v23297_v40  ;;  %11779 = vmatprep.subr.bf16.mxu0 %v23302_v58  ;;  %v23369_v40 = vld [vmem:[#allocation13 + $0x11c8] ss:$16 sps:$4 sm:$0xff]   ;;  %v23374_v58 = vld [vmem:[#allocation13 + $0x11e4] ss:$16 sps:$4 sm:$0xff]  }
 0x7fc   : > { %11865 = vmatprep.subr.bf16.mxu1 %v23305_v44  ;;  %v23377_v44 = vld [vmem:[#allocation13 + $0x11ec] ss:$16 sps:$4 sm:$0xff]  }
 0x7fe   : > { %11780 = vmatpush1.bf16.msra.mxu0 %v23300_v8  ;;  %v23372_v8 = vld [vmem:[#allocation13 + $0x11e0] ss:$16 sps:$4 sm:$0xff]  }
 0x7ff   : > { %11866 = vmatpush1.bf16.msra.mxu1 %v23303_v29  ;;  %11781 = vmatprep.subr.bf16.mxu0 %v23308_v61  ;;  %v23375_v29 = vld [vmem:[#allocation13 + $0x11e8] ss:$16 sps:$4 sm:$0xff]   ;;  %v23380_v61 = vld [vmem:[#allocation13 + $0x1204] ss:$16 sps:$4 sm:$0xff]  }
 0x800   : > { %11867 = vmatprep.subr.bf16.mxu1 %v23311_v52  ;;  %v11118_v52 = vrot.slane %v26191_v42, 6 }
 0x802   : > { %11782 = vmatpush1.bf16.msra.mxu0 %v23306_v43  ;;  %v23383_v43 = vld [vmem:[#allocation13 + $0x120c] ss:$16 sps:$4 sm:$0xff]  }
 0x803   : > { %11868 = vmatpush1.bf16.msra.mxu1 %v23309_v48  ;;  %11783 = vmatprep.subr.bf16.mxu0 %v23314_v60  ;;  %v11117_v48 = vrot.slane %v26152_v57, 6  ;;  %v23378_v60 = vld [vmem:[#allocation13 + $0x1200] ss:$16 sps:$4 sm:$0xff]   ;;  %v23387_v57 = vld [vmem:[#allocation13 + $0x1228] ss:$16 sps:$4 sm:$0xff]  }
 0x804   : > { %11869 = vmatprep.subr.bf16.mxu1 %v23317_v14  ;;  %v11127_v14 = vrot.slane %v26202_v24, 6 }
 0x806   : > { %11784 = vmatpush1.bf16.msra.mxu0 %v23312_v49  ;;  %v23381_v49 = vld [vmem:[#allocation13 + $0x1208] ss:$16 sps:$4 sm:$0xff]  }
 0x807   : > { %11870 = vmatpush1.bf16.msra.mxu1 %v23315_v46  ;;  %11785 = vmatprep.subr.bf16.mxu0 %v23320_v27  ;;  %v11119_v46 = vsel %vm11116_vm9, %v11117_v48, %v11118_v52  ;;  %v11126_v27 = vrot.slane %v26160_v35, 6  ;;  %v23393_v35 = vld [vmem:[#allocation13 + $0x1248] ss:$16 sps:$4 sm:$0xff]   ;;  %v23449_v52 = vld [vmem:[#allocation13 + $0x136c] ss:$16 sps:$4 sm:$0xff]  }
 0x808   : > { %11871 = vmatprep.subr.bf16.mxu1 %v23323_v28  ;;  %v23386_v28 = vld [vmem:[#allocation13 + $0x1224] ss:$16 sps:$4 sm:$0xff]   ;;  %v23447_v48 = vld [vmem:[#allocation13 + $0x1368] ss:$16 sps:$4 sm:$0xff]  }
 0x80a   : > { %11786 = vmatpush1.bf16.msra.mxu0 %v23318_v51  ;;  %v23389_v51 = vld [vmem:[#allocation13 + $0x122c] ss:$16 sps:$4 sm:$0xff]  }
 0x80b   : > { %11872 = vmatpush1.bf16.msra.mxu1 %v23321_v12  ;;  %11787 = vmatprep.subr.bf16.mxu0 %v23326_v59  ;;  %v11128_v12 = vsel %vm11116_vm9, %v11126_v27, %v11127_v14  ;;  %v23384_v59 = vld [vmem:[#allocation13 + $0x1220] ss:$16 sps:$4 sm:$0xff]   ;;  %v23455_v14 = vld [vmem:[#allocation13 + $0x138c] ss:$16 sps:$4 sm:$0xff]   ;;  %v23458_v27 = vld [vmem:[#allocation13 + $0x13a4] ss:$16 sps:$4 sm:$0xff]  }
 0x80c   : > { %11873 = vmatprep.subr.bf16.mxu1 %v23329_v63  ;;  %v23392_v63 = vld [vmem:[#allocation13 + $0x1244] ss:$16 sps:$4 sm:$0xff]  }
 0x80e   : > { %11788 = vmatpush1.bf16.msra.mxu0 %v23324_v30  ;;  %v23395_v30 = vld [vmem:[#allocation13 + $0x124c] ss:$16 sps:$4 sm:$0xff]  }
 0x80f   : > { %11874 = vmatpush1.bf16.msra.mxu1 %v23327_v2  ;;  %11789 = vmatprep.subr.bf16.mxu0 %v23332_v38  ;;  %v23390_v2 = vld [vmem:[#allocation13 + $0x1240] ss:$16 sps:$4 sm:$0xff]   ;;  %v23398_v38 = vld [vmem:[#allocation13 + $0x1264] ss:$16 sps:$4 sm:$0xff]  }
 0x810   : > { %11875 = vmatprep.subr.bf16.mxu1 %v23335_v34  ;;  %v23401_v34 = vld [vmem:[#allocation13 + $0x126c] ss:$16 sps:$4 sm:$0xff]  }
 0x812   : > { %11790 = vmatpush1.bf16.msra.mxu0 %v23330_v0  ;;  %v23396_v0 = vld [vmem:[#allocation13 + $0x1260] ss:$16 sps:$4 sm:$0xff]  }
 0x813   : > { %11876 = vmatpush1.bf16.msra.mxu1 %v23333_v5  ;;  %11791 = vmatprep.subr.bf16.mxu0 %v23338_v55  ;;  %v23399_v5 = vld [vmem:[#allocation13 + $0x1268] ss:$16 sps:$4 sm:$0xff]   ;;  %v23404_v55 = vld [vmem:[#allocation13 + $0x1284] ss:$16 sps:$4 sm:$0xff]  }
 0x814   : > { %11877 = vmatprep.subr.bf16.mxu1 %v23341_v9  ;;  %v23407_v9 = vld [vmem:[#allocation13 + $0x128c] ss:$16 sps:$4 sm:$0xff]  }
 0x816   : > { %11792 = vmatpush1.bf16.msra.mxu0 %v23336_v45  ;;  %v23402_v45 = vld [vmem:[#allocation13 + $0x1280] ss:$16 sps:$4 sm:$0xff]  }
 0x817   : > { %11878 = vmatpush1.bf16.msra.mxu1 %v23339_v15  ;;  %11793 = vmatprep.subr.bf16.mxu0 %v23344_v53  ;;  %v23405_v15 = vld [vmem:[#allocation13 + $0x1288] ss:$16 sps:$4 sm:$0xff]   ;;  %v23410_v53 = vld [vmem:[#allocation13 + $0x12a4] ss:$16 sps:$4 sm:$0xff]  }
 0x818   : > { %11879 = vmatprep.subr.bf16.mxu1 %v23347_v50  ;;  %v23413_v50 = vld [vmem:[#allocation13 + $0x12ac] ss:$16 sps:$4 sm:$0xff]  }
 0x81a   : > { %11794 = vmatpush1.bf16.msra.mxu0 %v23342_v6  ;;  %v23408_v6 = vld [vmem:[#allocation13 + $0x12a0] ss:$16 sps:$4 sm:$0xff]  }
 0x81b   : > { %11880 = vmatpush1.bf16.msra.mxu1 %v23345_v19  ;;  %11795 = vmatprep.subr.bf16.mxu0 %v23350_v21  ;;  %v23411_v19 = vld [vmem:[#allocation13 + $0x12a8] ss:$16 sps:$4 sm:$0xff]   ;;  %v23416_v21 = vld [vmem:[#allocation13 + $0x12c4] ss:$16 sps:$4 sm:$0xff]  }
 0x81c   : > { %11881 = vmatprep.subr.bf16.mxu1 %v23353_v62  ;;  %v23419_v62 = vld [vmem:[#allocation13 + $0x12cc] ss:$16 sps:$4 sm:$0xff]  }
 0x81e   : > { %11796 = vmatpush1.bf16.msra.mxu0 %v23348_v32  ;;  %v23414_v32 = vld [vmem:[#allocation13 + $0x12c0] ss:$16 sps:$4 sm:$0xff]  }
 0x81f   : > { %11882 = vmatpush1.bf16.msra.mxu1 %v23351_v31  ;;  %11797 = vmatprep.subr.bf16.mxu0 %v23356_v33  ;;  %v23417_v31 = vld [vmem:[#allocation13 + $0x12c8] ss:$16 sps:$4 sm:$0xff]   ;;  %v23422_v33 = vld [vmem:[#allocation13 + $0x12e4] ss:$16 sps:$4 sm:$0xff]  }
 0x820   : > { %11883 = vmatprep.subr.bf16.mxu1 %v23359_v36  ;;  %v23425_v36 = vld [vmem:[#allocation13 + $0x12ec] ss:$16 sps:$4 sm:$0xff]  }
 0x822   : > { %11798 = vmatpush1.bf16.msra.mxu0 %v23354_v56  ;;  %v23420_v56 = vld [vmem:[#allocation13 + $0x12e0] ss:$16 sps:$4 sm:$0xff]  }
 0x823   : > { %11884 = vmatpush1.bf16.msra.mxu1 %v23357_v1  ;;  %11799 = vmatprep.subr.bf16.mxu0 %v23362_v25  ;;  %v23423_v1 = vld [vmem:[#allocation13 + $0x12e8] ss:$16 sps:$4 sm:$0xff]   ;;  %v23428_v25 = vld [vmem:[#allocation13 + $0x1304] ss:$16 sps:$4 sm:$0xff]  }
 0x824   : > { %11885 = vmatprep.subr.bf16.mxu1 %v23365_v20  ;;  %v23431_v20 = vld [vmem:[#allocation13 + $0x130c] ss:$16 sps:$4 sm:$0xff]  }
 0x826   : > { %11800 = vmatpush1.bf16.msra.mxu0 %v23360_v37  ;;  %v23426_v37 = vld [vmem:[#allocation13 + $0x1300] ss:$16 sps:$4 sm:$0xff]  }
 0x827   : > { %11886 = vmatpush1.bf16.msra.mxu1 %v23363_v18  ;;  %11801 = vmatprep.subr.bf16.mxu0 %v23368_v41  ;;  %v23429_v18 = vld [vmem:[#allocation13 + $0x1308] ss:$16 sps:$4 sm:$0xff]   ;;  %v23434_v41 = vld [vmem:[#allocation13 + $0x1324] ss:$16 sps:$4 sm:$0xff]  }
 0x828   : > { %11887 = vmatprep.subr.bf16.mxu1 %v23371_v16  ;;  %v23437_v16 = vld [vmem:[#allocation13 + $0x132c] ss:$16 sps:$4 sm:$0xff]  }
 0x82a   : > { %11802 = vmatpush1.bf16.msra.mxu0 %v23366_v54  ;;  %v23432_v54 = vld [vmem:[#allocation13 + $0x1320] ss:$16 sps:$4 sm:$0xff]  }
 0x82b   : > { %11888 = vmatpush1.bf16.msra.mxu1 %v23369_v40  ;;  %11803 = vmatprep.subr.bf16.mxu0 %v23374_v58  ;;  %v23435_v40 = vld [vmem:[#allocation13 + $0x1328] ss:$16 sps:$4 sm:$0xff]   ;;  %v23440_v58 = vld [vmem:[#allocation13 + $0x1344] ss:$16 sps:$4 sm:$0xff]  }
 0x82c   : > { %11889 = vmatprep.subr.bf16.mxu1 %v23377_v44  ;;  %v23443_v44 = vld [vmem:[#allocation13 + $0x134c] ss:$16 sps:$4 sm:$0xff]  }
 0x82e   : > { %11804 = vmatpush1.bf16.msra.mxu0 %v23372_v8  ;;  %v23438_v8 = vld [vmem:[#allocation13 + $0x1340] ss:$16 sps:$4 sm:$0xff]  }
 0x82f   : > { %11890 = vmatpush1.bf16.msra.mxu1 %v23375_v29  ;;  %11816 = vmatprep.subr.bf16.mxu0 %v23380_v61  ;;  %v23441_v29 = vld [vmem:[#allocation13 + $0x1348] ss:$16 sps:$4 sm:$0xff]   ;;  %v23446_v61 = vld [vmem:[#allocation13 + $0x1364] ss:$16 sps:$4 sm:$0xff]  }
 0x830   : > { %11902 = vmatprep.subr.bf16.mxu1 %v23383_v43  ;;  %v23444_v43 = vld [vmem:[#allocation13 + $0x1360] ss:$16 sps:$4 sm:$0xff]  }
 0x831   : > { %11806 = vmatmul.mubr.bf16.vlgmr.msra.gmra.mrb[36].mxu0 %v11119_v46 }
 0x832   : > { %11892 = vmatmul.mubr.bf16.vlgmr.msra.gmra.mrb[36].mxu1 %v11119_v46  ;;  %11817 = vmatpush1.bf16.msra.mxu0 %v23378_v60  ;;  %v23452_v60 = vld [vmem:[#allocation13 + $0x1384] ss:$16 sps:$4 sm:$0xff]   ;;  %v23453_v46 = vld [vmem:[#allocation13 + $0x1388] ss:$16 sps:$4 sm:$0xff]  }
 0x833   : > { %11848 = vmatprep.mubr.bf16.mxu0 %v11128_v12  ;;  %11903 = vmatpush1.bf16.msra.mxu1 %v23381_v49  ;;  %v23450_v49 = vld [vmem:[#allocation13 + $0x1380] ss:$16 sps:$4 sm:$0xff]  }
 0x834   : > { %11934 = vmatprep.mubr.bf16.mxu1 %v11128_v12  ;;  %11818 = vmatprep.subr.bf16.mxu0 %v23386_v28  ;;  %v23461_v28 = vld [vmem:[#allocation13 + $0x13ac] ss:$16 sps:$4 sm:$0xff]   ;;  %v23459_v12 = vld [vmem:[#allocation13 + $0x13a8] ss:$16 sps:$4 sm:$0xff]  }
 0x835   : > { %11904 = vmatprep.subr.bf16.mxu1 %v23389_v51  ;;  %v23456_v51 = vld [vmem:[#allocation13 + $0x13a0] ss:$16 sps:$4 sm:$0xff]  }
 0x836   : > { %11819 = vmatpush1.bf16.msra.mxu0 %v23384_v59  ;;  %v23464_v59 = vld [vmem:[#allocation13 + $0x13c4] ss:$16 sps:$4 sm:$0xff]  }
 0x837   : > { %11905 = vmatpush1.bf16.msra.mxu1 %v23387_v57  ;;  %11820 = vmatprep.subr.bf16.mxu0 %v23392_v63  ;;  %v23467_v57 = vld [vmem:[#allocation13 + $0x13cc] ss:$16 sps:$4 sm:$0xff]   ;;  %v23462_v63 = vld [vmem:[#allocation13 + $0x13c0] ss:$16 sps:$4 sm:$0xff]  }
 0x838   : > { %11906 = vmatprep.subr.bf16.mxu1 %v23395_v30  ;;  %v23465_v30 = vld [vmem:[#allocation13 + $0x13c8] ss:$16 sps:$4 sm:$0xff]  }
 0x83a   : > { %11821 = vmatpush1.bf16.msra.mxu0 %v23390_v2  ;;  %v23470_v2 = vld [vmem:[#allocation13 + $0x13e4] ss:$16 sps:$4 sm:$0xff]  }
 0x83b   : > { %11907 = vmatpush1.bf16.msra.mxu1 %v23393_v35  ;;  %11822 = vmatprep.subr.bf16.mxu0 %v23398_v38  ;;  %v23473_v35 = vld [vmem:[#allocation13 + $0x13ec] ss:$16 sps:$4 sm:$0xff]   ;;  %v23468_v38 = vld [vmem:[#allocation13 + $0x13e0] ss:$16 sps:$4 sm:$0xff]  }
 0x83c   : > { %11908 = vmatprep.subr.bf16.mxu1 %v23401_v34  ;;  %v23471_v34 = vld [vmem:[#allocation13 + $0x13e8] ss:$16 sps:$4 sm:$0xff]  }
 0x83e   : > { %11823 = vmatpush1.bf16.msra.mxu0 %v23396_v0  ;;  %v23476_v0 = vld [vmem:[#allocation13 + $0x1404] ss:$16 sps:$4 sm:$0xff]  }
 0x83f   : > { %11909 = vmatpush1.bf16.msra.mxu1 %v23399_v5  ;;  %11824 = vmatprep.subr.bf16.mxu0 %v23404_v55  ;;  %v11124_v5 = vrot.slane %v26197_v4, 6  ;;  %v23479_v55 = vld [vmem:[#allocation13 + $0x140c] ss:$16 sps:$4 sm:$0xff]  }
 0x840   : > { %11910 = vmatprep.subr.bf16.mxu1 %v23407_v9  ;;  %v11123_v9 = vrot.slane %v26156_v3, 6  ;;  %v23491_v3 = vld [vmem:[#allocation13 + $0x144c] ss:$16 sps:$4 sm:$0xff]  }
 0x842   : > { %11825 = vmatpush1.bf16.msra.mxu0 %v23402_v45  ;;  %v23474_v45 = vld [vmem:[#allocation13 + $0x1400] ss:$16 sps:$4 sm:$0xff]  }
 0x843   : > { %11911 = vmatpush1.bf16.msra.mxu1 %v23405_v15  ;;  %11826 = vmatprep.subr.bf16.mxu0 %v23410_v53  ;;  %v23477_v15 = vld [vmem:[#allocation13 + $0x1408] ss:$16 sps:$4 sm:$0xff]   ;;  %v11125_v53 = vsel %vm11116_vm9, %v11123_v9, %v11124_v5  ;;  %v23546_v5 = vld [vmem:[#allocation13 + $0x1580] ss:$16 sps:$4 sm:$0xff]   ;;  %v23554_v9 = vld [vmem:[#allocation13 + $0x15a4] ss:$16 sps:$4 sm:$0xff]  }
 0x844   : > { %11912 = vmatprep.subr.bf16.mxu1 %v23413_v50  ;;  %v23482_v50 = vld [vmem:[#allocation13 + $0x1424] ss:$16 sps:$4 sm:$0xff]  }
 0x846   : > { %11827 = vmatpush1.bf16.msra.mxu0 %v23408_v6  ;;  %v23485_v6 = vld [vmem:[#allocation13 + $0x142c] ss:$16 sps:$4 sm:$0xff]  }
 0x847   : > { %11913 = vmatpush1.bf16.msra.mxu1 %v23411_v19  ;;  %11828 = vmatprep.subr.bf16.mxu0 %v23416_v21  ;;  %v23480_v19 = vld [vmem:[#allocation13 + $0x1420] ss:$16 sps:$4 sm:$0xff]   ;;  %v23483_v21 = vld [vmem:[#allocation13 + $0x1428] ss:$16 sps:$4 sm:$0xff]  }
 0x848   : > { %11914 = vmatprep.subr.bf16.mxu1 %v23419_v62  ;;  %v23488_v62 = vld [vmem:[#allocation13 + $0x1444] ss:$16 sps:$4 sm:$0xff]  }
 0x84a   : > { %11829 = vmatpush1.bf16.msra.mxu0 %v23414_v32  ;;  %v23486_v32 = vld [vmem:[#allocation13 + $0x1440] ss:$16 sps:$4 sm:$0xff]  }
 0x84b   : > { %11915 = vmatpush1.bf16.msra.mxu1 %v23417_v31  ;;  %11830 = vmatprep.subr.bf16.mxu0 %v23422_v33  ;;  %v23489_v31 = vld [vmem:[#allocation13 + $0x1448] ss:$16 sps:$4 sm:$0xff]   ;;  %v23494_v33 = vld [vmem:[#allocation13 + $0x1464] ss:$16 sps:$4 sm:$0xff]  }
 0x84c   : > { %11916 = vmatprep.subr.bf16.mxu1 %v23425_v36  ;;  %v23497_v36 = vld [vmem:[#allocation13 + $0x146c] ss:$16 sps:$4 sm:$0xff]  }
 0x84e   : > { %11831 = vmatpush1.bf16.msra.mxu0 %v23420_v56  ;;  %v23492_v56 = vld [vmem:[#allocation13 + $0x1460] ss:$16 sps:$4 sm:$0xff]  }
 0x84f   : > { %11917 = vmatpush1.bf16.msra.mxu1 %v23423_v1  ;;  %11832 = vmatprep.subr.bf16.mxu0 %v23428_v25  ;;  %v23495_v1 = vld [vmem:[#allocation13 + $0x1468] ss:$16 sps:$4 sm:$0xff]   ;;  %v23500_v25 = vld [vmem:[#allocation13 + $0x1484] ss:$16 sps:$4 sm:$0xff]  }
 0x850   : > { %11918 = vmatprep.subr.bf16.mxu1 %v23431_v20  ;;  %v23503_v20 = vld [vmem:[#allocation13 + $0x148c] ss:$16 sps:$4 sm:$0xff]  }
 0x852   : > { %11833 = vmatpush1.bf16.msra.mxu0 %v23426_v37  ;;  %v23501_v37 = vld [vmem:[#allocation13 + $0x1488] ss:$16 sps:$4 sm:$0xff]  }
 0x853   : > { %11919 = vmatpush1.bf16.msra.mxu1 %v23429_v18  ;;  %11834 = vmatprep.subr.bf16.mxu0 %v23434_v41  ;;  %v23506_v18 = vld [vmem:[#allocation13 + $0x14a4] ss:$16 sps:$4 sm:$0xff]   ;;  %v23509_v41 = vld [vmem:[#allocation13 + $0x14ac] ss:$16 sps:$4 sm:$0xff]  }
 0x854   : > { %11920 = vmatprep.subr.bf16.mxu1 %v23437_v16  ;;  %v23504_v16 = vld [vmem:[#allocation13 + $0x14a0] ss:$16 sps:$4 sm:$0xff]  }
 0x856   : > { %11835 = vmatpush1.bf16.msra.mxu0 %v23432_v54  ;;  %v23507_v54 = vld [vmem:[#allocation13 + $0x14a8] ss:$16 sps:$4 sm:$0xff]  }
 0x857   : > { %11921 = vmatpush1.bf16.msra.mxu1 %v23435_v40  ;;  %11836 = vmatprep.subr.bf16.mxu0 %v23440_v58  ;;  %v23512_v40 = vld [vmem:[#allocation13 + $0x14c4] ss:$16 sps:$4 sm:$0xff]   ;;  %v23515_v58 = vld [vmem:[#allocation13 + $0x14cc] ss:$16 sps:$4 sm:$0xff]  }
 0x858   : > { %11922 = vmatprep.subr.bf16.mxu1 %v23443_v44  ;;  %v23510_v44 = vld [vmem:[#allocation13 + $0x14c0] ss:$16 sps:$4 sm:$0xff]  }
 0x85a   : > { %11837 = vmatpush1.bf16.msra.mxu0 %v23438_v8  ;;  %v23513_v8 = vld [vmem:[#allocation13 + $0x14c8] ss:$16 sps:$4 sm:$0xff]  }
 0x85b   : > { %11923 = vmatpush1.bf16.msra.mxu1 %v23441_v29  ;;  %11838 = vmatprep.subr.bf16.mxu0 %v23446_v61  ;;  %v23518_v29 = vld [vmem:[#allocation13 + $0x14e4] ss:$16 sps:$4 sm:$0xff]   ;;  %v23521_v61 = vld [vmem:[#allocation13 + $0x14ec] ss:$16 sps:$4 sm:$0xff]  }
 0x85c   : > { %11924 = vmatprep.subr.bf16.mxu1 %v23449_v52  ;;  %v23516_v52 = vld [vmem:[#allocation13 + $0x14e0] ss:$16 sps:$4 sm:$0xff]  }
 0x85e   : > { %11839 = vmatpush1.bf16.msra.mxu0 %v23444_v43  ;;  %v23519_v43 = vld [vmem:[#allocation13 + $0x14e8] ss:$16 sps:$4 sm:$0xff]  }
 0x85f   : > { %11925 = vmatpush1.bf16.msra.mxu1 %v23447_v48  ;;  %11840 = vmatprep.subr.bf16.mxu0 %v23452_v60  ;;  %v23524_v48 = vld [vmem:[#allocation13 + $0x1504] ss:$16 sps:$4 sm:$0xff]   ;;  %v23527_v60 = vld [vmem:[#allocation13 + $0x150c] ss:$16 sps:$4 sm:$0xff]  }
 0x860   : > { %11926 = vmatprep.subr.bf16.mxu1 %v23455_v14  ;;  %v23522_v14 = vld [vmem:[#allocation13 + $0x1500] ss:$16 sps:$4 sm:$0xff]  }
 0x862   : > { %11841 = vmatpush1.bf16.msra.mxu0 %v23450_v49  ;;  %v23525_v49 = vld [vmem:[#allocation13 + $0x1508] ss:$16 sps:$4 sm:$0xff]  }
 0x863   : > { %11927 = vmatpush1.bf16.msra.mxu1 %v23453_v46  ;;  %11842 = vmatprep.subr.bf16.mxu0 %v23458_v27  ;;  %v23530_v46 = vld [vmem:[#allocation13 + $0x1524] ss:$16 sps:$4 sm:$0xff]   ;;  %v23533_v27 = vld [vmem:[#allocation13 + $0x152c] ss:$16 sps:$4 sm:$0xff]  }
 0x864   : > { %11928 = vmatprep.subr.bf16.mxu1 %v23461_v28  ;;  %v23528_v28 = vld [vmem:[#allocation13 + $0x1520] ss:$16 sps:$4 sm:$0xff]  }
 0x866   : > { %11843 = vmatpush1.bf16.msra.mxu0 %v23456_v51  ;;  %v23531_v51 = vld [vmem:[#allocation13 + $0x1528] ss:$16 sps:$4 sm:$0xff]  }
 0x867   : > { %11929 = vmatpush1.bf16.msra.mxu1 %v23459_v12  ;;  %11844 = vmatprep.subr.bf16.mxu0 %v23464_v59  ;;  %v23536_v12 = vld [vmem:[#allocation13 + $0x1544] ss:$16 sps:$4 sm:$0xff]   ;;  %v23539_v59 = vld [vmem:[#allocation13 + $0x154c] ss:$16 sps:$4 sm:$0xff]  }
 0x868   : > { %11930 = vmatprep.subr.bf16.mxu1 %v23467_v57  ;;  %v23534_v57 = vld [vmem:[#allocation13 + $0x1540] ss:$16 sps:$4 sm:$0xff]  }
 0x86a   : > { %11845 = vmatpush1.bf16.msra.mxu0 %v23462_v63  ;;  %v23537_v63 = vld [vmem:[#allocation13 + $0x1548] ss:$16 sps:$4 sm:$0xff]  }
 0x86b   : > { %11931 = vmatpush1.bf16.msra.mxu1 %v23465_v30  ;;  %11846 = vmatprep.subr.bf16.mxu0 %v23470_v2  ;;  %v23542_v30 = vld [vmem:[#allocation13 + $0x1564] ss:$16 sps:$4 sm:$0xff]   ;;  %v23545_v2 = vld [vmem:[#allocation13 + $0x156c] ss:$16 sps:$4 sm:$0xff]  }
 0x86c   : > { %11932 = vmatprep.subr.bf16.mxu1 %v23473_v35  ;;  %v23540_v35 = vld [vmem:[#allocation13 + $0x1560] ss:$16 sps:$4 sm:$0xff]  }
 0x86e   : > { %11847 = vmatpush1.bf16.msra.mxu0 %v23468_v38  ;;  %v23543_v38 = vld [vmem:[#allocation13 + $0x1568] ss:$16 sps:$4 sm:$0xff]  }
 0x86f   : > { %11933 = vmatpush1.bf16.msra.mxu1 %v23471_v34  ;;  %12743 = vmatprep.subr.bf16.mxu0 %v23476_v0  ;;  %v23548_v34 = vld [vmem:[#allocation13 + $0x1584] ss:$16 sps:$4 sm:$0xff]   ;;  %v23551_v0 = vld [vmem:[#allocation13 + $0x158c] ss:$16 sps:$4 sm:$0xff]  }
 0x870   : > { %12829 = vmatprep.subr.bf16.mxu1 %v23479_v55  ;;  %v23549_v55 = vld [vmem:[#allocation13 + $0x1588] ss:$16 sps:$4 sm:$0xff]  }
 0x871   : > { %11849 = vmatmul.mubr.bf16.vlgmr.msra.gmra.mrb[36].mxu0 %v11125_v53 }
 0x872   : > { %11935 = vmatmul.mubr.bf16.vlgmr.msra.gmra.mrb[36].mxu1 %v11125_v53  ;;  %12744 = vmatpush1.bf16.msra.mxu0 %v23474_v45  ;;  %v23557_v45 = vld [vmem:[#allocation13 + $0x15ac] ss:$16 sps:$4 sm:$0xff]   ;;  %v23555_v53 = vld [vmem:[#allocation13 + $0x15a8] ss:$16 sps:$4 sm:$0xff]  }
 0x873   : > { %12775 = vmatprep.mubr.bf16.mxu0 %v26242_v26  ;;  %12830 = vmatpush1.bf16.msra.mxu1 %v23477_v15  ;;  %v23552_v15 = vld [vmem:[#allocation13 + $0x15a0] ss:$16 sps:$4 sm:$0xff]  }
 0x874   : > { %12861 = vmatprep.mubr.bf16.mxu1 %v26242_v26  ;;  %12745 = vmatprep.subr.bf16.mxu0 %v23482_v50  ;;  %v23498_v26 = vld [vmem:[#allocation13 + $0x1480] ss:$16 sps:$4 sm:$0xff]   ;;  %v23560_v50 = vld [vmem:[#allocation13 + $0x15c4] ss:$16 sps:$4 sm:$0xff]  }
 0x875   : > { %12831 = vmatprep.subr.bf16.mxu1 %v23485_v6  ;;  %v23563_v6 = vld [vmem:[#allocation13 + $0x15cc] ss:$16 sps:$4 sm:$0xff]  }
 0x876   : > { %12746 = vmatpush1.bf16.msra.mxu0 %v23480_v19  ;;  %v23558_v19 = vld [vmem:[#allocation13 + $0x15c0] ss:$16 sps:$4 sm:$0xff]  }
 0x877   : > { %12832 = vmatpush1.bf16.msra.mxu1 %v23483_v21  ;;  %12747 = vmatprep.subr.bf16.mxu0 %v23488_v62  ;;  %v23561_v21 = vld [vmem:[#allocation13 + $0x15c8] ss:$16 sps:$4 sm:$0xff]   ;;  %v23566_v62 = vld [vmem:[#allocation13 + $0x15e4] ss:$16 sps:$4 sm:$0xff]  }
 0x878   : > { %12833 = vmatprep.subr.bf16.mxu1 %v23491_v3  ;;  %v23569_v3 = vld [vmem:[#allocation13 + $0x15ec] ss:$16 sps:$4 sm:$0xff]  }
 0x87a   : > { %12748 = vmatpush1.bf16.msra.mxu0 %v23486_v32  ;;  %v23564_v32 = vld [vmem:[#allocation13 + $0x15e0] ss:$16 sps:$4 sm:$0xff]  }
 0x87b   : > { %12834 = vmatpush1.bf16.msra.mxu1 %v23489_v31  ;;  %12749 = vmatprep.subr.bf16.mxu0 %v23494_v33  ;;  %v23567_v31 = vld [vmem:[#allocation13 + $0x15e8] ss:$16 sps:$4 sm:$0xff]   ;;  %v23572_v33 = vld [vmem:[#allocation13 + $0x1604] ss:$16 sps:$4 sm:$0xff]  }
 0x87c   : > { %12835 = vmatprep.subr.bf16.mxu1 %v23497_v36  ;;  %v23575_v36 = vld [vmem:[#allocation13 + $0x160c] ss:$16 sps:$4 sm:$0xff]  }
 0x87e   : > { %12750 = vmatpush1.bf16.msra.mxu0 %v23492_v56  ;;  %v23570_v56 = vld [vmem:[#allocation13 + $0x1600] ss:$16 sps:$4 sm:$0xff]  }
 0x87f   : > { %12836 = vmatpush1.bf16.msra.mxu1 %v23495_v1  ;;  %12751 = vmatprep.subr.bf16.mxu0 %v23500_v25  ;;  %v23573_v1 = vld [vmem:[#allocation13 + $0x1608] ss:$16 sps:$4 sm:$0xff]   ;;  %v23578_v25 = vld [vmem:[#allocation13 + $0x1624] ss:$16 sps:$4 sm:$0xff]  }
 0x880   : > { %12837 = vmatprep.subr.bf16.mxu1 %v23503_v20  ;;  %v23581_v20 = vld [vmem:[#allocation13 + $0x162c] ss:$16 sps:$4 sm:$0xff]  }
 0x882   : > { %12752 = vmatpush1.bf16.msra.mxu0 %v23498_v26  ;;  %v23576_v26 = vld [vmem:[#allocation13 + $0x1620] ss:$16 sps:$4 sm:$0xff]  }
 0x883   : > { %12838 = vmatpush1.bf16.msra.mxu1 %v23501_v37  ;;  %12753 = vmatprep.subr.bf16.mxu0 %v23506_v18  ;;  %v23579_v37 = vld [vmem:[#allocation13 + $0x1628] ss:$16 sps:$4 sm:$0xff]   ;;  %v23584_v18 = vld [vmem:[#allocation13 + $0x1644] ss:$16 sps:$4 sm:$0xff]  }
 0x884   : > { %12839 = vmatprep.subr.bf16.mxu1 %v23509_v41  ;;  %v23587_v41 = vld [vmem:[#allocation13 + $0x164c] ss:$16 sps:$4 sm:$0xff]  }
 0x886   : > { %12754 = vmatpush1.bf16.msra.mxu0 %v23504_v16  ;;  %v23582_v16 = vld [vmem:[#allocation13 + $0x1640] ss:$16 sps:$4 sm:$0xff]  }
 0x887   : > { %12840 = vmatpush1.bf16.msra.mxu1 %v23507_v54  ;;  %12755 = vmatprep.subr.bf16.mxu0 %v23512_v40  ;;  %v23585_v54 = vld [vmem:[#allocation13 + $0x1648] ss:$16 sps:$4 sm:$0xff]   ;;  %v23590_v40 = vld [vmem:[#allocation13 + $0x1664] ss:$16 sps:$4 sm:$0xff]  }
 0x888   : > { %12841 = vmatprep.subr.bf16.mxu1 %v23515_v58  ;;  %v23588_v58 = vld [vmem:[#allocation13 + $0x1660] ss:$16 sps:$4 sm:$0xff]  }
 0x88a   : > { %12756 = vmatpush1.bf16.msra.mxu0 %v23510_v44  ;;  %v23591_v44 = vld [vmem:[#allocation13 + $0x1668] ss:$16 sps:$4 sm:$0xff]  }
 0x88b   : > { %12842 = vmatpush1.bf16.msra.mxu1 %v23513_v8  ;;  %12757 = vmatprep.subr.bf16.mxu0 %v23518_v29  ;;  %v23596_v8 = vld [vmem:[#allocation13 + $0x1684] ss:$16 sps:$4 sm:$0xff]   ;;  %v23599_v29 = vld [vmem:[#allocation13 + $0x168c] ss:$16 sps:$4 sm:$0xff]  }
 0x88c   : > { %12843 = vmatprep.subr.bf16.mxu1 %v23521_v61  ;;  %v23597_v61 = vld [vmem:[#allocation13 + $0x1688] ss:$16 sps:$4 sm:$0xff]  }
 0x88e   : > { %12758 = vmatpush1.bf16.msra.mxu0 %v23516_v52  ;;  %v23602_v52 = vld [vmem:[#allocation13 + $0x16a4] ss:$16 sps:$4 sm:$0xff]  }
 0x88f   : > { %12844 = vmatpush1.bf16.msra.mxu1 %v23519_v43  ;;  %12759 = vmatprep.subr.bf16.mxu0 %v23524_v48  ;;  %v23605_v43 = vld [vmem:[#allocation13 + $0x16ac] ss:$16 sps:$4 sm:$0xff]   ;;  %v23600_v48 = vld [vmem:[#allocation13 + $0x16a0] ss:$16 sps:$4 sm:$0xff]  }
 0x890   : > { %12845 = vmatprep.subr.bf16.mxu1 %v23527_v60  ;;  %v23603_v60 = vld [vmem:[#allocation13 + $0x16a8] ss:$16 sps:$4 sm:$0xff]  }
 0x892   : > { %12760 = vmatpush1.bf16.msra.mxu0 %v23522_v14  ;;  %v23608_v14 = vld [vmem:[#allocation13 + $0x16c4] ss:$16 sps:$4 sm:$0xff]  }
 0x893   : > { %12846 = vmatpush1.bf16.msra.mxu1 %v23525_v49  ;;  %12761 = vmatprep.subr.bf16.mxu0 %v23530_v46  ;;  %v23611_v49 = vld [vmem:[#allocation13 + $0x16cc] ss:$16 sps:$4 sm:$0xff]   ;;  %v23606_v46 = vld [vmem:[#allocation13 + $0x16c0] ss:$16 sps:$4 sm:$0xff]  }
 0x894   : > { %12847 = vmatprep.subr.bf16.mxu1 %v23533_v27  ;;  %v23609_v27 = vld [vmem:[#allocation13 + $0x16c8] ss:$16 sps:$4 sm:$0xff]  }
 0x896   : > { %12762 = vmatpush1.bf16.msra.mxu0 %v23528_v28  ;;  %v23614_v28 = vld [vmem:[#allocation13 + $0x16e4] ss:$16 sps:$4 sm:$0xff]  }
 0x897   : > { %12848 = vmatpush1.bf16.msra.mxu1 %v23531_v51  ;;  %12763 = vmatprep.subr.bf16.mxu0 %v23536_v12  ;;  %v23617_v51 = vld [vmem:[#allocation13 + $0x16ec] ss:$16 sps:$4 sm:$0xff]   ;;  %v23612_v12 = vld [vmem:[#allocation13 + $0x16e0] ss:$16 sps:$4 sm:$0xff]  }
 0x898   : > { %12849 = vmatprep.subr.bf16.mxu1 %v23539_v59  ;;  %v23615_v59 = vld [vmem:[#allocation13 + $0x16e8] ss:$16 sps:$4 sm:$0xff]  }
 0x89a   : > { %12764 = vmatpush1.bf16.msra.mxu0 %v23534_v57  ;;  %v23620_v57 = vld [vmem:[#allocation13 + $0x1704] ss:$16 sps:$4 sm:$0xff]  }
 0x89b   : > { %12850 = vmatpush1.bf16.msra.mxu1 %v23537_v63  ;;  %12765 = vmatprep.subr.bf16.mxu0 %v23542_v30  ;;  %v23623_v63 = vld [vmem:[#allocation13 + $0x170c] ss:$16 sps:$4 sm:$0xff]   ;;  %v23618_v30 = vld [vmem:[#allocation13 + $0x1700] ss:$16 sps:$4 sm:$0xff]  }
 0x89c   : > { %12851 = vmatprep.subr.bf16.mxu1 %v23545_v2  ;;  %v23621_v2 = vld [vmem:[#allocation13 + $0x1708] ss:$16 sps:$4 sm:$0xff]  }
 0x89e   : > { %12766 = vmatpush1.bf16.msra.mxu0 %v23540_v35  ;;  %v23626_v35 = vld [vmem:[#allocation13 + $0x1724] ss:$16 sps:$4 sm:$0xff]  }
 0x89f   : > { %12852 = vmatpush1.bf16.msra.mxu1 %v23543_v38  ;;  %12767 = vmatprep.subr.bf16.mxu0 %v23548_v34  ;;  %v23629_v38 = vld [vmem:[#allocation13 + $0x172c] ss:$16 sps:$4 sm:$0xff]   ;;  %v23624_v34 = vld [vmem:[#allocation13 + $0x1720] ss:$16 sps:$4 sm:$0xff]  }
 0x8a0   : > { %12853 = vmatprep.subr.bf16.mxu1 %v23551_v0  ;;  %v23627_v0 = vld [vmem:[#allocation13 + $0x1728] ss:$16 sps:$4 sm:$0xff]  }
 0x8a2   : > { %12768 = vmatpush1.bf16.msra.mxu0 %v23546_v5  ;;  %v23632_v5 = vld [vmem:[#allocation13 + $0x1744] ss:$16 sps:$4 sm:$0xff]  }
 0x8a3   : > { %12854 = vmatpush1.bf16.msra.mxu1 %v23549_v55  ;;  %12769 = vmatprep.subr.bf16.mxu0 %v23554_v9  ;;  %v23635_v55 = vld [vmem:[#allocation13 + $0x174c] ss:$16 sps:$4 sm:$0xff]   ;;  %v23630_v9 = vld [vmem:[#allocation13 + $0x1740] ss:$16 sps:$4 sm:$0xff]  }
 0x8a4   : > { %12855 = vmatprep.subr.bf16.mxu1 %v23557_v45  ;;  %v23633_v45 = vld [vmem:[#allocation13 + $0x1748] ss:$16 sps:$4 sm:$0xff]  }
 0x8a6   : > { %12770 = vmatpush1.bf16.msra.mxu0 %v23552_v15  ;;  %v23638_v15 = vld [vmem:[#allocation13 + $0x1764] ss:$16 sps:$4 sm:$0xff]  }
 0x8a7   : > { %12856 = vmatpush1.bf16.msra.mxu1 %v23555_v53  ;;  %12771 = vmatprep.subr.bf16.mxu0 %v23560_v50  ;;  %v23641_v53 = vld [vmem:[#allocation13 + $0x176c] ss:$16 sps:$4 sm:$0xff]   ;;  %v23636_v50 = vld [vmem:[#allocation13 + $0x1760] ss:$16 sps:$4 sm:$0xff]  }
 0x8a8   : > { %12857 = vmatprep.subr.bf16.mxu1 %v23563_v6  ;;  %v23639_v6 = vld [vmem:[#allocation13 + $0x1768] ss:$16 sps:$4 sm:$0xff]  }
 0x8aa   : > { %12772 = vmatpush1.bf16.msra.mxu0 %v23558_v19  ;;  %v23644_v19 = vld [vmem:[#allocation13 + $0x1784] ss:$16 sps:$4 sm:$0xff]  }
 0x8ab   : > { %12858 = vmatpush1.bf16.msra.mxu1 %v23561_v21  ;;  %12773 = vmatprep.subr.bf16.mxu0 %v23566_v62  ;;  %v23647_v21 = vld [vmem:[#allocation13 + $0x178c] ss:$16 sps:$4 sm:$0xff]   ;;  %v23642_v62 = vld [vmem:[#allocation13 + $0x1780] ss:$16 sps:$4 sm:$0xff]  }
 0x8ac   : > { %12859 = vmatprep.subr.bf16.mxu1 %v23569_v3  ;;  %v23645_v3 = vld [vmem:[#allocation13 + $0x1788] ss:$16 sps:$4 sm:$0xff]  }
 0x8ae   : > { %12774 = vmatpush1.bf16.msra.mxu0 %v23564_v32  ;;  %v23650_v32 = vld [vmem:[#allocation13 + $0x17a4] ss:$16 sps:$4 sm:$0xff]  }
 0x8af   : > { %12860 = vmatpush1.bf16.msra.mxu1 %v23567_v31  ;;  %12786 = vmatprep.subr.bf16.mxu0 %v23572_v33  ;;  %v23653_v31 = vld [vmem:[#allocation13 + $0x17ac] ss:$16 sps:$4 sm:$0xff]   ;;  %v23648_v33 = vld [vmem:[#allocation13 + $0x17a0] ss:$16 sps:$4 sm:$0xff]  }
 0x8b0   : > { %12872 = vmatprep.subr.bf16.mxu1 %v23575_v36  ;;  %v23651_v36 = vld [vmem:[#allocation13 + $0x17a8] ss:$16 sps:$4 sm:$0xff]  }
 0x8b1   : > { %12776 = vmatmul.mubr.bf16.vlgmr.msra.gmra.mrb[36].mxu0 %v26245_v23 }
 0x8b2   : > { %12862 = vmatmul.mubr.bf16.vlgmr.msra.gmra.mrb[36].mxu1 %v26245_v23  ;;  %12787 = vmatpush1.bf16.msra.mxu0 %v23570_v56  ;;  %v23593_v23 = vld [vmem:[#allocation13 + $0x166c] ss:$16 sps:$4 sm:$0xff]   ;;  %v23656_v56 = vld [vmem:[#allocation13 + $0x17c4] ss:$16 sps:$4 sm:$0xff]  }
 0x8b3   : > { %12818 = vmatprep.mubr.bf16.mxu0 %v26250_v39  ;;  %12873 = vmatpush1.bf16.msra.mxu1 %v23573_v1  ;;  %v23659_v1 = vld [vmem:[#allocation13 + $0x17cc] ss:$16 sps:$4 sm:$0xff]  }
 0x8b4   : > { %12904 = vmatprep.mubr.bf16.mxu1 %v26250_v39  ;;  %12788 = vmatprep.subr.bf16.mxu0 %v23578_v25  ;;  %v23594_v39 = vld [vmem:[#allocation13 + $0x1680] ss:$16 sps:$4 sm:$0xff]  }
 0x8b5   : > { %12874 = vmatprep.subr.bf16.mxu1 %v23581_v20  ;;  %v23654_v25 = vld [vmem:[#allocation13 + $0x17c0] ss:$16 sps:$4 sm:$0xff]   ;;  %v23657_v20 = vld [vmem:[#allocation13 + $0x17c8] ss:$16 sps:$4 sm:$0xff]  }
 0x8b6   : > { %12789 = vmatpush1.bf16.msra.mxu0 %v23576_v26  ;;  %v23662_v26 = vld [vmem:[#allocation13 + $0x17e4] ss:$16 sps:$4 sm:$0xff]  }
 0x8b7   : > { %12875 = vmatpush1.bf16.msra.mxu1 %v23579_v37  ;;  %12790 = vmatprep.subr.bf16.mxu0 %v23584_v18  ;;  %v23665_v37 = vld [vmem:[#allocation13 + $0x17ec] ss:$16 sps:$4 sm:$0xff]   ;;  %v23660_v18 = vld [vmem:[#allocation13 + $0x17e0] ss:$16 sps:$4 sm:$0xff]  }
 0x8b8   : > { %12876 = vmatprep.subr.bf16.mxu1 %v23587_v41  ;;  %v23663_v41 = vld [vmem:[#allocation13 + $0x17e8] ss:$16 sps:$4 sm:$0xff]  }
 0x8ba   : > { %12791 = vmatpush1.bf16.msra.mxu0 %v23582_v16  ;;  %v23668_v16 = vld [vmem:[#allocation13 + $0x1804] ss:$16 sps:$4 sm:$0xff]  }
 0x8bb   : > { %12877 = vmatpush1.bf16.msra.mxu1 %v23585_v54  ;;  %12792 = vmatprep.subr.bf16.mxu0 %v23590_v40  ;;  %v23671_v54 = vld [vmem:[#allocation13 + $0x180c] ss:$16 sps:$4 sm:$0xff]   ;;  %v23666_v40 = vld [vmem:[#allocation13 + $0x1800] ss:$16 sps:$4 sm:$0xff]  }
 0x8bc   : > { %12878 = vmatprep.subr.bf16.mxu1 %v23593_v23  ;;  %v23669_v23 = vld [vmem:[#allocation13 + $0x1808] ss:$16 sps:$4 sm:$0xff]  }
 0x8be   : > { %12793 = vmatpush1.bf16.msra.mxu0 %v23588_v58  ;;  %v23674_v58 = vld [vmem:[#allocation13 + $0x1824] ss:$16 sps:$4 sm:$0xff]  }
 0x8bf   : > { %12879 = vmatpush1.bf16.msra.mxu1 %v23591_v44  ;;  %12794 = vmatprep.subr.bf16.mxu0 %v23596_v8  ;;  %v13053_v44 = vrot.slane %v26199_v47, 1  ;;  %v23677_v8 = vld [vmem:[#allocation13 + $0x182c] ss:$16 sps:$4 sm:$0xff]  }
 0x8c0   : > { %12880 = vmatprep.subr.bf16.mxu1 %v23599_v29  ;;  %v23672_v29 = vld [vmem:[#allocation13 + $0x1820] ss:$16 sps:$4 sm:$0xff]   ;;  %v23689_v47 = vld [vmem:[#allocation13 + $0x186c] ss:$16 sps:$4 sm:$0xff]  }
 0x8c2   : > { %12795 = vmatpush1.bf16.msra.mxu0 %v23594_v39  ;;  %v23675_v39 = vld [vmem:[#allocation13 + $0x1828] ss:$16 sps:$4 sm:$0xff]  }
 0x8c3   : > { %12881 = vmatpush1.bf16.msra.mxu1 %v23597_v61  ;;  %12796 = vmatprep.subr.bf16.mxu0 %v23602_v52  ;;  %v23680_v61 = vld [vmem:[#allocation13 + $0x1844] ss:$16 sps:$4 sm:$0xff]   ;;  %v23683_v52 = vld [vmem:[#allocation13 + $0x184c] ss:$16 sps:$4 sm:$0xff]  }
 0x8c4   : > { %12882 = vmatprep.subr.bf16.mxu1 %v23605_v43  ;;  %v23678_v43 = vld [vmem:[#allocation13 + $0x1840] ss:$16 sps:$4 sm:$0xff]  }
 0x8c6   : > { %12797 = vmatpush1.bf16.msra.mxu0 %v23600_v48  ;;  %v23681_v48 = vld [vmem:[#allocation13 + $0x1848] ss:$16 sps:$4 sm:$0xff]  }
 0x8c7   : > { %12883 = vmatpush1.bf16.msra.mxu1 %v23603_v60  ;;  %12798 = vmatprep.subr.bf16.mxu0 %v23608_v14  ;;  %v23686_v60 = vld [vmem:[#allocation13 + $0x1864] ss:$16 sps:$4 sm:$0xff]   ;;  %v23687_v14 = vld [vmem:[#allocation13 + $0x1868] ss:$16 sps:$4 sm:$0xff]  }
 0x8c8   : > { %12884 = vmatprep.subr.bf16.mxu1 %v23611_v49  ;;  %v23692_v49 = vld [vmem:[#allocation13 + $0x1884] ss:$16 sps:$4 sm:$0xff]  }
 0x8ca   : > { %12799 = vmatpush1.bf16.msra.mxu0 %v23606_v46  ;;  %v23695_v46 = vld [vmem:[#allocation13 + $0x188c] ss:$16 sps:$4 sm:$0xff]  }
 0x8cb   : > { %12885 = vmatpush1.bf16.msra.mxu1 %v23609_v27  ;;  %12800 = vmatprep.subr.bf16.mxu0 %v23614_v28  ;;  %v23690_v27 = vld [vmem:[#allocation13 + $0x1880] ss:$16 sps:$4 sm:$0xff]   ;;  %v23693_v28 = vld [vmem:[#allocation13 + $0x1888] ss:$16 sps:$4 sm:$0xff]  }
 0x8cc   : > { %12886 = vmatprep.subr.bf16.mxu1 %v23617_v51  ;;  %v23698_v51 = vld [vmem:[#allocation13 + $0x18a4] ss:$16 sps:$4 sm:$0xff]  }
 0x8ce   : > { %12801 = vmatpush1.bf16.msra.mxu0 %v23612_v12  ;;  %v23701_v12 = vld [vmem:[#allocation13 + $0x18ac] ss:$16 sps:$4 sm:$0xff]  }
 0x8cf   : > { %12887 = vmatpush1.bf16.msra.mxu1 %v23615_v59  ;;  %12802 = vmatprep.subr.bf16.mxu0 %v23620_v57  ;;  %v23696_v59 = vld [vmem:[#allocation13 + $0x18a0] ss:$16 sps:$4 sm:$0xff]   ;;  %v23699_v57 = vld [vmem:[#allocation13 + $0x18a8] ss:$16 sps:$4 sm:$0xff]  }
 0x8d0   : > { %12888 = vmatprep.subr.bf16.mxu1 %v23623_v63  ;;  %v23704_v63 = vld [vmem:[#allocation13 + $0x18c4] ss:$16 sps:$4 sm:$0xff]  }
 0x8d2   : > { %12803 = vmatpush1.bf16.msra.mxu0 %v23618_v30  ;;  %v23707_v30 = vld [vmem:[#allocation13 + $0x18cc] ss:$16 sps:$4 sm:$0xff]  }
 0x8d3   : > { %12889 = vmatpush1.bf16.msra.mxu1 %v23621_v2  ;;  %12804 = vmatprep.subr.bf16.mxu0 %v23626_v35  ;;  %v23702_v2 = vld [vmem:[#allocation13 + $0x18c0] ss:$16 sps:$4 sm:$0xff]   ;;  %v23705_v35 = vld [vmem:[#allocation13 + $0x18c8] ss:$16 sps:$4 sm:$0xff]  }
 0x8d4   : > { %12890 = vmatprep.subr.bf16.mxu1 %v23629_v38  ;;  %v23710_v38 = vld [vmem:[#allocation13 + $0x18e4] ss:$16 sps:$4 sm:$0xff]  }
 0x8d6   : > { %12805 = vmatpush1.bf16.msra.mxu0 %v23624_v34  ;;  %v23713_v34 = vld [vmem:[#allocation13 + $0x18ec] ss:$16 sps:$4 sm:$0xff]  }
 0x8d7   : > { %12891 = vmatpush1.bf16.msra.mxu1 %v23627_v0  ;;  %12806 = vmatprep.subr.bf16.mxu0 %v23632_v5  ;;  %v23708_v0 = vld [vmem:[#allocation13 + $0x18e0] ss:$16 sps:$4 sm:$0xff]   ;;  %v23711_v5 = vld [vmem:[#allocation13 + $0x18e8] ss:$16 sps:$4 sm:$0xff]  }
 0x8d8   : > { %12892 = vmatprep.subr.bf16.mxu1 %v23635_v55  ;;  %v23716_v55 = vld [vmem:[#allocation13 + $0x1904] ss:$16 sps:$4 sm:$0xff]  }
 0x8da   : > { %12807 = vmatpush1.bf16.msra.mxu0 %v23630_v9  ;;  %v23719_v9 = vld [vmem:[#allocation13 + $0x190c] ss:$16 sps:$4 sm:$0xff]  }
 0x8db   : > { %12893 = vmatpush1.bf16.msra.mxu1 %v23633_v45  ;;  %12808 = vmatprep.subr.bf16.mxu0 %v23638_v15  ;;  %v23714_v45 = vld [vmem:[#allocation13 + $0x1900] ss:$16 sps:$4 sm:$0xff]   ;;  %v23717_v15 = vld [vmem:[#allocation13 + $0x1908] ss:$16 sps:$4 sm:$0xff]  }
 0x8dc   : > { %12894 = vmatprep.subr.bf16.mxu1 %v23641_v53  ;;  %v23722_v53 = vld [vmem:[#allocation13 + $0x1924] ss:$16 sps:$4 sm:$0xff]  }
 0x8de   : > { %12809 = vmatpush1.bf16.msra.mxu0 %v23636_v50  ;;  %v23725_v50 = vld [vmem:[#allocation13 + $0x192c] ss:$16 sps:$4 sm:$0xff]  }
 0x8df   : > { %12895 = vmatpush1.bf16.msra.mxu1 %v23639_v6  ;;  %12810 = vmatprep.subr.bf16.mxu0 %v23644_v19  ;;  %v23720_v6 = vld [vmem:[#allocation13 + $0x1920] ss:$16 sps:$4 sm:$0xff]   ;;  %v23723_v19 = vld [vmem:[#allocation13 + $0x1928] ss:$16 sps:$4 sm:$0xff]  }
 0x8e0   : > { %12896 = vmatprep.subr.bf16.mxu1 %v23647_v21  ;;  %v23728_v21 = vld [vmem:[#allocation13 + $0x1944] ss:$16 sps:$4 sm:$0xff]  }
 0x8e2   : > { %12811 = vmatpush1.bf16.msra.mxu0 %v23642_v62  ;;  %v23731_v62 = vld [vmem:[#allocation13 + $0x194c] ss:$16 sps:$4 sm:$0xff]  }
 0x8e3   : > { %12897 = vmatpush1.bf16.msra.mxu1 %v23645_v3  ;;  %12812 = vmatprep.subr.bf16.mxu0 %v23650_v32  ;;  %v23726_v3 = vld [vmem:[#allocation13 + $0x1940] ss:$16 sps:$4 sm:$0xff]   ;;  %v23729_v32 = vld [vmem:[#allocation13 + $0x1948] ss:$16 sps:$4 sm:$0xff]  }
 0x8e4   : > { %12898 = vmatprep.subr.bf16.mxu1 %v23653_v31  ;;  %v23734_v31 = vld [vmem:[#allocation13 + $0x1964] ss:$16 sps:$4 sm:$0xff]  }
 0x8e6   : > { %12813 = vmatpush1.bf16.msra.mxu0 %v23648_v33  ;;  %v23737_v33 = vld [vmem:[#allocation13 + $0x196c] ss:$16 sps:$4 sm:$0xff]  }
 0x8e7   : > { %12899 = vmatpush1.bf16.msra.mxu1 %v23651_v36  ;;  %12814 = vmatprep.subr.bf16.mxu0 %v23656_v56  ;;  %v23732_v36 = vld [vmem:[#allocation13 + $0x1960] ss:$16 sps:$4 sm:$0xff]   ;;  %v23735_v56 = vld [vmem:[#allocation13 + $0x1968] ss:$16 sps:$4 sm:$0xff]  }
 0x8e8   : > { %12900 = vmatprep.subr.bf16.mxu1 %v23659_v1  ;;  %v23740_v1 = vld [vmem:[#allocation13 + $0x1984] ss:$16 sps:$4 sm:$0xff]  }
 0x8ea   : > { %12815 = vmatpush1.bf16.msra.mxu0 %v23654_v25  ;;  %v23743_v25 = vld [vmem:[#allocation13 + $0x198c] ss:$16 sps:$4 sm:$0xff]  }
 0x8eb   : > { %12901 = vmatpush1.bf16.msra.mxu1 %v23657_v20  ;;  %12816 = vmatprep.subr.bf16.mxu0 %v23662_v26  ;;  %v23738_v20 = vld [vmem:[#allocation13 + $0x1980] ss:$16 sps:$4 sm:$0xff]   ;;  %v23741_v26 = vld [vmem:[#allocation13 + $0x1988] ss:$16 sps:$4 sm:$0xff]  }
 0x8ec   : > { %12902 = vmatprep.subr.bf16.mxu1 %v23665_v37  ;;  %v23746_v37 = vld [vmem:[#allocation13 + $0x19a4] ss:$16 sps:$4 sm:$0xff]  }
 0x8ee   : > { %12817 = vmatpush1.bf16.msra.mxu0 %v23660_v18  ;;  %v23749_v18 = vld [vmem:[#allocation13 + $0x19ac] ss:$16 sps:$4 sm:$0xff]  }
 0x8ef   : > { %12903 = vmatpush1.bf16.msra.mxu1 %v23663_v41  ;;  %13700 = vmatprep.subr.bf16.mxu0 %v23668_v16  ;;  %v23744_v41 = vld [vmem:[#allocation13 + $0x19a0] ss:$16 sps:$4 sm:$0xff]   ;;  %v23747_v16 = vld [vmem:[#allocation13 + $0x19a8] ss:$16 sps:$4 sm:$0xff]  }
 0x8f0   : > { %13786 = vmatprep.subr.bf16.mxu1 %v23671_v54  ;;  %v23752_v54 = vld [vmem:[#allocation13 + $0x19c4] ss:$16 sps:$4 sm:$0xff]  }
 0x8f1   : > { %12819 = vmatmul.mubr.bf16.vlgmr.msra.gmra.mrb[36].mxu0 %v26253_v22 }
 0x8f2   : > { %12905 = vmatmul.mubr.bf16.vlgmr.msra.gmra.mrb[36].mxu1 %v26253_v22  ;;  %13701 = vmatpush1.bf16.msra.mxu0 %v23666_v40  ;;  %v23684_v22 = vld [vmem:[#allocation13 + $0x1860] ss:$16 sps:$4 sm:$0xff]   ;;  %v23755_v40 = vld [vmem:[#allocation13 + $0x19cc] ss:$16 sps:$4 sm:$0xff]  }
 0x8f3   : > { %13732 = vmatprep.mubr.bf16.mxu0 %v13053_v44  ;;  %13787 = vmatpush1.bf16.msra.mxu1 %v23669_v23  ;;  %v23750_v23 = vld [vmem:[#allocation13 + $0x19c0] ss:$16 sps:$4 sm:$0xff]  }
 0x8f4   : > { %13818 = vmatprep.mubr.bf16.mxu1 %v13053_v44  ;;  %13702 = vmatprep.subr.bf16.mxu0 %v23674_v58  ;;  %v23753_v58 = vld [vmem:[#allocation13 + $0x19c8] ss:$16 sps:$4 sm:$0xff]   ;;  %v23758_v44 = vld [vmem:[#allocation13 + $0x19e4] ss:$16 sps:$4 sm:$0xff]  }
 0x8f5   : > { %13788 = vmatprep.subr.bf16.mxu1 %v23677_v8  ;;  %v23761_v8 = vld [vmem:[#allocation13 + $0x19ec] ss:$16 sps:$4 sm:$0xff]  }
 0x8f6   : > { %13703 = vmatpush1.bf16.msra.mxu0 %v23672_v29  ;;  %v23756_v29 = vld [vmem:[#allocation13 + $0x19e0] ss:$16 sps:$4 sm:$0xff]  }
 0x8f7   : > { %13789 = vmatpush1.bf16.msra.mxu1 %v23675_v39  ;;  %13704 = vmatprep.subr.bf16.mxu0 %v23680_v61  ;;  %v23759_v39 = vld [vmem:[#allocation13 + $0x19e8] ss:$16 sps:$4 sm:$0xff]   ;;  %v23764_v61 = vld [vmem:[#allocation13 + $0x1a04] ss:$16 sps:$4 sm:$0xff]  }
 0x8f8   : > { %13790 = vmatprep.subr.bf16.mxu1 %v23683_v52  ;;  %v23767_v52 = vld [vmem:[#allocation13 + $0x1a0c] ss:$16 sps:$4 sm:$0xff]  }
 0x8fa   : > { %13705 = vmatpush1.bf16.msra.mxu0 %v23678_v43  ;;  %v23762_v43 = vld [vmem:[#allocation13 + $0x1a00] ss:$16 sps:$4 sm:$0xff]  }
 0x8fb   : > { %13791 = vmatpush1.bf16.msra.mxu1 %v23681_v48  ;;  %13706 = vmatprep.subr.bf16.mxu0 %v23686_v60  ;;  %v13052_v48 = vrot.slane %v26191_v42, 1  ;;  %v23765_v60 = vld [vmem:[#allocation13 + $0x1a08] ss:$16 sps:$4 sm:$0xff]   ;;  %v23774_v42 = vld [vmem:[#allocation13 + $0x1a40] ss:$16 sps:$4 sm:$0xff]  }
 0x8fc   : > { %13792 = vmatprep.subr.bf16.mxu1 %v23689_v47  ;;  %v23770_v47 = vld [vmem:[#allocation13 + $0x1a24] ss:$16 sps:$4 sm:$0xff]  }
 0x8fe   : > { %13707 = vmatpush1.bf16.msra.mxu0 %v23684_v22  ;;  %v13055_v22 = vrot.slane %v26202_v24, 1  ;;  %v23785_v24 = vld [vmem:[#allocation13 + $0x1a6c] ss:$16 sps:$4 sm:$0xff]  }
 0x8ff   : > { %13793 = vmatpush1.bf16.msra.mxu1 %v23687_v14  ;;  %13708 = vmatprep.subr.bf16.mxu0 %v23692_v49  ;;  %v23773_v14 = vld [vmem:[#allocation13 + $0x1a2c] ss:$16 sps:$4 sm:$0xff]   ;;  %v23768_v49 = vld [vmem:[#allocation13 + $0x1a20] ss:$16 sps:$4 sm:$0xff]  }
 0x900   : > { %13794 = vmatprep.subr.bf16.mxu1 %v23695_v46  ;;  %v23771_v46 = vld [vmem:[#allocation13 + $0x1a28] ss:$16 sps:$4 sm:$0xff]  }
 0x902   : > { %13709 = vmatpush1.bf16.msra.mxu0 %v23690_v27  ;;  %v23776_v27 = vld [vmem:[#allocation13 + $0x1a44] ss:$16 sps:$4 sm:$0xff]  }
 0x903   : > { %13795 = vmatpush1.bf16.msra.mxu1 %v23693_v28  ;;  %13710 = vmatprep.subr.bf16.mxu0 %v23698_v51  ;;  %v23779_v28 = vld [vmem:[#allocation13 + $0x1a4c] ss:$16 sps:$4 sm:$0xff]   ;;  %v23777_v51 = vld [vmem:[#allocation13 + $0x1a48] ss:$16 sps:$4 sm:$0xff]  }
 0x904   : > { %13796 = vmatprep.subr.bf16.mxu1 %v23701_v12  ;;  %v23782_v12 = vld [vmem:[#allocation13 + $0x1a64] ss:$16 sps:$4 sm:$0xff]  }
 0x906   : > { %13711 = vmatpush1.bf16.msra.mxu0 %v23696_v59  ;;  %v23780_v59 = vld [vmem:[#allocation13 + $0x1a60] ss:$16 sps:$4 sm:$0xff]  }
 0x907   : > { %13797 = vmatpush1.bf16.msra.mxu1 %v23699_v57  ;;  %13712 = vmatprep.subr.bf16.mxu0 %v23704_v63  ;;  %v23783_v57 = vld [vmem:[#allocation13 + $0x1a68] ss:$16 sps:$4 sm:$0xff]   ;;  %v23788_v63 = vld [vmem:[#allocation13 + $0x1a84] ss:$16 sps:$4 sm:$0xff]  }
 0x908   : > { %13798 = vmatprep.subr.bf16.mxu1 %v23707_v30  ;;  %v23791_v30 = vld [vmem:[#allocation13 + $0x1a8c] ss:$16 sps:$4 sm:$0xff]  }
 0x90a   : > { %13713 = vmatpush1.bf16.msra.mxu0 %v23702_v2  ;;  %v23786_v2 = vld [vmem:[#allocation13 + $0x1a80] ss:$16 sps:$4 sm:$0xff]  }
 0x90b   : > { %13799 = vmatpush1.bf16.msra.mxu1 %v23705_v35  ;;  %13714 = vmatprep.subr.bf16.mxu0 %v23710_v38  ;;  %v23789_v35 = vld [vmem:[#allocation13 + $0x1a88] ss:$16 sps:$4 sm:$0xff]   ;;  %v23794_v38 = vld [vmem:[#allocation13 + $0x1aa4] ss:$16 sps:$4 sm:$0xff]  }
 0x90c   : > { %13800 = vmatprep.subr.bf16.mxu1 %v23713_v34  ;;  %v23797_v34 = vld [vmem:[#allocation13 + $0x1aac] ss:$16 sps:$4 sm:$0xff]  }
 0x90e   : > { %13715 = vmatpush1.bf16.msra.mxu0 %v23708_v0  ;;  %v23792_v0 = vld [vmem:[#allocation13 + $0x1aa0] ss:$16 sps:$4 sm:$0xff]  }
 0x90f   : > { %13801 = vmatpush1.bf16.msra.mxu1 %v23711_v5  ;;  %13716 = vmatprep.subr.bf16.mxu0 %v23716_v55  ;;  %v23795_v5 = vld [vmem:[#allocation13 + $0x1aa8] ss:$16 sps:$4 sm:$0xff]   ;;  %v23800_v55 = vld [vmem:[#allocation13 + $0x1ac4] ss:$16 sps:$4 sm:$0xff]  }
 0x910   : > { %13802 = vmatprep.subr.bf16.mxu1 %v23719_v9  ;;  %v23803_v9 = vld [vmem:[#allocation13 + $0x1acc] ss:$16 sps:$4 sm:$0xff]  }
 0x912   : > { %13717 = vmatpush1.bf16.msra.mxu0 %v23714_v45  ;;  %v23798_v45 = vld [vmem:[#allocation13 + $0x1ac0] ss:$16 sps:$4 sm:$0xff]  }
 0x913   : > { %13803 = vmatpush1.bf16.msra.mxu1 %v23717_v15  ;;  %13718 = vmatprep.subr.bf16.mxu0 %v23722_v53  ;;  %v23801_v15 = vld [vmem:[#allocation13 + $0x1ac8] ss:$16 sps:$4 sm:$0xff]   ;;  %v23806_v53 = vld [vmem:[#allocation13 + $0x1ae4] ss:$16 sps:$4 sm:$0xff]  }
 0x914   : > { %13804 = vmatprep.subr.bf16.mxu1 %v23725_v50  ;;  %v23809_v50 = vld [vmem:[#allocation13 + $0x1aec] ss:$16 sps:$4 sm:$0xff]  }
 0x916   : > { %13719 = vmatpush1.bf16.msra.mxu0 %v23720_v6  ;;  %v23804_v6 = vld [vmem:[#allocation13 + $0x1ae0] ss:$16 sps:$4 sm:$0xff]  }
 0x917   : > { %13805 = vmatpush1.bf16.msra.mxu1 %v23723_v19  ;;  %13720 = vmatprep.subr.bf16.mxu0 %v23728_v21  ;;  %v23807_v19 = vld [vmem:[#allocation13 + $0x1ae8] ss:$16 sps:$4 sm:$0xff]   ;;  %v23812_v21 = vld [vmem:[#allocation13 + $0x1b04] ss:$16 sps:$4 sm:$0xff]  }
 0x918   : > { %13806 = vmatprep.subr.bf16.mxu1 %v23731_v62  ;;  %v23815_v62 = vld [vmem:[#allocation13 + $0x1b0c] ss:$16 sps:$4 sm:$0xff]  }
 0x91a   : > { %13721 = vmatpush1.bf16.msra.mxu0 %v23726_v3  ;;  %v23810_v3 = vld [vmem:[#allocation13 + $0x1b00] ss:$16 sps:$4 sm:$0xff]  }
 0x91b   : > { %13807 = vmatpush1.bf16.msra.mxu1 %v23729_v32  ;;  %13722 = vmatprep.subr.bf16.mxu0 %v23734_v31  ;;  %v23813_v32 = vld [vmem:[#allocation13 + $0x1b08] ss:$16 sps:$4 sm:$0xff]   ;;  %v23818_v31 = vld [vmem:[#allocation13 + $0x1b24] ss:$16 sps:$4 sm:$0xff]  }
 0x91c   : > { %13808 = vmatprep.subr.bf16.mxu1 %v23737_v33  ;;  %v23821_v33 = vld [vmem:[#allocation13 + $0x1b2c] ss:$16 sps:$4 sm:$0xff]  }
 0x91e   : > { %13723 = vmatpush1.bf16.msra.mxu0 %v23732_v36  ;;  %v23816_v36 = vld [vmem:[#allocation13 + $0x1b20] ss:$16 sps:$4 sm:$0xff]  }
 0x91f   : > { %13809 = vmatpush1.bf16.msra.mxu1 %v23735_v56  ;;  %13724 = vmatprep.subr.bf16.mxu0 %v23740_v1  ;;  %v23819_v56 = vld [vmem:[#allocation13 + $0x1b28] ss:$16 sps:$4 sm:$0xff]   ;;  %v23824_v1 = vld [vmem:[#allocation13 + $0x1b44] ss:$16 sps:$4 sm:$0xff]  }
 0x920   : > { %13810 = vmatprep.subr.bf16.mxu1 %v23743_v25  ;;  %v23827_v25 = vld [vmem:[#allocation13 + $0x1b4c] ss:$16 sps:$4 sm:$0xff]  }
 0x922   : > { %13725 = vmatpush1.bf16.msra.mxu0 %v23738_v20  ;;  %v23822_v20 = vld [vmem:[#allocation13 + $0x1b40] ss:$16 sps:$4 sm:$0xff]  }
 0x923   : > { %13811 = vmatpush1.bf16.msra.mxu1 %v23741_v26  ;;  %13726 = vmatprep.subr.bf16.mxu0 %v23746_v37  ;;  %v23825_v26 = vld [vmem:[#allocation13 + $0x1b48] ss:$16 sps:$4 sm:$0xff]   ;;  %v23830_v37 = vld [vmem:[#allocation13 + $0x1b64] ss:$16 sps:$4 sm:$0xff]  }
 0x924   : > { %13812 = vmatprep.subr.bf16.mxu1 %v23749_v18  ;;  %v23833_v18 = vld [vmem:[#allocation13 + $0x1b6c] ss:$16 sps:$4 sm:$0xff]  }
 0x926   : > { %13727 = vmatpush1.bf16.msra.mxu0 %v23744_v41  ;;  %v23828_v41 = vld [vmem:[#allocation13 + $0x1b60] ss:$16 sps:$4 sm:$0xff]  }
 0x927   : > { %13813 = vmatpush1.bf16.msra.mxu1 %v23747_v16  ;;  %13728 = vmatprep.subr.bf16.mxu0 %v23752_v54  ;;  %v23831_v16 = vld [vmem:[#allocation13 + $0x1b68] ss:$16 sps:$4 sm:$0xff]   ;;  %v23836_v54 = vld [vmem:[#allocation13 + $0x1b84] ss:$16 sps:$4 sm:$0xff]  }
 0x928   : > { %13814 = vmatprep.subr.bf16.mxu1 %v23755_v40  ;;  %v23839_v40 = vld [vmem:[#allocation13 + $0x1b8c] ss:$16 sps:$4 sm:$0xff]  }
 0x92a   : > { %13729 = vmatpush1.bf16.msra.mxu0 %v23750_v23  ;;  %v23834_v23 = vld [vmem:[#allocation13 + $0x1b80] ss:$16 sps:$4 sm:$0xff]  }
 0x92b   : > { %13815 = vmatpush1.bf16.msra.mxu1 %v23753_v58  ;;  %13730 = vmatprep.subr.bf16.mxu0 %v23758_v44  ;;  %v23837_v58 = vld [vmem:[#allocation13 + $0x1b88] ss:$16 sps:$4 sm:$0xff]   ;;  %v23842_v44 = vld [vmem:[#allocation13 + $0x1ba4] ss:$16 sps:$4 sm:$0xff]  }
 0x92c   : > { %13816 = vmatprep.subr.bf16.mxu1 %v23761_v8  ;;  %v23845_v8 = vld [vmem:[#allocation13 + $0x1bac] ss:$16 sps:$4 sm:$0xff]  }
 0x92e   : > { %13731 = vmatpush1.bf16.msra.mxu0 %v23756_v29  ;;  %v23840_v29 = vld [vmem:[#allocation13 + $0x1ba0] ss:$16 sps:$4 sm:$0xff]  }
 0x92f   : > { %13817 = vmatpush1.bf16.msra.mxu1 %v23759_v39  ;;  %13743 = vmatprep.subr.bf16.mxu0 %v23764_v61  ;;  %v23843_v39 = vld [vmem:[#allocation13 + $0x1ba8] ss:$16 sps:$4 sm:$0xff]   ;;  %v23848_v61 = vld [vmem:[#allocation13 + $0x1bc4] ss:$16 sps:$4 sm:$0xff]  }
 0x930   : > { %13829 = vmatprep.subr.bf16.mxu1 %v23767_v52  ;;  %v23851_v52 = vld [vmem:[#allocation13 + $0x1bcc] ss:$16 sps:$4 sm:$0xff]  }
 0x931   : > { %13733 = vmatmul.mubr.bf16.vlgmr.msra.gmra.mrb[36].mxu0 %v13052_v48 }
 0x932   : > { %13819 = vmatmul.mubr.bf16.vlgmr.msra.gmra.mrb[36].mxu1 %v13052_v48  ;;  %13744 = vmatpush1.bf16.msra.mxu0 %v23762_v43  ;;  %v23846_v43 = vld [vmem:[#allocation13 + $0x1bc0] ss:$16 sps:$4 sm:$0xff]   ;;  %v23849_v48 = vld [vmem:[#allocation13 + $0x1bc8] ss:$16 sps:$4 sm:$0xff]  }
 0x933   : > { %13775 = vmatprep.mubr.bf16.mxu0 %v13055_v22  ;;  %13830 = vmatpush1.bf16.msra.mxu1 %v23765_v60  ;;  %v23854_v60 = vld [vmem:[#allocation13 + $0x1be4] ss:$16 sps:$4 sm:$0xff]  }
 0x934   : > { %13861 = vmatprep.mubr.bf16.mxu1 %v13055_v22  ;;  %13745 = vmatprep.subr.bf16.mxu0 %v23770_v47  ;;  %v23857_v47 = vld [vmem:[#allocation13 + $0x1bec] ss:$16 sps:$4 sm:$0xff]   ;;  %v23852_v22 = vld [vmem:[#allocation13 + $0x1be0] ss:$16 sps:$4 sm:$0xff]  }
 0x935   : > { %13831 = vmatprep.subr.bf16.mxu1 %v23773_v14  ;;  %v23855_v14 = vld [vmem:[#allocation13 + $0x1be8] ss:$16 sps:$4 sm:$0xff]  }
 0x936   : > { %13746 = vmatpush1.bf16.msra.mxu0 %v23768_v49  ;;  %v23860_v49 = vld [vmem:[#allocation17 + $0x4] ss:$16 sps:$4 sm:$0xff]  }
 0x937   : > { %13832 = vmatpush1.bf16.msra.mxu1 %v23771_v46  ;;  %13747 = vmatprep.subr.bf16.mxu0 %v23776_v27  ;;  %v23863_v46 = vld [vmem:[#allocation17 + $0xc] ss:$16 sps:$4 sm:$0xff]   ;;  %v23858_v27 = vld [vmem:[#allocation17] ss:$16 sps:$4 sm:$0xff]  }
 0x938   : > { %13833 = vmatprep.subr.bf16.mxu1 %v23779_v28  ;;  %v13054_v28 = vrot.slane %v26197_v4, 1  ;;  %v23873_v4 = vld [vmem:[#allocation17 + $0x48] ss:$16 sps:$4 sm:$0xff]  }
 0x93a   : > { %13748 = vmatpush1.bf16.msra.mxu0 %v23774_v42  ;;  %v23861_v42 = vld [vmem:[#allocation17 + $0x8] ss:$16 sps:$4 sm:$0xff]  }
 0x93b   : > { %13834 = vmatpush1.bf16.msra.mxu1 %v23777_v51  ;;  %13749 = vmatprep.subr.bf16.mxu0 %v23782_v12  ;;  %v23866_v51 = vld [vmem:[#allocation17 + $0x24] ss:$16 sps:$4 sm:$0xff]   ;;  %v23869_v12 = vld [vmem:[#allocation17 + $0x2c] ss:$16 sps:$4 sm:$0xff]  }
 0x93c   : > { %13835 = vmatprep.subr.bf16.mxu1 %v23785_v24  ;;  %v23864_v24 = vld [vmem:[#allocation17 + $0x20] ss:$16 sps:$4 sm:$0xff]  }
 0x93e   : > { %13750 = vmatpush1.bf16.msra.mxu0 %v23780_v59  ;;  %v23867_v59 = vld [vmem:[#allocation17 + $0x28] ss:$16 sps:$4 sm:$0xff]  }
 0x93f   : > { %13836 = vmatpush1.bf16.msra.mxu1 %v23783_v57  ;;  %13751 = vmatprep.subr.bf16.mxu0 %v23788_v63  ;;  %v23872_v57 = vld [vmem:[#allocation17 + $0x44] ss:$16 sps:$4 sm:$0xff]   ;;  %v23875_v63 = vld [vmem:[#allocation17 + $0x4c] ss:$16 sps:$4 sm:$0xff]  }
 0x940   : > { %13837 = vmatprep.subr.bf16.mxu1 %v23791_v30  ;;  %v23870_v30 = vld [vmem:[#allocation17 + $0x40] ss:$16 sps:$4 sm:$0xff]  }
 0x942   : > { %13752 = vmatpush1.bf16.msra.mxu0 %v23786_v2  ;;  %v23878_v2 = vld [vmem:[#allocation17 + $0x64] ss:$16 sps:$4 sm:$0xff]  }
 0x943   : > { %13838 = vmatpush1.bf16.msra.mxu1 %v23789_v35  ;;  %13753 = vmatprep.subr.bf16.mxu0 %v23794_v38  ;;  %v23881_v35 = vld [vmem:[#allocation17 + $0x6c] ss:$16 sps:$4 sm:$0xff]   ;;  %v23876_v38 = vld [vmem:[#allocation17 + $0x60] ss:$16 sps:$4 sm:$0xff]  }
 0x944   : > { %13839 = vmatprep.subr.bf16.mxu1 %v23797_v34  ;;  %v23879_v34 = vld [vmem:[#allocation17 + $0x68] ss:$16 sps:$4 sm:$0xff]  }
 0x946   : > { %13754 = vmatpush1.bf16.msra.mxu0 %v23792_v0  ;;  %v23884_v0 = vld [vmem:[#allocation17 + $0x84] ss:$16 sps:$4 sm:$0xff]  }
 0x947   : > { %13840 = vmatpush1.bf16.msra.mxu1 %v23795_v5  ;;  %13755 = vmatprep.subr.bf16.mxu0 %v23800_v55  ;;  %v23887_v5 = vld [vmem:[#allocation17 + $0x8c] ss:$16 sps:$4 sm:$0xff]   ;;  %v23882_v55 = vld [vmem:[#allocation17 + $0x80] ss:$16 sps:$4 sm:$0xff]  }
 0x948   : > { %13841 = vmatprep.subr.bf16.mxu1 %v23803_v9  ;;  %v23885_v9 = vld [vmem:[#allocation17 + $0x88] ss:$16 sps:$4 sm:$0xff]  }
 0x94a   : > { %13756 = vmatpush1.bf16.msra.mxu0 %v23798_v45  ;;  %v23890_v45 = vld [vmem:[#allocation17 + $0xa4] ss:$16 sps:$4 sm:$0xff]  }
 0x94b   : > { %13842 = vmatpush1.bf16.msra.mxu1 %v23801_v15  ;;  %13757 = vmatprep.subr.bf16.mxu0 %v23806_v53  ;;  %v23893_v15 = vld [vmem:[#allocation17 + $0xac] ss:$16 sps:$4 sm:$0xff]   ;;  %v23888_v53 = vld [vmem:[#allocation17 + $0xa0] ss:$16 sps:$4 sm:$0xff]  }
 0x94c   : > { %13843 = vmatprep.subr.bf16.mxu1 %v23809_v50  ;;  %v23891_v50 = vld [vmem:[#allocation17 + $0xa8] ss:$16 sps:$4 sm:$0xff]  }
 0x94e   : > { %13758 = vmatpush1.bf16.msra.mxu0 %v23804_v6  ;;  %v23896_v6 = vld [vmem:[#allocation17 + $0xc4] ss:$16 sps:$4 sm:$0xff]  }
 0x94f   : > { %13844 = vmatpush1.bf16.msra.mxu1 %v23807_v19  ;;  %13759 = vmatprep.subr.bf16.mxu0 %v23812_v21  ;;  %v23899_v19 = vld [vmem:[#allocation17 + $0xcc] ss:$16 sps:$4 sm:$0xff]   ;;  %v23894_v21 = vld [vmem:[#allocation17 + $0xc0] ss:$16 sps:$4 sm:$0xff]  }
 0x950   : > { %13845 = vmatprep.subr.bf16.mxu1 %v23815_v62  ;;  %v23897_v62 = vld [vmem:[#allocation17 + $0xc8] ss:$16 sps:$4 sm:$0xff]  }
 0x952   : > { %13760 = vmatpush1.bf16.msra.mxu0 %v23810_v3  ;;  %v23902_v3 = vld [vmem:[#allocation17 + $0xe4] ss:$16 sps:$4 sm:$0xff]  }
 0x953   : > { %13846 = vmatpush1.bf16.msra.mxu1 %v23813_v32  ;;  %13761 = vmatprep.subr.bf16.mxu0 %v23818_v31  ;;  %v23905_v32 = vld [vmem:[#allocation17 + $0xec] ss:$16 sps:$4 sm:$0xff]   ;;  %v23900_v31 = vld [vmem:[#allocation17 + $0xe0] ss:$16 sps:$4 sm:$0xff]  }
 0x954   : > { %13847 = vmatprep.subr.bf16.mxu1 %v23821_v33  ;;  %v23903_v33 = vld [vmem:[#allocation17 + $0xe8] ss:$16 sps:$4 sm:$0xff]  }
 0x956   : > { %13762 = vmatpush1.bf16.msra.mxu0 %v23816_v36  ;;  %v23908_v36 = vld [vmem:[#allocation17 + $0x104] ss:$16 sps:$4 sm:$0xff]  }
 0x957   : > { %13848 = vmatpush1.bf16.msra.mxu1 %v23819_v56  ;;  %13763 = vmatprep.subr.bf16.mxu0 %v23824_v1  ;;  %v23911_v56 = vld [vmem:[#allocation17 + $0x10c] ss:$16 sps:$4 sm:$0xff]   ;;  %v23906_v1 = vld [vmem:[#allocation17 + $0x100] ss:$16 sps:$4 sm:$0xff]  }
 0x958   : > { %13849 = vmatprep.subr.bf16.mxu1 %v23827_v25  ;;  %v23909_v25 = vld [vmem:[#allocation17 + $0x108] ss:$16 sps:$4 sm:$0xff]  }
 0x95a   : > { %13764 = vmatpush1.bf16.msra.mxu0 %v23822_v20  ;;  %v23914_v20 = vld [vmem:[#allocation17 + $0x124] ss:$16 sps:$4 sm:$0xff]  }
 0x95b   : > { %13850 = vmatpush1.bf16.msra.mxu1 %v23825_v26  ;;  %13765 = vmatprep.subr.bf16.mxu0 %v23830_v37  ;;  %v23917_v26 = vld [vmem:[#allocation17 + $0x12c] ss:$16 sps:$4 sm:$0xff]   ;;  %v23912_v37 = vld [vmem:[#allocation17 + $0x120] ss:$16 sps:$4 sm:$0xff]  }
 0x95c   : > { %13851 = vmatprep.subr.bf16.mxu1 %v23833_v18  ;;  %v23915_v18 = vld [vmem:[#allocation17 + $0x128] ss:$16 sps:$4 sm:$0xff]  }
 0x95e   : > { %13766 = vmatpush1.bf16.msra.mxu0 %v23828_v41  ;;  %v23920_v41 = vld [vmem:[#allocation17 + $0x144] ss:$16 sps:$4 sm:$0xff]  }
 0x95f   : > { %13852 = vmatpush1.bf16.msra.mxu1 %v23831_v16  ;;  %13767 = vmatprep.subr.bf16.mxu0 %v23836_v54  ;;  %v23923_v16 = vld [vmem:[#allocation17 + $0x14c] ss:$16 sps:$4 sm:$0xff]   ;;  %v23918_v54 = vld [vmem:[#allocation17 + $0x140] ss:$16 sps:$4 sm:$0xff]  }
 0x960   : > { %13853 = vmatprep.subr.bf16.mxu1 %v23839_v40  ;;  %v23921_v40 = vld [vmem:[#allocation17 + $0x148] ss:$16 sps:$4 sm:$0xff]  }
 0x962   : > { %13768 = vmatpush1.bf16.msra.mxu0 %v23834_v23  ;;  %v23926_v23 = vld [vmem:[#allocation17 + $0x164] ss:$16 sps:$4 sm:$0xff]  }
 0x963   : > { %13854 = vmatpush1.bf16.msra.mxu1 %v23837_v58  ;;  %13769 = vmatprep.subr.bf16.mxu0 %v23842_v44  ;;  %v23929_v58 = vld [vmem:[#allocation17 + $0x16c] ss:$16 sps:$4 sm:$0xff]   ;;  %v23924_v44 = vld [vmem:[#allocation17 + $0x160] ss:$16 sps:$4 sm:$0xff]  }
 0x964   : > { %13855 = vmatprep.subr.bf16.mxu1 %v23845_v8  ;;  %v23927_v8 = vld [vmem:[#allocation17 + $0x168] ss:$16 sps:$4 sm:$0xff]  }
 0x966   : > { %13770 = vmatpush1.bf16.msra.mxu0 %v23840_v29  ;;  %v23932_v29 = vld [vmem:[#allocation17 + $0x184] ss:$16 sps:$4 sm:$0xff]  }
 0x967   : > { %13856 = vmatpush1.bf16.msra.mxu1 %v23843_v39  ;;  %13771 = vmatprep.subr.bf16.mxu0 %v23848_v61  ;;  %v23935_v39 = vld [vmem:[#allocation17 + $0x18c] ss:$16 sps:$4 sm:$0xff]   ;;  %v23930_v61 = vld [vmem:[#allocation17 + $0x180] ss:$16 sps:$4 sm:$0xff]  }
 0x968   : > { %13857 = vmatprep.subr.bf16.mxu1 %v23851_v52  ;;  %v23933_v52 = vld [vmem:[#allocation17 + $0x188] ss:$16 sps:$4 sm:$0xff]  }
 0x96a   : > { %13772 = vmatpush1.bf16.msra.mxu0 %v23846_v43  ;;  %v23936_v43 = vld [vmem:[#allocation17 + $0x1a0] ss:$16 sps:$4 sm:$0xff]  }
 0x96b   : > { %13858 = vmatpush1.bf16.msra.mxu1 %v23849_v48  ;;  %13773 = vmatprep.subr.bf16.mxu0 %v23854_v60  ;;  %v23938_v48 = vld [vmem:[#allocation17 + $0x1a4] ss:$16 sps:$4 sm:$0xff]   ;;  %v23939_v60 = vld [vmem:[#allocation17 + $0x1a8] ss:$16 sps:$4 sm:$0xff]  }
 0x96c   : > { %13859 = vmatprep.subr.bf16.mxu1 %v23857_v47  ;;  %v23941_v47 = vld [vmem:[#allocation17 + $0x1ac] ss:$16 sps:$4 sm:$0xff]  }
 0x96e   : > { %13774 = vmatpush1.bf16.msra.mxu0 %v23852_v22  ;;  %v23944_v22 = vld [vmem:[#allocation17 + $0x1c4] ss:$16 sps:$4 sm:$0xff]  }
 0x96f   : > { %13860 = vmatpush1.bf16.msra.mxu1 %v23855_v14  ;;  %14773 = vmatprep.subr.bf16.mxu0 %v23860_v49  ;;  %v23947_v14 = vld [vmem:[#allocation17 + $0x1cc] ss:$16 sps:$4 sm:$0xff]   ;;  %v23942_v49 = vld [vmem:[#allocation17 + $0x1c0] ss:$16 sps:$4 sm:$0xff]  }
 0x970   : > { %14859 = vmatprep.subr.bf16.mxu1 %v23863_v46  ;;  %v23945_v46 = vld [vmem:[#allocation17 + $0x1c8] ss:$16 sps:$4 sm:$0xff]  }
 0x971   : > { %13776 = vmatmul.mubr.bf16.vlgmr.msra.gmra.mrb[36].mxu0 %v13054_v28 }
 0x972   : > { %13862 = vmatmul.mubr.bf16.vlgmr.msra.gmra.mrb[36].mxu1 %v13054_v28  ;;  %14774 = vmatpush1.bf16.msra.mxu0 %v23858_v27  ;;  %v23950_v27 = vld [vmem:[#allocation17 + $0x1e4] ss:$16 sps:$4 sm:$0xff]   ;;  %v23953_v28 = vld [vmem:[#allocation17 + $0x1ec] ss:$16 sps:$4 sm:$0xff]  }
 0x973   : > { %14860 = vmatpush1.bf16.msra.mxu1 %v23861_v42  ;;  %14775 = vmatprep.subr.bf16.mxu0 %v23866_v51  ;;  %v23948_v42 = vld [vmem:[#allocation17 + $0x1e0] ss:$16 sps:$4 sm:$0xff]   ;;  %v23951_v51 = vld [vmem:[#allocation17 + $0x1e8] ss:$16 sps:$4 sm:$0xff]  }
 0x974   : > { %14861 = vmatprep.subr.bf16.mxu1 %v23869_v12  ;;  %v23956_v12 = vld [vmem:[#allocation17 + $0x204] ss:$16 sps:$4 sm:$0xff]  }
 0x976   : > { %14776 = vmatpush1.bf16.msra.mxu0 %v23864_v24  ;;  %v23959_v24 = vld [vmem:[#allocation17 + $0x20c] ss:$16 sps:$4 sm:$0xff]  }
 0x977   : > { %14862 = vmatpush1.bf16.msra.mxu1 %v23867_v59  ;;  %14777 = vmatprep.subr.bf16.mxu0 %v23872_v57  ;;  %v13880_v59 = vld [vmem:[#allocation14] sm:$0xf] }
 0x978   : > { %14863 = vmatprep.subr.bf16.mxu1 %v23875_v63  ;;  %v13885_v57 = vrot.slane %v13880_v59, %v25812_v10  ;;  %v13918_v63 = vld [vmem:[#allocation16] ss:$2 sm:$0xf] }
 0x97a   : > { %14778 = vmatpush1.bf16.msra.mxu0 %v23870_v30  ;;  %v13949_v30 = vld [vmem:[#allocation16 + $0x1] ss:$2 sm:$0xf] }
 0x97b   : > { %14864 = vmatpush1.bf16.msra.mxu1 %v23873_v4  ;;  %14779 = vmatprep.subr.bf16.mxu0 %v23878_v2  ;;  %v13893_v4 = vrot.slane %v13880_v59, %v25819_v17  ;;  %v13889_v2 = vrot.slane %v13880_v59, %v25826_v11 }
 0x97c   : > { %14865 = vmatprep.subr.bf16.mxu1 %v23881_v35  ;;  %v13897_v35 = vrot.slane %v13880_v59, %v25829_v13  ;;  %v23957_v59 = vld [vmem:[#allocation17 + $0x208] ss:$16 sps:$4 sm:$0xff]  }
 0x97e   : > { %14780 = vmatpush1.bf16.msra.mxu0 %v23876_v38 }
 0x97f   : > { %14866 = vmatpush1.bf16.msra.mxu1 %v23879_v34  ;;  %14781 = vmatprep.subr.bf16.mxu0 %v23884_v0  ;;  %v13923_v34 = vrot.slane %v13918_v63, %v25812_v10 }
 0x980   : > { %14867 = vmatprep.subr.bf16.mxu1 %v23887_v5  ;;  %v13954_v5 = vrot.slane %v13949_v30, %v25812_v10 }
 0x982   : > { %14782 = vmatpush1.bf16.msra.mxu0 %v23882_v55 }
 0x983   : > { %14868 = vmatpush1.bf16.msra.mxu1 %v23885_v9  ;;  %14783 = vmatprep.subr.bf16.mxu0 %v23890_v45  ;;  %v13931_v9 = vrot.slane %v13918_v63, %v25819_v17  ;;  %v13962_v45 = vrot.slane %v13949_v30, %v25819_v17 }
 0x984   : > { %14869 = vmatprep.subr.bf16.mxu1 %v23893_v15 }
 0x986   : > { %14784 = vmatpush1.bf16.msra.mxu0 %v23888_v53 }
 0x987   : > { %14870 = vmatpush1.bf16.msra.mxu1 %v23891_v50  ;;  %14785 = vmatprep.subr.bf16.mxu0 %v23896_v6  ;;  %v13927_v6 = vrot.slane %v13918_v63, %v25826_v11 }
 0x988   : > { %14871 = vmatprep.subr.bf16.mxu1 %v23899_v19  ;;  %v13958_v19 = vrot.slane %v13949_v30, %v25826_v11 }
 0x98a   : > { %14786 = vmatpush1.bf16.msra.mxu0 %v23894_v21 }
 0x98b   : > { %14872 = vmatpush1.bf16.msra.mxu1 %v23897_v62  ;;  %14787 = vmatprep.subr.bf16.mxu0 %v23902_v3 }
 0x98c   : > { %14873 = vmatprep.subr.bf16.mxu1 %v23905_v32 }
 0x98e   : > { %14788 = vmatpush1.bf16.msra.mxu0 %v23900_v31  ;;  %v13935_v31 = vrot.slane %v13918_v63, %v25829_v13  ;;  %v23962_v63 = vld [vmem:[#allocation17 + $0x224] ss:$16 sps:$4 sm:$0xff]  }
 0x98f   : > { %14874 = vmatpush1.bf16.msra.mxu1 %v23903_v33  ;;  %14789 = vmatprep.subr.bf16.mxu0 %v23908_v36 }
 0x990   : > { %14875 = vmatprep.subr.bf16.mxu1 %v23911_v56 }
 0x992   : > { %14790 = vmatpush1.bf16.msra.mxu0 %v23906_v1 }
 0x993   : > { %14876 = vmatpush1.bf16.msra.mxu1 %v23909_v25  ;;  %14791 = vmatprep.subr.bf16.mxu0 %v23914_v20 }
 0x994   : > { %14877 = vmatprep.subr.bf16.mxu1 %v23917_v26 }
 0x996   : > { %14792 = vmatpush1.bf16.msra.mxu0 %v23912_v37 }
 0x997   : > { %14878 = vmatpush1.bf16.msra.mxu1 %v23915_v18  ;;  %14793 = vmatprep.subr.bf16.mxu0 %v23920_v41 }
 0x998   : > { %14879 = vmatprep.subr.bf16.mxu1 %v23923_v16 }
 0x99a   : > { %14794 = vmatpush1.bf16.msra.mxu0 %v23918_v54 }
 0x99b   : > { %14880 = vmatpush1.bf16.msra.mxu1 %v23921_v40  ;;  %14795 = vmatprep.subr.bf16.mxu0 %v23926_v23 }
 0x99c   : > { %14881 = vmatprep.subr.bf16.mxu1 %v23929_v58 }
 0x99e   : > { %14796 = vmatpush1.bf16.msra.mxu0 %v23924_v44 }
 0x99f   : > { %14882 = vmatpush1.bf16.msra.mxu1 %v23927_v8  ;;  %14797 = vmatprep.subr.bf16.mxu0 %v23932_v29  ;;  %v13966_v29 = vrot.slane %v13949_v30, %v25829_v13  ;;  %v23965_v30 = vld [vmem:[#allocation17 + $0x22c] ss:$16 sps:$4 sm:$0xff]  }
 0x9a0   : > { %14883 = vmatprep.subr.bf16.mxu1 %v23935_v39 }
 0x9a2   : > { %14798 = vmatpush1.bf16.msra.mxu0 %v23930_v61 }
 0x9a3   : > { %14884 = vmatpush1.bf16.msra.mxu1 %v23933_v52  ;;  %14799 = vmatprep.subr.bf16.mxu0 %v23938_v48 }
 0x9a4   : > { %14885 = vmatprep.subr.bf16.mxu1 %v23941_v47 }
 0x9a6   : > { %14800 = vmatpush1.bf16.msra.mxu0 %v23936_v43 }
 0x9a7   : > { %14886 = vmatpush1.bf16.msra.mxu1 %v23939_v60  ;;  %14801 = vmatprep.subr.bf16.mxu0 %v23944_v22 }
 0x9a8   : > { %14887 = vmatprep.subr.bf16.mxu1 %v23947_v14 }
 0x9aa   : > { %14802 = vmatpush1.bf16.msra.mxu0 %v23942_v49 }
 0x9ab   : > { %14888 = vmatpush1.bf16.msra.mxu1 %v23945_v46  ;;  %14803 = vmatprep.subr.bf16.mxu0 %v23950_v27 }
 0x9ac   : > { %14889 = vmatprep.subr.bf16.mxu1 %v23953_v28 }
 0x9ae   : > { %14804 = vmatpush1.bf16.msra.mxu0 %v23948_v42 }
 0x9af   : > { %14890 = vmatpush1.bf16.msra.mxu1 %v23951_v51  ;;  %14816 = vmatprep.subr.bf16.mxu0 %v23956_v12 }
 0x9b0   : > { %14902 = vmatprep.subr.bf16.mxu1 %v23959_v24  ;;  %v23954_v24 = vld [vmem:[#allocation17 + $0x200] ss:$16 sps:$4 sm:$0xff]  }
 0xa44   : > { %v13777_v38 = vpop.f32.mrb[36].mxu0 }
 0xa45   : > { %v13902_v0 = vadd.f32 %v13885_v57, %v13777_v38  ;;  %v13863_v55 = vpop.f32.mrb[36].mxu1  ;;  %v13779_v15 = vpop.f32.mrb[37].mxu0  ;;  %v23971_v38 = vld [vmem:[#allocation17 + $0x24c] ss:$16 sps:$4 sm:$0xff]  }
 0xa46   : > { %v13904_v53 = vadd.f32 %v13893_v4, %v13863_v55  ;;  %v13903_v50 = vadd.f32 %v13889_v2, %v13779_v15  ;;  %v13865_v21 = vpop.f32.mrb[37].mxu1  ;;  %v13781_v62 = vpop.f32.mrb[38].mxu0  ;;  %v23977_v55 = vld [vmem:[#allocation17 + $0x26c] ss:$16 sps:$4 sm:$0xff]   ;;  %v23980_v15 = vld [vmem:[#allocation17 + $0x284] ss:$16 sps:$4 sm:$0xff]  }
 0xa47   : > { %v13910_v3 = vmax.f32 %v13902_v0, 0.0  ;;  %v13905_v32 = vadd.f32 %v13897_v35, %v13865_v21  ;;  %v13906_v33 = vadd.f32 %v13885_v57, %v13781_v62  ;;  %v13867_v36 = vpop.f32.mrb[38].mxu1  ;;  %v13783_v56 = vpop.f32.mrb[39].mxu0  ;;  %v23969_v0 = vld [vmem:[#allocation17 + $0x248] ss:$16 sps:$4 sm:$0xff]  }
 0xa48   : > { %v13912_v1 = vmax.f32 %v13904_v53, 0.0  ;;  %v13911_v25 = vmax.f32 %v13903_v50, 0.0  ;;  %v13908_v20 = vadd.f32 %v13893_v4, %v13867_v36  ;;  %v13907_v26 = vadd.f32 %v13889_v2, %v13783_v56  ;;  %v13869_v37 = vpop.f32.mrb[39].mxu1  ;;  %v23960_v4 = vld [vmem:[#allocation17 + $0x220] ss:$16 sps:$4 sm:$0xff]  }
 0xa49   : > { %v13940_v18 = vmul.f32 %v13923_v34, %v13910_v3  ;;  %v13913_v41 = vmax.f32 %v13905_v32, 0.0  ;;  %v13914_v16 = vmax.f32 %v13906_v33, 0.0  ;;  %v13909_v54 = vadd.f32 %v13897_v35, %v13869_v37  ;;  %v23963_v2 = vld [vmem:[#allocation17 + $0x228] ss:$16 sps:$4 sm:$0xff]   ;;  %v23968_v35 = vld [vmem:[#allocation17 + $0x244] ss:$16 sps:$4 sm:$0xff]  }
 0xa4a   : > { %v13942_v40 = vmul.f32 %v13931_v9, %v13912_v1  ;;  %v13941_v23 = vmul.f32 %v13927_v6, %v13911_v25  ;;  %v13916_v58 = vmax.f32 %v13908_v20, 0.0  ;;  %v13915_v44 = vmax.f32 %v13907_v26, 0.0  ;;  %v23983_v53 = vld [vmem:[#allocation17 + $0x28c] ss:$16 sps:$4 sm:$0xff]   ;;  %v23978_v50 = vld [vmem:[#allocation17 + $0x280] ss:$16 sps:$4 sm:$0xff]  }
 0xa4b   : > { %v13943_v8 = vmul.f32 %v13935_v31, %v13913_v41  ;;  %v13944_v39 = vmul.f32 %v13923_v34, %v13914_v16  ;;  %v13917_v61 = vmax.f32 %v13909_v54, 0.0  ;;  %v13971_v60 = vadd.f32 %v13954_v5, %v13940_v18  ;;  %v23966_v34 = vld [vmem:[#allocation17 + $0x240] ss:$16 sps:$4 sm:$0xff]   ;;  %v23989_v21 = vld [vmem:[#allocation17 + $0x2ac] ss:$16 sps:$4 sm:$0xff]  }
 0xa4c   : > { %v13973_v52 = vadd.f32 %v13962_v45, %v13942_v40  ;;  %v13946_v43 = vmul.f32 %v13931_v9, %v13916_v58  ;;  %v13945_v48 = vmul.f32 %v13927_v6, %v13915_v44  ;;  %v13972_v14 = vadd.f32 %v13958_v19, %v13941_v23  ;;  %v23972_v9 = vld [vmem:[#allocation17 + $0x260] ss:$16 sps:$4 sm:$0xff]   ;;  %v23981_v6 = vld [vmem:[#allocation17 + $0x288] ss:$16 sps:$4 sm:$0xff]   ;;  %v23992_v32 = vld [vmem:[#allocation17 + $0x2c4] ss:$16 sps:$4 sm:$0xff]  }
 0xa4d   : > { %v13975_v47 = vadd.f32 %v13954_v5, %v13944_v39  ;;  %v13947_v22 = vmul.f32 %v13935_v31, %v13917_v61  ;;  %v13974_v27 = vadd.f32 %v13966_v29, %v13943_v8  ;;  %v23974_v5 = vld [vmem:[#allocation17 + $0x264] ss:$16 sps:$4 sm:$0xff]   ;;  %v23984_v62 = vld [vmem:[#allocation17 + $0x2a0] ss:$16 sps:$4 sm:$0xff]   ;;  %v23987_v3 = vld [vmem:[#allocation17 + $0x2a8] ss:$16 sps:$4 sm:$0xff]  }
 0xa4e   : > { %v13977_v49 = vadd.f32 %v13962_v45, %v13946_v43  ;;  %v13976_v46 = vadd.f32 %v13958_v19, %v13945_v48  ;;  %v23975_v45 = vld [vmem:[#allocation17 + $0x268] ss:$16 sps:$4 sm:$0xff]   ;;  %v23986_v19 = vld [vmem:[#allocation17 + $0x2a4] ss:$16 sps:$4 sm:$0xff]   ;;  %v23995_v31 = vld [vmem:[#allocation17 + $0x2cc] ss:$16 sps:$4 sm:$0xff]  }
 0xa4f   : > { %v13979_v28 = vpack.c.bf16 %v13975_v47, %v13971_v60  ;;  %v13978_v42 = vadd.f32 %v13966_v29, %v13947_v22  ;;  %v23990_v33 = vld [vmem:[#allocation17 + $0x2c0] ss:$16 sps:$4 sm:$0xff]   ;;  %v23993_v36 = vld [vmem:[#allocation17 + $0x2c8] ss:$16 sps:$4 sm:$0xff]   ;;  %v23998_v56 = vld [vmem:[#allocation17 + $0x2e4] ss:$16 sps:$4 sm:$0xff]  }
 0xa50   : > { %v26314_v51 = vpack.c.bf16 %v13977_v49, %v13973_v52  ;;  %v13980_v12 = vpack.c.bf16 %v13976_v46, %v13972_v14  ;;  %v24001_v1 = vld [vmem:[#allocation17 + $0x2ec] ss:$16 sps:$4 sm:$0xff]   ;;  %v23996_v25 = vld [vmem:[#allocation17 + $0x2e0] ss:$16 sps:$4 sm:$0xff]   ;;  %v23999_v20 = vld [vmem:[#allocation17 + $0x2e8] ss:$16 sps:$4 sm:$0xff]  }
 0xa51   : > { %v13982_v57 = vpack.c.bf16 %v13978_v42, %v13974_v27  ;;  %v24004_v26 = vld [vmem:[#allocation17 + $0x304] ss:$16 sps:$4 sm:$0xff]   ;;  %v24007_v37 = vld [vmem:[#allocation17 + $0x30c] ss:$16 sps:$4 sm:$0xff]   ;;  %v24002_v18 = vld [vmem:[#allocation17 + $0x300] ss:$16 sps:$4 sm:$0xff]  }
 0xa52   : > { %14805 = vmatprep.mubr.bf16.mxu0 %v13980_v12  ;;  %14891 = vmatprep.mubr.bf16.mxu1 %v13980_v12  ;;  %v24005_v41 = vld [vmem:[#allocation17 + $0x308] ss:$16 sps:$4 sm:$0xff]   ;;  %v24010_v16 = vld [vmem:[#allocation17 + $0x324] ss:$16 sps:$4 sm:$0xff]   ;;  %v24013_v54 = vld [vmem:[#allocation17 + $0x32c] ss:$16 sps:$4 sm:$0xff]  }
 0xa53   : > { %14806 = vmatmul.mubr.bf16.vlgmr.msra.gmra.mrb[40].mxu0 %v13979_v28  ;;  %14892 = vmatmul.mubr.bf16.vlgmr.msra.gmra.mrb[40].mxu1 %v13979_v28  ;;  %v24008_v40 = vld [vmem:[#allocation17 + $0x320] ss:$16 sps:$4 sm:$0xff]   ;;  %v24011_v23 = vld [vmem:[#allocation17 + $0x328] ss:$16 sps:$4 sm:$0xff]   ;;  %v24016_v58 = vld [vmem:[#allocation17 + $0x344] ss:$16 sps:$4 sm:$0xff]  }
 0xa54   : > { %14817 = vmatpush1.bf16.msra.mxu0 %v23954_v24  ;;  %14903 = vmatpush1.bf16.msra.mxu1 %v23957_v59  ;;  %v24019_v44 = vld [vmem:[#allocation17 + $0x34c] ss:$16 sps:$4 sm:$0xff]   ;;  %v24014_v8 = vld [vmem:[#allocation17 + $0x340] ss:$16 sps:$4 sm:$0xff]   ;;  %v24017_v29 = vld [vmem:[#allocation17 + $0x348] ss:$16 sps:$4 sm:$0xff]  }
 0xa55   : > { %14848 = vmatprep.mubr.bf16.mxu0 %v13982_v57  ;;  %14934 = vmatprep.mubr.bf16.mxu1 %v13982_v57  ;;  %v24022_v39 = vld [vmem:[#allocation17 + $0x364] ss:$16 sps:$4 sm:$0xff]   ;;  %v24025_v61 = vld [vmem:[#allocation17 + $0x36c] ss:$16 sps:$4 sm:$0xff]   ;;  %v24020_v52 = vld [vmem:[#allocation17 + $0x360] ss:$16 sps:$4 sm:$0xff]  }
 0xa56   : > { %14818 = vmatprep.subr.bf16.mxu0 %v23962_v63  ;;  %14904 = vmatprep.subr.bf16.mxu1 %v23965_v30  ;;  %v24023_v43 = vld [vmem:[#allocation17 + $0x368] ss:$16 sps:$4 sm:$0xff]   ;;  %v24028_v48 = vld [vmem:[#allocation17 + $0x384] ss:$16 sps:$4 sm:$0xff]   ;;  %v24031_v60 = vld [vmem:[#allocation17 + $0x38c] ss:$16 sps:$4 sm:$0xff]  }
 0xa57   : > { %v24026_v47 = vld [vmem:[#allocation17 + $0x380] ss:$16 sps:$4 sm:$0xff]   ;;  %v24029_v22 = vld [vmem:[#allocation17 + $0x388] ss:$16 sps:$4 sm:$0xff]   ;;  %v24034_v14 = vld [vmem:[#allocation17 + $0x3a4] ss:$16 sps:$4 sm:$0xff]  }
 0xa58   : > { %14819 = vmatpush1.bf16.msra.mxu0 %v23960_v4  ;;  %14905 = vmatpush1.bf16.msra.mxu1 %v23963_v2  ;;  %v24037_v49 = vld [vmem:[#allocation17 + $0x3ac] ss:$16 sps:$4 sm:$0xff]   ;;  %v24032_v46 = vld [vmem:[#allocation17 + $0x3a0] ss:$16 sps:$4 sm:$0xff]   ;;  %v24035_v27 = vld [vmem:[#allocation17 + $0x3a8] ss:$16 sps:$4 sm:$0xff]  }
 0xa59   : > { %14820 = vmatprep.subr.bf16.mxu0 %v23968_v35  ;;  %14906 = vmatprep.subr.bf16.mxu1 %v23971_v38  ;;  %v24040_v28 = vld [vmem:[#allocation17 + $0x3c4] ss:$16 sps:$4 sm:$0xff]   ;;  %v24043_v42 = vld [vmem:[#allocation17 + $0x3cc] ss:$16 sps:$4 sm:$0xff]   ;;  %v24038_v12 = vld [vmem:[#allocation17 + $0x3c0] ss:$16 sps:$4 sm:$0xff]  }
 0xa5a   : > { %v24041_v24 = vld [vmem:[#allocation17 + $0x3c8] ss:$16 sps:$4 sm:$0xff]   ;;  %v24046_v59 = vld [vmem:[#allocation17 + $0x3e4] ss:$16 sps:$4 sm:$0xff]   ;;  %v24049_v57 = vld [vmem:[#allocation17 + $0x3ec] ss:$16 sps:$4 sm:$0xff]  }
 0xa5b   : > { %v24044_v63 = vld [vmem:[#allocation17 + $0x3e0] ss:$16 sps:$4 sm:$0xff]   ;;  %v24047_v30 = vld [vmem:[#allocation17 + $0x3e8] ss:$16 sps:$4 sm:$0xff]   ;;  %v24050_v35 = vld [vmem:[#allocation22] ss:$48 sps:$4 sm:$0xff]  }
 0xa5c   : > { %14821 = vmatpush1.bf16.msra.mxu0 %v23966_v34  ;;  %14907 = vmatpush1.bf16.msra.mxu1 %v23969_v0  ;;  %v24052_v4 = vld [vmem:[#allocation22 + $0x4] ss:$48 sps:$4 sm:$0xff]   ;;  %v24055_v2 = vld [vmem:[#allocation22 + $0xc] ss:$48 sps:$4 sm:$0xff]   ;;  %v24053_v38 = vld [vmem:[#allocation22 + $0x8] ss:$48 sps:$4 sm:$0xff]  }
 0xa5d   : > { %14822 = vmatprep.subr.bf16.mxu0 %v23974_v5  ;;  %14908 = vmatprep.subr.bf16.mxu1 %v23977_v55  ;;  %v24058_v34 = vld [vmem:[#allocation22 + $0x64] ss:$48 sps:$4 sm:$0xff]   ;;  %v24061_v0 = vld [vmem:[#allocation22 + $0x6c] ss:$48 sps:$4 sm:$0xff]   ;;  %v24056_v5 = vld [vmem:[#allocation22 + $0x60] ss:$48 sps:$4 sm:$0xff]  }
 0xa5e   : > { %v24059_v55 = vld [vmem:[#allocation22 + $0x68] ss:$48 sps:$4 sm:$0xff]  }
 0xa60   : > { %14823 = vmatpush1.bf16.msra.mxu0 %v23972_v9  ;;  %14909 = vmatpush1.bf16.msra.mxu1 %v23975_v45  ;;  %v24064_v9 = vld [vmem:[#allocation22 + $0xc4] ss:$48 sps:$4 sm:$0xff]   ;;  %v24067_v45 = vld [vmem:[#allocation22 + $0xcc] ss:$48 sps:$4 sm:$0xff]  }
 0xa61   : > { %14824 = vmatprep.subr.bf16.mxu0 %v23980_v15  ;;  %14910 = vmatprep.subr.bf16.mxu1 %v23983_v53  ;;  %v24062_v15 = vld [vmem:[#allocation22 + $0xc0] ss:$48 sps:$4 sm:$0xff]   ;;  %v24065_v53 = vld [vmem:[#allocation22 + $0xc8] ss:$48 sps:$4 sm:$0xff]  }
 0xa64   : > { %14825 = vmatpush1.bf16.msra.mxu0 %v23978_v50  ;;  %14911 = vmatpush1.bf16.msra.mxu1 %v23981_v6  ;;  %v24070_v50 = vld [vmem:[#allocation22 + $0x124] ss:$48 sps:$4 sm:$0xff]   ;;  %v24073_v6 = vld [vmem:[#allocation22 + $0x12c] ss:$48 sps:$4 sm:$0xff]  }
 0xa65   : > { %14826 = vmatprep.subr.bf16.mxu0 %v23986_v19  ;;  %14912 = vmatprep.subr.bf16.mxu1 %v23989_v21  ;;  %v24068_v19 = vld [vmem:[#allocation22 + $0x120] ss:$48 sps:$4 sm:$0xff]   ;;  %v24076_v21 = vld [vmem:[#allocation22 + $0x184] ss:$48 sps:$4 sm:$0xff]  }
 0xa68   : > { %14827 = vmatpush1.bf16.msra.mxu0 %v23984_v62  ;;  %14913 = vmatpush1.bf16.msra.mxu1 %v23987_v3  ;;  %v24079_v62 = vld [vmem:[#allocation22 + $0x18c] ss:$48 sps:$4 sm:$0xff]   ;;  %v24074_v3 = vld [vmem:[#allocation22 + $0x180] ss:$48 sps:$4 sm:$0xff]  }
 0xa69   : > { %14828 = vmatprep.subr.bf16.mxu0 %v23992_v32  ;;  %14914 = vmatprep.subr.bf16.mxu1 %v23995_v31  ;;  %v24077_v32 = vld [vmem:[#allocation22 + $0x188] ss:$48 sps:$4 sm:$0xff]   ;;  %v24082_v31 = vld [vmem:[#allocation22 + $0x1e4] ss:$48 sps:$4 sm:$0xff]  }
 0xa6c   : > { %14829 = vmatpush1.bf16.msra.mxu0 %v23990_v33  ;;  %14915 = vmatpush1.bf16.msra.mxu1 %v23993_v36  ;;  %v24085_v33 = vld [vmem:[#allocation22 + $0x1ec] ss:$48 sps:$4 sm:$0xff]   ;;  %v24080_v36 = vld [vmem:[#allocation22 + $0x1e0] ss:$48 sps:$4 sm:$0xff]  }
 0xa6d   : > { %14830 = vmatprep.subr.bf16.mxu0 %v23998_v56  ;;  %14916 = vmatprep.subr.bf16.mxu1 %v24001_v1  ;;  %v24083_v56 = vld [vmem:[#allocation22 + $0x1e8] ss:$48 sps:$4 sm:$0xff]   ;;  %v24088_v1 = vld [vmem:[#allocation22 + $0x244] ss:$48 sps:$4 sm:$0xff]  }
 0xa70   : > { %14831 = vmatpush1.bf16.msra.mxu0 %v23996_v25  ;;  %14917 = vmatpush1.bf16.msra.mxu1 %v23999_v20  ;;  %v24091_v25 = vld [vmem:[#allocation22 + $0x24c] ss:$48 sps:$4 sm:$0xff]   ;;  %v24086_v20 = vld [vmem:[#allocation22 + $0x240] ss:$48 sps:$4 sm:$0xff]  }
 0xa71   : > { %14832 = vmatprep.subr.bf16.mxu0 %v24004_v26  ;;  %14918 = vmatprep.subr.bf16.mxu1 %v24007_v37  ;;  %v24089_v26 = vld [vmem:[#allocation22 + $0x248] ss:$48 sps:$4 sm:$0xff]   ;;  %v24094_v37 = vld [vmem:[#allocation22 + $0x2a4] ss:$48 sps:$4 sm:$0xff]  }
 0xa74   : > { %14833 = vmatpush1.bf16.msra.mxu0 %v24002_v18  ;;  %14919 = vmatpush1.bf16.msra.mxu1 %v24005_v41  ;;  %v24097_v18 = vld [vmem:[#allocation22 + $0x2ac] ss:$48 sps:$4 sm:$0xff]   ;;  %v24092_v41 = vld [vmem:[#allocation22 + $0x2a0] ss:$48 sps:$4 sm:$0xff]  }
 0xa75   : > { %14834 = vmatprep.subr.bf16.mxu0 %v24010_v16  ;;  %14920 = vmatprep.subr.bf16.mxu1 %v24013_v54  ;;  %v24095_v16 = vld [vmem:[#allocation22 + $0x2a8] ss:$48 sps:$4 sm:$0xff]   ;;  %v24100_v54 = vld [vmem:[#allocation22 + $0x304] ss:$48 sps:$4 sm:$0xff]  }
 0xa78   : > { %14835 = vmatpush1.bf16.msra.mxu0 %v24008_v40  ;;  %14921 = vmatpush1.bf16.msra.mxu1 %v24011_v23  ;;  %v24103_v40 = vld [vmem:[#allocation22 + $0x30c] ss:$48 sps:$4 sm:$0xff]   ;;  %v24098_v23 = vld [vmem:[#allocation22 + $0x300] ss:$48 sps:$4 sm:$0xff]  }
 0xa79   : > { %14836 = vmatprep.subr.bf16.mxu0 %v24016_v58  ;;  %14922 = vmatprep.subr.bf16.mxu1 %v24019_v44  ;;  %v24101_v58 = vld [vmem:[#allocation22 + $0x308] ss:$48 sps:$4 sm:$0xff]   ;;  %v24106_v44 = vld [vmem:[#allocation22 + $0x364] ss:$48 sps:$4 sm:$0xff]  }
 0xa7c   : > { %14837 = vmatpush1.bf16.msra.mxu0 %v24014_v8  ;;  %14923 = vmatpush1.bf16.msra.mxu1 %v24017_v29  ;;  %v24109_v8 = vld [vmem:[#allocation22 + $0x36c] ss:$48 sps:$4 sm:$0xff]   ;;  %v24104_v29 = vld [vmem:[#allocation22 + $0x360] ss:$48 sps:$4 sm:$0xff]  }
 0xa7d   : > { %14838 = vmatprep.subr.bf16.mxu0 %v24022_v39  ;;  %14924 = vmatprep.subr.bf16.mxu1 %v24025_v61  ;;  %v24107_v39 = vld [vmem:[#allocation22 + $0x368] ss:$48 sps:$4 sm:$0xff]   ;;  %v24112_v61 = vld [vmem:[#allocation22 + $0x3c4] ss:$48 sps:$4 sm:$0xff]  }
 0xa80   : > { %14839 = vmatpush1.bf16.msra.mxu0 %v24020_v52  ;;  %14925 = vmatpush1.bf16.msra.mxu1 %v24023_v43  ;;  %v24115_v52 = vld [vmem:[#allocation22 + $0x3cc] ss:$48 sps:$4 sm:$0xff]   ;;  %v24110_v43 = vld [vmem:[#allocation22 + $0x3c0] ss:$48 sps:$4 sm:$0xff]  }
 0xa81   : > { %14840 = vmatprep.subr.bf16.mxu0 %v24028_v48  ;;  %14926 = vmatprep.subr.bf16.mxu1 %v24031_v60  ;;  %v24113_v48 = vld [vmem:[#allocation22 + $0x3c8] ss:$48 sps:$4 sm:$0xff]   ;;  %v24118_v60 = vld [vmem:[#allocation22 + $0x424] ss:$48 sps:$4 sm:$0xff]  }
 0xa84   : > { %14841 = vmatpush1.bf16.msra.mxu0 %v24026_v47  ;;  %14927 = vmatpush1.bf16.msra.mxu1 %v24029_v22  ;;  %v24121_v47 = vld [vmem:[#allocation22 + $0x42c] ss:$48 sps:$4 sm:$0xff]   ;;  %v24116_v22 = vld [vmem:[#allocation22 + $0x420] ss:$48 sps:$4 sm:$0xff]  }
 0xa85   : > { %14842 = vmatprep.subr.bf16.mxu0 %v24034_v14  ;;  %14928 = vmatprep.subr.bf16.mxu1 %v24037_v49  ;;  %v24119_v14 = vld [vmem:[#allocation22 + $0x428] ss:$48 sps:$4 sm:$0xff]   ;;  %v24124_v49 = vld [vmem:[#allocation22 + $0x484] ss:$48 sps:$4 sm:$0xff]  }
 0xa88   : > { %14843 = vmatpush1.bf16.msra.mxu0 %v24032_v46  ;;  %14929 = vmatpush1.bf16.msra.mxu1 %v24035_v27  ;;  %v24127_v46 = vld [vmem:[#allocation22 + $0x48c] ss:$48 sps:$4 sm:$0xff]   ;;  %v24122_v27 = vld [vmem:[#allocation22 + $0x480] ss:$48 sps:$4 sm:$0xff]  }
 0xa89   : > { %14844 = vmatprep.subr.bf16.mxu0 %v24040_v28  ;;  %14930 = vmatprep.subr.bf16.mxu1 %v24043_v42  ;;  %v24125_v28 = vld [vmem:[#allocation22 + $0x488] ss:$48 sps:$4 sm:$0xff]   ;;  %v24128_v42 = vld [vmem:[#allocation22 + $0x4e0] ss:$48 sps:$4 sm:$0xff]  }
 0xa8c   : > { %14845 = vmatpush1.bf16.msra.mxu0 %v24038_v12  ;;  %14931 = vmatpush1.bf16.msra.mxu1 %v24041_v24  ;;  %v24130_v12 = vld [vmem:[#allocation22 + $0x4e4] ss:$48 sps:$4 sm:$0xff]   ;;  %v24131_v24 = vld [vmem:[#allocation22 + $0x4e8] ss:$48 sps:$4 sm:$0xff]  }
 0xa8d   : > { %14846 = vmatprep.subr.bf16.mxu0 %v24046_v59  ;;  %14932 = vmatprep.subr.bf16.mxu1 %v24049_v57  ;;  %v24133_v59 = vld [vmem:[#allocation22 + $0x4ec] ss:$48 sps:$4 sm:$0xff]   ;;  %v24136_v57 = vld [vmem:[#allocation22 + $0x544] ss:$48 sps:$4 sm:$0xff]  }
 0xa90   : > { %14847 = vmatpush1.bf16.msra.mxu0 %v24044_v63  ;;  %14933 = vmatpush1.bf16.msra.mxu1 %v24047_v30  ;;  %v24139_v63 = vld [vmem:[#allocation22 + $0x54c] ss:$48 sps:$4 sm:$0xff]   ;;  %v24134_v30 = vld [vmem:[#allocation22 + $0x540] ss:$48 sps:$4 sm:$0xff]  }
 0xa91   : > { %17386 = vmatprep.subr.bf16.mxu0 %v24052_v4  ;;  %17472 = vmatprep.subr.bf16.mxu1 %v24055_v2  ;;  %v24137_v4 = vld [vmem:[#allocation22 + $0x548] ss:$48 sps:$4 sm:$0xff]   ;;  %v24142_v2 = vld [vmem:[#allocation22 + $0x5a4] ss:$48 sps:$4 sm:$0xff]  }
 0xa93   : > { %14849 = vmatmul.mubr.bf16.vlgmr.msra.gmra.mrb[40].mxu0 %v26314_v51  ;;  %14935 = vmatmul.mubr.bf16.vlgmr.msra.gmra.mrb[40].mxu1 %v26314_v51  ;;  %v24071_v51 = vld [vmem:[#allocation22 + $0x128] ss:$48 sps:$4 sm:$0xff]  }
 0xa94   : > { %17387 = vmatpush1.bf16.msra.mxu0 %v24050_v35  ;;  %17473 = vmatpush1.bf16.msra.mxu1 %v24053_v38  ;;  %v24145_v35 = vld [vmem:[#allocation22 + $0x5ac] ss:$48 sps:$4 sm:$0xff]   ;;  %v24140_v38 = vld [vmem:[#allocation22 + $0x5a0] ss:$48 sps:$4 sm:$0xff]  }
 0xa95   : > { %17388 = vmatprep.subr.bf16.mxu0 %v24058_v34  ;;  %17474 = vmatprep.subr.bf16.mxu1 %v24061_v0  ;;  %v24143_v34 = vld [vmem:[#allocation22 + $0x5a8] ss:$48 sps:$4 sm:$0xff]   ;;  %v24148_v0 = vld [vmem:[#allocation22 + $0x604] ss:$48 sps:$4 sm:$0xff]  }
 0xa98   : > { %17389 = vmatpush1.bf16.msra.mxu0 %v24056_v5  ;;  %17475 = vmatpush1.bf16.msra.mxu1 %v24059_v55  ;;  %v24151_v5 = vld [vmem:[#allocation22 + $0x60c] ss:$48 sps:$4 sm:$0xff]   ;;  %v14111_v55 = vld [vmem:[#allocation19] sm:$0xf] }
 0xa99   : > { %17390 = vmatprep.subr.bf16.mxu0 %v24064_v9  ;;  %17476 = vmatprep.subr.bf16.mxu1 %v24067_v45  ;;  %v14116_v9 = vrot.slane %v14111_v55, %v25812_v10  ;;  %v14953_v45 = vld [vmem:[#allocation20] ss:$2 sm:$0xf] }
 0xa9c   : > { %17391 = vmatpush1.bf16.msra.mxu0 %v24062_v15  ;;  %17477 = vmatpush1.bf16.msra.mxu1 %v24065_v53  ;;  %v14984_v15 = vld [vmem:[#allocation20 + $0x1] ss:$2 sm:$0xf]  ;;  %v14124_v53 = vrot.slane %v14111_v55, %v25819_v17 }
 0xa9d   : > { %17392 = vmatprep.subr.bf16.mxu0 %v24070_v50  ;;  %17478 = vmatprep.subr.bf16.mxu1 %v24073_v6  ;;  %v14120_v50 = vrot.slane %v14111_v55, %v25826_v11  ;;  %v14128_v6 = vrot.slane %v14111_v55, %v25829_v13  ;;  %v24146_v55 = vld [vmem:[#allocation22 + $0x600] ss:$48 sps:$4 sm:$0xff]  }
 0xaa0   : > { %17393 = vmatpush1.bf16.msra.mxu0 %v24068_v19  ;;  %17479 = vmatpush1.bf16.msra.mxu1 %v24071_v51  ;;  %v14958_v51 = vrot.slane %v14953_v45, %v25812_v10 }
 0xaa1   : > { %17394 = vmatprep.subr.bf16.mxu0 %v24076_v21  ;;  %17480 = vmatprep.subr.bf16.mxu1 %v24079_v62  ;;  %v14989_v21 = vrot.slane %v14984_v15, %v25812_v10 }
 0xaa4   : > { %17395 = vmatpush1.bf16.msra.mxu0 %v24074_v3  ;;  %17481 = vmatpush1.bf16.msra.mxu1 %v24077_v32  ;;  %v14966_v3 = vrot.slane %v14953_v45, %v25819_v17  ;;  %v14997_v32 = vrot.slane %v14984_v15, %v25819_v17 }
 0xaa5   : > { %17396 = vmatprep.subr.bf16.mxu0 %v24082_v31  ;;  %17482 = vmatprep.subr.bf16.mxu1 %v24085_v33 }
 0xaa8   : > { %17397 = vmatpush1.bf16.msra.mxu0 %v24080_v36  ;;  %17483 = vmatpush1.bf16.msra.mxu1 %v24083_v56  ;;  %v14962_v56 = vrot.slane %v14953_v45, %v25826_v11 }
 0xaa9   : > { %17398 = vmatprep.subr.bf16.mxu0 %v24088_v1  ;;  %17484 = vmatprep.subr.bf16.mxu1 %v24091_v25  ;;  %v14993_v1 = vrot.slane %v14984_v15, %v25826_v11 }
 0xaac   : > { %17399 = vmatpush1.bf16.msra.mxu0 %v24086_v20  ;;  %17485 = vmatpush1.bf16.msra.mxu1 %v24089_v26 }
 0xaad   : > { %17400 = vmatprep.subr.bf16.mxu0 %v24094_v37  ;;  %17486 = vmatprep.subr.bf16.mxu1 %v24097_v18  ;;  %v14970_v37 = vrot.slane %v14953_v45, %v25829_v13  ;;  %v15001_v18 = vrot.slane %v14984_v15, %v25829_v13  ;;  %v24154_v45 = vld [vmem:[#allocation22 + $0x664] ss:$48 sps:$4 sm:$0xff]   ;;  %v24157_v15 = vld [vmem:[#allocation22 + $0x66c] ss:$48 sps:$4 sm:$0xff]  }
 0xab0   : > { %17401 = vmatpush1.bf16.msra.mxu0 %v24092_v41  ;;  %17487 = vmatpush1.bf16.msra.mxu1 %v24095_v16 }
 0xab1   : > { %17402 = vmatprep.subr.bf16.mxu0 %v24100_v54  ;;  %17488 = vmatprep.subr.bf16.mxu1 %v24103_v40 }
 0xab4   : > { %17403 = vmatpush1.bf16.msra.mxu0 %v24098_v23  ;;  %17489 = vmatpush1.bf16.msra.mxu1 %v24101_v58 }
 0xab5   : > { %17404 = vmatprep.subr.bf16.mxu0 %v24106_v44  ;;  %17490 = vmatprep.subr.bf16.mxu1 %v24109_v8 }
 0xab8   : > { %17405 = vmatpush1.bf16.msra.mxu0 %v24104_v29  ;;  %17491 = vmatpush1.bf16.msra.mxu1 %v24107_v39 }
 0xab9   : > { %17406 = vmatprep.subr.bf16.mxu0 %v24112_v61  ;;  %17492 = vmatprep.subr.bf16.mxu1 %v24115_v52 }
 0xabc   : > { %17407 = vmatpush1.bf16.msra.mxu0 %v24110_v43  ;;  %17493 = vmatpush1.bf16.msra.mxu1 %v24113_v48 }
 0xabd   : > { %17408 = vmatprep.subr.bf16.mxu0 %v24118_v60  ;;  %17494 = vmatprep.subr.bf16.mxu1 %v24121_v47 }
 0xac0   : > { %17409 = vmatpush1.bf16.msra.mxu0 %v24116_v22  ;;  %17495 = vmatpush1.bf16.msra.mxu1 %v24119_v14 }
 0xac1   : > { %17410 = vmatprep.subr.bf16.mxu0 %v24124_v49  ;;  %17496 = vmatprep.subr.bf16.mxu1 %v24127_v46 }
 0xac4   : > { %17411 = vmatpush1.bf16.msra.mxu0 %v24122_v27  ;;  %17497 = vmatpush1.bf16.msra.mxu1 %v24125_v28 }
 0xac5   : > { %17412 = vmatprep.subr.bf16.mxu0 %v24130_v12  ;;  %17498 = vmatprep.subr.bf16.mxu1 %v24133_v59 }
 0xac8   : > { %17413 = vmatpush1.bf16.msra.mxu0 %v24128_v42  ;;  %17499 = vmatpush1.bf16.msra.mxu1 %v24131_v24 }
 0xac9   : > { %17414 = vmatprep.subr.bf16.mxu0 %v24136_v57  ;;  %17500 = vmatprep.subr.bf16.mxu1 %v24139_v63 }
 0xacc   : > { %17415 = vmatpush1.bf16.msra.mxu0 %v24134_v30  ;;  %17501 = vmatpush1.bf16.msra.mxu1 %v24137_v4 }
 0xacd   : > { %17416 = vmatprep.subr.bf16.mxu0 %v24142_v2  ;;  %17502 = vmatprep.subr.bf16.mxu1 %v24145_v35 }
 0xad0   : > { %17417 = vmatpush1.bf16.msra.mxu0 %v24140_v38  ;;  %17503 = vmatpush1.bf16.msra.mxu1 %v24143_v34 }
 0xad1   : > { %17429 = vmatprep.subr.bf16.mxu0 %v24148_v0  ;;  %17515 = vmatprep.subr.bf16.mxu1 %v24151_v5 }
 0xb66   : > { %v14850_v19 = vpop.f32.mrb[40].mxu0  ;;  %v14936_v62 = vpop.f32.mrb[40].mxu1 }
 0xb67   : > { %v20926_v31 = vadd.f32 %v14850_v19, %v14116_v9  ;;  %v20930_v33 = vadd.f32 %v14936_v62, %v14124_v53  ;;  %v14852_v36 = vpop.f32.mrb[41].mxu0  ;;  %v14938_v25 = vpop.f32.mrb[41].mxu1  ;;  %v24163_v19 = vld [vmem:[#allocation22 + $0x6cc] ss:$48 sps:$4 sm:$0xff]   ;;  %v24166_v62 = vld [vmem:[#allocation22 + $0x724] ss:$48 sps:$4 sm:$0xff]  }
 0xb68   : > { %v20927_v20 = vadd.f32 %v14852_v36, %v14120_v50  ;;  %v20931_v26 = vadd.f32 %v14938_v25, %v14128_v6  ;;  %v14854_v41 = vpop.f32.mrb[42].mxu0  ;;  %v14940_v16 = vpop.f32.mrb[42].mxu1  ;;  %v24175_v36 = vld [vmem:[#allocation22 + $0x78c] ss:$48 sps:$4 sm:$0xff]   ;;  %v24178_v25 = vld [vmem:[#allocation22 + $0x7e4] ss:$48 sps:$4 sm:$0xff]  }
 0xb69   : > { %v14945_v54 = vmax.f32 %v20926_v31, 0.0  ;;  %v14947_v40 = vmax.f32 %v20930_v33, 0.0  ;;  %v20928_v23 = vadd.f32 %v14854_v41, %v14116_v9  ;;  %v20932_v58 = vadd.f32 %v14940_v16, %v14124_v53  ;;  %v14856_v44 = vpop.f32.mrb[43].mxu0  ;;  %v14942_v8 = vpop.f32.mrb[43].mxu1  ;;  %v24149_v9 = vld [vmem:[#allocation22 + $0x608] ss:$48 sps:$4 sm:$0xff]  }
 0xb6a   : > { %v14946_v29 = vmax.f32 %v20927_v20, 0.0  ;;  %v14948_v39 = vmax.f32 %v20931_v26, 0.0  ;;  %v20929_v61 = vadd.f32 %v14856_v44, %v14120_v50  ;;  %v20933_v52 = vadd.f32 %v14942_v8, %v14128_v6  ;;  %v24152_v53 = vld [vmem:[#allocation22 + $0x660] ss:$48 sps:$4 sm:$0xff]   ;;  %v24155_v50 = vld [vmem:[#allocation22 + $0x668] ss:$48 sps:$4 sm:$0xff]  }
 0xb6b   : > { %v14975_v43 = vmul.f32 %v14958_v51, %v14945_v54  ;;  %v14977_v48 = vmul.f32 %v14966_v3, %v14947_v40  ;;  %v14949_v60 = vmax.f32 %v20928_v23, 0.0  ;;  %v14951_v47 = vmax.f32 %v20932_v58, 0.0  ;;  %v24160_v6 = vld [vmem:[#allocation22 + $0x6c4] ss:$48 sps:$4 sm:$0xff]   ;;  %v24167_v31 = vld [vmem:[#allocation22 + $0x728] ss:$48 sps:$4 sm:$0xff]  }
 0xb6c   : > { %v14976_v22 = vmul.f32 %v14962_v56, %v14946_v29  ;;  %v14978_v14 = vmul.f32 %v14970_v37, %v14948_v39  ;;  %v14950_v49 = vmax.f32 %v20929_v61, 0.0  ;;  %v14952_v46 = vmax.f32 %v20933_v52, 0.0  ;;  %v24172_v33 = vld [vmem:[#allocation22 + $0x784] ss:$48 sps:$4 sm:$0xff]   ;;  %v24181_v20 = vld [vmem:[#allocation22 + $0x7ec] ss:$48 sps:$4 sm:$0xff]  }
 0xb6d   : > { %v15008_v27 = vadd.f32 %v14997_v32, %v14977_v48  ;;  %v14979_v28 = vmul.f32 %v14958_v51, %v14949_v60  ;;  %v14981_v42 = vmul.f32 %v14966_v3, %v14951_v47  ;;  %v15006_v59 = vadd.f32 %v14989_v21, %v14975_v43  ;;  %v24158_v51 = vld [vmem:[#allocation22 + $0x6c0] ss:$48 sps:$4 sm:$0xff]   ;;  %v24169_v3 = vld [vmem:[#allocation22 + $0x72c] ss:$48 sps:$4 sm:$0xff]   ;;  %v24185_v54 = vld [vmem:[#allocation22 + $0x848] ss:$48 sps:$4 sm:$0xff]  }
 0xb6e   : > { %v14980_v12 = vmul.f32 %v14962_v56, %v14950_v49  ;;  %v14982_v24 = vmul.f32 %v14970_v37, %v14952_v46  ;;  %v15007_v30 = vadd.f32 %v14993_v1, %v14976_v22  ;;  %v15009_v4 = vadd.f32 %v15001_v18, %v14978_v14  ;;  %v24170_v56 = vld [vmem:[#allocation22 + $0x780] ss:$48 sps:$4 sm:$0xff]   ;;  %v24179_v37 = vld [vmem:[#allocation22 + $0x7e8] ss:$48 sps:$4 sm:$0xff]   ;;  %v24187_v41 = vld [vmem:[#allocation22 + $0x84c] ss:$48 sps:$4 sm:$0xff]  }
 0xb6f   : > { %v15010_v57 = vadd.f32 %v14989_v21, %v14979_v28  ;;  %v15012_v63 = vadd.f32 %v14997_v32, %v14981_v42  ;;  %v24161_v21 = vld [vmem:[#allocation22 + $0x6c8] ss:$48 sps:$4 sm:$0xff]   ;;  %v24164_v32 = vld [vmem:[#allocation22 + $0x720] ss:$48 sps:$4 sm:$0xff]   ;;  %v24190_v40 = vld [vmem:[#allocation22 + $0x8a4] ss:$48 sps:$4 sm:$0xff]  }
 0xb70   : > { %v15011_v2 = vadd.f32 %v14993_v1, %v14980_v12  ;;  %v15013_v35 = vadd.f32 %v15001_v18, %v14982_v24  ;;  %v24173_v1 = vld [vmem:[#allocation22 + $0x788] ss:$48 sps:$4 sm:$0xff]   ;;  %v24176_v26 = vld [vmem:[#allocation22 + $0x7e0] ss:$48 sps:$4 sm:$0xff]   ;;  %v24184_v18 = vld [vmem:[#allocation22 + $0x844] ss:$48 sps:$4 sm:$0xff]  }
 0xb71   : > { %v26330_v38 = vpack.c.bf16 %v15010_v57, %v15006_v59  ;;  %v26332_v34 = vpack.c.bf16 %v15012_v63, %v15008_v27  ;;  %v24182_v16 = vld [vmem:[#allocation22 + $0x840] ss:$48 sps:$4 sm:$0xff]   ;;  %v24193_v23 = vld [vmem:[#allocation22 + $0x8ac] ss:$48 sps:$4 sm:$0xff]   ;;  %v24191_v44 = vld [vmem:[#allocation22 + $0x8a8] ss:$48 sps:$4 sm:$0xff]  }
 0xb72   : > { %v26334_v0 = vpack.c.bf16 %v15011_v2, %v15007_v30  ;;  %v26336_v5 = vpack.c.bf16 %v15013_v35, %v15009_v4  ;;  %v24188_v58 = vld [vmem:[#allocation22 + $0x8a0] ss:$48 sps:$4 sm:$0xff]   ;;  %v24196_v8 = vld [vmem:[#allocation22 + $0x904] ss:$48 sps:$4 sm:$0xff]   ;;  %v24199_v29 = vld [vmem:[#allocation22 + $0x90c] ss:$48 sps:$4 sm:$0xff]  }
 0xb73   : > { %v24194_v39 = vld [vmem:[#allocation22 + $0x900] ss:$48 sps:$4 sm:$0xff]   ;;  %v24197_v61 = vld [vmem:[#allocation22 + $0x908] ss:$48 sps:$4 sm:$0xff]   ;;  %v24202_v52 = vld [vmem:[#allocation22 + $0x964] ss:$48 sps:$4 sm:$0xff]  }
 0xb74   : > { %17418 = vmatprep.mubr.bf16.mxu0 %v26334_v0  ;;  %17504 = vmatprep.mubr.bf16.mxu1 %v26334_v0  ;;  %v24205_v43 = vld [vmem:[#allocation22 + $0x96c] ss:$48 sps:$4 sm:$0xff]   ;;  %v24200_v48 = vld [vmem:[#allocation22 + $0x960] ss:$48 sps:$4 sm:$0xff]   ;;  %v24203_v60 = vld [vmem:[#allocation22 + $0x968] ss:$48 sps:$4 sm:$0xff]  }
 0xb75   : > { %17419 = vmatmul.mubr.bf16.vlgmr.msra.gmra.mrb[44].mxu0 %v26330_v38  ;;  %17505 = vmatmul.mubr.bf16.vlgmr.msra.gmra.mrb[44].mxu1 %v26330_v38  ;;  %v24208_v47 = vld [vmem:[#allocation22 + $0x9c4] ss:$48 sps:$4 sm:$0xff]   ;;  %v24211_v22 = vld [vmem:[#allocation22 + $0x9cc] ss:$48 sps:$4 sm:$0xff]   ;;  %v24206_v14 = vld [vmem:[#allocation22 + $0x9c0] ss:$48 sps:$4 sm:$0xff]  }
 0xb76   : > { %17430 = vmatpush1.bf16.msra.mxu0 %v24146_v55  ;;  %17516 = vmatpush1.bf16.msra.mxu1 %v24149_v9  ;;  %v24209_v49 = vld [vmem:[#allocation22 + $0x9c8] ss:$48 sps:$4 sm:$0xff]   ;;  %v24214_v46 = vld [vmem:[#allocation22 + $0xa24] ss:$48 sps:$4 sm:$0xff]   ;;  %v24217_v27 = vld [vmem:[#allocation22 + $0xa2c] ss:$48 sps:$4 sm:$0xff]  }
 0xb77   : > { %17461 = vmatprep.mubr.bf16.mxu0 %v26336_v5  ;;  %17547 = vmatprep.mubr.bf16.mxu1 %v26336_v5  ;;  %v24212_v28 = vld [vmem:[#allocation22 + $0xa20] ss:$48 sps:$4 sm:$0xff]   ;;  %v24215_v42 = vld [vmem:[#allocation22 + $0xa28] ss:$48 sps:$4 sm:$0xff]   ;;  %v24220_v12 = vld [vmem:[#allocation22 + $0xa84] ss:$48 sps:$4 sm:$0xff]  }
 0xb78   : > { %17431 = vmatprep.subr.bf16.mxu0 %v24154_v45  ;;  %17517 = vmatprep.subr.bf16.mxu1 %v24157_v15  ;;  %v24223_v24 = vld [vmem:[#allocation22 + $0xa8c] ss:$48 sps:$4 sm:$0xff]   ;;  %v24218_v59 = vld [vmem:[#allocation22 + $0xa80] ss:$48 sps:$4 sm:$0xff]   ;;  %v24221_v57 = vld [vmem:[#allocation22 + $0xa88] ss:$48 sps:$4 sm:$0xff]  }
 0xb79   : > { %v24226_v63 = vld [vmem:[#allocation22 + $0xae4] ss:$48 sps:$4 sm:$0xff]   ;;  %v24229_v30 = vld [vmem:[#allocation22 + $0xaec] ss:$48 sps:$4 sm:$0xff]   ;;  %v24224_v4 = vld [vmem:[#allocation22 + $0xae0] ss:$48 sps:$4 sm:$0xff]  }
 0xb7a   : > { %17432 = vmatpush1.bf16.msra.mxu0 %v24152_v53  ;;  %17518 = vmatpush1.bf16.msra.mxu1 %v24155_v50  ;;  %v24227_v2 = vld [vmem:[#allocation22 + $0xae8] ss:$48 sps:$4 sm:$0xff]   ;;  %v24232_v35 = vld [vmem:[#allocation22 + $0xb44] ss:$48 sps:$4 sm:$0xff]   ;;  %v24235_v55 = vld [vmem:[#allocation22 + $0xb4c] ss:$48 sps:$4 sm:$0xff]  }
 0xb7b   : > { %17433 = vmatprep.subr.bf16.mxu0 %v24160_v6  ;;  %17519 = vmatprep.subr.bf16.mxu1 %v24163_v19  ;;  %v24230_v9 = vld [vmem:[#allocation22 + $0xb40] ss:$48 sps:$4 sm:$0xff]   ;;  %v24233_v45 = vld [vmem:[#allocation22 + $0xb48] ss:$48 sps:$4 sm:$0xff]   ;;  %v24238_v15 = vld [vmem:[#allocation22 + $0xba4] ss:$48 sps:$4 sm:$0xff]  }
 0xb7c   : > { %v24241_v53 = vld [vmem:[#allocation22 + $0xbac] ss:$48 sps:$4 sm:$0xff]   ;;  %v24236_v50 = vld [vmem:[#allocation22 + $0xba0] ss:$48 sps:$4 sm:$0xff]   ;;  %v24239_v6 = vld [vmem:[#allocation22 + $0xba8] ss:$48 sps:$4 sm:$0xff]  }
 0xb7d   : > { %v24244_v19 = vld [vmem:[#allocation22 + $0x14] ss:$48 sps:$4 sm:$0xff]  }
 0xb7e   : > { %17434 = vmatpush1.bf16.msra.mxu0 %v24158_v51  ;;  %17520 = vmatpush1.bf16.msra.mxu1 %v24161_v21  ;;  %v24247_v51 = vld [vmem:[#allocation22 + $0x1c] ss:$48 sps:$4 sm:$0xff]   ;;  %v24242_v21 = vld [vmem:[#allocation22 + $0x10] ss:$48 sps:$4 sm:$0xff]  }
 0xb7f   : > { %17435 = vmatprep.subr.bf16.mxu0 %v24166_v62  ;;  %17521 = vmatprep.subr.bf16.mxu1 %v24169_v3  ;;  %v24245_v62 = vld [vmem:[#allocation22 + $0x18] ss:$48 sps:$4 sm:$0xff]   ;;  %v24250_v3 = vld [vmem:[#allocation22 + $0x74] ss:$48 sps:$4 sm:$0xff]  }
 0xb82   : > { %17436 = vmatpush1.bf16.msra.mxu0 %v24164_v32  ;;  %17522 = vmatpush1.bf16.msra.mxu1 %v24167_v31  ;;  %v24253_v32 = vld [vmem:[#allocation22 + $0x7c] ss:$48 sps:$4 sm:$0xff]   ;;  %v24248_v31 = vld [vmem:[#allocation22 + $0x70] ss:$48 sps:$4 sm:$0xff]  }
 0xb83   : > { %17437 = vmatprep.subr.bf16.mxu0 %v24172_v33  ;;  %17523 = vmatprep.subr.bf16.mxu1 %v24175_v36  ;;  %v24251_v33 = vld [vmem:[#allocation22 + $0x78] ss:$48 sps:$4 sm:$0xff]   ;;  %v24256_v36 = vld [vmem:[#allocation22 + $0xd4] ss:$48 sps:$4 sm:$0xff]  }
 0xb86   : > { %17438 = vmatpush1.bf16.msra.mxu0 %v24170_v56  ;;  %17524 = vmatpush1.bf16.msra.mxu1 %v24173_v1  ;;  %v24259_v56 = vld [vmem:[#allocation22 + $0xdc] ss:$48 sps:$4 sm:$0xff]   ;;  %v24254_v1 = vld [vmem:[#allocation22 + $0xd0] ss:$48 sps:$4 sm:$0xff]  }
 0xb87   : > { %17439 = vmatprep.subr.bf16.mxu0 %v24178_v25  ;;  %17525 = vmatprep.subr.bf16.mxu1 %v24181_v20  ;;  %v24257_v25 = vld [vmem:[#allocation22 + $0xd8] ss:$48 sps:$4 sm:$0xff]   ;;  %v24262_v20 = vld [vmem:[#allocation22 + $0x134] ss:$48 sps:$4 sm:$0xff]  }
 0xb8a   : > { %17440 = vmatpush1.bf16.msra.mxu0 %v24176_v26  ;;  %17526 = vmatpush1.bf16.msra.mxu1 %v24179_v37  ;;  %v24265_v26 = vld [vmem:[#allocation22 + $0x13c] ss:$48 sps:$4 sm:$0xff]   ;;  %v24260_v37 = vld [vmem:[#allocation22 + $0x130] ss:$48 sps:$4 sm:$0xff]  }
 0xb8b   : > { %17441 = vmatprep.subr.bf16.mxu0 %v24184_v18  ;;  %17527 = vmatprep.subr.bf16.mxu1 %v24187_v41  ;;  %v24263_v18 = vld [vmem:[#allocation22 + $0x138] ss:$48 sps:$4 sm:$0xff]   ;;  %v24268_v41 = vld [vmem:[#allocation22 + $0x194] ss:$48 sps:$4 sm:$0xff]  }
 0xb8e   : > { %17442 = vmatpush1.bf16.msra.mxu0 %v24182_v16  ;;  %17528 = vmatpush1.bf16.msra.mxu1 %v24185_v54  ;;  %v24271_v16 = vld [vmem:[#allocation22 + $0x19c] ss:$48 sps:$4 sm:$0xff]   ;;  %v24266_v54 = vld [vmem:[#allocation22 + $0x190] ss:$48 sps:$4 sm:$0xff]  }
 0xb8f   : > { %17443 = vmatprep.subr.bf16.mxu0 %v24190_v40  ;;  %17529 = vmatprep.subr.bf16.mxu1 %v24193_v23  ;;  %v24269_v40 = vld [vmem:[#allocation22 + $0x198] ss:$48 sps:$4 sm:$0xff]   ;;  %v24274_v23 = vld [vmem:[#allocation22 + $0x1f4] ss:$48 sps:$4 sm:$0xff]  }
 0xb92   : > { %17444 = vmatpush1.bf16.msra.mxu0 %v24188_v58  ;;  %17530 = vmatpush1.bf16.msra.mxu1 %v24191_v44  ;;  %v24277_v58 = vld [vmem:[#allocation22 + $0x1fc] ss:$48 sps:$4 sm:$0xff]   ;;  %v24272_v44 = vld [vmem:[#allocation22 + $0x1f0] ss:$48 sps:$4 sm:$0xff]  }
 0xb93   : > { %17445 = vmatprep.subr.bf16.mxu0 %v24196_v8  ;;  %17531 = vmatprep.subr.bf16.mxu1 %v24199_v29  ;;  %v24275_v8 = vld [vmem:[#allocation22 + $0x1f8] ss:$48 sps:$4 sm:$0xff]   ;;  %v24280_v29 = vld [vmem:[#allocation22 + $0x254] ss:$48 sps:$4 sm:$0xff]  }
 0xb96   : > { %17446 = vmatpush1.bf16.msra.mxu0 %v24194_v39  ;;  %17532 = vmatpush1.bf16.msra.mxu1 %v24197_v61  ;;  %v24283_v39 = vld [vmem:[#allocation22 + $0x25c] ss:$48 sps:$4 sm:$0xff]   ;;  %v24278_v61 = vld [vmem:[#allocation22 + $0x250] ss:$48 sps:$4 sm:$0xff]  }
 0xb97   : > { %17447 = vmatprep.subr.bf16.mxu0 %v24202_v52  ;;  %17533 = vmatprep.subr.bf16.mxu1 %v24205_v43  ;;  %v24281_v52 = vld [vmem:[#allocation22 + $0x258] ss:$48 sps:$4 sm:$0xff]   ;;  %v24286_v43 = vld [vmem:[#allocation22 + $0x2b4] ss:$48 sps:$4 sm:$0xff]  }
 0xb9a   : > { %17448 = vmatpush1.bf16.msra.mxu0 %v24200_v48  ;;  %17534 = vmatpush1.bf16.msra.mxu1 %v24203_v60  ;;  %v24289_v48 = vld [vmem:[#allocation22 + $0x2bc] ss:$48 sps:$4 sm:$0xff]   ;;  %v24284_v60 = vld [vmem:[#allocation22 + $0x2b0] ss:$48 sps:$4 sm:$0xff]  }
 0xb9b   : > { %17449 = vmatprep.subr.bf16.mxu0 %v24208_v47  ;;  %17535 = vmatprep.subr.bf16.mxu1 %v24211_v22  ;;  %v24287_v47 = vld [vmem:[#allocation22 + $0x2b8] ss:$48 sps:$4 sm:$0xff]   ;;  %v24292_v22 = vld [vmem:[#allocation22 + $0x314] ss:$48 sps:$4 sm:$0xff]  }
 0xb9e   : > { %17450 = vmatpush1.bf16.msra.mxu0 %v24206_v14  ;;  %17536 = vmatpush1.bf16.msra.mxu1 %v24209_v49  ;;  %v24295_v14 = vld [vmem:[#allocation22 + $0x31c] ss:$48 sps:$4 sm:$0xff]   ;;  %v24290_v49 = vld [vmem:[#allocation22 + $0x310] ss:$48 sps:$4 sm:$0xff]  }
 0xb9f   : > { %17451 = vmatprep.subr.bf16.mxu0 %v24214_v46  ;;  %17537 = vmatprep.subr.bf16.mxu1 %v24217_v27  ;;  %v24293_v46 = vld [vmem:[#allocation22 + $0x318] ss:$48 sps:$4 sm:$0xff]   ;;  %v24298_v27 = vld [vmem:[#allocation22 + $0x374] ss:$48 sps:$4 sm:$0xff]  }
 0xba2   : > { %17452 = vmatpush1.bf16.msra.mxu0 %v24212_v28  ;;  %17538 = vmatpush1.bf16.msra.mxu1 %v24215_v42  ;;  %v24301_v28 = vld [vmem:[#allocation22 + $0x37c] ss:$48 sps:$4 sm:$0xff]   ;;  %v24296_v42 = vld [vmem:[#allocation22 + $0x370] ss:$48 sps:$4 sm:$0xff]  }
 0xba3   : > { %17453 = vmatprep.subr.bf16.mxu0 %v24220_v12  ;;  %17539 = vmatprep.subr.bf16.mxu1 %v24223_v24  ;;  %v24299_v12 = vld [vmem:[#allocation22 + $0x378] ss:$48 sps:$4 sm:$0xff]   ;;  %v24304_v24 = vld [vmem:[#allocation22 + $0x3d4] ss:$48 sps:$4 sm:$0xff]  }
 0xba6   : > { %17454 = vmatpush1.bf16.msra.mxu0 %v24218_v59  ;;  %17540 = vmatpush1.bf16.msra.mxu1 %v24221_v57  ;;  %v24307_v59 = vld [vmem:[#allocation22 + $0x3dc] ss:$48 sps:$4 sm:$0xff]   ;;  %v24302_v57 = vld [vmem:[#allocation22 + $0x3d0] ss:$48 sps:$4 sm:$0xff]  }
 0xba7   : > { %17455 = vmatprep.subr.bf16.mxu0 %v24226_v63  ;;  %17541 = vmatprep.subr.bf16.mxu1 %v24229_v30  ;;  %v24305_v63 = vld [vmem:[#allocation22 + $0x3d8] ss:$48 sps:$4 sm:$0xff]   ;;  %v24310_v30 = vld [vmem:[#allocation22 + $0x434] ss:$48 sps:$4 sm:$0xff]  }
 0xbaa   : > { %17456 = vmatpush1.bf16.msra.mxu0 %v24224_v4  ;;  %17542 = vmatpush1.bf16.msra.mxu1 %v24227_v2  ;;  %v24313_v4 = vld [vmem:[#allocation22 + $0x43c] ss:$48 sps:$4 sm:$0xff]   ;;  %v24308_v2 = vld [vmem:[#allocation22 + $0x430] ss:$48 sps:$4 sm:$0xff]  }
 0xbab   : > { %17457 = vmatprep.subr.bf16.mxu0 %v24232_v35  ;;  %17543 = vmatprep.subr.bf16.mxu1 %v24235_v55  ;;  %v24311_v35 = vld [vmem:[#allocation22 + $0x438] ss:$48 sps:$4 sm:$0xff]   ;;  %v24316_v55 = vld [vmem:[#allocation22 + $0x494] ss:$48 sps:$4 sm:$0xff]  }
 0xbae   : > { %17458 = vmatpush1.bf16.msra.mxu0 %v24230_v9  ;;  %17544 = vmatpush1.bf16.msra.mxu1 %v24233_v45  ;;  %v24319_v9 = vld [vmem:[#allocation22 + $0x49c] ss:$48 sps:$4 sm:$0xff]   ;;  %v24314_v45 = vld [vmem:[#allocation22 + $0x490] ss:$48 sps:$4 sm:$0xff]  }
 0xbaf   : > { %17459 = vmatprep.subr.bf16.mxu0 %v24238_v15  ;;  %17545 = vmatprep.subr.bf16.mxu1 %v24241_v53  ;;  %v24317_v15 = vld [vmem:[#allocation22 + $0x498] ss:$48 sps:$4 sm:$0xff]   ;;  %v24322_v53 = vld [vmem:[#allocation22 + $0x4f4] ss:$48 sps:$4 sm:$0xff]  }
 0xbb2   : > { %17460 = vmatpush1.bf16.msra.mxu0 %v24236_v50  ;;  %17546 = vmatpush1.bf16.msra.mxu1 %v24239_v6  ;;  %v24325_v50 = vld [vmem:[#allocation22 + $0x4fc] ss:$48 sps:$4 sm:$0xff]   ;;  %v24320_v6 = vld [vmem:[#allocation22 + $0x4f0] ss:$48 sps:$4 sm:$0xff]  }
 0xbb3   : > { %17558 = vmatprep.subr.bf16.mxu0 %v24244_v19  ;;  %17644 = vmatprep.subr.bf16.mxu1 %v24247_v51  ;;  %v24323_v19 = vld [vmem:[#allocation22 + $0x4f8] ss:$48 sps:$4 sm:$0xff]   ;;  %v24328_v51 = vld [vmem:[#allocation22 + $0x554] ss:$48 sps:$4 sm:$0xff]  }
 0xbb5   : > { %17462 = vmatmul.mubr.bf16.vlgmr.msra.gmra.mrb[44].mxu0 %v26332_v34  ;;  %17548 = vmatmul.mubr.bf16.vlgmr.msra.gmra.mrb[44].mxu1 %v26332_v34 }
 0xbb6   : > { %17559 = vmatpush1.bf16.msra.mxu0 %v24242_v21  ;;  %17590 = vmatprep.mubr.bf16.mxu0 %v26334_v0  ;;  %v24331_v21 = vld [vmem:[#allocation22 + $0x55c] ss:$48 sps:$4 sm:$0xff]  }
 0xbb7   : > { %17645 = vmatpush1.bf16.msra.mxu1 %v24245_v62  ;;  %17676 = vmatprep.mubr.bf16.mxu1 %v26334_v0  ;;  %v24326_v62 = vld [vmem:[#allocation22 + $0x550] ss:$48 sps:$4 sm:$0xff]  }
 0xbb8   : > { %17560 = vmatprep.subr.bf16.mxu0 %v24250_v3  ;;  %17646 = vmatprep.subr.bf16.mxu1 %v24253_v32  ;;  %v24329_v3 = vld [vmem:[#allocation22 + $0x558] ss:$48 sps:$4 sm:$0xff]   ;;  %v24334_v32 = vld [vmem:[#allocation22 + $0x5b4] ss:$48 sps:$4 sm:$0xff]  }
 0xbba   : > { %17561 = vmatpush1.bf16.msra.mxu0 %v24248_v31  ;;  %v24337_v31 = vld [vmem:[#allocation22 + $0x5bc] ss:$48 sps:$4 sm:$0xff]  }
 0xbbb   : > { %17647 = vmatpush1.bf16.msra.mxu1 %v24251_v33  ;;  %17562 = vmatprep.subr.bf16.mxu0 %v24256_v36  ;;  %v24332_v33 = vld [vmem:[#allocation22 + $0x5b0] ss:$48 sps:$4 sm:$0xff]   ;;  %v24335_v36 = vld [vmem:[#allocation22 + $0x5b8] ss:$48 sps:$4 sm:$0xff]  }
 0xbbc   : > { %17648 = vmatprep.subr.bf16.mxu1 %v24259_v56  ;;  %v24340_v56 = vld [vmem:[#allocation22 + $0x614] ss:$48 sps:$4 sm:$0xff]  }
 0xbbe   : > { %17563 = vmatpush1.bf16.msra.mxu0 %v24254_v1  ;;  %v24343_v1 = vld [vmem:[#allocation22 + $0x61c] ss:$48 sps:$4 sm:$0xff]  }
 0xbbf   : > { %17649 = vmatpush1.bf16.msra.mxu1 %v24257_v25  ;;  %17564 = vmatprep.subr.bf16.mxu0 %v24262_v20  ;;  %v24338_v25 = vld [vmem:[#allocation22 + $0x610] ss:$48 sps:$4 sm:$0xff]   ;;  %v24341_v20 = vld [vmem:[#allocation22 + $0x618] ss:$48 sps:$4 sm:$0xff]  }
 0xbc0   : > { %17650 = vmatprep.subr.bf16.mxu1 %v24265_v26  ;;  %v24346_v26 = vld [vmem:[#allocation22 + $0x674] ss:$48 sps:$4 sm:$0xff]  }
 0xbc2   : > { %17565 = vmatpush1.bf16.msra.mxu0 %v24260_v37  ;;  %v24349_v37 = vld [vmem:[#allocation22 + $0x67c] ss:$48 sps:$4 sm:$0xff]  }
 0xbc3   : > { %17651 = vmatpush1.bf16.msra.mxu1 %v24263_v18  ;;  %17566 = vmatprep.subr.bf16.mxu0 %v24268_v41  ;;  %v24344_v18 = vld [vmem:[#allocation22 + $0x670] ss:$48 sps:$4 sm:$0xff]   ;;  %v24347_v41 = vld [vmem:[#allocation22 + $0x678] ss:$48 sps:$4 sm:$0xff]  }
 0xbc4   : > { %17652 = vmatprep.subr.bf16.mxu1 %v24271_v16  ;;  %v24352_v16 = vld [vmem:[#allocation22 + $0x6d4] ss:$48 sps:$4 sm:$0xff]  }
 0xbc6   : > { %17567 = vmatpush1.bf16.msra.mxu0 %v24266_v54  ;;  %v24355_v54 = vld [vmem:[#allocation22 + $0x6dc] ss:$48 sps:$4 sm:$0xff]  }
 0xbc7   : > { %17653 = vmatpush1.bf16.msra.mxu1 %v24269_v40  ;;  %17568 = vmatprep.subr.bf16.mxu0 %v24274_v23  ;;  %v24350_v40 = vld [vmem:[#allocation22 + $0x6d0] ss:$48 sps:$4 sm:$0xff]   ;;  %v24353_v23 = vld [vmem:[#allocation22 + $0x6d8] ss:$48 sps:$4 sm:$0xff]  }
 0xbc8   : > { %17654 = vmatprep.subr.bf16.mxu1 %v24277_v58  ;;  %v24358_v58 = vld [vmem:[#allocation22 + $0x734] ss:$48 sps:$4 sm:$0xff]  }
 0xbca   : > { %17569 = vmatpush1.bf16.msra.mxu0 %v24272_v44  ;;  %v24361_v44 = vld [vmem:[#allocation22 + $0x73c] ss:$48 sps:$4 sm:$0xff]  }
 0xbcb   : > { %17655 = vmatpush1.bf16.msra.mxu1 %v24275_v8  ;;  %17570 = vmatprep.subr.bf16.mxu0 %v24280_v29  ;;  %v24356_v8 = vld [vmem:[#allocation22 + $0x730] ss:$48 sps:$4 sm:$0xff]   ;;  %v24359_v29 = vld [vmem:[#allocation22 + $0x738] ss:$48 sps:$4 sm:$0xff]  }
 0xbcc   : > { %17656 = vmatprep.subr.bf16.mxu1 %v24283_v39  ;;  %v24364_v39 = vld [vmem:[#allocation22 + $0x794] ss:$48 sps:$4 sm:$0xff]  }
 0xbce   : > { %17571 = vmatpush1.bf16.msra.mxu0 %v24278_v61  ;;  %v24367_v61 = vld [vmem:[#allocation22 + $0x79c] ss:$48 sps:$4 sm:$0xff]  }
 0xbcf   : > { %17657 = vmatpush1.bf16.msra.mxu1 %v24281_v52  ;;  %17572 = vmatprep.subr.bf16.mxu0 %v24286_v43  ;;  %v24362_v52 = vld [vmem:[#allocation22 + $0x790] ss:$48 sps:$4 sm:$0xff]   ;;  %v24365_v43 = vld [vmem:[#allocation22 + $0x798] ss:$48 sps:$4 sm:$0xff]  }
 0xbd0   : > { %17658 = vmatprep.subr.bf16.mxu1 %v24289_v48  ;;  %v24370_v48 = vld [vmem:[#allocation22 + $0x7f4] ss:$48 sps:$4 sm:$0xff]  }
 0xbd2   : > { %17573 = vmatpush1.bf16.msra.mxu0 %v24284_v60  ;;  %v24373_v60 = vld [vmem:[#allocation22 + $0x7fc] ss:$48 sps:$4 sm:$0xff]  }
 0xbd3   : > { %17659 = vmatpush1.bf16.msra.mxu1 %v24287_v47  ;;  %17574 = vmatprep.subr.bf16.mxu0 %v24292_v22  ;;  %v24368_v47 = vld [vmem:[#allocation22 + $0x7f0] ss:$48 sps:$4 sm:$0xff]   ;;  %v24371_v22 = vld [vmem:[#allocation22 + $0x7f8] ss:$48 sps:$4 sm:$0xff]  }
 0xbd4   : > { %17660 = vmatprep.subr.bf16.mxu1 %v24295_v14  ;;  %v24376_v14 = vld [vmem:[#allocation22 + $0x854] ss:$48 sps:$4 sm:$0xff]  }
 0xbd6   : > { %17575 = vmatpush1.bf16.msra.mxu0 %v24290_v49  ;;  %v24379_v49 = vld [vmem:[#allocation22 + $0x85c] ss:$48 sps:$4 sm:$0xff]  }
 0xbd7   : > { %17661 = vmatpush1.bf16.msra.mxu1 %v24293_v46  ;;  %17576 = vmatprep.subr.bf16.mxu0 %v24298_v27  ;;  %v24374_v46 = vld [vmem:[#allocation22 + $0x850] ss:$48 sps:$4 sm:$0xff]   ;;  %v24377_v27 = vld [vmem:[#allocation22 + $0x858] ss:$48 sps:$4 sm:$0xff]  }
 0xbd8   : > { %17662 = vmatprep.subr.bf16.mxu1 %v24301_v28  ;;  %v24382_v28 = vld [vmem:[#allocation22 + $0x8b4] ss:$48 sps:$4 sm:$0xff]  }
 0xbda   : > { %17577 = vmatpush1.bf16.msra.mxu0 %v24296_v42  ;;  %v24385_v42 = vld [vmem:[#allocation22 + $0x8bc] ss:$48 sps:$4 sm:$0xff]  }
 0xbdb   : > { %17663 = vmatpush1.bf16.msra.mxu1 %v24299_v12  ;;  %17578 = vmatprep.subr.bf16.mxu0 %v24304_v24  ;;  %v24380_v12 = vld [vmem:[#allocation22 + $0x8b0] ss:$48 sps:$4 sm:$0xff]   ;;  %v24383_v24 = vld [vmem:[#allocation22 + $0x8b8] ss:$48 sps:$4 sm:$0xff]  }
 0xbdc   : > { %17664 = vmatprep.subr.bf16.mxu1 %v24307_v59  ;;  %v24388_v59 = vld [vmem:[#allocation22 + $0x914] ss:$48 sps:$4 sm:$0xff]  }
 0xbde   : > { %17579 = vmatpush1.bf16.msra.mxu0 %v24302_v57  ;;  %v24391_v57 = vld [vmem:[#allocation22 + $0x91c] ss:$48 sps:$4 sm:$0xff]  }
 0xbdf   : > { %17665 = vmatpush1.bf16.msra.mxu1 %v24305_v63  ;;  %17580 = vmatprep.subr.bf16.mxu0 %v24310_v30  ;;  %v24386_v63 = vld [vmem:[#allocation22 + $0x910] ss:$48 sps:$4 sm:$0xff]   ;;  %v24389_v30 = vld [vmem:[#allocation22 + $0x918] ss:$48 sps:$4 sm:$0xff]  }
 0xbe0   : > { %17666 = vmatprep.subr.bf16.mxu1 %v24313_v4  ;;  %v24394_v4 = vld [vmem:[#allocation22 + $0x974] ss:$48 sps:$4 sm:$0xff]  }
 0xbe2   : > { %17581 = vmatpush1.bf16.msra.mxu0 %v24308_v2  ;;  %v24397_v2 = vld [vmem:[#allocation22 + $0x97c] ss:$48 sps:$4 sm:$0xff]  }
 0xbe3   : > { %17667 = vmatpush1.bf16.msra.mxu1 %v24311_v35  ;;  %17582 = vmatprep.subr.bf16.mxu0 %v24316_v55  ;;  %v24392_v35 = vld [vmem:[#allocation22 + $0x970] ss:$48 sps:$4 sm:$0xff]   ;;  %v24395_v55 = vld [vmem:[#allocation22 + $0x978] ss:$48 sps:$4 sm:$0xff]  }
 0xbe4   : > { %17668 = vmatprep.subr.bf16.mxu1 %v24319_v9  ;;  %v24400_v9 = vld [vmem:[#allocation22 + $0x9d4] ss:$48 sps:$4 sm:$0xff]  }
 0xbe6   : > { %17583 = vmatpush1.bf16.msra.mxu0 %v24314_v45  ;;  %v24403_v45 = vld [vmem:[#allocation22 + $0x9dc] ss:$48 sps:$4 sm:$0xff]  }
 0xbe7   : > { %17669 = vmatpush1.bf16.msra.mxu1 %v24317_v15  ;;  %17584 = vmatprep.subr.bf16.mxu0 %v24322_v53  ;;  %v24398_v15 = vld [vmem:[#allocation22 + $0x9d0] ss:$48 sps:$4 sm:$0xff]   ;;  %v24401_v53 = vld [vmem:[#allocation22 + $0x9d8] ss:$48 sps:$4 sm:$0xff]  }
 0xbe8   : > { %17670 = vmatprep.subr.bf16.mxu1 %v24325_v50  ;;  %v24406_v50 = vld [vmem:[#allocation22 + $0xa34] ss:$48 sps:$4 sm:$0xff]  }
 0xbea   : > { %17585 = vmatpush1.bf16.msra.mxu0 %v24320_v6  ;;  %v24409_v6 = vld [vmem:[#allocation22 + $0xa3c] ss:$48 sps:$4 sm:$0xff]  }
 0xbeb   : > { %17671 = vmatpush1.bf16.msra.mxu1 %v24323_v19  ;;  %17586 = vmatprep.subr.bf16.mxu0 %v24328_v51  ;;  %v24404_v19 = vld [vmem:[#allocation22 + $0xa30] ss:$48 sps:$4 sm:$0xff]   ;;  %v24407_v51 = vld [vmem:[#allocation22 + $0xa38] ss:$48 sps:$4 sm:$0xff]  }
 0xbec   : > { %17672 = vmatprep.subr.bf16.mxu1 %v24331_v21  ;;  %v24412_v21 = vld [vmem:[#allocation22 + $0xa94] ss:$48 sps:$4 sm:$0xff]  }
 0xbee   : > { %17587 = vmatpush1.bf16.msra.mxu0 %v24326_v62  ;;  %v24415_v62 = vld [vmem:[#allocation22 + $0xa9c] ss:$48 sps:$4 sm:$0xff]  }
 0xbef   : > { %17673 = vmatpush1.bf16.msra.mxu1 %v24329_v3  ;;  %17588 = vmatprep.subr.bf16.mxu0 %v24334_v32  ;;  %v24410_v3 = vld [vmem:[#allocation22 + $0xa90] ss:$48 sps:$4 sm:$0xff]   ;;  %v24413_v32 = vld [vmem:[#allocation22 + $0xa98] ss:$48 sps:$4 sm:$0xff]  }
 0xbf0   : > { %17674 = vmatprep.subr.bf16.mxu1 %v24337_v31  ;;  %v24418_v31 = vld [vmem:[#allocation22 + $0xaf4] ss:$48 sps:$4 sm:$0xff]  }
 0xbf2   : > { %17589 = vmatpush1.bf16.msra.mxu0 %v24332_v33  ;;  %v24421_v33 = vld [vmem:[#allocation22 + $0xafc] ss:$48 sps:$4 sm:$0xff]  }
 0xbf3   : > { %17675 = vmatpush1.bf16.msra.mxu1 %v24335_v36  ;;  %17601 = vmatprep.subr.bf16.mxu0 %v24340_v56  ;;  %v24416_v36 = vld [vmem:[#allocation22 + $0xaf0] ss:$48 sps:$4 sm:$0xff]   ;;  %v24419_v56 = vld [vmem:[#allocation22 + $0xaf8] ss:$48 sps:$4 sm:$0xff]  }
 0xbf4   : > { %17687 = vmatprep.subr.bf16.mxu1 %v24343_v1  ;;  %v24424_v1 = vld [vmem:[#allocation22 + $0xb54] ss:$48 sps:$4 sm:$0xff]  }
 0xbf5   : > { %17591 = vmatmul.mubr.bf16.vlgmr.msra.gmra.mrb[48].mxu0 %v26330_v38 }
 0xbf6   : > { %17677 = vmatmul.mubr.bf16.vlgmr.msra.gmra.mrb[48].mxu1 %v26330_v38  ;;  %17602 = vmatpush1.bf16.msra.mxu0 %v24338_v25  ;;  %v24427_v25 = vld [vmem:[#allocation22 + $0xb5c] ss:$48 sps:$4 sm:$0xff]  }
 0xbf7   : > { %17633 = vmatprep.mubr.bf16.mxu0 %v26336_v5  ;;  %17688 = vmatpush1.bf16.msra.mxu1 %v24341_v20  ;;  %v24422_v20 = vld [vmem:[#allocation22 + $0xb50] ss:$48 sps:$4 sm:$0xff]  }
 0xbf8   : > { %17719 = vmatprep.mubr.bf16.mxu1 %v26336_v5  ;;  %17603 = vmatprep.subr.bf16.mxu0 %v24346_v26  ;;  %v24425_v26 = vld [vmem:[#allocation22 + $0xb58] ss:$48 sps:$4 sm:$0xff]  }
 0xbf9   : > { %17689 = vmatprep.subr.bf16.mxu1 %v24349_v37  ;;  %v24430_v37 = vld [vmem:[#allocation22 + $0xbb4] ss:$48 sps:$4 sm:$0xff]  }
 0xbfa   : > { %17604 = vmatpush1.bf16.msra.mxu0 %v24344_v18  ;;  %v24433_v18 = vld [vmem:[#allocation22 + $0xbbc] ss:$48 sps:$4 sm:$0xff]  }
 0xbfb   : > { %17690 = vmatpush1.bf16.msra.mxu1 %v24347_v41  ;;  %17605 = vmatprep.subr.bf16.mxu0 %v24352_v16  ;;  %v24428_v41 = vld [vmem:[#allocation22 + $0xbb0] ss:$48 sps:$4 sm:$0xff]   ;;  %v24431_v16 = vld [vmem:[#allocation22 + $0xbb8] ss:$48 sps:$4 sm:$0xff]  }
 0xbfc   : > { %17691 = vmatprep.subr.bf16.mxu1 %v24355_v54  ;;  %v24436_v54 = vld [vmem:[#allocation22 + $0x24] ss:$48 sps:$4 sm:$0xff]  }
 0xbfe   : > { %17606 = vmatpush1.bf16.msra.mxu0 %v24350_v40  ;;  %v24439_v40 = vld [vmem:[#allocation22 + $0x2c] ss:$48 sps:$4 sm:$0xff]  }
 0xbff   : > { %17692 = vmatpush1.bf16.msra.mxu1 %v24353_v23  ;;  %17607 = vmatprep.subr.bf16.mxu0 %v24358_v58  ;;  %v24434_v23 = vld [vmem:[#allocation22 + $0x20] ss:$48 sps:$4 sm:$0xff]   ;;  %v24437_v58 = vld [vmem:[#allocation22 + $0x28] ss:$48 sps:$4 sm:$0xff]  }
 0xc00   : > { %17693 = vmatprep.subr.bf16.mxu1 %v24361_v44  ;;  %v24442_v44 = vld [vmem:[#allocation22 + $0x84] ss:$48 sps:$4 sm:$0xff]  }
 0xc02   : > { %17608 = vmatpush1.bf16.msra.mxu0 %v24356_v8  ;;  %v24445_v8 = vld [vmem:[#allocation22 + $0x8c] ss:$48 sps:$4 sm:$0xff]  }
 0xc03   : > { %17694 = vmatpush1.bf16.msra.mxu1 %v24359_v29  ;;  %17609 = vmatprep.subr.bf16.mxu0 %v24364_v39  ;;  %v24440_v29 = vld [vmem:[#allocation22 + $0x80] ss:$48 sps:$4 sm:$0xff]   ;;  %v24443_v39 = vld [vmem:[#allocation22 + $0x88] ss:$48 sps:$4 sm:$0xff]  }
 0xc04   : > { %17695 = vmatprep.subr.bf16.mxu1 %v24367_v61  ;;  %v24448_v61 = vld [vmem:[#allocation22 + $0xe4] ss:$48 sps:$4 sm:$0xff]  }
 0xc06   : > { %17610 = vmatpush1.bf16.msra.mxu0 %v24362_v52  ;;  %v24451_v52 = vld [vmem:[#allocation22 + $0xec] ss:$48 sps:$4 sm:$0xff]  }
 0xc07   : > { %17696 = vmatpush1.bf16.msra.mxu1 %v24365_v43  ;;  %17611 = vmatprep.subr.bf16.mxu0 %v24370_v48  ;;  %v24446_v43 = vld [vmem:[#allocation22 + $0xe0] ss:$48 sps:$4 sm:$0xff]   ;;  %v24449_v48 = vld [vmem:[#allocation22 + $0xe8] ss:$48 sps:$4 sm:$0xff]  }
 0xc08   : > { %17697 = vmatprep.subr.bf16.mxu1 %v24373_v60  ;;  %v24454_v60 = vld [vmem:[#allocation22 + $0x144] ss:$48 sps:$4 sm:$0xff]  }
 0xc0a   : > { %17612 = vmatpush1.bf16.msra.mxu0 %v24368_v47  ;;  %v24457_v47 = vld [vmem:[#allocation22 + $0x14c] ss:$48 sps:$4 sm:$0xff]  }
 0xc0b   : > { %17698 = vmatpush1.bf16.msra.mxu1 %v24371_v22  ;;  %17613 = vmatprep.subr.bf16.mxu0 %v24376_v14  ;;  %v24452_v22 = vld [vmem:[#allocation22 + $0x140] ss:$48 sps:$4 sm:$0xff]   ;;  %v24455_v14 = vld [vmem:[#allocation22 + $0x148] ss:$48 sps:$4 sm:$0xff]  }
 0xc0c   : > { %17699 = vmatprep.subr.bf16.mxu1 %v24379_v49  ;;  %v24460_v49 = vld [vmem:[#allocation22 + $0x1a4] ss:$48 sps:$4 sm:$0xff]  }
 0xc0e   : > { %17614 = vmatpush1.bf16.msra.mxu0 %v24374_v46  ;;  %v24463_v46 = vld [vmem:[#allocation22 + $0x1ac] ss:$48 sps:$4 sm:$0xff]  }
 0xc0f   : > { %17700 = vmatpush1.bf16.msra.mxu1 %v24377_v27  ;;  %17615 = vmatprep.subr.bf16.mxu0 %v24382_v28  ;;  %v24461_v27 = vld [vmem:[#allocation22 + $0x1a8] ss:$48 sps:$4 sm:$0xff]   ;;  %v24466_v28 = vld [vmem:[#allocation22 + $0x204] ss:$48 sps:$4 sm:$0xff]  }
 0xc10   : > { %17701 = vmatprep.subr.bf16.mxu1 %v24385_v42  ;;  %v24469_v42 = vld [vmem:[#allocation22 + $0x20c] ss:$48 sps:$4 sm:$0xff]  }
 0xc12   : > { %17616 = vmatpush1.bf16.msra.mxu0 %v24380_v12  ;;  %v24464_v12 = vld [vmem:[#allocation22 + $0x200] ss:$48 sps:$4 sm:$0xff]  }
 0xc13   : > { %17702 = vmatpush1.bf16.msra.mxu1 %v24383_v24  ;;  %17617 = vmatprep.subr.bf16.mxu0 %v24388_v59  ;;  %v24467_v24 = vld [vmem:[#allocation22 + $0x208] ss:$48 sps:$4 sm:$0xff]   ;;  %v24472_v59 = vld [vmem:[#allocation22 + $0x264] ss:$48 sps:$4 sm:$0xff]  }
 0xc14   : > { %17703 = vmatprep.subr.bf16.mxu1 %v24391_v57  ;;  %v24475_v57 = vld [vmem:[#allocation22 + $0x26c] ss:$48 sps:$4 sm:$0xff]  }
 0xc16   : > { %17618 = vmatpush1.bf16.msra.mxu0 %v24386_v63  ;;  %v24470_v63 = vld [vmem:[#allocation22 + $0x260] ss:$48 sps:$4 sm:$0xff]  }
 0xc17   : > { %17704 = vmatpush1.bf16.msra.mxu1 %v24389_v30  ;;  %17619 = vmatprep.subr.bf16.mxu0 %v24394_v4  ;;  %v24473_v30 = vld [vmem:[#allocation22 + $0x268] ss:$48 sps:$4 sm:$0xff]   ;;  %v24478_v4 = vld [vmem:[#allocation22 + $0x2c4] ss:$48 sps:$4 sm:$0xff]  }
 0xc18   : > { %17705 = vmatprep.subr.bf16.mxu1 %v24397_v2  ;;  %v24481_v2 = vld [vmem:[#allocation22 + $0x2cc] ss:$48 sps:$4 sm:$0xff]  }
 0xc1a   : > { %17620 = vmatpush1.bf16.msra.mxu0 %v24392_v35  ;;  %v24476_v35 = vld [vmem:[#allocation22 + $0x2c0] ss:$48 sps:$4 sm:$0xff]  }
 0xc1b   : > { %17706 = vmatpush1.bf16.msra.mxu1 %v24395_v55  ;;  %17621 = vmatprep.subr.bf16.mxu0 %v24400_v9  ;;  %v24479_v55 = vld [vmem:[#allocation22 + $0x2c8] ss:$48 sps:$4 sm:$0xff]   ;;  %v24484_v9 = vld [vmem:[#allocation22 + $0x324] ss:$48 sps:$4 sm:$0xff]  }
 0xc1c   : > { %17707 = vmatprep.subr.bf16.mxu1 %v24403_v45  ;;  %v24487_v45 = vld [vmem:[#allocation22 + $0x32c] ss:$48 sps:$4 sm:$0xff]  }
 0xc1e   : > { %17622 = vmatpush1.bf16.msra.mxu0 %v24398_v15  ;;  %v24482_v15 = vld [vmem:[#allocation22 + $0x320] ss:$48 sps:$4 sm:$0xff]  }
 0xc1f   : > { %17708 = vmatpush1.bf16.msra.mxu1 %v24401_v53  ;;  %17623 = vmatprep.subr.bf16.mxu0 %v24406_v50  ;;  %v24485_v53 = vld [vmem:[#allocation22 + $0x328] ss:$48 sps:$4 sm:$0xff]   ;;  %v24490_v50 = vld [vmem:[#allocation22 + $0x384] ss:$48 sps:$4 sm:$0xff]  }
 0xc20   : > { %17709 = vmatprep.subr.bf16.mxu1 %v24409_v6  ;;  %v24493_v6 = vld [vmem:[#allocation22 + $0x38c] ss:$48 sps:$4 sm:$0xff]  }
 0xc22   : > { %17624 = vmatpush1.bf16.msra.mxu0 %v24404_v19  ;;  %v24488_v19 = vld [vmem:[#allocation22 + $0x380] ss:$48 sps:$4 sm:$0xff]  }
 0xc23   : > { %17710 = vmatpush1.bf16.msra.mxu1 %v24407_v51  ;;  %17625 = vmatprep.subr.bf16.mxu0 %v24412_v21  ;;  %v24491_v51 = vld [vmem:[#allocation22 + $0x388] ss:$48 sps:$4 sm:$0xff]   ;;  %v24496_v21 = vld [vmem:[#allocation22 + $0x3e4] ss:$48 sps:$4 sm:$0xff]  }
 0xc24   : > { %17711 = vmatprep.subr.bf16.mxu1 %v24415_v62  ;;  %v24499_v62 = vld [vmem:[#allocation22 + $0x3ec] ss:$48 sps:$4 sm:$0xff]  }
 0xc26   : > { %17626 = vmatpush1.bf16.msra.mxu0 %v24410_v3  ;;  %v24494_v3 = vld [vmem:[#allocation22 + $0x3e0] ss:$48 sps:$4 sm:$0xff]  }
 0xc27   : > { %17712 = vmatpush1.bf16.msra.mxu1 %v24413_v32  ;;  %17627 = vmatprep.subr.bf16.mxu0 %v24418_v31  ;;  %v24497_v32 = vld [vmem:[#allocation22 + $0x3e8] ss:$48 sps:$4 sm:$0xff]   ;;  %v24502_v31 = vld [vmem:[#allocation22 + $0x444] ss:$48 sps:$4 sm:$0xff]  }
 0xc28   : > { %17713 = vmatprep.subr.bf16.mxu1 %v24421_v33  ;;  %v24505_v33 = vld [vmem:[#allocation22 + $0x44c] ss:$48 sps:$4 sm:$0xff]  }
 0xc2a   : > { %17628 = vmatpush1.bf16.msra.mxu0 %v24416_v36  ;;  %v24500_v36 = vld [vmem:[#allocation22 + $0x440] ss:$48 sps:$4 sm:$0xff]  }
 0xc2b   : > { %17714 = vmatpush1.bf16.msra.mxu1 %v24419_v56  ;;  %17629 = vmatprep.subr.bf16.mxu0 %v24424_v1  ;;  %v24503_v56 = vld [vmem:[#allocation22 + $0x448] ss:$48 sps:$4 sm:$0xff]   ;;  %v24508_v1 = vld [vmem:[#allocation22 + $0x4a4] ss:$48 sps:$4 sm:$0xff]  }
 0xc2c   : > { %17715 = vmatprep.subr.bf16.mxu1 %v24427_v25  ;;  %v24511_v25 = vld [vmem:[#allocation22 + $0x4ac] ss:$48 sps:$4 sm:$0xff]  }
 0xc2e   : > { %17630 = vmatpush1.bf16.msra.mxu0 %v24422_v20  ;;  %v24506_v20 = vld [vmem:[#allocation22 + $0x4a0] ss:$48 sps:$4 sm:$0xff]  }
 0xc2f   : > { %17716 = vmatpush1.bf16.msra.mxu1 %v24425_v26  ;;  %17631 = vmatprep.subr.bf16.mxu0 %v24430_v37  ;;  %v24509_v26 = vld [vmem:[#allocation22 + $0x4a8] ss:$48 sps:$4 sm:$0xff]   ;;  %v24514_v37 = vld [vmem:[#allocation22 + $0x504] ss:$48 sps:$4 sm:$0xff]  }
 0xc30   : > { %17717 = vmatprep.subr.bf16.mxu1 %v24433_v18  ;;  %v24517_v18 = vld [vmem:[#allocation22 + $0x50c] ss:$48 sps:$4 sm:$0xff]  }
 0xc32   : > { %17632 = vmatpush1.bf16.msra.mxu0 %v24428_v41  ;;  %v24512_v41 = vld [vmem:[#allocation22 + $0x500] ss:$48 sps:$4 sm:$0xff]  }
 0xc33   : > { %17718 = vmatpush1.bf16.msra.mxu1 %v24431_v16  ;;  %17730 = vmatprep.subr.bf16.mxu0 %v24436_v54  ;;  %v24515_v16 = vld [vmem:[#allocation22 + $0x508] ss:$48 sps:$4 sm:$0xff]   ;;  %v24520_v54 = vld [vmem:[#allocation22 + $0x564] ss:$48 sps:$4 sm:$0xff]  }
 0xc34   : > { %17816 = vmatprep.subr.bf16.mxu1 %v24439_v40  ;;  %v24523_v40 = vld [vmem:[#allocation22 + $0x56c] ss:$48 sps:$4 sm:$0xff]  }
 0xc35   : > { %17634 = vmatmul.mubr.bf16.vlgmr.msra.gmra.mrb[48].mxu0 %v26332_v34 }
 0xc36   : > { %17720 = vmatmul.mubr.bf16.vlgmr.msra.gmra.mrb[48].mxu1 %v26332_v34  ;;  %17731 = vmatpush1.bf16.msra.mxu0 %v24434_v23  ;;  %v24518_v23 = vld [vmem:[#allocation22 + $0x560] ss:$48 sps:$4 sm:$0xff]  }
 0xc37   : > { %17762 = vmatprep.mubr.bf16.mxu0 %v26334_v0  ;;  %17817 = vmatpush1.bf16.msra.mxu1 %v24437_v58  ;;  %v24521_v58 = vld [vmem:[#allocation22 + $0x568] ss:$48 sps:$4 sm:$0xff]  }
 0xc38   : > { %17848 = vmatprep.mubr.bf16.mxu1 %v26334_v0  ;;  %17732 = vmatprep.subr.bf16.mxu0 %v24442_v44  ;;  %v24458_v0 = vld [vmem:[#allocation22 + $0x1a0] ss:$48 sps:$4 sm:$0xff]   ;;  %v24526_v44 = vld [vmem:[#allocation22 + $0x5c4] ss:$48 sps:$4 sm:$0xff]  }
 0xc39   : > { %17818 = vmatprep.subr.bf16.mxu1 %v24445_v8  ;;  %v24529_v8 = vld [vmem:[#allocation22 + $0x5cc] ss:$48 sps:$4 sm:$0xff]  }
 0xc3a   : > { %17733 = vmatpush1.bf16.msra.mxu0 %v24440_v29  ;;  %v24524_v29 = vld [vmem:[#allocation22 + $0x5c0] ss:$48 sps:$4 sm:$0xff]  }
 0xc3b   : > { %17819 = vmatpush1.bf16.msra.mxu1 %v24443_v39  ;;  %17734 = vmatprep.subr.bf16.mxu0 %v24448_v61  ;;  %v24527_v39 = vld [vmem:[#allocation22 + $0x5c8] ss:$48 sps:$4 sm:$0xff]   ;;  %v24532_v61 = vld [vmem:[#allocation22 + $0x624] ss:$48 sps:$4 sm:$0xff]  }
 0xc3c   : > { %17820 = vmatprep.subr.bf16.mxu1 %v24451_v52  ;;  %v24535_v52 = vld [vmem:[#allocation22 + $0x62c] ss:$48 sps:$4 sm:$0xff]  }
 0xc3e   : > { %17735 = vmatpush1.bf16.msra.mxu0 %v24446_v43  ;;  %v24530_v43 = vld [vmem:[#allocation22 + $0x620] ss:$48 sps:$4 sm:$0xff]  }
 0xc3f   : > { %17821 = vmatpush1.bf16.msra.mxu1 %v24449_v48  ;;  %17736 = vmatprep.subr.bf16.mxu0 %v24454_v60  ;;  %v24533_v48 = vld [vmem:[#allocation22 + $0x628] ss:$48 sps:$4 sm:$0xff]   ;;  %v24538_v60 = vld [vmem:[#allocation22 + $0x684] ss:$48 sps:$4 sm:$0xff]  }
 0xc40   : > { %17822 = vmatprep.subr.bf16.mxu1 %v24457_v47  ;;  %v24541_v47 = vld [vmem:[#allocation22 + $0x68c] ss:$48 sps:$4 sm:$0xff]  }
 0xc42   : > { %17737 = vmatpush1.bf16.msra.mxu0 %v24452_v22  ;;  %v24536_v22 = vld [vmem:[#allocation22 + $0x680] ss:$48 sps:$4 sm:$0xff]  }
 0xc43   : > { %17823 = vmatpush1.bf16.msra.mxu1 %v24455_v14  ;;  %17738 = vmatprep.subr.bf16.mxu0 %v24460_v49  ;;  %v24539_v14 = vld [vmem:[#allocation22 + $0x688] ss:$48 sps:$4 sm:$0xff]   ;;  %v24544_v49 = vld [vmem:[#allocation22 + $0x6e4] ss:$48 sps:$4 sm:$0xff]  }
 0xc44   : > { %17824 = vmatprep.subr.bf16.mxu1 %v24463_v46  ;;  %v24547_v46 = vld [vmem:[#allocation22 + $0x6ec] ss:$48 sps:$4 sm:$0xff]  }
 0xc46   : > { %17739 = vmatpush1.bf16.msra.mxu0 %v24458_v0  ;;  %v24542_v0 = vld [vmem:[#allocation22 + $0x6e0] ss:$48 sps:$4 sm:$0xff]  }
 0xc47   : > { %17825 = vmatpush1.bf16.msra.mxu1 %v24461_v27  ;;  %17740 = vmatprep.subr.bf16.mxu0 %v24466_v28  ;;  %v24545_v27 = vld [vmem:[#allocation22 + $0x6e8] ss:$48 sps:$4 sm:$0xff]   ;;  %v24550_v28 = vld [vmem:[#allocation22 + $0x744] ss:$48 sps:$4 sm:$0xff]  }
 0xc48   : > { %17826 = vmatprep.subr.bf16.mxu1 %v24469_v42  ;;  %v24548_v42 = vld [vmem:[#allocation22 + $0x740] ss:$48 sps:$4 sm:$0xff]  }
 0xc4a   : > { %17741 = vmatpush1.bf16.msra.mxu0 %v24464_v12  ;;  %v24551_v12 = vld [vmem:[#allocation22 + $0x748] ss:$48 sps:$4 sm:$0xff]  }
 0xc4b   : > { %17827 = vmatpush1.bf16.msra.mxu1 %v24467_v24  ;;  %17742 = vmatprep.subr.bf16.mxu0 %v24472_v59  ;;  %v24556_v24 = vld [vmem:[#allocation22 + $0x7a4] ss:$48 sps:$4 sm:$0xff]   ;;  %v24559_v59 = vld [vmem:[#allocation22 + $0x7ac] ss:$48 sps:$4 sm:$0xff]  }
 0xc4c   : > { %17828 = vmatprep.subr.bf16.mxu1 %v24475_v57  ;;  %v26360_v57 = vld [vmem:[#allocation23] sm:$0xff] }
 0xc4e   : > { %17743 = vmatpush1.bf16.msra.mxu0 %v24470_v63  ;;  %v24557_v63 = vld [vmem:[#allocation22 + $0x7a8] ss:$48 sps:$4 sm:$0xff]  }
 0xc4f   : > { %17829 = vmatpush1.bf16.msra.mxu1 %v24473_v30  ;;  %17744 = vmatprep.subr.bf16.mxu0 %v24478_v4  ;;  %v24562_v30 = vld [vmem:[#allocation22 + $0x804] ss:$48 sps:$4 sm:$0xff]   ;;  %v24565_v4 = vld [vmem:[#allocation22 + $0x80c] ss:$48 sps:$4 sm:$0xff]  }
 0xc50   : > { %17830 = vmatprep.subr.bf16.mxu1 %v24481_v2  ;;  %v15409_v2 = vrot.slane %v26360_v57, %v25812_v10 }
 0xc52   : > { %17745 = vmatpush1.bf16.msra.mxu0 %v24476_v35  ;;  %v26364_v35 = vld [vmem:[#allocation25] ss:$2 sm:$0xff] }
 0xc53   : > { %17831 = vmatpush1.bf16.msra.mxu1 %v24479_v55  ;;  %17746 = vmatprep.subr.bf16.mxu0 %v24484_v9  ;;  %v26366_v55 = vld [vmem:[#allocation25 + $0x1] ss:$2 sm:$0xff]  ;;  %v15417_v9 = vrot.slane %v26360_v57, %v25819_v17 }
 0xc54   : > { %17832 = vmatprep.subr.bf16.mxu1 %v24487_v45  ;;  %v15413_v45 = vrot.slane %v26360_v57, %v25826_v11 }
 0xc56   : > { %17747 = vmatpush1.bf16.msra.mxu0 %v24482_v15  ;;  %v15421_v15 = vrot.slane %v26360_v57, %v25829_v13 }
 0xc57   : > { %17833 = vmatpush1.bf16.msra.mxu1 %v24485_v53  ;;  %17748 = vmatprep.subr.bf16.mxu0 %v24490_v50  ;;  %v24560_v53 = vld [vmem:[#allocation22 + $0x800] ss:$48 sps:$4 sm:$0xff]   ;;  %v24563_v50 = vld [vmem:[#allocation22 + $0x808] ss:$48 sps:$4 sm:$0xff]  }
 0xc58   : > { %17834 = vmatprep.subr.bf16.mxu1 %v24493_v6  ;;  %v24568_v6 = vld [vmem:[#allocation22 + $0x864] ss:$48 sps:$4 sm:$0xff]  }
 0xc5a   : > { %17749 = vmatpush1.bf16.msra.mxu0 %v24488_v19 }
 0xc5b   : > { %17835 = vmatpush1.bf16.msra.mxu1 %v24491_v51  ;;  %17750 = vmatprep.subr.bf16.mxu0 %v24496_v21  ;;  %v17934_v51 = vrot.slane %v26364_v35, %v25812_v10  ;;  %v18024_v21 = vrot.slane %v26366_v55, %v25812_v10 }
 0xc5c   : > { %17836 = vmatprep.subr.bf16.mxu1 %v24499_v62 }
 0xc5e   : > { %17751 = vmatpush1.bf16.msra.mxu0 %v24494_v3  ;;  %v24571_v3 = vld [vmem:[#allocation22 + $0x86c] ss:$48 sps:$4 sm:$0xff]  }
 0xc5f   : > { %17837 = vmatpush1.bf16.msra.mxu1 %v24497_v32  ;;  %17752 = vmatprep.subr.bf16.mxu0 %v24502_v31 }
 0xc60   : > { %17838 = vmatprep.subr.bf16.mxu1 %v24505_v33  ;;  %v17942_v33 = vrot.slane %v26364_v35, %v25819_v17 }
 0xc62   : > { %17753 = vmatpush1.bf16.msra.mxu0 %v24500_v36  ;;  %v18032_v36 = vrot.slane %v26366_v55, %v25819_v17 }
 0xc63   : > { %17839 = vmatpush1.bf16.msra.mxu1 %v24503_v56  ;;  %17754 = vmatprep.subr.bf16.mxu0 %v24508_v1 }
 0xc64   : > { %17840 = vmatprep.subr.bf16.mxu1 %v24511_v25 }
 0xc66   : > { %17755 = vmatpush1.bf16.msra.mxu0 %v24506_v20  ;;  %v17938_v20 = vrot.slane %v26364_v35, %v25826_v11 }
 0xc67   : > { %17841 = vmatpush1.bf16.msra.mxu1 %v24509_v26  ;;  %17756 = vmatprep.subr.bf16.mxu0 %v24514_v37  ;;  %v17946_v37 = vrot.slane %v26364_v35, %v25829_v13 }
 0xc68   : > { %17842 = vmatprep.subr.bf16.mxu1 %v24517_v18 }
 0xc6a   : > { %17757 = vmatpush1.bf16.msra.mxu0 %v24512_v41 }
 0xc6b   : > { %17843 = vmatpush1.bf16.msra.mxu1 %v24515_v16  ;;  %17758 = vmatprep.subr.bf16.mxu0 %v24520_v54  ;;  %v24566_v16 = vld [vmem:[#allocation22 + $0x860] ss:$48 sps:$4 sm:$0xff]  }
 0xc6c   : > { %17844 = vmatprep.subr.bf16.mxu1 %v24523_v40 }
 0xc6e   : > { %17759 = vmatpush1.bf16.msra.mxu0 %v24518_v23 }
 0xc6f   : > { %17845 = vmatpush1.bf16.msra.mxu1 %v24521_v58  ;;  %17760 = vmatprep.subr.bf16.mxu0 %v24526_v44 }
 0xc70   : > { %17846 = vmatprep.subr.bf16.mxu1 %v24529_v8 }
 0xc72   : > { %17761 = vmatpush1.bf16.msra.mxu0 %v24524_v29  ;;  %v24569_v29 = vld [vmem:[#allocation22 + $0x868] ss:$48 sps:$4 sm:$0xff]  }
 0xc73   : > { %17847 = vmatpush1.bf16.msra.mxu1 %v24527_v39  ;;  %17773 = vmatprep.subr.bf16.mxu0 %v24532_v61 }
 0xc74   : > { %17859 = vmatprep.subr.bf16.mxu1 %v24535_v52 }
 0xc75   : > { %17763 = vmatmul.mubr.bf16.vlgmr.msra.gmra.mrb[52].mxu0 %v26330_v38 }
 0xc76   : > { %17849 = vmatmul.mubr.bf16.vlgmr.msra.gmra.mrb[52].mxu1 %v26330_v38  ;;  %17774 = vmatpush1.bf16.msra.mxu0 %v24530_v43  ;;  %v24553_v38 = vld [vmem:[#allocation22 + $0x74c] ss:$48 sps:$4 sm:$0xff]  }
 0xc77   : > { %17805 = vmatprep.mubr.bf16.mxu0 %v26336_v5  ;;  %17860 = vmatpush1.bf16.msra.mxu1 %v24533_v48  ;;  %v24574_v48 = vld [vmem:[#allocation22 + $0x8c4] ss:$48 sps:$4 sm:$0xff]  }
 0xc78   : > { %17891 = vmatprep.mubr.bf16.mxu1 %v26336_v5  ;;  %17775 = vmatprep.subr.bf16.mxu0 %v24538_v60  ;;  %v24554_v5 = vld [vmem:[#allocation22 + $0x7a0] ss:$48 sps:$4 sm:$0xff]   ;;  %v18028_v60 = vrot.slane %v26366_v55, %v25826_v11 }
 0xc79   : > { %17861 = vmatprep.subr.bf16.mxu1 %v24541_v47  ;;  %v18036_v47 = vrot.slane %v26366_v55, %v25829_v13 }
 0xc7a   : > { %17776 = vmatpush1.bf16.msra.mxu0 %v24536_v22 }
 0xc7b   : > { %17862 = vmatpush1.bf16.msra.mxu1 %v24539_v14  ;;  %17777 = vmatprep.subr.bf16.mxu0 %v24544_v49  ;;  %v24577_v49 = vld [vmem:[#allocation22 + $0x8cc] ss:$48 sps:$4 sm:$0xff]  }
 0xc7c   : > { %17863 = vmatprep.subr.bf16.mxu1 %v24547_v46 }
 0xc7e   : > { %17778 = vmatpush1.bf16.msra.mxu0 %v24542_v0 }
 0xc7f   : > { %17864 = vmatpush1.bf16.msra.mxu1 %v24545_v27  ;;  %17779 = vmatprep.subr.bf16.mxu0 %v24550_v28 }
 0xc80   : > { %17865 = vmatprep.subr.bf16.mxu1 %v24553_v38  ;;  %v24572_v38 = vld [vmem:[#allocation22 + $0x8c0] ss:$48 sps:$4 sm:$0xff]  }
 0xc82   : > { %17780 = vmatpush1.bf16.msra.mxu0 %v24548_v42 }
 0xc83   : > { %17866 = vmatpush1.bf16.msra.mxu1 %v24551_v12  ;;  %17781 = vmatprep.subr.bf16.mxu0 %v24556_v24 }
 0xc84   : > { %17867 = vmatprep.subr.bf16.mxu1 %v24559_v59 }
 0xc86   : > { %17782 = vmatpush1.bf16.msra.mxu0 %v24554_v5  ;;  %v24575_v5 = vld [vmem:[#allocation22 + $0x8c8] ss:$48 sps:$4 sm:$0xff]  }
 0xc87   : > { %17868 = vmatpush1.bf16.msra.mxu1 %v24557_v63  ;;  %17783 = vmatprep.subr.bf16.mxu0 %v24562_v30  ;;  %v24580_v63 = vld [vmem:[#allocation22 + $0x924] ss:$48 sps:$4 sm:$0xff]  }
 0xc88   : > { %v17463_v19 = vpop.f32.mrb[44].mxu0  ;;  %v17549_v62 = vpop.f32.mrb[44].mxu1  ;;  %17869 = vmatprep.subr.bf16.mxu1 %v24565_v4 }
 0xc89   : > { %v20934_v32 = vadd.f32 %v17463_v19, %v15409_v2  ;;  %v20938_v31 = vadd.f32 %v17549_v62, %v15417_v9  ;;  %v17465_v56 = vpop.f32.mrb[45].mxu0  ;;  %v17551_v1 = vpop.f32.mrb[45].mxu1  ;;  %v24578_v19 = vld [vmem:[#allocation22 + $0x920] ss:$48 sps:$4 sm:$0xff]  }
 0xc8a   : > { %v20935_v25 = vadd.f32 %v17465_v56, %v15413_v45  ;;  %v20939_v26 = vadd.f32 %v17551_v1, %v15421_v15  ;;  %v17467_v18 = vpop.f32.mrb[46].mxu0  ;;  %v17553_v41 = vpop.f32.mrb[46].mxu1  ;;  %17784 = vmatpush1.bf16.msra.mxu0 %v24560_v53 }
 0xc8b   : > { %v17902_v54 = vmax.f32 %v20934_v32, 0.0  ;;  %v17904_v40 = vmax.f32 %v20938_v31, 0.0  ;;  %v20936_v23 = vadd.f32 %v17467_v18, %v15409_v2  ;;  %v20940_v58 = vadd.f32 %v17553_v41, %v15417_v9  ;;  %17870 = vmatpush1.bf16.msra.mxu1 %v24563_v50  ;;  %v17469_v44 = vpop.f32.mrb[47].mxu0  ;;  %v17555_v8 = vpop.f32.mrb[47].mxu1  ;;  %17785 = vmatprep.subr.bf16.mxu0 %v24568_v6  ;;  %v24583_v2 = vld [vmem:[#allocation22 + $0x92c] ss:$48 sps:$4 sm:$0xff]  }
 0xc8c   : > { %v17903_v39 = vmax.f32 %v20935_v25, 0.0  ;;  %v17905_v61 = vmax.f32 %v20939_v26, 0.0  ;;  %v20937_v52 = vadd.f32 %v17469_v44, %v15413_v45  ;;  %v20941_v43 = vadd.f32 %v17555_v8, %v15421_v15  ;;  %17871 = vmatprep.subr.bf16.mxu1 %v24571_v3  ;;  %v24586_v31 = vld [vmem:[#allocation22 + $0x984] ss:$48 sps:$4 sm:$0xff]   ;;  %v24589_v25 = vld [vmem:[#allocation22 + $0x98c] ss:$48 sps:$4 sm:$0xff]  }
 0xc8d   : > { %v17914_v22 = vmax.f32 %v20936_v23, 0.0  ;;  %v17916_v14 = vmax.f32 %v20940_v58, 0.0  ;;  %v17991_v46 = vmul.f32 %v17934_v51, %v17902_v54  ;;  %v17993_v0 = vmul.f32 %v17942_v33, %v17904_v40  ;;  %v24584_v41 = vld [vmem:[#allocation22 + $0x980] ss:$48 sps:$4 sm:$0xff]   ;;  %v24587_v40 = vld [vmem:[#allocation22 + $0x988] ss:$48 sps:$4 sm:$0xff]  }
 0xc8e   : > { %v17915_v27 = vmax.f32 %v20937_v52, 0.0  ;;  %v17917_v28 = vmax.f32 %v20941_v43, 0.0  ;;  %17786 = vmatpush1.bf16.msra.mxu0 %v24566_v16  ;;  %v17992_v42 = vmul.f32 %v17938_v20, %v17903_v39  ;;  %v17994_v12 = vmul.f32 %v17946_v37, %v17905_v61  ;;  %v24592_v23 = vld [vmem:[#allocation22 + $0x9e4] ss:$48 sps:$4 sm:$0xff]   ;;  %v24595_v8 = vld [vmem:[#allocation22 + $0x9ec] ss:$48 sps:$4 sm:$0xff]  }
 0xc8f   : > { %v18003_v24 = vmul.f32 %v17934_v51, %v17914_v22  ;;  %v18005_v59 = vmul.f32 %v17942_v33, %v17916_v14  ;;  %17872 = vmatpush1.bf16.msra.mxu1 %v24569_v29  ;;  %17787 = vmatprep.subr.bf16.mxu0 %v24574_v48  ;;  %v26394_v15 = vadd.f32 %v18024_v21, %v17991_v46  ;;  %v24590_v43 = vld [vmem:[#allocation22 + $0x9e0] ss:$48 sps:$4 sm:$0xff]   ;;  %v24598_v22 = vld [vmem:[#allocation22 + $0xa44] ss:$48 sps:$4 sm:$0xff]   ;;  %v24601_v46 = vld [vmem:[#allocation22 + $0xa4c] ss:$48 sps:$4 sm:$0xff]  }
 0xc90   : > { %v18004_v30 = vmul.f32 %v17938_v20, %v17915_v27  ;;  %v18006_v4 = vmul.f32 %v17946_v37, %v17917_v28  ;;  %17873 = vmatprep.subr.bf16.mxu1 %v24577_v49  ;;  %v26396_v53 = vadd.f32 %v18032_v36, %v17993_v0  ;;  %v26402_v51 = vadd.f32 %v18028_v60, %v17992_v42  ;;  %v24596_v42 = vld [vmem:[#allocation22 + $0xa40] ss:$48 sps:$4 sm:$0xff]  }
 0xc91   : > { %v26390_v9 = vadd.f32 %v18024_v21, %v18003_v24  ;;  %v26392_v45 = vadd.f32 %v18032_v36, %v18005_v59  ;;  %v26404_v62 = vadd.f32 %v18036_v47, %v17994_v12  ;;  %v24581_v21 = vld [vmem:[#allocation22 + $0x928] ss:$48 sps:$4 sm:$0xff]  }
 0xc92   : > { %v26398_v50 = vadd.f32 %v18028_v60, %v18004_v30  ;;  %v26400_v6 = vadd.f32 %v18036_v47, %v18006_v4  ;;  %17788 = vmatpush1.bf16.msra.mxu0 %v24572_v38  ;;  %v24593_v47 = vld [vmem:[#allocation22 + $0x9e8] ss:$48 sps:$4 sm:$0xff]   ;;  %v24607_v4 = vld [vmem:[#allocation22 + $0xaac] ss:$48 sps:$4 sm:$0xff]  }
 0xc93   : > { %v18106_v3 = vsel %vm11116_vm9, %v26390_v9, 0.0  ;;  %v18122_v32 = vsel %vm11116_vm9, %v26392_v45, 0.0  ;;  %17874 = vmatpush1.bf16.msra.mxu1 %v24575_v5  ;;  %17789 = vmatprep.subr.bf16.mxu0 %v24580_v63  ;;  %v24599_v59 = vld [vmem:[#allocation22 + $0xa48] ss:$48 sps:$4 sm:$0xff]   ;;  %v24604_v5 = vld [vmem:[#allocation22 + $0xaa4] ss:$48 sps:$4 sm:$0xff]  }
 0xc94   : > { %v18107_v33 = vadd.f32 %v18106_v3, %v26394_v15  ;;  %v18123_v36 = vadd.f32 %v18122_v32, %v26396_v53  ;;  %v18114_v56 = vsel %vm11116_vm9, %v26398_v50, 0.0  ;;  %v18130_v1 = vsel %vm11116_vm9, %v26400_v6, 0.0  ;;  %17875 = vmatprep.subr.bf16.mxu1 %v24583_v2 }
 0xc95   : > { %v18115_v20 = vadd.f32 %v18114_v56, %v26402_v51  ;;  %v18131_v26 = vadd.f32 %v18130_v1, %v26404_v62 }
 0xc96   : > { %v18108_v37 = vrot.slane %v18107_v33, 4  ;;  %v18124_v18 = vrot.slane %v18123_v36, 4  ;;  %17790 = vmatpush1.bf16.msra.mxu0 %v24578_v19 }
 0xc97   : > { %v18116_v16 = vrot.slane %v18115_v20, 4  ;;  %v18132_v54 = vrot.slane %v18131_v26, 4  ;;  %17876 = vmatpush1.bf16.msra.mxu1 %v24581_v21  ;;  %17791 = vmatprep.subr.bf16.mxu0 %v24586_v31  ;;  %v24602_v21 = vld [vmem:[#allocation22 + $0xaa0] ss:$48 sps:$4 sm:$0xff]  }
 0xc98   : > { %v18109_v58 = vadd.f32 %v18108_v37, %v18107_v33  ;;  %v18125_v44 = vadd.f32 %v18124_v18, %v18123_v36  ;;  %17877 = vmatprep.subr.bf16.mxu1 %v24589_v25  ;;  %v24605_v36 = vld [vmem:[#allocation22 + $0xaa8] ss:$48 sps:$4 sm:$0xff]   ;;  %v24613_v37 = vld [vmem:[#allocation22 + $0xb0c] ss:$48 sps:$4 sm:$0xff]  }
 0xc99   : > { %v18117_v29 = vadd.f32 %v18116_v16, %v18115_v20  ;;  %v18133_v39 = vadd.f32 %v18132_v54, %v18131_v26  ;;  %v24610_v26 = vld [vmem:[#allocation22 + $0xb04] ss:$48 sps:$4 sm:$0xff]  }
 0xc9a   : > { %v18110_v61 = vrot.slane %v18109_v58, 2  ;;  %v18126_v52 = vrot.slane %v18125_v44, 2  ;;  %17792 = vmatpush1.bf16.msra.mxu0 %v24584_v41 }
 0xc9b   : > { %v18118_v48 = vrot.slane %v18117_v29, 2  ;;  %v18134_v60 = vrot.slane %v18133_v39, 2  ;;  %17878 = vmatpush1.bf16.msra.mxu1 %v24587_v40  ;;  %17793 = vmatprep.subr.bf16.mxu0 %v24592_v23 }
 0xc9c   : > { %v18111_v14 = vadd.f32 %v18110_v61, %v18109_v58  ;;  %v18127_v49 = vadd.f32 %v18126_v52, %v18125_v44  ;;  %17879 = vmatprep.subr.bf16.mxu1 %v24595_v8 }
 0xc9d   : > { %v18119_v0 = vadd.f32 %v18118_v48, %v18117_v29  ;;  %v18135_v27 = vadd.f32 %v18134_v60, %v18133_v39  ;;  %v24616_v29 = vld [vmem:[#allocation22 + $0xb64] ss:$48 sps:$4 sm:$0xff]  }
 0xc9e   : > { %v18112_v28 = vrot.slane %v18111_v14, 1  ;;  %v18128_v38 = vrot.slane %v18127_v49, 1  ;;  %17794 = vmatpush1.bf16.msra.mxu0 %v24590_v43 }
 0xc9f   : > { %v18120_v12 = vrot.slane %v18119_v0, 1  ;;  %v18136_v24 = vrot.slane %v18135_v27, 1  ;;  %17880 = vmatpush1.bf16.msra.mxu1 %v24593_v47  ;;  %17795 = vmatprep.subr.bf16.mxu0 %v24598_v22  ;;  %v24614_v47 = vld [vmem:[#allocation22 + $0xb60] ss:$48 sps:$4 sm:$0xff]  }
 0xca0   : > { %v18113_v63 = vadd.f32 %v18112_v28, %v18111_v14  ;;  %v18129_v30 = vadd.f32 %v18128_v38, %v18127_v49  ;;  %17881 = vmatprep.subr.bf16.mxu1 %v24601_v46  ;;  %v24617_v49 = vld [vmem:[#allocation22 + $0xb68] ss:$48 sps:$4 sm:$0xff]   ;;  %v24622_v46 = vld [vmem:[#allocation22 + $0xbc4] ss:$48 sps:$4 sm:$0xff]   ;;  %v24625_v28 = vld [vmem:[#allocation22 + $0xbcc] ss:$48 sps:$4 sm:$0xff]  }
 0xca1   : > { %v18121_v2 = vadd.f32 %v18120_v12, %v18119_v0  ;;  %v18137_v19 = vadd.f32 %v18136_v24, %v18135_v27 }
 0xca2   : > { %v26418_v3 = vmul.f32 0.1, %v18113_v63  ;;  %v26420_v32 = vmul.f32 0.1, %v18129_v30  ;;  %17796 = vmatpush1.bf16.msra.mxu0 %v24596_v42  ;;  %v24623_v30 = vld [vmem:[#allocation22 + $0xbc8] ss:$48 sps:$4 sm:$0xff]  }
 0xca3   : > { %v26422_v31 = vmul.f32 0.1, %v18121_v2  ;;  %v26424_v33 = vmul.f32 0.1, %v18137_v19  ;;  %17882 = vmatpush1.bf16.msra.mxu1 %v24599_v59  ;;  %17797 = vmatprep.subr.bf16.mxu0 %v24604_v5  ;;  %v24620_v59 = vld [vmem:[#allocation22 + $0xbc0] ss:$48 sps:$4 sm:$0xff]  }
 0xca4   : > { %v18215_v56 = vsub.f32 %v26394_v15, %v26418_v3  ;;  %v18227_v1 = vsub.f32 %v26390_v9, %v26418_v3  ;;  %v18217_v25 = vsub.f32 %v26396_v53, %v26420_v32  ;;  %v18229_v20 = vsub.f32 %v26392_v45, %v26420_v32  ;;  %17883 = vmatprep.subr.bf16.mxu1 %v24607_v4  ;;  %v24608_v45 = vld [vmem:[#allocation22 + $0xb00] ss:$48 sps:$4 sm:$0xff]  }
 0xca5   : > { %v18216_v18 = vsub.f32 %v26402_v51, %v26422_v31  ;;  %v18228_v41 = vsub.f32 %v26398_v50, %v26422_v31  ;;  %v18218_v15 = vsub.f32 %v26404_v62, %v26424_v33  ;;  %v18230_v9 = vsub.f32 %v26400_v6, %v26424_v33  ;;  %v24611_v51 = vld [vmem:[#allocation22 + $0xb08] ss:$48 sps:$4 sm:$0xff]   ;;  %v24619_v6 = vld [vmem:[#allocation22 + $0xb6c] ss:$48 sps:$4 sm:$0xff]  }
 0xca6   : > { %v18239_v16 = vmul.f32 %v18215_v56, %v18215_v56  ;;  %v18251_v53 = vmul.f32 %v18227_v1, %v18227_v1  ;;  %v18241_v54 = vmul.f32 %v18217_v25, %v18217_v25  ;;  %v18253_v40 = vmul.f32 %v18229_v20, %v18229_v20  ;;  %17798 = vmatpush1.bf16.msra.mxu0 %v24602_v21 }
 0xca7   : > { %v18240_v23 = vmul.f32 %v18216_v18, %v18216_v18  ;;  %v18252_v58 = vmul.f32 %v18228_v41, %v18228_v41  ;;  %v18242_v44 = vmul.f32 %v18218_v15, %v18218_v15  ;;  %v18254_v8 = vmul.f32 %v18230_v9, %v18230_v9  ;;  %17884 = vmatpush1.bf16.msra.mxu1 %v24605_v36 }
 0xca8   : > { %v18263_v50 = vsel %vm11116_vm9, %v18251_v53, 0.0  ;;  %v18279_v62 = vsel %vm11116_vm9, %v18253_v40, 0.0  ;;  %17799 = vmatprep.subr.bf16.mxu0 %v24610_v26  ;;  %17885 = vmatprep.subr.bf16.mxu1 %v24613_v37  ;;  %v25186_v40 = vmov 1983009808  }
 0xca9   : > { %v18264_v39 = vadd.f32 %v18263_v50, %v18239_v16  ;;  %v18280_v61 = vadd.f32 %v18279_v62, %v18241_v54  ;;  %v18271_v52 = vsel %vm11116_vm9, %v18252_v58, 0.0  ;;  %v18287_v43 = vsel %vm11116_vm9, %v18254_v8, 0.0 }
 0xcaa   : > { %v18272_v48 = vadd.f32 %v18271_v52, %v18240_v23  ;;  %v18288_v60 = vadd.f32 %v18287_v43, %v18242_v44  ;;  %17800 = vmatpush1.bf16.msra.mxu0 %v24608_v45  ;;  %v18484_v45 = vunpack.c.l.s4 %v25186_v40 }
 0xcab   : > { %v18265_v22 = vrot.slane %v18264_v39, 4  ;;  %v18281_v14 = vrot.slane %v18280_v61, 4  ;;  %17886 = vmatpush1.bf16.msra.mxu1 %v24611_v51  ;;  %17801 = vmatprep.subr.bf16.mxu0 %v24616_v29 }
 0xcac   : > { %v18273_v0 = vrot.slane %v18272_v48, 4  ;;  %v18289_v27 = vrot.slane %v18288_v60, 4  ;;  %17887 = vmatprep.subr.bf16.mxu1 %v24619_v6  ;;  %v18485_v23 = vunpack.c.0.s8 %v18484_v45 }
 0xcad   : > { %v18266_v38 = vadd.f32 %v18265_v22, %v18264_v39  ;;  %v18282_v42 = vadd.f32 %v18281_v14, %v18280_v61 }
 0xcae   : > { %v18274_v12 = vadd.f32 %v18273_v0, %v18272_v48  ;;  %v18290_v24 = vadd.f32 %v18289_v27, %v18288_v60  ;;  %17802 = vmatpush1.bf16.msra.mxu0 %v24614_v47  ;;  %v26449_v44 = vsub.s32 %v18485_v23, %v25809_v7 }
 0xcaf   : > { %v18267_v5 = vrot.slane %v18266_v38, 2  ;;  %v18283_v63 = vrot.slane %v18282_v42, 2  ;;  %17888 = vmatpush1.bf16.msra.mxu1 %v24617_v49  ;;  %17803 = vmatprep.subr.bf16.mxu0 %v24622_v46 }
 0xcb0   : > { %v18275_v4 = vrot.slane %v18274_v12, 2  ;;  %v18291_v2 = vrot.slane %v18290_v24, 2  ;;  %17889 = vmatprep.subr.bf16.mxu1 %v24625_v28 }
 0xcb1   : > { %v18268_v19 = vadd.f32 %v18267_v5, %v18266_v38  ;;  %v18284_v21 = vadd.f32 %v18283_v63, %v18282_v42  ;;  %v15428_v63 = vsub.s32 5, %v25809_v7 }
 0xcb2   : > { %v18276_v36 = vadd.f32 %v18275_v4, %v18274_v12  ;;  %v18292_v56 = vadd.f32 %v18291_v2, %v18290_v24  ;;  %17804 = vmatpush1.bf16.msra.mxu0 %v24620_v59 }
 0xcb3   : > { %v18269_v1 = vrot.slane %v18268_v19, 1  ;;  %v18285_v25 = vrot.slane %v18284_v21, 1  ;;  %17890 = vmatpush1.bf16.msra.mxu1 %v24623_v30  ;;  %v15429_v2 = vrot.slane %v26360_v57, %v15428_v63 }
 0xcb4   : > { %v18277_v20 = vrot.slane %v18276_v36, 1  ;;  %v18293_v26 = vrot.slane %v18292_v56, 1 }
 0xcb5   : > { %v18270_v37 = vadd.f32 %v18269_v1, %v18268_v19  ;;  %v18286_v18 = vadd.f32 %v18285_v25, %v18284_v21  ;;  %17806 = vmatmul.mubr.bf16.vlgmr.msra.gmra.mrb[52].mxu0 %v26332_v34 }
 0xcb6   : > { %v18278_v41 = vadd.f32 %v18277_v20, %v18276_v36  ;;  %v18294_v15 = vadd.f32 %v18293_v26, %v18292_v56  ;;  %17892 = vmatmul.mubr.bf16.vlgmr.msra.gmra.mrb[52].mxu1 %v26332_v34 }
 0xcb7   : > { %v18360_v9 = vmul.f32 0.11111111, %v18270_v37  ;;  %v18362_v16 = vmul.f32 0.11111111, %v18286_v18  ;;  %v17954_v18 = vrot.slane %v26364_v35, %v15428_v63 }
 0xcb8   : > { %v18361_v53 = vmul.f32 0.11111111, %v18278_v41  ;;  %v18363_v54 = vmul.f32 0.11111111, %v18294_v15 }
 0xcb9   : > { %24626 = vrsqrt.f32 %v18360_v9  ;;  %vm18374_vm10 = vcmp.eq.f32.partialorder %v18360_v9, inf  ;;  %vm18376_vm12 = vcmp.eq.f32.partialorder %v18360_v9, 0.0  ;;  %v18377_v34 = vand.u32 2147483648, %v18360_v9 }
 0xcba   : > { %24628 = vrsqrt.f32 %v18362_v16  ;;  %vm18388_vm13 = vcmp.eq.f32.partialorder %v18362_v16, inf  ;;  %vm18390_vm14 = vcmp.eq.f32.partialorder %v18362_v16, 0.0  ;;  %v18391_v62 = vand.u32 2147483648, %v18362_v16 }
 0xcbb   : > { %24630 = vrsqrt.f32 %v18361_v53  ;;  %vm18381_vm15 = vcmp.eq.f32.partialorder %v18361_v53, inf  ;;  %vm18383_vm0 = vcmp.eq.f32.partialorder %v18361_v53, 0.0  ;;  %v18384_v52 = vand.u32 2147483648, %v18361_v53 }
 0xcbc   : > { %24632 = vrsqrt.f32 %v18363_v54  ;;  %vm18395_vm1 = vcmp.eq.f32.partialorder %v18363_v54, inf  ;;  %v18398_v49 = vand.u32 2147483648, %v18363_v54  ;;  %vm18397_vm2 = vcmp.eq.f32.partialorder %v18363_v54, 0.0 }
 0xcc3   : > { %v24627_v58 = vpop.eup %24626 }
 0xcc4   : > { %v24629_v8 = vpop.eup %24628  ;;  %v18373_v51 = vmul.f32 %v24627_v58, %v18360_v9 }
 0xcc5   : > { %v24631_v29 = vpop.eup %24630  ;;  %v18387_v50 = vmul.f32 %v24629_v8, %v18362_v16 }
 0xcc6   : > { %v24633_v6 = vpop.eup %24632  ;;  %v18375_v39 = vsel %vm18374_vm10, %v18360_v9, %v18373_v51  ;;  %v18380_v61 = vmul.f32 %v24631_v29, %v18361_v53 }
 0xcc7   : > { %v18378_v43 = vsel %vm18376_vm12, %v18377_v34, %v18375_v39  ;;  %v18389_v48 = vsel %vm18388_vm13, %v18362_v16, %v18387_v50  ;;  %v18394_v60 = vmul.f32 %v24633_v6, %v18363_v54  ;;  %v18044_v39 = vrot.slane %v26366_v55, %v15428_v63 }
 0xcc8   : > { %v18457_v47 = vsel %vm18456_vm11, %v26418_v3, %v18378_v43  ;;  %v18392_v22 = vsel %vm18390_vm14, %v18391_v62, %v18389_v48  ;;  %v18382_v14 = vsel %vm18381_vm15, %v18361_v53, %v18380_v61 }
 0xcc9   : > { %v18459_v46 = vsel %vm18456_vm11, %v26420_v32, %v18392_v22  ;;  %v18385_v0 = vsel %vm18383_vm0, %v18384_v52, %v18382_v14  ;;  %v18396_v27 = vsel %vm18395_vm1, %v18363_v54, %v18394_v60  ;;  %v15424_v32 = vsub.s32 4, %v25809_v7 }
 0xcca   : > { %v18458_v28 = vsel %vm18456_vm11, %v26422_v31, %v18385_v0  ;;  %v18399_v38 = vsel %vm18397_vm2, %v18398_v49, %v18396_v27  ;;  %v15432_v31 = vsub.s32 6, %v25809_v7 }
 0xccb   : > { %v18481_v42 = vcombine.low %v18457_v47, %v18458_v28  ;;  %v18460_v12 = vsel %vm18456_vm11, %v26424_v33, %v18399_v38  ;;  %v15436_v33 = vsub.s32 7, %v25809_v7  ;;  %v15425_v30 = vrot.slane %v26360_v57, %v15424_v32 }
 0xccc   : > { %v18482_v3 = vcombine.low %v18459_v46, %v18460_v12  ;;  %v15433_v4 = vrot.slane %v26360_v57, %v15432_v31  ;;  %v17950_v56 = vrot.slane %v26364_v35, %v15424_v32  ;;  %v18040_v1 = vrot.slane %v26366_v55, %v15424_v32 }
 0xccd   : > { %v18489_v24 = vrot.slane %v18481_v42, %v26449_v44  ;;  %v15437_v19 = vrot.slane %v26360_v57, %v15436_v33  ;;  %v17958_v37 = vrot.slane %v26364_v35, %v15432_v31  ;;  %v17962_v57 = vrot.slane %v26364_v35, %v15436_v33 }
 0xcce   : > { %v18496_v59 = vrot.slane %v18482_v3, %v26449_v44  ;;  %v18048_v34 = vrot.slane %v26366_v55, %v15432_v31  ;;  %v18052_v22 = vrot.slane %v26366_v55, %v15436_v33 }
 0xcd0   : > { %v18497_v5 = vcombine.low %v18489_v24, %v18496_v59 }
 0xcd2   : > { %18535 = vst [vmem:[%s26464_s19] sm:$0xff] %v18497_v5 }
 0xd08   : > { %v17635_v21 = vpop.f32.mrb[48].mxu0 }
 0xd09   : > { %v20942_v36 = vadd.f32 %v17635_v21, %v15425_v30  ;;  %v17721_v25 = vpop.f32.mrb[48].mxu1  ;;  %v17637_v20 = vpop.f32.mrb[49].mxu0 }
 0xd0a   : > { %v20946_v26 = vadd.f32 %v17721_v25, %v15433_v4  ;;  %v20943_v7 = vadd.f32 %v17637_v20, %v15429_v2  ;;  %v17723_v41 = vpop.f32.mrb[49].mxu1  ;;  %v17639_v15 = vpop.f32.mrb[50].mxu0 }
 0xd0b   : > { %v17906_v9 = vmax.f32 %v20942_v36, 0.0  ;;  %v20947_v16 = vadd.f32 %v17723_v41, %v15437_v19  ;;  %v20944_v53 = vadd.f32 %v17639_v15, %v15425_v30  ;;  %v17725_v54 = vpop.f32.mrb[50].mxu1  ;;  %v17641_v40 = vpop.f32.mrb[51].mxu0 }
 0xd0c   : > { %v17908_v45 = vmax.f32 %v20946_v26, 0.0  ;;  %v17907_v23 = vmax.f32 %v20943_v7, 0.0  ;;  %v20948_v58 = vadd.f32 %v17725_v54, %v15433_v4  ;;  %v20945_v8 = vadd.f32 %v17641_v40, %v15429_v2  ;;  %v17727_v51 = vpop.f32.mrb[51].mxu1 }
 0xd0d   : > { %v17909_v29 = vmax.f32 %v20947_v16, 0.0  ;;  %v17918_v50 = vmax.f32 %v20944_v53, 0.0  ;;  %v20949_v62 = vadd.f32 %v17727_v51, %v15437_v19  ;;  %v17995_v6 = vmul.f32 %v17950_v56, %v17906_v9 }
 0xd0e   : > { %v17920_v61 = vmax.f32 %v20948_v58, 0.0  ;;  %v17919_v52 = vmax.f32 %v20945_v8, 0.0  ;;  %v17997_v43 = vmul.f32 %v17958_v37, %v17908_v45  ;;  %v17996_v35 = vmul.f32 %v17954_v18, %v17907_v23 }
 0xd0f   : > { %v18007_v48 = vmul.f32 %v17950_v56, %v17918_v50  ;;  %v17921_v60 = vmax.f32 %v20949_v62, 0.0  ;;  %v17998_v47 = vmul.f32 %v17962_v57, %v17909_v29  ;;  %v18085_v27 = vadd.f32 %v18040_v1, %v17995_v6 }
 0xd10   : > { %v18009_v14 = vmul.f32 %v17958_v37, %v17920_v61  ;;  %v18008_v49 = vmul.f32 %v17954_v18, %v17919_v52  ;;  %v18087_v42 = vadd.f32 %v18048_v34, %v17997_v43  ;;  %v18086_v12 = vadd.f32 %v18044_v39, %v17996_v35 }
 0xd11   : > { %v18097_v46 = vadd.f32 %v18040_v1, %v18007_v48  ;;  %v18010_v0 = vmul.f32 %v17962_v57, %v17921_v60  ;;  %v18088_v59 = vadd.f32 %v18052_v22, %v17998_v47 }
 0xd12   : > { %v18099_v28 = vadd.f32 %v18048_v34, %v18009_v14  ;;  %v18098_v38 = vadd.f32 %v18044_v39, %v18008_v49 }
 0xd13   : > { %v18138_v3 = vsel %vm11116_vm9, %v18097_v46, 0.0  ;;  %v18100_v24 = vadd.f32 %v18052_v22, %v18010_v0 }
 0xd14   : > { %v18139_v5 = vadd.f32 %v18138_v3, %v18085_v27  ;;  %v18154_v32 = vsel %vm11116_vm9, %v18099_v28, 0.0  ;;  %v18146_v31 = vsel %vm11116_vm9, %v18098_v38, 0.0 }
 0xd15   : > { %v18155_v63 = vadd.f32 %v18154_v32, %v18087_v42  ;;  %v18147_v55 = vadd.f32 %v18146_v31, %v18086_v12  ;;  %v18162_v33 = vsel %vm11116_vm9, %v18100_v24, 0.0 }
 0xd16   : > { %v18140_v30 = vrot.slane %v18139_v5, 4  ;;  %v18163_v4 = vadd.f32 %v18162_v33, %v18088_v59 }
 0xd17   : > { %v18156_v2 = vrot.slane %v18155_v63, 4  ;;  %v18148_v19 = vrot.slane %v18147_v55, 4 }
 0xd18   : > { %v18141_v21 = vadd.f32 %v18140_v30, %v18139_v5  ;;  %v18164_v36 = vrot.slane %v18163_v4, 4 }
 0xd19   : > { %v18157_v56 = vadd.f32 %v18156_v2, %v18155_v63  ;;  %v18149_v1 = vadd.f32 %v18148_v19, %v18147_v55 }
 0xd1a   : > { %v18142_v25 = vrot.slane %v18141_v21, 2  ;;  %v18165_v20 = vadd.f32 %v18164_v36, %v18163_v4 }
 0xd1b   : > { %v18158_v26 = vrot.slane %v18157_v56, 2  ;;  %v18150_v37 = vrot.slane %v18149_v1, 2 }
 0xd1c   : > { %v18143_v7 = vadd.f32 %v18142_v25, %v18141_v21  ;;  %v18166_v18 = vrot.slane %v18165_v20, 2 }
 0xd1d   : > { %v18159_v41 = vadd.f32 %v18158_v26, %v18157_v56  ;;  %v18151_v15 = vadd.f32 %v18150_v37, %v18149_v1 }
 0xd1e   : > { %v18144_v9 = vrot.slane %v18143_v7, 1  ;;  %v18167_v16 = vadd.f32 %v18166_v18, %v18165_v20 }
 0xd1f   : > { %v18160_v57 = vrot.slane %v18159_v41, 1  ;;  %v18152_v53 = vrot.slane %v18151_v15, 1 }
 0xd20   : > { %v18145_v54 = vadd.f32 %v18144_v9, %v18143_v7  ;;  %v18168_v40 = vrot.slane %v18167_v16, 1 }
 0xd21   : > { %v18161_v45 = vadd.f32 %v18160_v57, %v18159_v41  ;;  %v18153_v23 = vadd.f32 %v18152_v53, %v18151_v15 }
 0xd22   : > { %v26487_v58 = vmul.f32 0.1, %v18145_v54  ;;  %v18169_v8 = vadd.f32 %v18168_v40, %v18167_v16 }
 0xd23   : > { %v26489_v51 = vmul.f32 0.1, %v18161_v45  ;;  %v26491_v34 = vmul.f32 0.1, %v18153_v23 }
 0xd24   : > { %v18219_v29 = vsub.f32 %v18085_v27, %v26487_v58  ;;  %v18231_v50 = vsub.f32 %v18097_v46, %v26487_v58  ;;  %v26495_v62 = vmul.f32 0.1, %v18169_v8 }
 0xd25   : > { %v18221_v6 = vsub.f32 %v18087_v42, %v26489_v51  ;;  %v18233_v39 = vsub.f32 %v18099_v28, %v26489_v51  ;;  %v18220_v61 = vsub.f32 %v18086_v12, %v26491_v34  ;;  %v18232_v52 = vsub.f32 %v18098_v38, %v26491_v34 }
 0xd26   : > { %v18243_v43 = vmul.f32 %v18219_v29, %v18219_v29  ;;  %v18255_v35 = vmul.f32 %v18231_v50, %v18231_v50  ;;  %v18222_v48 = vsub.f32 %v18088_v59, %v26495_v62  ;;  %v18234_v60 = vsub.f32 %v18100_v24, %v26495_v62 }
 0xd27   : > { %v18245_v47 = vmul.f32 %v18221_v6, %v18221_v6  ;;  %v18257_v22 = vmul.f32 %v18233_v39, %v18233_v39  ;;  %v18244_v14 = vmul.f32 %v18220_v61, %v18220_v61  ;;  %v18256_v49 = vmul.f32 %v18232_v52, %v18232_v52 }
 0xd28   : > { %v18295_v46 = vsel %vm11116_vm9, %v18255_v35, 0.0  ;;  %v18246_v0 = vmul.f32 %v18222_v48, %v18222_v48  ;;  %v18258_v27 = vmul.f32 %v18234_v60, %v18234_v60 }
 0xd29   : > { %v18296_v42 = vadd.f32 %v18295_v46, %v18243_v43  ;;  %v18311_v28 = vsel %vm11116_vm9, %v18257_v22, 0.0  ;;  %v18303_v12 = vsel %vm11116_vm9, %v18256_v49, 0.0 }
 0xd2a   : > { %v18312_v38 = vadd.f32 %v18311_v28, %v18245_v47  ;;  %v18304_v3 = vadd.f32 %v18303_v12, %v18244_v14  ;;  %v18319_v5 = vsel %vm11116_vm9, %v18258_v27, 0.0 }
 0xd2b   : > { %v18297_v59 = vrot.slane %v18296_v42, 4  ;;  %v18320_v32 = vadd.f32 %v18319_v5, %v18246_v0 }
 0xd2c   : > { %v18313_v24 = vrot.slane %v18312_v38, 4  ;;  %v18305_v31 = vrot.slane %v18304_v3, 4 }
 0xd2d   : > { %v18298_v63 = vadd.f32 %v18297_v59, %v18296_v42  ;;  %v18321_v55 = vrot.slane %v18320_v32, 4 }
 0xd2e   : > { %v18314_v33 = vadd.f32 %v18313_v24, %v18312_v38  ;;  %v18306_v30 = vadd.f32 %v18305_v31, %v18304_v3  ;;  %v18018_v31 = vld [vmem:[#allocation25 + $0x11] ss:$2 sm:$0xf] }
 0xd2f   : > { %v18299_v4 = vrot.slane %v18298_v63, 2  ;;  %v18322_v2 = vadd.f32 %v18321_v55, %v18320_v32  ;;  %v15403_v32 = vld [vmem:[#allocation23 + $0x8] sm:$0xf] }
 0xd30   : > { %v18315_v19 = vrot.slane %v18314_v33, 2  ;;  %v18307_v21 = vrot.slane %v18306_v30, 2  ;;  %v15441_v24 = vrot.slane %v15403_v32, %v25812_v10  ;;  %v15445_v55 = vrot.slane %v15403_v32, %v25826_v11 }
 0xd31   : > { %v18300_v36 = vadd.f32 %v18299_v4, %v18298_v63  ;;  %v18323_v56 = vrot.slane %v18322_v2, 2  ;;  %v15449_v63 = vrot.slane %v15403_v32, %v25819_v17 }
 0xd32   : > { %v18316_v1 = vadd.f32 %v18315_v19, %v18314_v33  ;;  %v18308_v25 = vadd.f32 %v18307_v21, %v18306_v30  ;;  %v15453_v33 = vrot.slane %v15403_v32, %v25829_v13 }
 0xd33   : > { %v18301_v20 = vrot.slane %v18300_v36, 1  ;;  %v18324_v26 = vadd.f32 %v18323_v56, %v18322_v2  ;;  %v18056_v2 = vrot.slane %v18018_v31, %v25812_v10 }
 0xd34   : > { %v18317_v37 = vrot.slane %v18316_v1, 1  ;;  %v18309_v7 = vrot.slane %v18308_v25, 1 }
 0xd35   : > { %v18302_v18 = vadd.f32 %v18301_v20, %v18300_v36  ;;  %v18325_v41 = vrot.slane %v18324_v26, 1 }
 0xd36   : > { %v18318_v15 = vadd.f32 %v18317_v37, %v18316_v1  ;;  %v18310_v9 = vadd.f32 %v18309_v7, %v18308_v25 }
 0xd37   : > { %v18364_v16 = vmul.f32 0.11111111, %v18302_v18  ;;  %v18326_v54 = vadd.f32 %v18325_v41, %v18324_v26 }
 0xd38   : > { %v18366_v57 = vmul.f32 0.11111111, %v18318_v15  ;;  %v18365_v53 = vmul.f32 0.11111111, %v18310_v9 }
 0xd39   : > { %24634 = vrsqrt.f32 %v18364_v16  ;;  %v18367_v40 = vmul.f32 0.11111111, %v18326_v54  ;;  %vm18402_vm3 = vcmp.eq.f32.partialorder %v18364_v16, inf  ;;  %vm18404_vm4 = vcmp.eq.f32.partialorder %v18364_v16, 0.0 }
 0xd3a   : > { %24636 = vrsqrt.f32 %v18366_v57  ;;  %v18405_v50 = vand.u32 2147483648, %v18364_v16  ;;  %vm18416_vm5 = vcmp.eq.f32.partialorder %v18366_v57, inf  ;;  %vm18418_vm6 = vcmp.eq.f32.partialorder %v18366_v57, 0.0 }
 0xd3b   : > { %24638 = vrsqrt.f32 %v18365_v53  ;;  %v18419_v61 = vand.u32 2147483648, %v18366_v57  ;;  %vm18409_vm7 = vcmp.eq.f32.partialorder %v18365_v53, inf  ;;  %v18412_v48 = vand.u32 2147483648, %v18365_v53 }
 0xd3c   : > { %24640 = vrsqrt.f32 %v18367_v40  ;;  %vm18411_vm8 = vcmp.eq.f32.partialorder %v18365_v53, 0.0  ;;  %vm18423_vm10 = vcmp.eq.f32.partialorder %v18367_v40, inf  ;;  %v18426_v42 = vand.u32 2147483648, %v18367_v40 }
 0xd3d   : > { %vm18425_vm12 = vcmp.eq.f32.partialorder %v18367_v40, 0.0 }
 0xd43   : > { %v24635_v45 = vpop.eup %24634 }
 0xd44   : > { %v24637_v23 = vpop.eup %24636  ;;  %v18401_v8 = vmul.f32 %v24635_v45, %v18364_v16 }
 0xd45   : > { %v24639_v29 = vpop.eup %24638  ;;  %v18415_v6 = vmul.f32 %v24637_v23, %v18366_v57 }
 0xd46   : > { %v18403_v39 = vsel %vm18402_vm3, %v18364_v16, %v18401_v8  ;;  %v18408_v52 = vmul.f32 %v24639_v29, %v18365_v53  ;;  %v24641_v60 = vpop.eup %24640 }
 0xd47   : > { %v18406_v43 = vsel %vm18404_vm4, %v18405_v50, %v18403_v39  ;;  %v18417_v35 = vsel %vm18416_vm5, %v18366_v57, %v18415_v6  ;;  %v18422_v0 = vmul.f32 %v24641_v60, %v18367_v40  ;;  %v18060_v50 = vrot.slane %v18018_v31, %v25826_v11 }
 0xd48   : > { %v18461_v47 = vsel %vm18456_vm11, %v26487_v58, %v18406_v43  ;;  %v18420_v22 = vsel %vm18418_vm6, %v18419_v61, %v18417_v35  ;;  %v18410_v14 = vsel %vm18409_vm7, %v18365_v53, %v18408_v52  ;;  %v18068_v60 = vrot.slane %v18018_v31, %v25829_v13 }
 0xd49   : > { %v18463_v49 = vsel %vm18456_vm11, %v26489_v51, %v18420_v22  ;;  %v18413_v46 = vsel %vm18411_vm8, %v18412_v48, %v18410_v14  ;;  %v18424_v12 = vsel %vm18423_vm10, %v18367_v40, %v18422_v0  ;;  %v18064_v40 = vrot.slane %v18018_v31, %v25819_v17 }
 0xd4a   : > { %v18462_v27 = vsel %vm18456_vm11, %v26491_v34, %v18413_v46  ;;  %v18427_v38 = vsel %vm18425_vm12, %v18426_v42, %v18424_v12  ;;  %v17928_v34 = vld [vmem:[#allocation25 + $0x10] ss:$2 sm:$0xf] }
 0xd4b   : > { %v18498_v28 = vcombine.low %v18461_v47, %v18462_v27  ;;  %v18464_v58 = vsel %vm18456_vm11, %v26495_v62, %v18427_v38  ;;  %v17966_v4 = vrot.slane %v17928_v34, %v25812_v10  ;;  %v17974_v56 = vrot.slane %v17928_v34, %v25819_v17 }
 0xd4c   : > { %v18499_v3 = vcombine.low %v18463_v49, %v18464_v58  ;;  %v17970_v25 = vrot.slane %v17928_v34, %v25826_v11  ;;  %v17978_v18 = vrot.slane %v17928_v34, %v25829_v13 }
 0xd4d   : > { %v18506_v5 = vrot.slane %v18498_v28, %v26449_v44 }
 0xd4e   : > { %v18513_v59 = vrot.slane %v18499_v3, %v26449_v44 }
 0xd50   : > { %v18514_v51 = vcombine.low %v18506_v5, %v18513_v59 }
 0xd52   : > { %18536 = vst [vmem:[%s26464_s19 + $0x8] sm:$0xff] %v18514_v51 }
 0xd88   : > { %v17807_v30 = vpop.f32.mrb[52].mxu0 }
 0xd89   : > { %v20950_v62 = vadd.f32 %v17807_v30, %v15441_v24  ;;  %v17893_v19 = vpop.f32.mrb[52].mxu1  ;;  %v17809_v21 = vpop.f32.mrb[53].mxu0 }
 0xd8a   : > { %v20954_v36 = vadd.f32 %v17893_v19, %v15449_v63  ;;  %v20951_v1 = vadd.f32 %v17809_v21, %v15445_v55  ;;  %v17895_v20 = vpop.f32.mrb[53].mxu1  ;;  %v17811_v26 = vpop.f32.mrb[54].mxu0 }
 0xd8b   : > { %v17910_v37 = vmax.f32 %v20950_v62, 0.0  ;;  %v20955_v7 = vadd.f32 %v17895_v20, %v15453_v33  ;;  %v20952_v41 = vadd.f32 %v17811_v26, %v15441_v24  ;;  %v17897_v15 = vpop.f32.mrb[54].mxu1  ;;  %v17813_v9 = vpop.f32.mrb[55].mxu0 }
 0xd8c   : > { %v17912_v16 = vmax.f32 %v20954_v36, 0.0  ;;  %v17911_v57 = vmax.f32 %v20951_v1, 0.0  ;;  %v20956_v10 = vadd.f32 %v17897_v15, %v15449_v63  ;;  %v20953_v53 = vadd.f32 %v17813_v9, %v15445_v55  ;;  %v17899_v54 = vpop.f32.mrb[55].mxu1 }
 0xd8d   : > { %v17913_v45 = vmax.f32 %v20955_v7, 0.0  ;;  %v17922_v23 = vmax.f32 %v20952_v41, 0.0  ;;  %v20957_v8 = vadd.f32 %v17899_v54, %v15453_v33  ;;  %v17999_v29 = vmul.f32 %v17966_v4, %v17910_v37 }
 0xd8e   : > { %v17924_v6 = vmax.f32 %v20956_v10, 0.0  ;;  %v17923_v39 = vmax.f32 %v20953_v53, 0.0  ;;  %v18001_v61 = vmul.f32 %v17974_v56, %v17912_v16  ;;  %v18000_v52 = vmul.f32 %v17970_v25, %v17911_v57 }
 0xd8f   : > { %v18011_v43 = vmul.f32 %v17966_v4, %v17922_v23  ;;  %v17925_v35 = vmax.f32 %v20957_v8, 0.0  ;;  %v18002_v48 = vmul.f32 %v17978_v18, %v17913_v45  ;;  %v18089_v17 = vadd.f32 %v18056_v2, %v17999_v29 }
 0xd90   : > { %v18013_v47 = vmul.f32 %v17974_v56, %v17924_v6  ;;  %v18012_v22 = vmul.f32 %v17970_v25, %v17923_v39  ;;  %v18091_v27 = vadd.f32 %v18064_v40, %v18001_v61  ;;  %v18090_v42 = vadd.f32 %v18060_v50, %v18000_v52 }
 0xd91   : > { %v18101_v14 = vadd.f32 %v18056_v2, %v18011_v43  ;;  %v18014_v49 = vmul.f32 %v17978_v18, %v17925_v35  ;;  %v18092_v12 = vadd.f32 %v18068_v60, %v18002_v48 }
 0xd92   : > { %v18103_v46 = vadd.f32 %v18064_v40, %v18013_v47  ;;  %v18102_v0 = vadd.f32 %v18060_v50, %v18012_v22 }
 0xd93   : > { %v18170_v11 = vsel %vm11116_vm9, %v18101_v14, 0.0  ;;  %v18104_v28 = vadd.f32 %v18068_v60, %v18014_v49 }
 0xd94   : > { %v18171_v38 = vadd.f32 %v18170_v11, %v18089_v17  ;;  %v18186_v58 = vsel %vm11116_vm9, %v18103_v46, 0.0  ;;  %v18178_v3 = vsel %vm11116_vm9, %v18102_v0, 0.0 }
 0xd95   : > { %v18187_v5 = vadd.f32 %v18186_v58, %v18091_v27  ;;  %v18179_v13 = vadd.f32 %v18178_v3, %v18090_v42  ;;  %v18194_v59 = vsel %vm11116_vm9, %v18104_v28, 0.0 }
 0xd96   : > { %v18172_v51 = vrot.slane %v18171_v38, 4  ;;  %v18195_v32 = vadd.f32 %v18194_v59, %v18092_v12 }
 0xd97   : > { %v18188_v24 = vrot.slane %v18187_v5, 4  ;;  %v18180_v34 = vrot.slane %v18179_v13, 4 }
 0xd98   : > { %v18173_v31 = vadd.f32 %v18172_v51, %v18171_v38  ;;  %v18196_v63 = vrot.slane %v18195_v32, 4 }
 0xd99   : > { %v18189_v55 = vadd.f32 %v18188_v24, %v18187_v5  ;;  %v18181_v33 = vadd.f32 %v18180_v34, %v18179_v13 }
 0xd9a   : > { %v18174_v30 = vrot.slane %v18173_v31, 2  ;;  %v18197_v62 = vadd.f32 %v18196_v63, %v18195_v32 }
 0xd9b   : > { %v18190_v4 = vrot.slane %v18189_v55, 2  ;;  %v18182_v2 = vrot.slane %v18181_v33, 2 }
 0xd9c   : > { %v18175_v19 = vadd.f32 %v18174_v30, %v18173_v31  ;;  %v18198_v21 = vrot.slane %v18197_v62, 2 }
 0xd9d   : > { %v18191_v36 = vadd.f32 %v18190_v4, %v18189_v55  ;;  %v18183_v56 = vadd.f32 %v18182_v2, %v18181_v33 }
 0xd9e   : > { %v18176_v1 = vrot.slane %v18175_v19, 1  ;;  %v18199_v25 = vadd.f32 %v18198_v21, %v18197_v62 }
 0xd9f   : > { %v18192_v20 = vrot.slane %v18191_v36, 1  ;;  %v18184_v26 = vrot.slane %v18183_v56, 1 }
 0xda0   : > { %v18177_v37 = vadd.f32 %v18176_v1, %v18175_v19  ;;  %v18200_v7 = vrot.slane %v18199_v25, 1 }
 0xda1   : > { %v18193_v18 = vadd.f32 %v18192_v20, %v18191_v36  ;;  %v18185_v41 = vadd.f32 %v18184_v26, %v18183_v56 }
 0xda2   : > { %v26534_v15 = vmul.f32 0.1, %v18177_v37  ;;  %v18201_v9 = vadd.f32 %v18200_v7, %v18199_v25 }
 0xda3   : > { %v26536_v16 = vmul.f32 0.1, %v18193_v18  ;;  %v26538_v57 = vmul.f32 0.1, %v18185_v41 }
 0xda4   : > { %v18223_v10 = vsub.f32 %v18089_v17, %v26534_v15  ;;  %v18235_v53 = vsub.f32 %v18101_v14, %v26534_v15  ;;  %v26542_v54 = vmul.f32 0.1, %v18201_v9 }
 0xda5   : > { %v18225_v40 = vsub.f32 %v18091_v27, %v26536_v16  ;;  %v18237_v45 = vsub.f32 %v18103_v46, %v26536_v16  ;;  %v18224_v23 = vsub.f32 %v18090_v42, %v26538_v57  ;;  %v18236_v8 = vsub.f32 %v18102_v0, %v26538_v57 }
 0xda6   : > { %v18247_v29 = vmul.f32 %v18223_v10, %v18223_v10  ;;  %v18259_v50 = vmul.f32 %v18235_v53, %v18235_v53  ;;  %v18226_v6 = vsub.f32 %v18092_v12, %v26542_v54  ;;  %v18238_v39 = vsub.f32 %v18104_v28, %v26542_v54 }
 0xda7   : > { %v18249_v61 = vmul.f32 %v18225_v40, %v18225_v40  ;;  %v18261_v52 = vmul.f32 %v18237_v45, %v18237_v45  ;;  %v18248_v43 = vmul.f32 %v18224_v23, %v18224_v23  ;;  %v18260_v35 = vmul.f32 %v18236_v8, %v18236_v8 }
 0xda8   : > { %v18327_v48 = vsel %vm11116_vm9, %v18259_v50, 0.0  ;;  %v18250_v60 = vmul.f32 %v18226_v6, %v18226_v6  ;;  %v18262_v47 = vmul.f32 %v18238_v39, %v18238_v39 }
 0xda9   : > { %v18328_v22 = vadd.f32 %v18327_v48, %v18247_v29  ;;  %v18343_v14 = vsel %vm11116_vm9, %v18261_v52, 0.0  ;;  %v18335_v49 = vsel %vm11116_vm9, %v18260_v35, 0.0 }
 0xdaa   : > { %v18344_v17 = vadd.f32 %v18343_v14, %v18249_v61  ;;  %v18336_v46 = vadd.f32 %v18335_v49, %v18248_v43  ;;  %v18351_v0 = vsel %vm11116_vm9, %v18262_v47, 0.0 }
 0xdab   : > { %v18329_v27 = vrot.slane %v18328_v22, 4  ;;  %v18352_v42 = vadd.f32 %v18351_v0, %v18250_v60 }
 0xdac   : > { %v18345_v11 = vrot.slane %v18344_v17, 4  ;;  %v18337_v28 = vrot.slane %v18336_v46, 4 }
 0xdad   : > { %v18330_v12 = vadd.f32 %v18329_v27, %v18328_v22  ;;  %v18353_v38 = vrot.slane %v18352_v42, 4 }
 0xdae   : > { %v18346_v58 = vadd.f32 %v18345_v11, %v18344_v17  ;;  %v18338_v3 = vadd.f32 %v18337_v28, %v18336_v46 }
 0xdaf   : > { %v18331_v5 = vrot.slane %v18330_v12, 2  ;;  %v18354_v13 = vadd.f32 %v18353_v38, %v18352_v42 }
 0xdb0   : > { %v18347_v59 = vrot.slane %v18346_v58, 2  ;;  %v18339_v51 = vrot.slane %v18338_v3, 2 }
 0xdb1   : > { %v18332_v32 = vadd.f32 %v18331_v5, %v18330_v12  ;;  %v18355_v24 = vrot.slane %v18354_v13, 2 }
 0xdb2   : > { %v18348_v34 = vadd.f32 %v18347_v59, %v18346_v58  ;;  %v18340_v31 = vadd.f32 %v18339_v51, %v18338_v3 }
 0xdb3   : > { %v18333_v63 = vrot.slane %v18332_v32, 1  ;;  %v18356_v55 = vadd.f32 %v18355_v24, %v18354_v13 }
 0xdb4   : > { %v18349_v33 = vrot.slane %v18348_v34, 1  ;;  %v18341_v30 = vrot.slane %v18340_v31, 1 }
 0xdb5   : > { %v18334_v62 = vadd.f32 %v18333_v63, %v18332_v32  ;;  %v18357_v4 = vrot.slane %v18356_v55, 1 }
 0xdb6   : > { %v18350_v2 = vadd.f32 %v18349_v33, %v18348_v34  ;;  %v18342_v19 = vadd.f32 %v18341_v30, %v18340_v31 }
 0xdb7   : > { %v18368_v21 = vmul.f32 0.11111111, %v18334_v62  ;;  %v18358_v1 = vadd.f32 %v18357_v4, %v18356_v55 }
 0xdb8   : > { %v18370_v36 = vmul.f32 0.11111111, %v18350_v2  ;;  %v18369_v56 = vmul.f32 0.11111111, %v18342_v19 }
 0xdb9   : > { %24642 = vrsqrt.f32 %v18368_v21  ;;  %v18371_v25 = vmul.f32 0.11111111, %v18358_v1  ;;  %vm18430_vm9 = vcmp.eq.f32.partialorder %v18368_v21, inf  ;;  %vm18432_vm13 = vcmp.eq.f32.partialorder %v18368_v21, 0.0 }
 0xdba   : > { %24644 = vrsqrt.f32 %v18370_v36  ;;  %v18433_v18 = vand.u32 2147483648, %v18368_v21  ;;  %vm18444_vm14 = vcmp.eq.f32.partialorder %v18370_v36, inf  ;;  %vm18446_vm15 = vcmp.eq.f32.partialorder %v18370_v36, 0.0 }
 0xdbb   : > { %24646 = vrsqrt.f32 %v18369_v56  ;;  %v18447_v10 = vand.u32 2147483648, %v18370_v36  ;;  %vm18437_vm0 = vcmp.eq.f32.partialorder %v18369_v56, inf  ;;  %v18440_v23 = vand.u32 2147483648, %v18369_v56 }
 0xdbc   : > { %24648 = vrsqrt.f32 %v18371_v25  ;;  %vm18439_vm1 = vcmp.eq.f32.partialorder %v18369_v56, 0.0  ;;  %vm18451_vm2 = vcmp.eq.f32.partialorder %v18371_v25, inf  ;;  %v18454_v35 = vand.u32 2147483648, %v18371_v25 }
 0xdbd   : > { %vm18453_vm3 = vcmp.eq.f32.partialorder %v18371_v25, 0.0 }
 0xdc3   : > { %v24643_v20 = vpop.eup %24642 }
 0xdc4   : > { %v24645_v26 = vpop.eup %24644  ;;  %v18429_v37 = vmul.f32 %v24643_v20, %v18368_v21 }
 0xdc5   : > { %v24647_v7 = vpop.eup %24646  ;;  %v18443_v41 = vmul.f32 %v24645_v26, %v18370_v36 }
 0xdc6   : > { %v18431_v9 = vsel %vm18430_vm9, %v18368_v21, %v18429_v37  ;;  %v18436_v53 = vmul.f32 %v24647_v7, %v18369_v56  ;;  %v24649_v8 = vpop.eup %24648 }
 0xdc7   : > { %v18434_v40 = vsel %vm18432_vm13, %v18433_v18, %v18431_v9  ;;  %v18445_v45 = vsel %vm18444_vm14, %v18370_v36, %v18443_v41  ;;  %v18450_v52 = vmul.f32 %v24649_v8, %v18371_v25 }
 0xdc8   : > { %v18465_v29 = vsel %vm18456_vm11, %v26534_v15, %v18434_v40  ;;  %v18448_v50 = vsel %vm18446_vm15, %v18447_v10, %v18445_v45  ;;  %v18438_v6 = vsel %vm18437_vm0, %v18369_v56, %v18436_v53 }
 0xdc9   : > { %v18467_v39 = vsel %vm18456_vm11, %v26536_v16, %v18448_v50  ;;  %v18441_v61 = vsel %vm18439_vm1, %v18440_v23, %v18438_v6  ;;  %v18452_v60 = vsel %vm18451_vm2, %v18371_v25, %v18450_v52 }
 0xdca   : > { %v18466_v43 = vsel %vm18456_vm11, %v26538_v57, %v18441_v61  ;;  %v18455_v15 = vsel %vm18453_vm3, %v18454_v35, %v18452_v60 }
 0xdcb   : > { %v18515_v48 = vcombine.low %v18465_v29, %v18466_v43  ;;  %v18468_v47 = vsel %vm18456_vm11, %v26542_v54, %v18455_v15 }
 0xdcc   : > { %v18516_v22 = vcombine.low %v18467_v39, %v18468_v47 }
 0xdcd   : > { %v18523_v16 = vrot.slane %v18515_v48, %v26449_v44 }
 0xdce   : > { %v18530_v14 = vrot.slane %v18516_v22, %v26449_v44 }
 0xdd0   : > { %v18531_v57 = vcombine.low %v18523_v16, %v18530_v14 }
 0xdd2   : > { %18537 = vst [vmem:[%s26464_s19 + $0x10] sm:$0xff] %v18531_v57 }
 0xdd3   : > { %25083 = shalt.err (!%p25080_p7)
}
 0xdd4   : > { %s25084_s0 = scalar_lea.hbm %s26569_s27, 384  ;;  %s25088_s24 = scalar_lea.hbm %s26691_s17, 768 }
 0xdd5   : > { %p25085_p8 = scmp.ne.s32.totalorder %s26569_s27, %s25084_s0  ;;  %p25089_p1 = scmp.lt.u32.totalorder %s26569_s27, %s26691_s17 }
 0xdd6   : > { %p25090_p0 = scmp.lt.u32.totalorder %s25088_s24, %s25084_s0  ;;  %p25092_p5 = scmp.lt.u32.totalorder %s25084_s0, %s26569_s27 }
 0xdd7   : > { %p25086_p11 = pnand %p25085_p8, %p26692_p9 }
 0xdd8   : > { %p25091_p6 = por %p25090_p0, %p25089_p1 }
 0xdd9   : > { %p25087_p13 = pneg %p25086_p11 }
 0xdda   : > { %p25093_p12 = por %p25092_p5, %p25091_p6 }
 0xddc   : > { %p25094_p10 = pnand %p25093_p12, %p25087_p13 }
 0xdde   : > { %25097 = shalt.err (!%p25094_p10)
}
 0xddf   : > { %21365 = dma.vmem_to_hbm [thread:$0]  (%p26692_p9), %s26571_s6, 384, %s26569_s27, %s18539_s29  }
 0xde0 PF: > { %s26693_s19 = sld [smem:[#allocation39_spill]]  ;;  %s26694_s30 = sld [smem:[#allocation36_spill]] }
 0xde1   : > { %s26695_s20 = sld [smem:[#allocation43_spill]] }
 0xde6   : > { %p21447_p2 = scmp.ge.s32.totalorder %s26693_s19, 2  ;;  %s18565_s21 = sand.u32 1, %s26694_s30  }
 0xde7   : > { %p26696_p3 = scmp.ne.s32.totalorder %s26695_s20, 0  ;;  %s18566_s16 = scalar_lea.sflag [#allocation4], %s18565_s21 }
 0xde9   : > { %p21414_p4 = pnand %p21447_p2, %p26696_p3 }
 0xdeb   : > { %25147 = dma.done.wait (!%p21414_p4), %s18566_s16, 384  }
 0xdec   : > { %25149 = vsyncadd (!%p21414_p4), %s18566_s16, 4294966912  ;;  %s26697_s24 = sld [smem:[#allocation40_spill]]  ;;  %s26698_s21 = sld [smem:[#allocation37_spill]] }
 0xded   : > { %s26699_s22 = sld [smem:[#allocation38_spill]]  ;;  %s26700_s23 = sld [smem:[#allocation41_spill]] }
 0xdf2   : > { %p34_p7 = scmp.ge.s32.totalorder %s26697_s24, 4  }
 0xdf4   :  { %36 = sbr.rel (!%p34_p7) target bundleno = 17 (0x11), region = 201 }
 0xdfb   :  { %18571 = vsyncpa [#allocation3], 1 }
 0xdfc   :  { %18573 = vsyncpa [#allocation3 + $0x1], 1 }
 0xdfd   :  { %18574 = vsyncpa [#allocation6], 1 }
 0xdfe   :  { %18575 = vsyncpa [#allocation9], 1 }
 0xdff   :  { %18576 = vsyncpa [#allocation12], 1 }
 0xe00   :  { %18577 = vsyncpa [#allocation15], 1 }
 0xe01   :  { %18578 = vsyncpa [#allocation18], 1 }
 0xe02   :  { %18579 = vsyncpa [#allocation21], 1 }
 0xe03   :  { %18580 = vsyncpa [#allocation24], 1 }
 0xe04   :  { %18581 = vsyncpa [#allocation4], 1 }
 0xe05   :  { %18583 = vsyncpa [#allocation4 + $0x1], 1 }

</bundles_post_ra>
